<compile_context>
chip_gen: v7x
topology: tpu7x:2x2x1
jax: 0.10.0
libtpu: 0.0.40
codegen_flags: <defaults>
</compile_context>

<pallas_src>
import jax
import jax.numpy as jnp
from jax.experimental import pallas as pl
from jax.experimental.pallas import tpu as pltpu

CPAD = 128     # lane-dense channel width used through the conv stack
BN_EPS = 1e-5
LRELU = 0.1


def _bn_lrelu(acc, gamma, beta):
    """Training-mode BatchNorm (batch stats, biased var) + LeakyReLU(0.1), f32.

    Stats are accumulated over 128-row chunks so `acc` and `acc*acc` are never
    both live for the full (rows, 128) extent (bounds VMEM/vreg temp pressure)."""
    rows, cp = acc.shape
    chunk = 128 if rows % 128 == 0 else rows
    s = jnp.zeros((1, cp), jnp.float32)
    s2 = jnp.zeros((1, cp), jnp.float32)
    for i in range(rows // chunk):
        c = acc[i * chunk:(i + 1) * chunk, :]
        s = s + jnp.sum(c, axis=0, keepdims=True)
        s2 = s2 + jnp.sum(c * c, axis=0, keepdims=True)
    inv_n = 1.0 / rows
    mean = s * inv_n
    var = jnp.maximum(s2 * inv_n - mean * mean, 0.0)   # single-pass var, clamped
    scale = gamma * jax.lax.rsqrt(var + BN_EPS)
    shift = beta - mean * scale
    y = acc * scale + shift
    return jnp.where(y >= 0.0, y, LRELU * y)


def fused_kernel(lhs1_ref, wc_ref, wf_ref, vec_ref, o_ref, h1p_ref):
    """conv1+bn+lrelu -> conv2+bn+lrelu -> GAP -> fc1+bn1d+lrelu -> fc2, one call.

    vec_ref rows: [g1, be1, g2, be2, fc_g, fc_be, fc2_bias(pad), 0]
    wc_ref rows : [conv1 packed (128) | conv2 tap0..tap8 (9 x 128)]
    wf_ref rows : [fc1 (128) | fc2 out-padded (128)]
    """
    NHW, CP = lhs1_ref.shape
    N, Hp, Wp, _ = h1p_ref.shape
    H, W = Hp - 2, Wp - 2
    HW = H * W

    # ---- conv1: ONE (NHW,128)x(128,128) bf16 MXU matmul (im2col packed in wrapper) ----
    acc1 = jnp.dot(lhs1_ref[...], wc_ref[0:CP, :], preferred_element_type=jnp.float32)
    y1 = _bn_lrelu(acc1, vec_ref[0:1, :], vec_ref[1:2, :])                 # (NHW, CP) f32

    # ---- stage conv2's halo'd input in VMEM: zero only the 4 border strips ----
    zrow = jnp.zeros((N, 1, Wp, CP), h1p_ref.dtype)
    h1p_ref[:, 0:1, :, :] = zrow
    h1p_ref[:, H + 1:H + 2, :, :] = zrow
    zcol = jnp.zeros((N, Hp, 1, CP), h1p_ref.dtype)
    h1p_ref[:, :, 0:1, :] = zcol
    h1p_ref[:, :, W + 1:W + 2, :] = zcol
    h1p_ref[:, 1:H + 1, 1:W + 1, :] = y1.astype(h1p_ref.dtype).reshape(N, H, W, CP)

    # ---- conv2: 9 per-tap K=128 matmuls accumulated in f32 (no im2col concat) ----
    slab = h1p_ref[...]                                                     # one VMEM load
    acc2 = jnp.zeros((NHW, CP), jnp.float32)
    for t in range(9):
        ky, kx = t // 3, t % 3
        tap = slab[:, ky:ky + H, kx:kx + W, :].reshape(NHW, CP)             # bf16
        wt = wc_ref[CP * (1 + t):CP * (2 + t), :]                           # (128,128) bf16
        acc2 = acc2 + jnp.dot(tap, wt, preferred_element_type=jnp.float32)
    y2 = _bn_lrelu(acc2, vec_ref[2:3, :], vec_ref[3:4, :])                  # (NHW, CP) f32

    # ---- global average pool: per-image column sum (no MXU pool matrix) ----
    pooled = jnp.concatenate(
        [jnp.sum(y2[n * HW:(n + 1) * HW, :], axis=0, keepdims=True) for n in range(N)],
        axis=0) * (1.0 / HW)                                                # (N, CP) f32

    # ---- fc head: Linear -> BN1d(batch stats) -> LeakyReLU(0.1) -> Linear (f32) ----
    z = jnp.dot(pooled, wf_ref[0:CP, :], preferred_element_type=jnp.float32)
    inv_b = 1.0 / N
    mean = jnp.sum(z, axis=0, keepdims=True) * inv_b
    var = jnp.maximum(jnp.sum(z * z, axis=0, keepdims=True) * inv_b - mean * mean, 0.0)
    scale = vec_ref[4:5, :] * jax.lax.rsqrt(var + BN_EPS)
    z = z * scale + (vec_ref[5:6, :] - mean * scale)
    z = jnp.where(z >= 0.0, z, LRELU * z)
    o_ref[...] = (jnp.dot(z, wf_ref[CP:2 * CP, :], preferred_element_type=jnp.float32)
                  + vec_ref[6:7, :])


def _fused_call(lhs1, wc, wf, vecs, N, H, W):
    # Single-block call: no grid, every operand is one full block resident in VMEM,
    # so there is no pipelining / double-buffering overhead for the tiny weights.
    vmem = pl.BlockSpec(memory_space=pltpu.MemorySpace.VMEM)
    return pl.pallas_call(
        fused_kernel,
        out_shape=jax.ShapeDtypeStruct((N, CPAD), jnp.float32),
        in_specs=[vmem, vmem, vmem, vmem],
        out_specs=vmem,
        scratch_shapes=[pltpu.VMEM((N, H + 2, W + 2, CPAD), jnp.bfloat16)],  # conv2 halo'd input
    )(lhs1, wc, wf, vecs)


# ----------------------------------------------------------------------------
# Parameters (layouts the kernel expects; padded regions are zero, which keeps
# the dead lanes exactly zero through every layer)
# ----------------------------------------------------------------------------
def init_params(key, in_channels=3):
    taps = 9 * in_channels
    assert taps <= CPAD, "conv1 tap packing needs 9*in_channels <= 128"
    k1, k2, k3, k4, k5 = jax.random.split(key, 5)

    # conv1: Conv2d(Cin,32,3,padding=1) — weight packed as (9*Cin -> 128, 32 -> 128)
    w1 = 0.1 * jax.random.normal(k1, (3, 3, in_channels, 32), jnp.float32)
    w1 = jnp.pad(w1.reshape(taps, 32), ((0, CPAD - taps), (0, CPAD - 32)))
    # conv2: Conv2d(32,64,3,padding=1) — 9 per-tap (128,128) blocks stacked
    w2 = 0.1 * jax.random.normal(k2, (3, 3, 32, 64), jnp.float32)
    w2 = jnp.pad(w2, ((0, 0), (0, 0), (0, CPAD - 32), (0, CPAD - 64))).reshape(9 * CPAD, CPAD)
    wc = jnp.concatenate([w1, w2], axis=0).astype(jnp.bfloat16)             # (1280, 128)

    # fc: Linear(64,128) -> BN1d(128) -> LeakyReLU(0.1) -> Linear(128,64)
    fw1 = jnp.pad(0.1 * jax.random.normal(k3, (64, 128), jnp.float32), ((0, CPAD - 64), (0, 0)))
    fw2 = jnp.pad(0.1 * jax.random.normal(k4, (128, 64), jnp.float32), ((0, 0), (0, CPAD - 64)))
    wf = jnp.concatenate([fw1, fw2], axis=0)                                # (256, 128) f32

    # Per-channel vectors packed into ONE (8,128) f32 operand.
    # Conv biases and the fc1 bias are omitted: bias immediately followed by
    # training-mode BatchNorm is a no-op, so forward semantics are unchanged.
    fb2 = jnp.pad(0.01 * jax.random.normal(k5, (64,), jnp.float32), (0, CPAD - 64))
    ones = jnp.ones((CPAD,), jnp.float32)
    zeros = jnp.zeros((CPAD,), jnp.float32)
    vecs = jnp.stack([ones, zeros,      # bn1 gamma, beta
                      ones, zeros,      # bn2 gamma, beta
                      ones, zeros,      # fc BN1d gamma, beta
                      fb2, zeros])      # fc2 bias (out-padded), spare
    return {"wc": wc, "wf": wf, "vecs": vecs}


def batch_representation_forward(x_nchw, p):
    N, Cin, H, W = x_nchw.shape
    # Wrapper-side prep on the tiny raw input (N,(H+2),(W+2),Cin): NCHW -> NHWC,
    # zero halo, and im2col-pack the 9*Cin conv1 taps into one 128-lane group.
    x = jnp.transpose(x_nchw, (0, 2, 3, 1))
    xp = jnp.pad(x, ((0, 0), (1, 1), (1, 1), (0, 0)))
    patches = [xp[:, ky:ky + H, kx:kx + W, :] for ky in range(3) for kx in range(3)]
    lhs1 = jnp.concatenate(patches, axis=-1).reshape(N * H * W, 9 * Cin)
    lhs1 = jnp.pad(lhs1, ((0, 0), (0, CPAD - 9 * Cin))).astype(jnp.bfloat16)  # (NHW,128)
    feat = _fused_call(lhs1, p["wc"], p["wf"], p["vecs"], N, H, W)            # (N,128)
    return feat[:, :64][:, :, None, None]                                     # (N,64,1,1)


if __name__ == "__main__":
    key = jax.random.PRNGKey(0)
    k_x, k_p = jax.random.split(key)
    x = jax.random.normal(k_x, (2, 3, 16, 16), jnp.float32)   # NCHW, like PyTorch
    params = init_params(k_p, in_channels=3)

    out = jax.block_until_ready(jax.jit(batch_representation_forward)(x, params))

    assert out.shape == (2, 64, 1, 1), out.shape
    assert bool(jnp.all(jnp.isfinite(out)))
    print("KERNEL_OK")
</pallas_src>

<mosaic_0001>
module attributes {stable_mosaic.version = 11 : i64} {
  func.func @fused_kernel(%arg0: memref<512x128xbf16, #tpu.memory_space<vmem>>, %arg1: memref<1280x128xbf16, #tpu.memory_space<vmem>>, %arg2: memref<256x128xf32, #tpu.memory_space<vmem>>, %arg3: memref<8x128xf32, #tpu.memory_space<vmem>>, %arg4: memref<2x128xf32, #tpu.memory_space<vmem>>, %arg5: memref<2x18x18x128xbf16, #tpu.memory_space<vmem>>) attributes {dimension_semantics = [], scalar_prefetch = 0 : i64, scratch_operands = 1 : i64, tpu.core_type = #tpu.core_type<tc>} {
    %c0 = arith.constant 0 : index
    %c0_0 = arith.constant 0 : index
    %0 = vector.load %arg0[%c0, %c0_0] : memref<512x128xbf16, #tpu.memory_space<vmem>>, vector<512x128xbf16>
    %c0_1 = arith.constant 0 : index
    %c0_2 = arith.constant 0 : index
    %1 = vector.load %arg1[%c0_1, %c0_2] : memref<1280x128xbf16, #tpu.memory_space<vmem>>, vector<128x128xbf16>
    %cst = arith.constant dense<0.000000e+00> : vector<512x128xf32>
    %2 = tpu.matmul %0, %1, %cst {dimension_numbers = #tpu.dot_dimension_numbers<[1], [0], [0], [1], [0, 0, 1, 1], [], []>} : vector<512x128xbf16>, vector<128x128xbf16>, vector<512x128xf32> -> vector<512x128xf32>
    %c0_3 = arith.constant 0 : index
    %c0_4 = arith.constant 0 : index
    %3 = vector.load %arg3[%c0_3, %c0_4] : memref<8x128xf32, #tpu.memory_space<vmem>>, vector<1x128xf32>
    %c1 = arith.constant 1 : index
    %c0_5 = arith.constant 0 : index
    %4 = vector.load %arg3[%c1, %c0_5] : memref<8x128xf32, #tpu.memory_space<vmem>>, vector<1x128xf32>
    %cst_6 = arith.constant 0.000000e+00 : f32
    %5 = vector.broadcast %cst_6 : f32 to vector<1x128xf32>
    %cst_7 = arith.constant 0.000000e+00 : f32
    %6 = vector.broadcast %cst_7 : f32 to vector<1x128xf32>
    %7 = vector.extract_strided_slice %2 {offsets = [0, 0], sizes = [128, 128], strides = [1, 1]} : vector<512x128xf32> to vector<128x128xf32>
    %cst_8 = arith.constant dense<0.000000e+00> : vector<128xf32>
    %8 = vector.multi_reduction <add>, %7, %cst_8 [0] : vector<128x128xf32> to vector<128xf32>
    %9 = vector.shape_cast %8 : vector<128xf32> to vector<1x128xf32>
    %10 = arith.addf %5, %9 : vector<1x128xf32>
    %11 = arith.mulf %7, %7 : vector<128x128xf32>
    %cst_9 = arith.constant dense<0.000000e+00> : vector<128xf32>
    %12 = vector.multi_reduction <add>, %11, %cst_9 [0] : vector<128x128xf32> to vector<128xf32>
    %13 = vector.shape_cast %12 : vector<128xf32> to vector<1x128xf32>
    %14 = arith.addf %6, %13 : vector<1x128xf32>
    %15 = vector.extract_strided_slice %2 {offsets = [128, 0], sizes = [128, 128], strides = [1, 1]} : vector<512x128xf32> to vector<128x128xf32>
    %cst_10 = arith.constant dense<0.000000e+00> : vector<128xf32>
    %16 = vector.multi_reduction <add>, %15, %cst_10 [0] : vector<128x128xf32> to vector<128xf32>
    %17 = vector.shape_cast %16 : vector<128xf32> to vector<1x128xf32>
    %18 = arith.addf %10, %17 : vector<1x128xf32>
    %19 = arith.mulf %15, %15 : vector<128x128xf32>
    %cst_11 = arith.constant dense<0.000000e+00> : vector<128xf32>
    %20 = vector.multi_reduction <add>, %19, %cst_11 [0] : vector<128x128xf32> to vector<128xf32>
    %21 = vector.shape_cast %20 : vector<128xf32> to vector<1x128xf32>
    %22 = arith.addf %14, %21 : vector<1x128xf32>
    %23 = vector.extract_strided_slice %2 {offsets = [256, 0], sizes = [128, 128], strides = [1, 1]} : vector<512x128xf32> to vector<128x128xf32>
    %cst_12 = arith.constant dense<0.000000e+00> : vector<128xf32>
    %24 = vector.multi_reduction <add>, %23, %cst_12 [0] : vector<128x128xf32> to vector<128xf32>
    %25 = vector.shape_cast %24 : vector<128xf32> to vector<1x128xf32>
    %26 = arith.addf %18, %25 : vector<1x128xf32>
    %27 = arith.mulf %23, %23 : vector<128x128xf32>
    %cst_13 = arith.constant dense<0.000000e+00> : vector<128xf32>
    %28 = vector.multi_reduction <add>, %27, %cst_13 [0] : vector<128x128xf32> to vector<128xf32>
    %29 = vector.shape_cast %28 : vector<128xf32> to vector<1x128xf32>
    %30 = arith.addf %22, %29 : vector<1x128xf32>
    %31 = vector.extract_strided_slice %2 {offsets = [384, 0], sizes = [128, 128], strides = [1, 1]} : vector<512x128xf32> to vector<128x128xf32>
    %cst_14 = arith.constant dense<0.000000e+00> : vector<128xf32>
    %32 = vector.multi_reduction <add>, %31, %cst_14 [0] : vector<128x128xf32> to vector<128xf32>
    %33 = vector.shape_cast %32 : vector<128xf32> to vector<1x128xf32>
    %34 = arith.addf %26, %33 : vector<1x128xf32>
    %35 = arith.mulf %31, %31 : vector<128x128xf32>
    %cst_15 = arith.constant dense<0.000000e+00> : vector<128xf32>
    %36 = vector.multi_reduction <add>, %35, %cst_15 [0] : vector<128x128xf32> to vector<128xf32>
    %37 = vector.shape_cast %36 : vector<128xf32> to vector<1x128xf32>
    %38 = arith.addf %30, %37 : vector<1x128xf32>
    %cst_16 = arith.constant 0.001953125 : f32
    %39 = vector.broadcast %cst_16 : f32 to vector<1x128xf32>
    %40 = arith.mulf %34, %39 : vector<1x128xf32>
    %cst_17 = arith.constant 0.001953125 : f32
    %41 = vector.broadcast %cst_17 : f32 to vector<1x128xf32>
    %42 = arith.mulf %38, %41 : vector<1x128xf32>
    %43 = arith.mulf %40, %40 : vector<1x128xf32>
    %44 = arith.subf %42, %43 : vector<1x128xf32>
    %cst_18 = arith.constant 0.000000e+00 : f32
    %45 = vector.broadcast %cst_18 : f32 to vector<1x128xf32>
    %46 = arith.maximumf %44, %45 : vector<1x128xf32>
    %cst_19 = arith.constant 9.99999974E-6 : f32
    %47 = vector.broadcast %cst_19 : f32 to vector<1x128xf32>
    %48 = arith.addf %46, %47 : vector<1x128xf32>
    %49 = math.rsqrt %48 : vector<1x128xf32>
    %50 = arith.mulf %3, %49 : vector<1x128xf32>
    %51 = arith.mulf %40, %50 : vector<1x128xf32>
    %52 = arith.subf %4, %51 : vector<1x128xf32>
    %53 = vector.broadcast %50 : vector<1x128xf32> to vector<512x128xf32>
    %54 = arith.mulf %2, %53 : vector<512x128xf32>
    %55 = vector.broadcast %52 : vector<1x128xf32> to vector<512x128xf32>
    %56 = arith.addf %54, %55 : vector<512x128xf32>
    %cst_20 = arith.constant 0.000000e+00 : f32
    %57 = vector.broadcast %cst_20 : f32 to vector<512x128xf32>
    %58 = arith.cmpf oge, %56, %57 : vector<512x128xf32>
    %cst_21 = arith.constant 1.000000e-01 : f32
    %59 = vector.broadcast %cst_21 : f32 to vector<512x128xf32>
    %60 = arith.mulf %59, %56 : vector<512x128xf32>
    %61 = arith.select %58, %56, %60 : vector<512x128xi1>, vector<512x128xf32>
    %cst_22 = arith.constant 0.000000e+00 : bf16
    %62 = vector.broadcast %cst_22 : bf16 to vector<2x1x18x128xbf16>
    %c0_23 = arith.constant 0 : index
    %c0_24 = arith.constant 0 : index
    %c0_25 = arith.constant 0 : index
    %c0_26 = arith.constant 0 : index
    %63 = vector.load %arg5[%c0_23, %c0_24, %c0_25, %c0_26] : memref<2x18x18x128xbf16, #tpu.memory_space<vmem>>, vector<2x1x18x128xbf16>
    tpu.vector_store %arg5[%c0_23, %c0_24, %c0_25, %c0_26], %62 {strides = array<i32>} : memref<2x18x18x128xbf16, #tpu.memory_space<vmem>>, vector<2x1x18x128xbf16>,
    %c0_27 = arith.constant 0 : index
    %c17 = arith.constant 17 : index
    %c0_28 = arith.constant 0 : index
    %c0_29 = arith.constant 0 : index
    %64 = vector.load %arg5[%c0_27, %c17, %c0_28, %c0_29] : memref<2x18x18x128xbf16, #tpu.memory_space<vmem>>, vector<2x1x18x128xbf16>
    tpu.vector_store %arg5[%c0_27, %c17, %c0_28, %c0_29], %62 {strides = array<i32>} : memref<2x18x18x128xbf16, #tpu.memory_space<vmem>>, vector<2x1x18x128xbf16>,
    %cst_30 = arith.constant 0.000000e+00 : bf16
    %65 = vector.broadcast %cst_30 : bf16 to vector<2x18x1x128xbf16>
    %c0_31 = arith.constant 0 : index
    %c0_32 = arith.constant 0 : index
    %c0_33 = arith.constant 0 : index
    %c0_34 = arith.constant 0 : index
    %66 = vector.load %arg5[%c0_31, %c0_32, %c0_33, %c0_34] : memref<2x18x18x128xbf16, #tpu.memory_space<vmem>>, vector<2x18x1x128xbf16>
    tpu.vector_store %arg5[%c0_31, %c0_32, %c0_33, %c0_34], %65 {strides = array<i32>} : memref<2x18x18x128xbf16, #tpu.memory_space<vmem>>, vector<2x18x1x128xbf16>,
    %c0_35 = arith.constant 0 : index
    %c0_36 = arith.constant 0 : index
    %c17_37 = arith.constant 17 : index
    %c0_38 = arith.constant 0 : index
    %67 = vector.load %arg5[%c0_35, %c0_36, %c17_37, %c0_38] : memref<2x18x18x128xbf16, #tpu.memory_space<vmem>>, vector<2x18x1x128xbf16>
    tpu.vector_store %arg5[%c0_35, %c0_36, %c17_37, %c0_38], %65 {strides = array<i32>} : memref<2x18x18x128xbf16, #tpu.memory_space<vmem>>, vector<2x18x1x128xbf16>,
    %68 = arith.truncf %61 : vector<512x128xf32> to vector<512x128xbf16>
    %69 = vector.shape_cast %68 : vector<512x128xbf16> to vector<2x16x16x128xbf16>
    %c0_39 = arith.constant 0 : index
    %c1_40 = arith.constant 1 : index
    %c1_41 = arith.constant 1 : index
    %c0_42 = arith.constant 0 : index
    %70 = vector.load %arg5[%c0_39, %c1_40, %c1_41, %c0_42] : memref<2x18x18x128xbf16, #tpu.memory_space<vmem>>, vector<2x16x16x128xbf16>
    tpu.vector_store %arg5[%c0_39, %c1_40, %c1_41, %c0_42], %69 {strides = array<i32>} : memref<2x18x18x128xbf16, #tpu.memory_space<vmem>>, vector<2x16x16x128xbf16>,
    %c0_43 = arith.constant 0 : index
    %c0_44 = arith.constant 0 : index
    %c0_45 = arith.constant 0 : index
    %c0_46 = arith.constant 0 : index
    %71 = vector.load %arg5[%c0_43, %c0_44, %c0_45, %c0_46] : memref<2x18x18x128xbf16, #tpu.memory_space<vmem>>, vector<2x18x18x128xbf16>
    %cst_47 = arith.constant 0.000000e+00 : f32
    %72 = vector.broadcast %cst_47 : f32 to vector<512x128xf32>
    %73 = vector.extract_strided_slice %71 {offsets = [0, 0, 0, 0], sizes = [2, 16, 16, 128], strides = [1, 1, 1, 1]} : vector<2x18x18x128xbf16> to vector<2x16x16x128xbf16>
    %74 = vector.shape_cast %73 : vector<2x16x16x128xbf16> to vector<512x128xbf16>
    %c128 = arith.constant 128 : index
    %c0_48 = arith.constant 0 : index
    %75 = vector.load %arg1[%c128, %c0_48] : memref<1280x128xbf16, #tpu.memory_space<vmem>>, vector<128x128xbf16>
    %cst_49 = arith.constant dense<0.000000e+00> : vector<512x128xf32>
    %76 = tpu.matmul %74, %75, %cst_49 {dimension_numbers = #tpu.dot_dimension_numbers<[1], [0], [0], [1], [0, 0, 1, 1], [], []>} : vector<512x128xbf16>, vector<128x128xbf16>, vector<512x128xf32> -> vector<512x128xf32>
    %77 = arith.addf %72, %76 : vector<512x128xf32>
    %78 = vector.extract_strided_slice %71 {offsets = [0, 0, 1, 0], sizes = [2, 16, 16, 128], strides = [1, 1, 1, 1]} : vector<2x18x18x128xbf16> to vector<2x16x16x128xbf16>
    %79 = vector.shape_cast %78 : vector<2x16x16x128xbf16> to vector<512x128xbf16>
    %c256 = arith.constant 256 : index
    %c0_50 = arith.constant 0 : index
    %80 = vector.load %arg1[%c256, %c0_50] : memref<1280x128xbf16, #tpu.memory_space<vmem>>, vector<128x128xbf16>
    %cst_51 = arith.constant dense<0.000000e+00> : vector<512x128xf32>
    %81 = tpu.matmul %79, %80, %cst_51 {dimension_numbers = #tpu.dot_dimension_numbers<[1], [0], [0], [1], [0, 0, 1, 1], [], []>} : vector<512x128xbf16>, vector<128x128xbf16>, vector<512x128xf32> -> vector<512x128xf32>
    %82 = arith.addf %77, %81 : vector<512x128xf32>
    %83 = vector.extract_strided_slice %71 {offsets = [0, 0, 2, 0], sizes = [2, 16, 16, 128], strides = [1, 1, 1, 1]} : vector<2x18x18x128xbf16> to vector<2x16x16x128xbf16>
    %84 = vector.shape_cast %83 : vector<2x16x16x128xbf16> to vector<512x128xbf16>
    %c384 = arith.constant 384 : index
    %c0_52 = arith.constant 0 : index
    %85 = vector.load %arg1[%c384, %c0_52] : memref<1280x128xbf16, #tpu.memory_space<vmem>>, vector<128x128xbf16>
    %cst_53 = arith.constant dense<0.000000e+00> : vector<512x128xf32>
    %86 = tpu.matmul %84, %85, %cst_53 {dimension_numbers = #tpu.dot_dimension_numbers<[1], [0], [0], [1], [0, 0, 1, 1], [], []>} : vector<512x128xbf16>, vector<128x128xbf16>, vector<512x128xf32> -> vector<512x128xf32>
    %87 = arith.addf %82, %86 : vector<512x128xf32>
    %88 = vector.extract_strided_slice %71 {offsets = [0, 1, 0, 0], sizes = [2, 16, 16, 128], strides = [1, 1, 1, 1]} : vector<2x18x18x128xbf16> to vector<2x16x16x128xbf16>
    %89 = vector.shape_cast %88 : vector<2x16x16x128xbf16> to vector<512x128xbf16>
    %c512 = arith.constant 512 : index
    %c0_54 = arith.constant 0 : index
    %90 = vector.load %arg1[%c512, %c0_54] : memref<1280x128xbf16, #tpu.memory_space<vmem>>, vector<128x128xbf16>
    %cst_55 = arith.constant dense<0.000000e+00> : vector<512x128xf32>
    %91 = tpu.matmul %89, %90, %cst_55 {dimension_numbers = #tpu.dot_dimension_numbers<[1], [0], [0], [1], [0, 0, 1, 1], [], []>} : vector<512x128xbf16>, vector<128x128xbf16>, vector<512x128xf32> -> vector<512x128xf32>
    %92 = arith.addf %87, %91 : vector<512x128xf32>
    %93 = vector.extract_strided_slice %71 {offsets = [0, 1, 1, 0], sizes = [2, 16, 16, 128], strides = [1, 1, 1, 1]} : vector<2x18x18x128xbf16> to vector<2x16x16x128xbf16>
    %94 = vector.shape_cast %93 : vector<2x16x16x128xbf16> to vector<512x128xbf16>
    %c640 = arith.constant 640 : index
    %c0_56 = arith.constant 0 : index
    %95 = vector.load %arg1[%c640, %c0_56] : memref<1280x128xbf16, #tpu.memory_space<vmem>>, vector<128x128xbf16>
    %cst_57 = arith.constant dense<0.000000e+00> : vector<512x128xf32>
    %96 = tpu.matmul %94, %95, %cst_57 {dimension_numbers = #tpu.dot_dimension_numbers<[1], [0], [0], [1], [0, 0, 1, 1], [], []>} : vector<512x128xbf16>, vector<128x128xbf16>, vector<512x128xf32> -> vector<512x128xf32>
    %97 = arith.addf %92, %96 : vector<512x128xf32>
    %98 = vector.extract_strided_slice %71 {offsets = [0, 1, 2, 0], sizes = [2, 16, 16, 128], strides = [1, 1, 1, 1]} : vector<2x18x18x128xbf16> to vector<2x16x16x128xbf16>
    %99 = vector.shape_cast %98 : vector<2x16x16x128xbf16> to vector<512x128xbf16>
    %c768 = arith.constant 768 : index
    %c0_58 = arith.constant 0 : index
    %100 = vector.load %arg1[%c768, %c0_58] : memref<1280x128xbf16, #tpu.memory_space<vmem>>, vector<128x128xbf16>
    %cst_59 = arith.constant dense<0.000000e+00> : vector<512x128xf32>
    %101 = tpu.matmul %99, %100, %cst_59 {dimension_numbers = #tpu.dot_dimension_numbers<[1], [0], [0], [1], [0, 0, 1, 1], [], []>} : vector<512x128xbf16>, vector<128x128xbf16>, vector<512x128xf32> -> vector<512x128xf32>
    %102 = arith.addf %97, %101 : vector<512x128xf32>
    %103 = vector.extract_strided_slice %71 {offsets = [0, 2, 0, 0], sizes = [2, 16, 16, 128], strides = [1, 1, 1, 1]} : vector<2x18x18x128xbf16> to vector<2x16x16x128xbf16>
    %104 = vector.shape_cast %103 : vector<2x16x16x128xbf16> to vector<512x128xbf16>
    %c896 = arith.constant 896 : index
    %c0_60 = arith.constant 0 : index
    %105 = vector.load %arg1[%c896, %c0_60] : memref<1280x128xbf16, #tpu.memory_space<vmem>>, vector<128x128xbf16>
    %cst_61 = arith.constant dense<0.000000e+00> : vector<512x128xf32>
    %106 = tpu.matmul %104, %105, %cst_61 {dimension_numbers = #tpu.dot_dimension_numbers<[1], [0], [0], [1], [0, 0, 1, 1], [], []>} : vector<512x128xbf16>, vector<128x128xbf16>, vector<512x128xf32> -> vector<512x128xf32>
    %107 = arith.addf %102, %106 : vector<512x128xf32>
    %108 = vector.extract_strided_slice %71 {offsets = [0, 2, 1, 0], sizes = [2, 16, 16, 128], strides = [1, 1, 1, 1]} : vector<2x18x18x128xbf16> to vector<2x16x16x128xbf16>
    %109 = vector.shape_cast %108 : vector<2x16x16x128xbf16> to vector<512x128xbf16>
    %c1024 = arith.constant 1024 : index
    %c0_62 = arith.constant 0 : index
    %110 = vector.load %arg1[%c1024, %c0_62] : memref<1280x128xbf16, #tpu.memory_space<vmem>>, vector<128x128xbf16>
    %cst_63 = arith.constant dense<0.000000e+00> : vector<512x128xf32>
    %111 = tpu.matmul %109, %110, %cst_63 {dimension_numbers = #tpu.dot_dimension_numbers<[1], [0], [0], [1], [0, 0, 1, 1], [], []>} : vector<512x128xbf16>, vector<128x128xbf16>, vector<512x128xf32> -> vector<512x128xf32>
    %112 = arith.addf %107, %111 : vector<512x128xf32>
    %113 = vector.extract_strided_slice %71 {offsets = [0, 2, 2, 0], sizes = [2, 16, 16, 128], strides = [1, 1, 1, 1]} : vector<2x18x18x128xbf16> to vector<2x16x16x128xbf16>
    %114 = vector.shape_cast %113 : vector<2x16x16x128xbf16> to vector<512x128xbf16>
    %c1152 = arith.constant 1152 : index
    %c0_64 = arith.constant 0 : index
    %115 = vector.load %arg1[%c1152, %c0_64] : memref<1280x128xbf16, #tpu.memory_space<vmem>>, vector<128x128xbf16>
    %cst_65 = arith.constant dense<0.000000e+00> : vector<512x128xf32>
    %116 = tpu.matmul %114, %115, %cst_65 {dimension_numbers = #tpu.dot_dimension_numbers<[1], [0], [0], [1], [0, 0, 1, 1], [], []>} : vector<512x128xbf16>, vector<128x128xbf16>, vector<512x128xf32> -> vector<512x128xf32>
    %117 = arith.addf %112, %116 : vector<512x128xf32>
    %c2 = arith.constant 2 : index
    %c0_66 = arith.constant 0 : index
    %118 = vector.load %arg3[%c2, %c0_66] : memref<8x128xf32, #tpu.memory_space<vmem>>, vector<1x128xf32>
    %c3 = arith.constant 3 : index
    %c0_67 = arith.constant 0 : index
    %119 = vector.load %arg3[%c3, %c0_67] : memref<8x128xf32, #tpu.memory_space<vmem>>, vector<1x128xf32>
    %cst_68 = arith.constant 0.000000e+00 : f32
    %120 = vector.broadcast %cst_68 : f32 to vector<1x128xf32>
    %cst_69 = arith.constant 0.000000e+00 : f32
    %121 = vector.broadcast %cst_69 : f32 to vector<1x128xf32>
    %122 = vector.extract_strided_slice %117 {offsets = [0, 0], sizes = [128, 128], strides = [1, 1]} : vector<512x128xf32> to vector<128x128xf32>
    %cst_70 = arith.constant dense<0.000000e+00> : vector<128xf32>
    %123 = vector.multi_reduction <add>, %122, %cst_70 [0] : vector<128x128xf32> to vector<128xf32>
    %124 = vector.shape_cast %123 : vector<128xf32> to vector<1x128xf32>
    %125 = arith.addf %120, %124 : vector<1x128xf32>
    %126 = arith.mulf %122, %122 : vector<128x128xf32>
    %cst_71 = arith.constant dense<0.000000e+00> : vector<128xf32>
    %127 = vector.multi_reduction <add>, %126, %cst_71 [0] : vector<128x128xf32> to vector<128xf32>
    %128 = vector.shape_cast %127 : vector<128xf32> to vector<1x128xf32>
    %129 = arith.addf %121, %128 : vector<1x128xf32>
    %130 = vector.extract_strided_slice %117 {offsets = [128, 0], sizes = [128, 128], strides = [1, 1]} : vector<512x128xf32> to vector<128x128xf32>
    %cst_72 = arith.constant dense<0.000000e+00> : vector<128xf32>
    %131 = vector.multi_reduction <add>, %130, %cst_72 [0] : vector<128x128xf32> to vector<128xf32>
    %132 = vector.shape_cast %131 : vector<128xf32> to vector<1x128xf32>
    %133 = arith.addf %125, %132 : vector<1x128xf32>
    %134 = arith.mulf %130, %130 : vector<128x128xf32>
    %cst_73 = arith.constant dense<0.000000e+00> : vector<128xf32>
    %135 = vector.multi_reduction <add>, %134, %cst_73 [0] : vector<128x128xf32> to vector<128xf32>
    %136 = vector.shape_cast %135 : vector<128xf32> to vector<1x128xf32>
    %137 = arith.addf %129, %136 : vector<1x128xf32>
    %138 = vector.extract_strided_slice %117 {offsets = [256, 0], sizes = [128, 128], strides = [1, 1]} : vector<512x128xf32> to vector<128x128xf32>
    %cst_74 = arith.constant dense<0.000000e+00> : vector<128xf32>
    %139 = vector.multi_reduction <add>, %138, %cst_74 [0] : vector<128x128xf32> to vector<128xf32>
    %140 = vector.shape_cast %139 : vector<128xf32> to vector<1x128xf32>
    %141 = arith.addf %133, %140 : vector<1x128xf32>
    %142 = arith.mulf %138, %138 : vector<128x128xf32>
    %cst_75 = arith.constant dense<0.000000e+00> : vector<128xf32>
    %143 = vector.multi_reduction <add>, %142, %cst_75 [0] : vector<128x128xf32> to vector<128xf32>
    %144 = vector.shape_cast %143 : vector<128xf32> to vector<1x128xf32>
    %145 = arith.addf %137, %144 : vector<1x128xf32>
    %146 = vector.extract_strided_slice %117 {offsets = [384, 0], sizes = [128, 128], strides = [1, 1]} : vector<512x128xf32> to vector<128x128xf32>
    %cst_76 = arith.constant dense<0.000000e+00> : vector<128xf32>
    %147 = vector.multi_reduction <add>, %146, %cst_76 [0] : vector<128x128xf32> to vector<128xf32>
    %148 = vector.shape_cast %147 : vector<128xf32> to vector<1x128xf32>
    %149 = arith.addf %141, %148 : vector<1x128xf32>
    %150 = arith.mulf %146, %146 : vector<128x128xf32>
    %cst_77 = arith.constant dense<0.000000e+00> : vector<128xf32>
    %151 = vector.multi_reduction <add>, %150, %cst_77 [0] : vector<128x128xf32> to vector<128xf32>
    %152 = vector.shape_cast %151 : vector<128xf32> to vector<1x128xf32>
    %153 = arith.addf %145, %152 : vector<1x128xf32>
    %cst_78 = arith.constant 0.001953125 : f32
    %154 = vector.broadcast %cst_78 : f32 to vector<1x128xf32>
    %155 = arith.mulf %149, %154 : vector<1x128xf32>
    %cst_79 = arith.constant 0.001953125 : f32
    %156 = vector.broadcast %cst_79 : f32 to vector<1x128xf32>
    %157 = arith.mulf %153, %156 : vector<1x128xf32>
    %158 = arith.mulf %155, %155 : vector<1x128xf32>
    %159 = arith.subf %157, %158 : vector<1x128xf32>
    %cst_80 = arith.constant 0.000000e+00 : f32
    %160 = vector.broadcast %cst_80 : f32 to vector<1x128xf32>
    %161 = arith.maximumf %159, %160 : vector<1x128xf32>
    %cst_81 = arith.constant 9.99999974E-6 : f32
    %162 = vector.broadcast %cst_81 : f32 to vector<1x128xf32>
    %163 = arith.addf %161, %162 : vector<1x128xf32>
    %164 = math.rsqrt %163 : vector<1x128xf32>
    %165 = arith.mulf %118, %164 : vector<1x128xf32>
    %166 = arith.mulf %155, %165 : vector<1x128xf32>
    %167 = arith.subf %119, %166 : vector<1x128xf32>
    %168 = vector.broadcast %165 : vector<1x128xf32> to vector<512x128xf32>
    %169 = arith.mulf %117, %168 : vector<512x128xf32>
    %170 = vector.broadcast %167 : vector<1x128xf32> to vector<512x128xf32>
    %171 = arith.addf %169, %170 : vector<512x128xf32>
    %cst_82 = arith.constant 0.000000e+00 : f32
    %172 = vector.broadcast %cst_82 : f32 to vector<512x128xf32>
    %173 = arith.cmpf oge, %171, %172 : vector<512x128xf32>
    %cst_83 = arith.constant 1.000000e-01 : f32
    %174 = vector.broadcast %cst_83 : f32 to vector<512x128xf32>
    %175 = arith.mulf %174, %171 : vector<512x128xf32>
    %176 = arith.select %173, %171, %175 : vector<512x128xi1>, vector<512x128xf32>
    %177 = vector.extract_strided_slice %176 {offsets = [0, 0], sizes = [256, 128], strides = [1, 1]} : vector<512x128xf32> to vector<256x128xf32>
    %cst_84 = arith.constant dense<0.000000e+00> : vector<128xf32>
    %178 = vector.multi_reduction <add>, %177, %cst_84 [0] : vector<256x128xf32> to vector<128xf32>
    %179 = vector.shape_cast %178 : vector<128xf32> to vector<1x128xf32>
    %180 = vector.extract_strided_slice %176 {offsets = [256, 0], sizes = [256, 128], strides = [1, 1]} : vector<512x128xf32> to vector<256x128xf32>
    %cst_85 = arith.constant dense<0.000000e+00> : vector<128xf32>
    %181 = vector.multi_reduction <add>, %180, %cst_85 [0] : vector<256x128xf32> to vector<128xf32>
    %182 = vector.shape_cast %181 : vector<128xf32> to vector<1x128xf32>
    %183 = tpu.concatenate %179, %182 in 0 : vector<1x128xf32>, vector<1x128xf32> -> vector<2x128xf32>
    %cst_86 = arith.constant 3.906250e-03 : f32
    %184 = vector.broadcast %cst_86 : f32 to vector<2x128xf32>
    %185 = arith.mulf %183, %184 : vector<2x128xf32>
    %c0_87 = arith.constant 0 : index
    %c0_88 = arith.constant 0 : index
    %186 = vector.load %arg2[%c0_87, %c0_88] : memref<256x128xf32, #tpu.memory_space<vmem>>, vector<128x128xf32>
    %cst_89 = arith.constant dense<0.000000e+00> : vector<2x128xf32>
    %187 = tpu.matmul %185, %186, %cst_89 {dimension_numbers = #tpu.dot_dimension_numbers<[1], [0], [0], [1], [0, 0, 1, 1], [], []>} : vector<2x128xf32>, vector<128x128xf32>, vector<2x128xf32> -> vector<2x128xf32>
    %cst_90 = arith.constant dense<0.000000e+00> : vector<128xf32>
    %188 = vector.multi_reduction <add>, %187, %cst_90 [0] : vector<2x128xf32> to vector<128xf32>
    %189 = vector.shape_cast %188 : vector<128xf32> to vector<1x128xf32>
    %cst_91 = arith.constant 5.000000e-01 : f32
    %190 = vector.broadcast %cst_91 : f32 to vector<1x128xf32>
    %191 = arith.mulf %189, %190 : vector<1x128xf32>
    %192 = arith.mulf %187, %187 : vector<2x128xf32>
    %cst_92 = arith.constant dense<0.000000e+00> : vector<128xf32>
    %193 = vector.multi_reduction <add>, %192, %cst_92 [0] : vector<2x128xf32> to vector<128xf32>
    %194 = vector.shape_cast %193 : vector<128xf32> to vector<1x128xf32>
    %cst_93 = arith.constant 5.000000e-01 : f32
    %195 = vector.broadcast %cst_93 : f32 to vector<1x128xf32>
    %196 = arith.mulf %194, %195 : vector<1x128xf32>
    %197 = arith.mulf %191, %191 : vector<1x128xf32>
    %198 = arith.subf %196, %197 : vector<1x128xf32>
    %cst_94 = arith.constant 0.000000e+00 : f32
    %199 = vector.broadcast %cst_94 : f32 to vector<1x128xf32>
    %200 = arith.maximumf %198, %199 : vector<1x128xf32>
    %c4 = arith.constant 4 : index
    %c0_95 = arith.constant 0 : index
    %201 = vector.load %arg3[%c4, %c0_95] : memref<8x128xf32, #tpu.memory_space<vmem>>, vector<1x128xf32>
    %cst_96 = arith.constant 9.99999974E-6 : f32
    %202 = vector.broadcast %cst_96 : f32 to vector<1x128xf32>
    %203 = arith.addf %200, %202 : vector<1x128xf32>
    %204 = math.rsqrt %203 : vector<1x128xf32>
    %205 = arith.mulf %201, %204 : vector<1x128xf32>
    %206 = vector.broadcast %205 : vector<1x128xf32> to vector<2x128xf32>
    %207 = arith.mulf %187, %206 : vector<2x128xf32>
    %c5 = arith.constant 5 : index
    %c0_97 = arith.constant 0 : index
    %208 = vector.load %arg3[%c5, %c0_97] : memref<8x128xf32, #tpu.memory_space<vmem>>, vector<1x128xf32>
    %209 = arith.mulf %191, %205 : vector<1x128xf32>
    %210 = arith.subf %208, %209 : vector<1x128xf32>
    %211 = vector.broadcast %210 : vector<1x128xf32> to vector<2x128xf32>
    %212 = arith.addf %207, %211 : vector<2x128xf32>
    %cst_98 = arith.constant 0.000000e+00 : f32
    %213 = vector.broadcast %cst_98 : f32 to vector<2x128xf32>
    %214 = arith.cmpf oge, %212, %213 : vector<2x128xf32>
    %cst_99 = arith.constant 1.000000e-01 : f32
    %215 = vector.broadcast %cst_99 : f32 to vector<2x128xf32>
    %216 = arith.mulf %215, %212 : vector<2x128xf32>
    %217 = arith.select %214, %212, %216 : vector<2x128xi1>, vector<2x128xf32>
    %c128_100 = arith.constant 128 : index
    %c0_101 = arith.constant 0 : index
    %218 = vector.load %arg2[%c128_100, %c0_101] : memref<256x128xf32, #tpu.memory_space<vmem>>, vector<128x128xf32>
    %cst_102 = arith.constant dense<0.000000e+00> : vector<2x128xf32>
    %219 = tpu.matmul %217, %218, %cst_102 {dimension_numbers = #tpu.dot_dimension_numbers<[1], [0], [0], [1], [0, 0, 1, 1], [], []>} : vector<2x128xf32>, vector<128x128xf32>, vector<2x128xf32> -> vector<2x128xf32>
    %c6 = arith.constant 6 : index
    %c0_103 = arith.constant 0 : index
    %220 = vector.load %arg3[%c6, %c0_103] : memref<8x128xf32, #tpu.memory_space<vmem>>, vector<1x128xf32>
    %221 = vector.broadcast %220 : vector<1x128xf32> to vector<2x128xf32>
    %222 = arith.addf %219, %221 : vector<2x128xf32>
    %c0_104 = arith.constant 0 : index
    %c0_105 = arith.constant 0 : index
    %223 = vector.load %arg4[%c0_104, %c0_105] : memref<2x128xf32, #tpu.memory_space<vmem>>, vector<2x128xf32>
    tpu.vector_store %arg4[%c0_104, %c0_105], %222 {strides = array<i32>} : memref<2x128xf32, #tpu.memory_space<vmem>>, vector<2x128xf32>,
    return
  }
}

</mosaic_0001>

<bundles_post_ra>
// kernel: batch_representation_forward.1
= control target key start
LH: loop header
LB: loop body
LE: loop exit
PB: predicated region body
PF: predicated region fallthrough
CT: control target
= control target key end

     0   :  { %s17067_s0 = inlined_call_operand.vmem [shape: bf16[512,128], index: 0, kind: input, shape index: {}]   ;;  %s17068_s1 = inlined_call_operand.vmem [shape: bf16[1280,128], index: 1, kind: input, shape index: {}]   ;;  %s17069_s2 = inlined_call_operand.vmem [shape: f32[256,128], index: 2, kind: input, shape index: {}]   ;;  %s17070_s3 = inlined_call_operand.vmem [shape: f32[8,128], index: 3, kind: input, shape index: {}]   ;;  %s17071_s4 = inlined_call_operand.hbm [shape: f32[2,128], index: 4, kind: output, shape index: {}]  }
   0x1   :  { %v11058_v0 = vld [vmem:[%s17068_s1] sm:$0xff]   ;;  %v11059_v1 = vld [vmem:[%s17068_s1 + $0x8] sm:$0xff]   ;;  %v11060_v2 = vld [vmem:[%s17068_s1 + $0x10] sm:$0xff]  }
   0x2   :  { %9607 = vmatprep.subr.bf16.mxu0 %v11058_v0  ;;  %v11061_v3 = vld [vmem:[%s17068_s1 + $0x18] sm:$0xff]   ;;  %v11066_v4 = vld [vmem:[%s17067_s0] sm:$0xff]   ;;  %v11063_v6 = vld [vmem:[%s17068_s1 + $0x28] sm:$0xff]  }
   0x3   :  { %9608 = vmatpush3.bf16.msra.mxu0 %v11058_v0  ;;  %9623 = vmatprep.mubr.bf16.mxu0 %v11066_v4  ;;  %v11062_v5 = vld [vmem:[%s17068_s1 + $0x20] sm:$0xff]   ;;  %v11064_v7 = vld [vmem:[%s17068_s1 + $0x30] sm:$0xff]   ;;  %v11065_v8 = vld [vmem:[%s17068_s1 + $0x38] sm:$0xff]  }
   0x4   :  { %9609 = vmatprep.subr.bf16.mxu0 %v11059_v1  ;;  %v11067_v9 = vld [vmem:[%s17067_s0 + $0x8] sm:$0xff]   ;;  %v11068_v10 = vld [vmem:[%s17067_s0 + $0x10] sm:$0xff]   ;;  %v11069_v11 = vld [vmem:[%s17067_s0 + $0x18] sm:$0xff]  }
   0x5   :  { %v11070_v12 = vld [vmem:[%s17067_s0 + $0x20] sm:$0xff]   ;;  %v11071_v13 = vld [vmem:[%s17067_s0 + $0x28] sm:$0xff]   ;;  %v11072_v14 = vld [vmem:[%s17067_s0 + $0x30] sm:$0xff]  }
   0x6   :  { %v11073_v15 = vld [vmem:[%s17067_s0 + $0x38] sm:$0xff]   ;;  %v11074_v16 = vld [vmem:[%s17067_s0 + $0x40] sm:$0xff]   ;;  %v11075_v17 = vld [vmem:[%s17067_s0 + $0x48] sm:$0xff]  }
   0x7   :  { %9610 = vmatpush3.bf16.msra.mxu0 %v11059_v1  ;;  %v11076_v18 = vld [vmem:[%s17067_s0 + $0x50] sm:$0xff]   ;;  %v11077_v19 = vld [vmem:[%s17067_s0 + $0x58] sm:$0xff]   ;;  %v11078_v20 = vld [vmem:[%s17067_s0 + $0x60] sm:$0xff]  }
   0x8   :  { %9611 = vmatprep.subr.bf16.mxu0 %v11060_v2  ;;  %v11079_v21 = vld [vmem:[%s17067_s0 + $0x68] sm:$0xff]   ;;  %v11080_v22 = vld [vmem:[%s17067_s0 + $0x70] sm:$0xff]   ;;  %v11081_v23 = vld [vmem:[%s17067_s0 + $0x78] sm:$0xff]  }
   0x9   :  { %v11082_v24 = vld [vmem:[%s17067_s0 + $0x80] sm:$0xff]  }
   0xb   :  { %9612 = vmatpush3.bf16.msra.mxu0 %v11060_v2 }
   0xc   :  { %9613 = vmatprep.subr.bf16.mxu0 %v11061_v3 }
   0xf   :  { %9614 = vmatpush3.bf16.msra.mxu0 %v11061_v3 }
  0x10   :  { %9615 = vmatprep.subr.bf16.mxu0 %v11062_v5 }
  0x13   :  { %9616 = vmatpush3.bf16.msra.mxu0 %v11062_v5 }
  0x14   :  { %9617 = vmatprep.subr.bf16.mxu0 %v11063_v6 }
  0x17   :  { %9618 = vmatpush3.bf16.msra.mxu0 %v11063_v6 }
  0x18   :  { %9619 = vmatprep.subr.bf16.mxu0 %v11064_v7 }
  0x1b   :  { %9620 = vmatpush3.bf16.msra.mxu0 %v11064_v7 }
  0x1c   :  { %9621 = vmatprep.subr.bf16.mxu0 %v11065_v8 }
  0x1f   :  { %9622 = vmatpush3.bf16.msra.mxu0 %v11065_v8 }
  0x22   :  { %9624 = vmatmul.mubr.bf16.vlgmr.msra.gmra.mrb[0].mxu0 %v11067_v9 }
  0x23   :  { %9627 = vmatprep.mubr.bf16.mxu0 %v11068_v10 }
  0x2a   :  { %9628 = vmatmul.mubr.bf16.gmra.mrb[4].mxu0 %v11069_v11 }
  0x2b   :  { %9631 = vmatprep.mubr.bf16.mxu0 %v11070_v12 }
  0x32   :  { %9632 = vmatmul.mubr.bf16.gmra.mrb[8].mxu0 %v11071_v13 }
  0x33   :  { %9635 = vmatprep.mubr.bf16.mxu0 %v11072_v14 }
  0x3a   :  { %9636 = vmatmul.mubr.bf16.gmra.mrb[12].mxu0 %v11073_v15 }
  0x3b   :  { %9639 = vmatprep.mubr.bf16.mxu0 %v11074_v16 }
  0x42   :  { %9640 = vmatmul.mubr.bf16.gmra.mrb[16].mxu0 %v11075_v17 }
  0x43   :  { %9643 = vmatprep.mubr.bf16.mxu0 %v11076_v18 }
  0x4a   :  { %9644 = vmatmul.mubr.bf16.gmra.mrb[20].mxu0 %v11077_v19 }
  0x4b   :  { %9647 = vmatprep.mubr.bf16.mxu0 %v11078_v20 }
  0x52   :  { %9648 = vmatmul.mubr.bf16.gmra.mrb[24].mxu0 %v11079_v21 }
  0x53   :  { %9651 = vmatprep.mubr.bf16.mxu0 %v11080_v22 }
  0x54   :  { %9 = vsyncpa [#allocation4], 0  ;;  %v11083_v25 = vld [vmem:[%s17067_s0 + $0x88] sm:$0xff]   ;;  %v11084_v26 = vld [vmem:[%s17067_s0 + $0x90] sm:$0xff]   ;;  %vm17113_vm0 = vcmask 1040384   ;;  %v17342_v34 = vmov 0 }
  0x55   :  { %v11085_v27 = vld [vmem:[%s17067_s0 + $0x98] sm:$0xff]   ;;  %v11086_v28 = vld [vmem:[%s17067_s0 + $0xa0] sm:$0xff]   ;;  %v11087_v29 = vld [vmem:[%s17067_s0 + $0xa8] sm:$0xff]   ;;  %vm1222_vm1 = vsmask.f32 256  ;;  %v17345_v39 = vmov 0 }
  0x56   :  { %v11088_v30 = vld [vmem:[%s17067_s0 + $0xb0] sm:$0xff]   ;;  %v11089_v31 = vld [vmem:[%s17067_s0 + $0xb8] sm:$0xff]   ;;  %v11090_v33 = vld [vmem:[%s17067_s0 + $0xc0] sm:$0xff]   ;;  %vm1332_vm3 = vsmask.f32 7938  ;;  %vm2277_vm9 = vcmask 1043456  }
  0x57   :  { %v1230_v32 = vld [vmem:[#allocation2 + $0x18] sm:$0x1]  ;;  %vm11469_vm2 = vmand %vm17113_vm0, %vm1222_vm1  ;;  %v1227_v35 = vld [vmem:[#allocation2 + $0xc] sm:$0x1]  ;;  %vm1634_vm5 = vsmask.f32 4368 }
  0x58   :  { %v17343_v34 = vsel %vm11469_vm2, 4294967295, %v17342_v34  ;;  %v1231_v36 = vsel %vm11469_vm2, 0, %v1230_v32  ;;  %v1228_v37 = vsel %vm11469_vm2, 0, %v1227_v35  ;;  %v1340_v38 = vld [vmem:[#allocation2 + $0x20] sm:$0x1]  ;;  %vm11479_vm4 = vmand %vm17113_vm0, %vm1332_vm3  ;;  %v11091_v42 = vld [vmem:[%s17067_s0 + $0xc8] sm:$0xff]  }
  0x59   :  { %17344 = vst [vmem:[#allocation6_spill] sm:$0xff] %v17343_v34  ;;  %1232 = vst [vmem:[#allocation2 + $0x18] sm:$0x1] %v1231_v36  ;;  %v17346_v39 = vsel %vm11479_vm4, 4294967295, %v17345_v39  ;;  %v1341_v40 = vsel %vm11479_vm4, 0, %v1340_v38  ;;  %v11092_v45 = vld [vmem:[%s17067_s0 + $0xd0] sm:$0xff]  }
  0x5a   :  { %9652 = vmatmul.mubr.bf16.gmra.mrb[28].mxu0 %v11081_v23  ;;  %1229 = vst [vmem:[#allocation2 + $0xc] sm:$0x1] %v1228_v37  ;;  %17347 = vst [vmem:[#allocation7_spill] sm:$0xff] %v17346_v39  ;;  %v1337_v41 = vld [vmem:[#allocation2 + $0x14] sm:$0x1]  ;;  %v11093_v52 = vld [vmem:[%s17067_s0 + $0xd8] sm:$0xff]  }
  0x5b   :  { %9655 = vmatprep.mubr.bf16.mxu0 %v11082_v24  ;;  %1342 = vst [vmem:[#allocation2 + $0x20] sm:$0x1] %v1341_v40  ;;  %v1338_v43 = vsel %vm11479_vm4, 0, %v1337_v41  ;;  %v1236_v44 = vld [vmem:[#allocation2 + $0x30] sm:$0x1]  ;;  %v11094_v55 = vld [vmem:[%s17067_s0 + $0xe0] sm:$0xff]   ;;  %vm12130_vm8 = vmor %vm1222_vm1, %vm1634_vm5 }
  0x5c   :  { %1339 = vst [vmem:[#allocation2 + $0x14] sm:$0x1] %v1338_v43  ;;  %v1237_v46 = vsel %vm11469_vm2, 0, %v1236_v44  ;;  %v1233_v47 = vld [vmem:[#allocation2 + $0x24] sm:$0x1]  ;;  %v11095_v62 = vld [vmem:[%s17067_s0 + $0xe8] sm:$0xff]   ;;  %vm12448_vm10 = vmand %vm2277_vm9, %vm1332_vm3 }
  0x5d   :  { %1238 = vst [vmem:[#allocation2 + $0x30] sm:$0x1] %v1237_v46  ;;  %v1346_v48 = vld [vmem:[#allocation2 + $0x38] sm:$0x1]  ;;  %v1234_v49 = vsel %vm11469_vm2, 0, %v1233_v47  ;;  %v11096_v1 = vld [vmem:[%s17067_s0 + $0xf0] sm:$0xff]  }
  0x5e   :  { %v1347_v50 = vsel %vm11479_vm4, 0, %v1346_v48  ;;  %1235 = vst [vmem:[#allocation2 + $0x24] sm:$0x1] %v1234_v49  ;;  %v1343_v51 = vld [vmem:[#allocation2 + $0x2c] sm:$0x1]  ;;  %v11097_v7 = vld [vmem:[%s17067_s0 + $0xf8] sm:$0xff]  }
  0x5f   :  { %1348 = vst [vmem:[#allocation2 + $0x38] sm:$0x1] %v1347_v50  ;;  %v1344_v53 = vsel %vm11479_vm4, 0, %v1343_v51  ;;  %v1242_v54 = vld [vmem:[#allocation2 + $0x48] sm:$0x1]  ;;  %s11342_s22 = smov [#allocation3]  }
  0x60   :  { %1345 = vst [vmem:[#allocation2 + $0x2c] sm:$0x1] %v1344_v53  ;;  %v1243_v56 = vsel %vm11469_vm2, 0, %v1242_v54  ;;  %v1239_v57 = vld [vmem:[#allocation2 + $0x3c] sm:$0x1]  ;;  %s8780_s23 = sshll.u32 %s11342_s22, 4  ;;  %s8781_s23 = int_to_ptr.vmem [resolvable:$true] %s8780_s23 }
  0x61   :  { %1244 = vst [vmem:[#allocation2 + $0x48] sm:$0x1] %v1243_v56  ;;  %v1352_v58 = vld [vmem:[#allocation2 + $0x50] sm:$0x1]  ;;  %v1240_v59 = vsel %vm11469_vm2, 0, %v1239_v57  ;;  %s11314_s24 = scalar_lea.vmem %s8781_s23, 32  ;;  %p11319_p1 = scmp.lt.s32.totalorder %s8781_s23, %s8781_s23 }
  0x62   :  { %9656 = vmatmul.mubr.bf16.gmra.mrb[32].mxu0 %v11083_v25  ;;  %v1353_v60 = vsel %vm11479_vm4, 0, %v1352_v58  ;;  %1241 = vst [vmem:[#allocation2 + $0x3c] sm:$0x1] %v1240_v59  ;;  %v1349_v61 = vld [vmem:[#allocation2 + $0x44] sm:$0x1]  ;;  %p11315_p0 = scmp.ne.s32.totalorder %s8781_s23, %s11314_s24  ;;  %p11320_p2 = scmp.lt.s32.totalorder %s11314_s24, %s11314_s24 }
  0x63   :  { %9659 = vmatprep.mubr.bf16.mxu0 %v11084_v26  ;;  %1354 = vst [vmem:[#allocation2 + $0x50] sm:$0x1] %v1353_v60  ;;  %v1350_v63 = vsel %vm11479_vm4, 0, %v1349_v61  ;;  %v1248_v0 = vld [vmem:[#allocation2 + $0x60] sm:$0x1] }
  0x64   :  { %1351 = vst [vmem:[#allocation2 + $0x44] sm:$0x1] %v1350_v63  ;;  %v1249_v2 = vsel %vm11469_vm2, 0, %v1248_v0  ;;  %v1245_v3 = vld [vmem:[#allocation2 + $0x54] sm:$0x1]  ;;  %p11321_p3 = por %p11320_p2, %p11319_p1 }
  0x65   :  { %1250 = vst [vmem:[#allocation2 + $0x60] sm:$0x1] %v1249_v2  ;;  %v1358_v4 = vld [vmem:[#allocation2 + $0x68] sm:$0x1]  ;;  %v1246_v5 = vsel %vm11469_vm2, 0, %v1245_v3 }
  0x66   :  { %v1359_v6 = vsel %vm11479_vm4, 0, %v1358_v4  ;;  %1247 = vst [vmem:[#allocation2 + $0x54] sm:$0x1] %v1246_v5  ;;  %v1355_v8 = vld [vmem:[#allocation2 + $0x5c] sm:$0x1]  ;;  %p11322_p4 = pnand %p11321_p3, %p11315_p0 }
  0x67   :  { %1360 = vst [vmem:[#allocation2 + $0x68] sm:$0x1] %v1359_v6  ;;  %v1254_v9 = vld [vmem:[#allocation2 + $0x78] sm:$0x1]  ;;  %v1251_v10 = vld [vmem:[#allocation2 + $0x6c] sm:$0x1] }
  0x68   :  { %v1356_v11 = vsel %vm11479_vm4, 0, %v1355_v8  ;;  %v1255_v12 = vsel %vm11469_vm2, 0, %v1254_v9  ;;  %v1252_v13 = vsel %vm11469_vm2, 0, %v1251_v10  ;;  %v1364_v14 = vld [vmem:[#allocation2 + $0x80] sm:$0x1] }
  0x69   :  { %1357 = vst [vmem:[#allocation2 + $0x5c] sm:$0x1] %v1356_v11  ;;  %1256 = vst [vmem:[#allocation2 + $0x78] sm:$0x1] %v1255_v12  ;;  %v1365_v15 = vsel %vm11479_vm4, 0, %v1364_v14 }
  0x6a   :  { %9660 = vmatmul.mubr.bf16.gmra.mrb[36].mxu0 %v11085_v27  ;;  %1253 = vst [vmem:[#allocation2 + $0x6c] sm:$0x1] %v1252_v13  ;;  %v1361_v16 = vld [vmem:[#allocation2 + $0x74] sm:$0x1]  ;;  %v1260_v17 = vld [vmem:[#allocation2 + $0x90] sm:$0x1] }
  0x6b   :  { %9663 = vmatprep.mubr.bf16.mxu0 %v11086_v28  ;;  %1366 = vst [vmem:[#allocation2 + $0x80] sm:$0x1] %v1365_v15  ;;  %v1362_v18 = vsel %vm11479_vm4, 0, %v1361_v16  ;;  %v1261_v19 = vsel %vm11469_vm2, 0, %v1260_v17  ;;  %v1257_v20 = vld [vmem:[#allocation2 + $0x84] sm:$0x1] }
  0x6c   :  { %v1370_v21 = vld [vmem:[#allocation2 + $0x98] sm:$0x1]  ;;  %1363 = vst [vmem:[#allocation2 + $0x74] sm:$0x1] %v1362_v18  ;;  %1262 = vst [vmem:[#allocation2 + $0x90] sm:$0x1] %v1261_v19 }
  0x6d   :  { %v1258_v22 = vsel %vm11469_vm2, 0, %v1257_v20  ;;  %v1371_v23 = vsel %vm11479_vm4, 0, %v1370_v21  ;;  %v1367_v24 = vld [vmem:[#allocation2 + $0x8c] sm:$0x1]  ;;  %v1266_v25 = vld [vmem:[#allocation2 + $0xa8] sm:$0x1] }
  0x6e   :  { %1259 = vst [vmem:[#allocation2 + $0x84] sm:$0x1] %v1258_v22  ;;  %1372 = vst [vmem:[#allocation2 + $0x98] sm:$0x1] %v1371_v23  ;;  %v1368_v26 = vsel %vm11479_vm4, 0, %v1367_v24  ;;  %v1267_v27 = vsel %vm11469_vm2, 0, %v1266_v25 }
  0x6f   :  { %1369 = vst [vmem:[#allocation2 + $0x8c] sm:$0x1] %v1368_v26  ;;  %1268 = vst [vmem:[#allocation2 + $0xa8] sm:$0x1] %v1267_v27  ;;  %v1263_v28 = vld [vmem:[#allocation2 + $0x9c] sm:$0x1] }
  0x70   :  { %v1373_v32 = vld [vmem:[#allocation2 + $0xa4] sm:$0x1]  ;;  %v1272_v35 = vld [vmem:[#allocation2 + $0xc0] sm:$0x1]  ;;  %v1269_v37 = vld [vmem:[#allocation2 + $0xb4] sm:$0x1] }
  0x71   :  { %v1273_v36 = vsel %vm11469_vm2, 0, %v1272_v35  ;;  %v1382_v38 = vld [vmem:[#allocation2 + $0xc8] sm:$0x1]  ;;  %v1270_v40 = vsel %vm11469_vm2, 0, %v1269_v37  ;;  %v1284_v43 = vld [vmem:[#allocation2 + $0xf0] sm:$0x1] }
  0x72   :  { %9664 = vmatmul.mubr.bf16.gmra.mrb[40].mxu0 %v11087_v29  ;;  %v1376_v29 = vld [vmem:[#allocation2 + $0xb0] sm:$0x1]  ;;  %1274 = vst [vmem:[#allocation2 + $0xc0] sm:$0x1] %v1273_v36  ;;  %v1383_v41 = vsel %vm11479_vm4, 0, %v1382_v38  ;;  %v1285_v46 = vsel %vm11469_vm2, 0, %v1284_v43 }
  0x73   :  { %9667 = vmatprep.mubr.bf16.mxu0 %v11088_v30  ;;  %v1264_v30 = vsel %vm11469_vm2, 0, %v1263_v28  ;;  %1271 = vst [vmem:[#allocation2 + $0xb4] sm:$0x1] %v1270_v40  ;;  %1384 = vst [vmem:[#allocation2 + $0xc8] sm:$0x1] %v1383_v41 }
  0x74   :  { %1265 = vst [vmem:[#allocation2 + $0x9c] sm:$0x1] %v1264_v30  ;;  %v1281_v44 = vld [vmem:[#allocation2 + $0xe4] sm:$0x1]  ;;  %v1394_v48 = vld [vmem:[#allocation2 + $0xf8] sm:$0x1] }
  0x75   :  { %v1282_v47 = vsel %vm11469_vm2, 0, %v1281_v44  ;;  %1286 = vst [vmem:[#allocation2 + $0xf0] sm:$0x1] %v1285_v46  ;;  %v1395_v49 = vsel %vm11479_vm4, 0, %v1394_v48  ;;  %v1391_v50 = vld [vmem:[#allocation2 + $0xec] sm:$0x1] }
  0x76   :  { %1283 = vst [vmem:[#allocation2 + $0xe4] sm:$0x1] %v1282_v47  ;;  %v1290_v51 = vld [vmem:[#allocation2 + $0x108] sm:$0x1]  ;;  %1396 = vst [vmem:[#allocation2 + $0xf8] sm:$0x1] %v1395_v49 }
  0x77   :  { %v1291_v53 = vsel %vm11469_vm2, 0, %v1290_v51  ;;  %v1287_v54 = vld [vmem:[#allocation2 + $0xfc] sm:$0x1]  ;;  %v1397_v58 = vld [vmem:[#allocation2 + $0x104] sm:$0x1] }
  0x78   :  { %1292 = vst [vmem:[#allocation2 + $0x108] sm:$0x1] %v1291_v53  ;;  %v1288_v56 = vsel %vm11469_vm2, 0, %v1287_v54  ;;  %v1296_v59 = vld [vmem:[#allocation2 + $0x120] sm:$0x1]  ;;  %v1398_v60 = vsel %vm11479_vm4, 0, %v1397_v58 }
  0x79   :  { %1289 = vst [vmem:[#allocation2 + $0xfc] sm:$0x1] %v1288_v56  ;;  %v1297_v61 = vsel %vm11469_vm2, 0, %v1296_v59  ;;  %v1406_v63 = vld [vmem:[#allocation2 + $0x128] sm:$0x1] }
  0x7a   :  { %9668 = vmatmul.mubr.bf16.gmra.mrb[44].mxu0 %v11089_v31  ;;  %v1377_v31 = vsel %vm11479_vm4, 0, %v1376_v29  ;;  %1399 = vst [vmem:[#allocation2 + $0x104] sm:$0x1] %v1398_v60  ;;  %1298 = vst [vmem:[#allocation2 + $0x120] sm:$0x1] %v1297_v61 }
  0x7b   :  { %9671 = vmatprep.mubr.bf16.mxu0 %v11090_v33  ;;  %1378 = vst [vmem:[#allocation2 + $0xb0] sm:$0x1] %v1377_v31  ;;  %v1374_v33 = vsel %vm11479_vm4, 0, %v1373_v32  ;;  %v1403_v2 = vld [vmem:[#allocation2 + $0x11c] sm:$0x1] }
  0x7c   :  { %1375 = vst [vmem:[#allocation2 + $0xa4] sm:$0x1] %v1374_v33  ;;  %v1404_v3 = vsel %vm11479_vm4, 0, %v1403_v2  ;;  %v1302_v4 = vld [vmem:[#allocation2 + $0x138] sm:$0x1] }
  0x7d   :  { %1405 = vst [vmem:[#allocation2 + $0x11c] sm:$0x1] %v1404_v3  ;;  %v1303_v5 = vsel %vm11469_vm2, 0, %v1302_v4  ;;  %v1299_v6 = vld [vmem:[#allocation2 + $0x12c] sm:$0x1] }
  0x7e   :  { %1304 = vst [vmem:[#allocation2 + $0x138] sm:$0x1] %v1303_v5  ;;  %v1412_v8 = vld [vmem:[#allocation2 + $0x140] sm:$0x1]  ;;  %v1409_v10 = vld [vmem:[#allocation2 + $0x134] sm:$0x1] }
  0x7f   :  { %v1413_v9 = vsel %vm11479_vm4, 0, %v1412_v8  ;;  %v1308_v11 = vld [vmem:[#allocation2 + $0x150] sm:$0x1]  ;;  %v1305_v12 = vld [vmem:[#allocation2 + $0x144] sm:$0x1]  ;;  %v1410_v13 = vsel %vm11479_vm4, 0, %v1409_v10 }
  0x80   :  { %1414 = vst [vmem:[#allocation2 + $0x140] sm:$0x1] %v1413_v9  ;;  %v1309_v14 = vsel %vm11469_vm2, 0, %v1308_v11  ;;  %v1306_v15 = vsel %vm11469_vm2, 0, %v1305_v12  ;;  %v1418_v16 = vld [vmem:[#allocation2 + $0x158] sm:$0x1] }
  0x81   :  { %1411 = vst [vmem:[#allocation2 + $0x134] sm:$0x1] %v1410_v13  ;;  %1310 = vst [vmem:[#allocation2 + $0x150] sm:$0x1] %v1309_v14  ;;  %v1419_v17 = vsel %vm11479_vm4, 0, %v1418_v16 }
  0x82   :  { %9672 = vmatmul.mubr.bf16.gmra.mrb[48].mxu0 %v11091_v42  ;;  %v1379_v42 = vld [vmem:[#allocation2 + $0xbc] sm:$0x1]  ;;  %1307 = vst [vmem:[#allocation2 + $0x144] sm:$0x1] %v1306_v15  ;;  %v1415_v18 = vld [vmem:[#allocation2 + $0x14c] sm:$0x1] }
  0x83   :  { %9675 = vmatprep.mubr.bf16.mxu0 %v11092_v45  ;;  %v1380_v45 = vsel %vm11479_vm4, 0, %v1379_v42  ;;  %v1314_v19 = vld [vmem:[#allocation2 + $0x168] sm:$0x1]  ;;  %1420 = vst [vmem:[#allocation2 + $0x158] sm:$0x1] %v1419_v17  ;;  %v1416_v20 = vsel %vm11479_vm4, 0, %v1415_v18 }
  0x84   :  { %1381 = vst [vmem:[#allocation2 + $0xbc] sm:$0x1] %v1380_v45  ;;  %v1315_v21 = vsel %vm11469_vm2, 0, %v1314_v19  ;;  %v1311_v22 = vld [vmem:[#allocation2 + $0x15c] sm:$0x1] }
  0x85   :  { %v1424_v23 = vld [vmem:[#allocation2 + $0x170] sm:$0x1]  ;;  %1417 = vst [vmem:[#allocation2 + $0x14c] sm:$0x1] %v1416_v20  ;;  %1316 = vst [vmem:[#allocation2 + $0x168] sm:$0x1] %v1315_v21 }
  0x86   :  { %v1312_v24 = vsel %vm11469_vm2, 0, %v1311_v22  ;;  %v1425_v25 = vsel %vm11479_vm4, 0, %v1424_v23  ;;  %v1421_v26 = vld [vmem:[#allocation2 + $0x164] sm:$0x1]  ;;  %v1320_v27 = vld [vmem:[#allocation2 + $0x180] sm:$0x1] }
  0x87   :  { %1313 = vst [vmem:[#allocation2 + $0x15c] sm:$0x1] %v1312_v24  ;;  %1426 = vst [vmem:[#allocation2 + $0x170] sm:$0x1] %v1425_v25  ;;  %v1422_v28 = vsel %vm11479_vm4, 0, %v1421_v26  ;;  %v1321_v29 = vsel %vm11469_vm2, 0, %v1320_v27 }
  0x88   :  { %v1317_v30 = vld [vmem:[#allocation2 + $0x174] sm:$0x1]  ;;  %v1430_v31 = vld [vmem:[#allocation2 + $0x188] sm:$0x1]  ;;  %1423 = vst [vmem:[#allocation2 + $0x164] sm:$0x1] %v1422_v28 }
  0x89   :  { %1322 = vst [vmem:[#allocation2 + $0x180] sm:$0x1] %v1321_v29  ;;  %v1318_v32 = vsel %vm11469_vm2, 0, %v1317_v30  ;;  %v1431_v33 = vsel %vm11479_vm4, 0, %v1430_v31  ;;  %v1427_v35 = vld [vmem:[#allocation2 + $0x17c] sm:$0x1] }
  0x8a   :  { %9676 = vmatmul.mubr.bf16.gmra.mrb[52].mxu0 %v11093_v52  ;;  %v1392_v52 = vsel %vm11479_vm4, 0, %v1391_v50  ;;  %1319 = vst [vmem:[#allocation2 + $0x174] sm:$0x1] %v1318_v32  ;;  %1432 = vst [vmem:[#allocation2 + $0x188] sm:$0x1] %v1431_v33  ;;  %v1428_v37 = vsel %vm11479_vm4, 0, %v1427_v35 }
  0x8b   :  { %9679 = vmatprep.mubr.bf16.mxu0 %v11094_v55  ;;  %v1400_v55 = vld [vmem:[#allocation2 + $0x110] sm:$0x1]  ;;  %1393 = vst [vmem:[#allocation2 + $0xec] sm:$0x1] %v1392_v52  ;;  %v1326_v36 = vld [vmem:[#allocation2 + $0x198] sm:$0x1] }
  0x8c   :  { %v1401_v57 = vsel %vm11479_vm4, 0, %v1400_v55  ;;  %v1327_v38 = vsel %vm11469_vm2, 0, %v1326_v36  ;;  %1429 = vst [vmem:[#allocation2 + $0x17c] sm:$0x1] %v1428_v37  ;;  %v1323_v40 = vld [vmem:[#allocation2 + $0x18c] sm:$0x1] }
  0x8d   :  { %1402 = vst [vmem:[#allocation2 + $0x110] sm:$0x1] %v1401_v57  ;;  %1328 = vst [vmem:[#allocation2 + $0x198] sm:$0x1] %v1327_v38  ;;  %v1324_v41 = vsel %vm11469_vm2, 0, %v1323_v40 }
  0x8e   :  { %1325 = vst [vmem:[#allocation2 + $0x18c] sm:$0x1] %v1324_v41  ;;  %v1436_v42 = vld [vmem:[#allocation2 + $0x1a0] sm:$0x1] }
  0x8f   :  { %v1437_v44 = vsel %vm11479_vm4, 0, %v1436_v42 }
  0x90   :  { %1438 = vst [vmem:[#allocation2 + $0x1a0] sm:$0x1] %v1437_v44 }
  0x92   :  { %9680 = vmatmul.mubr.bf16.gmra.mrb[56].mxu0 %v11095_v62  ;;  %v1293_v62 = vld [vmem:[#allocation2 + $0x114] sm:$0x1] }
  0x93   :  { %9683 = vmatprep.mubr.bf16.mxu0 %v11096_v1  ;;  %v1294_v0 = vsel %vm11469_vm2, 0, %v1293_v62  ;;  %v1407_v1 = vsel %vm11479_vm4, 0, %v1406_v63 }
  0x94   :  { %1295 = vst [vmem:[#allocation2 + $0x114] sm:$0x1] %v1294_v0  ;;  %1408 = vst [vmem:[#allocation2 + $0x128] sm:$0x1] %v1407_v1 }
  0x9a   :  { %9684 = vmatmul.mubr.bf16.gmra.mrb[60].mxu0 %v11097_v7  ;;  %v1300_v7 = vsel %vm11469_vm2, 0, %v1299_v6 }
  0x9b   :  { %1301 = vst [vmem:[#allocation2 + $0x12c] sm:$0x1] %v1300_v7 }
  0xf5   :  { %v11624_v43 = vpop.f32.mrb[0].mxu0 }
  0xf6   :  { %v11628_v45 = vpop.f32.mrb[1].mxu0  ;;  %v654_v51 = vmul.f32 %v11624_v43, %v11624_v43 }
  0xf7   :  { %v11630_v46 = vpop.f32.mrb[2].mxu0  ;;  %v652_v48 = vmul.f32 %v11628_v45, %v11628_v45 }
  0xf8   :  { %v11632_v47 = vpop.f32.mrb[3].mxu0  ;;  %v655_v54 = vmul.f32 %v11630_v46, %v11630_v46 }
  0xf9   :  { %v630_v49 = vadd.f32 %v11632_v47, %v11628_v45  ;;  %v653_v50 = vmul.f32 %v11632_v47, %v11632_v47 }
  0xfb   :  { %v631_v52 = vadd.f32 %v11624_v43, %v630_v49  ;;  %v668_v53 = vadd.f32 %v653_v50, %v652_v48 }
  0xfd   :  { %v669_v55 = vadd.f32 %v668_v53, %v654_v51  ;;  %v11645_v56 = vpop.f32.mrb[4].mxu0  ;;  %v632_v57 = vadd.f32 %v11630_v46, %v631_v52 }
  0xfe   :  { %v11648_v58 = vpop.f32.mrb[5].mxu0  ;;  %v658_v3 = vmul.f32 %v11645_v56, %v11645_v56 }
  0xff   :  { %v633_v59 = vadd.f32 %v632_v57, %v11648_v58  ;;  %v656_v60 = vmul.f32 %v11648_v58, %v11648_v58  ;;  %v670_v61 = vadd.f32 %v669_v55, %v655_v54  ;;  %v11653_v62 = vpop.f32.mrb[6].mxu0 }
 0x100   :  { %v11655_v63 = vpop.f32.mrb[7].mxu0  ;;  %v659_v6 = vmul.f32 %v11653_v62, %v11653_v62 }
 0x101   :  { %v671_v0 = vadd.f32 %v670_v61, %v656_v60  ;;  %v634_v1 = vadd.f32 %v633_v59, %v11655_v63  ;;  %v657_v2 = vmul.f32 %v11655_v63, %v11655_v63 }
 0x103   :  { %v635_v4 = vadd.f32 %v11645_v56, %v634_v1  ;;  %v672_v5 = vadd.f32 %v671_v0, %v657_v2 }
 0x105   :  { %v673_v7 = vadd.f32 %v672_v5, %v658_v3  ;;  %v11665_v8 = vpop.f32.mrb[8].mxu0  ;;  %v636_v9 = vadd.f32 %v11653_v62, %v635_v4 }
 0x106   :  { %v11668_v10 = vpop.f32.mrb[9].mxu0  ;;  %v662_v19 = vmul.f32 %v11665_v8, %v11665_v8 }
 0x107   :  { %v637_v11 = vadd.f32 %v636_v9, %v11668_v10  ;;  %v660_v12 = vmul.f32 %v11668_v10, %v11668_v10  ;;  %v674_v13 = vadd.f32 %v673_v7, %v659_v6  ;;  %v11673_v14 = vpop.f32.mrb[10].mxu0 }
 0x108   :  { %v11675_v15 = vpop.f32.mrb[11].mxu0  ;;  %v663_v22 = vmul.f32 %v11673_v14, %v11673_v14 }
 0x109   :  { %v675_v16 = vadd.f32 %v674_v13, %v660_v12  ;;  %v638_v17 = vadd.f32 %v637_v11, %v11675_v15  ;;  %v661_v18 = vmul.f32 %v11675_v15, %v11675_v15 }
 0x10b   :  { %v639_v20 = vadd.f32 %v11665_v8, %v638_v17  ;;  %v676_v21 = vadd.f32 %v675_v16, %v661_v18 }
 0x10d   :  { %v677_v23 = vadd.f32 %v676_v21, %v662_v19  ;;  %v11685_v24 = vpop.f32.mrb[12].mxu0  ;;  %v640_v25 = vadd.f32 %v11673_v14, %v639_v20 }
 0x10e   :  { %v11688_v26 = vpop.f32.mrb[13].mxu0  ;;  %v666_v36 = vmul.f32 %v11685_v24, %v11685_v24 }
 0x10f   :  { %v641_v27 = vadd.f32 %v640_v25, %v11688_v26  ;;  %v664_v28 = vmul.f32 %v11688_v26, %v11688_v26  ;;  %v678_v29 = vadd.f32 %v677_v23, %v663_v22  ;;  %v11693_v30 = vpop.f32.mrb[14].mxu0  ;;  %v1433_v23 = vld [vmem:[#allocation2 + $0x194] sm:$0x1] }
 0x110   :  { %v11695_v31 = vpop.f32.mrb[15].mxu0  ;;  %v667_v40 = vmul.f32 %v11693_v30, %v11693_v30 }
 0x111   :  { %v679_v32 = vadd.f32 %v678_v29, %v664_v28  ;;  %v642_v33 = vadd.f32 %v641_v27, %v11695_v31  ;;  %v665_v35 = vmul.f32 %v11695_v31, %v11695_v31  ;;  %v1434_v29 = vsel %vm11479_vm4, 0, %v1433_v23 }
 0x112   :  { %1435 = vst [vmem:[#allocation2 + $0x194] sm:$0x1] %v1434_v29 }
 0x113   :  { %v643_v37 = vadd.f32 %v11685_v24, %v642_v33  ;;  %v680_v38 = vadd.f32 %v679_v32, %v665_v35 }
 0x115   :  { %v644_v41 = vadd.f32 %v11693_v30, %v643_v37  ;;  %v681_v42 = vadd.f32 %v680_v38, %v666_v36  ;;  %v11706_v44 = vpop.f32.mrb[16].mxu0 }
 0x116   :  { %v11708_v48 = vpop.f32.mrb[17].mxu0  ;;  %v714_v55 = vmul.f32 %v11706_v44, %v11706_v44 }
 0x117   :  { %v11710_v49 = vadd.f32 %v681_v42, %v667_v40  ;;  %v11712_v50 = vpop.f32.mrb[18].mxu0  ;;  %v712_v52 = vmul.f32 %v11708_v48, %v11708_v48  ;;  %v645_v40 = vrot.slane %v644_v41, 4 }
 0x118   :  { %v11714_v51 = vpop.f32.mrb[19].mxu0  ;;  %v715_v1 = vmul.f32 %v11712_v50, %v11712_v50 }
 0x119   :  { %v690_v53 = vadd.f32 %v11714_v51, %v11708_v48  ;;  %v713_v54 = vmul.f32 %v11714_v51, %v11714_v51 }
 0x11b   :  { %v691_v57 = vadd.f32 %v11706_v44, %v690_v53  ;;  %v728_v59 = vadd.f32 %v713_v54, %v712_v52 }
 0x11d   :  { %v729_v60 = vadd.f32 %v728_v59, %v714_v55  ;;  %v11725_v61 = vpop.f32.mrb[20].mxu0  ;;  %v692_v0 = vadd.f32 %v11712_v50, %v691_v57 }
 0x11e   :  { %v11730_v2 = vpop.f32.mrb[21].mxu0  ;;  %v718_v16 = vmul.f32 %v11725_v61, %v11725_v61 }
 0x11f   :  { %v693_v3 = vadd.f32 %v692_v0, %v11730_v2  ;;  %v716_v4 = vmul.f32 %v11730_v2, %v11730_v2  ;;  %v11735_v5 = vpop.f32.mrb[22].mxu0  ;;  %v730_v6 = vadd.f32 %v729_v60, %v715_v1 }
 0x120   :  { %v11737_v7 = vpop.f32.mrb[23].mxu0  ;;  %v719_v20 = vmul.f32 %v11735_v5, %v11735_v5 }
 0x121   :  { %v694_v9 = vadd.f32 %v693_v3, %v11737_v7  ;;  %v717_v11 = vmul.f32 %v11737_v7, %v11737_v7  ;;  %v731_v12 = vadd.f32 %v730_v6, %v716_v4  ;;  %v11098_v3 = vld [vmem:[%s17068_s1 + $0x100] sm:$0xff]   ;;  %v646_v4 = vadd.f32 %v645_v40, %v644_v41 }
 0x122   :  { %v683_v6 = vrot.slane %v11710_v49, 4  ;;  %9927 = vmatprep.subr.bf16.mxu1 %v11098_v3 }
 0x123   :  { %v695_v13 = vadd.f32 %v11725_v61, %v694_v9  ;;  %v732_v17 = vadd.f32 %v731_v12, %v717_v11  ;;  %9928 = vmatpush3.bf16.msra.mxu1 %v11098_v3 }
 0x125   :  { %v11745_v18 = vpop.f32.mrb[24].mxu0  ;;  %v696_v19 = vadd.f32 %v11735_v5, %v695_v13  ;;  %v733_v21 = vadd.f32 %v732_v17, %v718_v16 }
 0x126   :  { %v11750_v22 = vpop.f32.mrb[25].mxu0  ;;  %v722_v42 = vmul.f32 %v11745_v18, %v11745_v18 }
 0x127   :  { %v697_v25 = vadd.f32 %v696_v19, %v11750_v22  ;;  %v720_v27 = vmul.f32 %v11750_v22, %v11750_v22  ;;  %v11755_v28 = vpop.f32.mrb[26].mxu0  ;;  %v734_v32 = vadd.f32 %v733_v21, %v719_v20  ;;  %v647_v19 = vrot.slane %v646_v4, 2 }
 0x128   :  { %v11759_v33 = vpop.f32.mrb[27].mxu0  ;;  %v723_v55 = vmul.f32 %v11755_v28, %v11755_v28  ;;  %v684_v20 = vadd.f32 %v683_v6, %v11710_v49 }
 0x129   :  { %v698_v35 = vadd.f32 %v697_v25, %v11759_v33  ;;  %v721_v36 = vmul.f32 %v11759_v33, %v11759_v33  ;;  %v735_v37 = vadd.f32 %v734_v32, %v720_v27 }
 0x12b   :  { %v699_v38 = vadd.f32 %v11745_v18, %v698_v35  ;;  %v736_v52 = vadd.f32 %v735_v37, %v721_v36  ;;  %v648_v37 = vadd.f32 %v647_v19, %v646_v4 }
 0x12d   :  { %v11767_v53 = vpop.f32.mrb[28].mxu0  ;;  %v700_v54 = vadd.f32 %v11755_v28, %v699_v38  ;;  %v737_v57 = vadd.f32 %v736_v52, %v722_v42  ;;  %v685_v38 = vrot.slane %v684_v20, 2  ;;  %v649_v6 = vrot.slane %v648_v37, 1 }
 0x12e   :  { %v11772_v59 = vpop.f32.mrb[29].mxu0  ;;  %v726_v41 = vmul.f32 %v11767_v53, %v11767_v53 }
 0x12f   :  { %v701_v60 = vadd.f32 %v700_v54, %v11772_v59  ;;  %v724_v0 = vmul.f32 %v11772_v59, %v11772_v59  ;;  %v11777_v1 = vpop.f32.mrb[30].mxu0  ;;  %v738_v9 = vadd.f32 %v737_v57, %v723_v55 }
 0x130   :  { %v11783_v11 = vpop.f32.mrb[31].mxu0  ;;  %v727_v27 = vmul.f32 %v11777_v1, %v11777_v1 }
 0x131   :  { %v702_v12 = vadd.f32 %v701_v60, %v11783_v11  ;;  %v725_v13 = vmul.f32 %v11783_v11, %v11783_v11  ;;  %v739_v16 = vadd.f32 %v738_v9, %v724_v0  ;;  %v686_v9 = vadd.f32 %v685_v38, %v684_v20 }
 0x133   :  { %v703_v17 = vadd.f32 %v11767_v53, %v702_v12  ;;  %v740_v21 = vadd.f32 %v739_v16, %v725_v13 }
 0x135   :  { %v704_v23 = vadd.f32 %v11777_v1, %v703_v17  ;;  %v11793_v25 = vpop.f32.mrb[32].mxu0  ;;  %v741_v29 = vadd.f32 %v740_v21, %v726_v41 }
 0x136   :  { %v11797_v32 = vpop.f32.mrb[33].mxu0  ;;  %v774_v0 = vmul.f32 %v11793_v25, %v11793_v25 }
 0x137   :  { %v705_v35 = vrot.slane %v704_v23, 4  ;;  %v11799_v36 = vpop.f32.mrb[34].mxu0  ;;  %v742_v49 = vadd.f32 %v741_v29, %v727_v27  ;;  %v772_v52 = vmul.f32 %v11797_v32, %v11797_v32 }
 0x138   :  { %v11801_v40 = vpop.f32.mrb[35].mxu0  ;;  %v775_v16 = vmul.f32 %v11799_v36, %v11799_v36 }
 0x139   :  { %v706_v42 = vadd.f32 %v705_v35, %v704_v23  ;;  %v750_v54 = vadd.f32 %v11801_v40, %v11797_v32  ;;  %v773_v55 = vmul.f32 %v11801_v40, %v11801_v40  ;;  %v743_v57 = vrot.slane %v742_v49, 4 }
 0x13b   :  { %v707_v60 = vrot.slane %v706_v42, 2  ;;  %v751_v3 = vadd.f32 %v11793_v25, %v750_v54  ;;  %v788_v4 = vadd.f32 %v773_v55, %v772_v52  ;;  %v744_v12 = vadd.f32 %v743_v57, %v742_v49 }
 0x13c   :  { %v650_v49 = vadd.f32 %v649_v6, %v648_v37 }
 0x13d   :  { %v708_v13 = vadd.f32 %v707_v60, %v706_v42  ;;  %v789_v17 = vadd.f32 %v788_v4, %v774_v0  ;;  %v11814_v19 = vpop.f32.mrb[36].mxu0  ;;  %v752_v41 = vadd.f32 %v11799_v36, %v751_v3  ;;  %v745_v21 = vrot.slane %v744_v12, 2 }
 0x13e   :  { %v11817_v23 = vpop.f32.mrb[37].mxu0  ;;  %v687_v42 = vrot.slane %v686_v9, 1 }
 0x13f   :  { %v709_v27 = vrot.slane %v708_v13, 1  ;;  %v753_v29 = vadd.f32 %v752_v41, %v11817_v23  ;;  %v776_v35 = vmul.f32 %v11817_v23, %v11817_v23  ;;  %v790_v20 = vadd.f32 %v789_v17, %v775_v16  ;;  %v11822_v38 = vpop.f32.mrb[38].mxu0 }
 0x140   :  { %17348 = vst [vmem:[#allocation8_spill] sm:$0xff] %v11822_v38  ;;  %v746_v52 = vadd.f32 %v745_v21, %v744_v12  ;;  %v11824_v54 = vpop.f32.mrb[39].mxu0  ;;  %v778_v16 = vmul.f32 %v11814_v19, %v11814_v19  ;;  %v688_v6 = vadd.f32 %v687_v42, %v686_v9 }
 0x141   :  { %v710_v55 = vadd.f32 %v709_v27, %v708_v13  ;;  %v791_v57 = vadd.f32 %v790_v20, %v776_v35  ;;  %v754_v60 = vadd.f32 %v753_v29, %v11824_v54  ;;  %v777_v0 = vmul.f32 %v11824_v54, %v11824_v54 }
 0x142   :  { %v747_v3 = vrot.slane %v746_v52, 1  ;;  %v779_v13 = vmul.f32 %v11822_v38, %v11822_v38 }
 0x143   :  { %v11829_v4 = vadd.f32 %v710_v55, %v650_v49  ;;  %v755_v17 = vadd.f32 %v11814_v19, %v754_v60  ;;  %v792_v37 = vadd.f32 %v791_v57, %v777_v0 }
 0x144   :  { %v748_v12 = vadd.f32 %v747_v3, %v746_v52 }
 0x145   :  { %v793_v41 = vadd.f32 %v792_v37, %v778_v16  ;;  %v11836_v21 = vpop.f32.mrb[40].mxu0  ;;  %v756_v27 = vadd.f32 %v11822_v38, %v755_v17 }
 0x146   :  { %17349 = vst [vmem:[#allocation9_spill] sm:$0xff] %v11836_v21  ;;  %v11839_v29 = vadd.f32 %v748_v12, %v688_v6  ;;  %v11841_v35 = vpop.f32.mrb[41].mxu0  ;;  %v782_v0 = vmul.f32 %v11836_v21, %v11836_v21 }
 0x147   :  { %17350 = vst [vmem:[#allocation10_spill] sm:$0xff] %v11841_v35  ;;  %v757_v20 = vadd.f32 %v756_v27, %v11841_v35  ;;  %v780_v49 = vmul.f32 %v11841_v35, %v11841_v35  ;;  %v794_v55 = vadd.f32 %v793_v41, %v779_v13  ;;  %v11846_v9 = vpop.f32.mrb[42].mxu0 }
 0x148   :  { %17351 = vst [vmem:[#allocation11_spill] sm:$0xff] %v11846_v9  ;;  %v11848_v42 = vpop.f32.mrb[43].mxu0  ;;  %v783_v17 = vmul.f32 %v11846_v9, %v11846_v9 }
 0x149   :  { %17352 = vst [vmem:[#allocation12_spill] sm:$0xff] %v11848_v42  ;;  %v795_v52 = vadd.f32 %v794_v55, %v780_v49  ;;  %v758_v57 = vadd.f32 %v757_v20, %v11848_v42  ;;  %v781_v60 = vmul.f32 %v11848_v42, %v11848_v42 }
 0x14b   :  { %v759_v3 = vadd.f32 %v11836_v21, %v758_v57  ;;  %v796_v16 = vadd.f32 %v795_v52, %v781_v60 }
 0x14d   :  { %v797_v37 = vadd.f32 %v796_v16, %v782_v0  ;;  %v11858_v6 = vpop.f32.mrb[44].mxu0  ;;  %v760_v12 = vadd.f32 %v11846_v9, %v759_v3 }
 0x14e   :  { %17353 = vst [vmem:[#allocation13_spill] sm:$0xff] %v11858_v6  ;;  %v11861_v13 = vpop.f32.mrb[45].mxu0  ;;  %v786_v0 = vmul.f32 %v11858_v6, %v11858_v6 }
 0x14f   :  { %17354 = vst [vmem:[#allocation14_spill] sm:$0xff] %v11861_v13  ;;  %v761_v41 = vadd.f32 %v760_v12, %v11861_v13  ;;  %v784_v27 = vmul.f32 %v11861_v13, %v11861_v13  ;;  %v798_v20 = vadd.f32 %v797_v37, %v783_v17  ;;  %v11866_v49 = vpop.f32.mrb[46].mxu0 }
 0x150   :  { %17355 = vst [vmem:[#allocation15_spill] sm:$0xff] %v11866_v49  ;;  %v11868_v55 = vpop.f32.mrb[47].mxu0  ;;  %v787_v12 = vmul.f32 %v11866_v49, %v11866_v49 }
 0x151   :  { %17356 = vst [vmem:[#allocation16_spill] sm:$0xff] %v11868_v55  ;;  %v799_v52 = vadd.f32 %v798_v20, %v784_v27  ;;  %v762_v57 = vadd.f32 %v761_v41, %v11868_v55  ;;  %v785_v60 = vmul.f32 %v11868_v55, %v11868_v55 }
 0x153   :  { %v763_v3 = vadd.f32 %v11858_v6, %v762_v57  ;;  %v800_v16 = vadd.f32 %v799_v52, %v785_v60 }
 0x155   :  { %v764_v17 = vadd.f32 %v11866_v49, %v763_v3  ;;  %v801_v37 = vadd.f32 %v800_v16, %v786_v0  ;;  %v11879_v39 = vpop.f32.mrb[48].mxu0 }
 0x156   :  { %17357 = vst [vmem:[#allocation17_spill] sm:$0xff] %v11879_v39  ;;  %v11881_v27 = vpop.f32.mrb[49].mxu0  ;;  %v834_v3 = vmul.f32 %v11879_v39, %v11879_v39 }
 0x157   :  { %17358 = vst [vmem:[#allocation18_spill] sm:$0xff] %v11881_v27  ;;  %v765_v41 = vrot.slane %v764_v17, 4  ;;  %v802_v20 = vadd.f32 %v801_v37, %v787_v12  ;;  %v11883_v34 = vpop.f32.mrb[50].mxu0  ;;  %v832_v55 = vmul.f32 %v11881_v27, %v11881_v27 }
 0x158   :  { %17359 = vst [vmem:[#allocation19_spill] sm:$0xff] %v11883_v34  ;;  %v11887_v13 = vpop.f32.mrb[51].mxu0 }
 0x159   :  { %17360 = vst [vmem:[#allocation20_spill] sm:$0xff] %v11887_v13  ;;  %v766_v52 = vadd.f32 %v765_v41, %v764_v17  ;;  %v803_v57 = vrot.slane %v802_v20, 4  ;;  %v810_v60 = vadd.f32 %v11887_v13, %v11881_v27  ;;  %v833_v0 = vmul.f32 %v11887_v13, %v11887_v13 }
 0x15a   :  { %v835_v41 = vmul.f32 %v11883_v34, %v11883_v34 }
 0x15b   :  { %v767_v16 = vrot.slane %v766_v52, 2  ;;  %v804_v12 = vadd.f32 %v803_v57, %v802_v20  ;;  %v811_v37 = vadd.f32 %v11879_v39, %v810_v60  ;;  %v848_v49 = vadd.f32 %v833_v0, %v832_v55 }
 0x15d   :  { %v768_v6 = vadd.f32 %v767_v16, %v766_v52  ;;  %v805_v9 = vrot.slane %v804_v12, 2  ;;  %v849_v21 = vadd.f32 %v848_v49, %v834_v3  ;;  %v11896_v42 = vpop.f32.mrb[52].mxu0  ;;  %v812_v17 = vadd.f32 %v11883_v34, %v811_v37 }
 0x15e   :  { %17361 = vst [vmem:[#allocation21_spill] sm:$0xff] %v11896_v42  ;;  %v11901_v27 = vpop.f32.mrb[53].mxu0  ;;  %v880_v34 = vlaneseq }
 0x15f   :  { %17362 = vst [vmem:[#allocation22_spill] sm:$0xff] %v11901_v27  ;;  %v769_v13 = vrot.slane %v768_v6, 1  ;;  %v806_v35 = vadd.f32 %v805_v9, %v804_v12  ;;  %v813_v38 = vadd.f32 %v812_v17, %v11901_v27  ;;  %v836_v20 = vmul.f32 %v11901_v27, %v11901_v27  ;;  %v11906_v55 = vpop.f32.mrb[54].mxu0  ;;  %v11099_v9 = vld [vmem:[%s17068_s1 + $0x108] sm:$0xff]  }
 0x160   :  { %17363 = vst [vmem:[#allocation23_spill] sm:$0xff] %v11906_v55  ;;  %v850_v52 = vadd.f32 %v849_v21, %v835_v41  ;;  %v11908_v49 = vpop.f32.mrb[55].mxu0  ;;  %9929 = vmatprep.subr.bf16.mxu1 %v11099_v9  ;;  %v838_v21 = vmul.f32 %v11896_v42, %v11896_v42  ;;  %v881_v39 = vshrl.u32 %v880_v34, 7 }
 0x161   :  { %17364 = vst [vmem:[#allocation24_spill] sm:$0xff] %v11908_v49  ;;  %v770_v57 = vadd.f32 %v769_v13, %v768_v6  ;;  %v807_v60 = vrot.slane %v806_v35, 1  ;;  %v814_v0 = vadd.f32 %v813_v38, %v11908_v49  ;;  %v837_v3 = vmul.f32 %v11908_v49, %v11908_v49  ;;  %9930 = vmatpush3.bf16.msra.mxu1 %v11099_v9 }
 0x162   :  { %v851_v16 = vadd.f32 %v850_v52, %v836_v20  ;;  %v839_v20 = vmul.f32 %v11906_v55, %v11906_v55 }
 0x163   :  { %v771_v12 = vadd.f32 %v770_v57, %v11829_v4  ;;  %v808_v37 = vadd.f32 %v807_v60, %v806_v35  ;;  %v815_v17 = vadd.f32 %v11896_v42, %v814_v0 }
 0x164   :  { %v852_v6 = vadd.f32 %v851_v16, %v837_v3 }
 0x165   :  { %v809_v38 = vadd.f32 %v808_v37, %v11839_v29  ;;  %v11921_v13 = vpop.f32.mrb[56].mxu0  ;;  %v816_v41 = vadd.f32 %v11906_v55, %v815_v17 }
 0x166   :  { %17365 = vst [vmem:[#allocation25_spill] sm:$0xff] %v11921_v13  ;;  %v853_v52 = vadd.f32 %v852_v6, %v838_v21  ;;  %v11926_v4 = vpop.f32.mrb[57].mxu0  ;;  %v842_v17 = vmul.f32 %v11921_v13, %v11921_v13 }
 0x167   :  { %17366 = vst [vmem:[#allocation26_spill] sm:$0xff] %v11926_v4  ;;  %v817_v35 = vadd.f32 %v816_v41, %v11926_v4  ;;  %v840_v57 = vmul.f32 %v11926_v4, %v11926_v4  ;;  %v11931_v60 = vpop.f32.mrb[58].mxu0 }
 0x168   :  { %17367 = vst [vmem:[#allocation27_spill] sm:$0xff] %v11931_v60  ;;  %v854_v0 = vadd.f32 %v853_v52, %v839_v20  ;;  %v11933_v3 = vpop.f32.mrb[59].mxu0  ;;  %v843_v20 = vmul.f32 %v11931_v60, %v11931_v60 }
 0x169   :  { %17368 = vst [vmem:[#allocation28_spill] sm:$0xff] %v11933_v3  ;;  %v818_v29 = vadd.f32 %v817_v35, %v11933_v3  ;;  %v841_v9 = vmul.f32 %v11933_v3, %v11933_v3 }
 0x16a   :  { %v855_v16 = vadd.f32 %v854_v0, %v840_v57 }
 0x16b   :  { %v819_v37 = vadd.f32 %v11921_v13, %v818_v29 }
 0x16c   :  { %v856_v21 = vadd.f32 %v855_v16, %v841_v9 }
 0x16d   :  { %v11941_v6 = vpop.f32.mrb[60].mxu0  ;;  %v820_v41 = vadd.f32 %v11931_v60, %v819_v37 }
 0x16e   :  { %17369 = vst [vmem:[#allocation29_spill] sm:$0xff] %v11941_v6  ;;  %v857_v52 = vadd.f32 %v856_v21, %v842_v17  ;;  %v613_v4 = vpop.f32.mrb[61].mxu0  ;;  %v846_v16 = vmul.f32 %v11941_v6, %v11941_v6 }
 0x16f   :  { %v821_v35 = vadd.f32 %v820_v41, %v613_v4  ;;  %v844_v55 = vmul.f32 %v613_v4, %v613_v4  ;;  %v11946_v42 = vpop.f32.mrb[62].mxu0 }
 0x170   :  { %17370 = vst [vmem:[#allocation30_spill] sm:$0xff] %v11946_v42  ;;  %v858_v57 = vadd.f32 %v857_v52, %v843_v20  ;;  %v616_v0 = vpop.f32.mrb[63].mxu0  ;;  %v847_v17 = vmul.f32 %v11946_v42, %v11946_v42 }
 0x171   :  { %v822_v29 = vadd.f32 %v821_v35, %v616_v0  ;;  %v845_v3 = vmul.f32 %v616_v0, %v616_v0 }
 0x172   :  { %v859_v49 = vadd.f32 %v858_v57, %v844_v55  ;;  %v11100_v55 = vld [vmem:[%s17068_s1 + $0x110] sm:$0xff]  }
 0x173   :  { %v823_v9 = vadd.f32 %v11941_v6, %v822_v29  ;;  %9931 = vmatprep.subr.bf16.mxu1 %v11100_v55 }
 0x174   :  { %v860_v37 = vadd.f32 %v859_v49, %v845_v3  ;;  %9932 = vmatpush3.bf16.msra.mxu1 %v11100_v55 }
 0x175   :  { %v824_v13 = vadd.f32 %v11946_v42, %v823_v9 }
 0x176   :  { %v861_v21 = vadd.f32 %v860_v37, %v846_v16 }
 0x177   :  { %v825_v41 = vrot.slane %v824_v13, 4 }
 0x178   :  { %v862_v60 = vadd.f32 %v861_v21, %v847_v17 }
 0x179   :  { %v826_v27 = vadd.f32 %v825_v41, %v824_v13 }
 0x17a   :  { %v863_v20 = vrot.slane %v862_v60, 4 }
 0x17b   :  { %v827_v52 = vrot.slane %v826_v27, 2 }
 0x17c   :  { %v864_v35 = vadd.f32 %v863_v20, %v862_v60 }
 0x17d   :  { %v828_v57 = vadd.f32 %v827_v52, %v826_v27  ;;  %v628_v27 = vld [vmem:[%s17070_s3] sm:$0x1]  ;;  %v11960_v52 = vsub.s32 0, %v881_v39 }
 0x17e   :  { %v865_v29 = vrot.slane %v864_v35, 2 }
 0x17f   :  { %v829_v49 = vrot.slane %v828_v57, 1  ;;  %17371 = vst [vmem:[#allocation31_spill] sm:$0xff] %v11960_v52 }
 0x180   :  { %v866_v3 = vadd.f32 %v865_v29, %v864_v35 }
 0x181   :  { %v830_v9 = vadd.f32 %v829_v49, %v828_v57 }
 0x182   :  { %v867_v6 = vrot.slane %v866_v3, 1 }
 0x183   :  { %v831_v42 = vadd.f32 %v830_v9, %v771_v12 }
 0x184   :  { %v868_v16 = vadd.f32 %v867_v6, %v866_v3 }
 0x185   :  { %v870_v37 = vmul.f32 0.001953125, %v831_v42  ;;  %v629_v42 = vld [vmem:[%s17070_s3 + $0x1] sm:$0x1] }
 0x186   :  { %v869_v17 = vadd.f32 %v868_v16, %v809_v38 }
 0x187   :  { %v872_v13 = vmul.f32 %v870_v37, %v870_v37 }
 0x188   :  { %v871_v21 = vmul.f32 0.001953125, %v869_v17 }
 0x18a   :  { %v873_v41 = vsub.f32 %v871_v21, %v872_v13 }
 0x18c   :  { %v874_v60 = vmax.f32 %v873_v41, 0.0 }
 0x18e   :  { %v875_v20 = vadd.f32 1e-05, %v874_v60 }
 0x190   :  { %11206 = vrsqrt.f32 %v875_v20 }
 0x19a   :  { %v11207_v35 = vpop.eup %11206 }
 0x19b   :  { %v877_v55 = vmul.f32 %v11207_v35, %v628_v27 }
 0x19d   :  { %v878_v12 = vmul.f32 %v877_v55, %v870_v37  ;;  %v11966_v38 = vrot.slane %v877_v55, %v11960_v52 }
 0x19f   :  { %v879_v6 = vsub.f32 %v629_v42, %v878_v12  ;;  %v944_v57 = vmul.f32 %v11966_v38, %v613_v4  ;;  %v945_v34 = vmul.f32 %v11966_v38, %v616_v0  ;;  %v11972_v29 = vmul.f32 %v11966_v38, %v11628_v45 }
 0x1a0   :  { %v11976_v39 = vmul.f32 %v11966_v38, %v11632_v47  ;;  %v11980_v49 = vmul.f32 %v11624_v43, %v11966_v38  ;;  %v11984_v3 = vmul.f32 %v11630_v46, %v11966_v38  ;;  %v11988_v4 = vmul.f32 %v11966_v38, %v11648_v58 }
 0x1a1   :  { %v11991_v0 = vrot.slane %v879_v6, %v11960_v52  ;;  %v11995_v45 = vmul.f32 %v11966_v38, %v11655_v63  ;;  %v11999_v47 = vmul.f32 %v11645_v56, %v11966_v38  ;;  %v12003_v43 = vmul.f32 %v11653_v62, %v11966_v38 }
 0x1a2   :  { %v12007_v46 = vmul.f32 %v11966_v38, %v11668_v10  ;;  %v12011_v58 = vmul.f32 %v11966_v38, %v11675_v15  ;;  %v12015_v63 = vmul.f32 %v11665_v8, %v11966_v38  ;;  %v12019_v56 = vmul.f32 %v11673_v14, %v11966_v38 }
 0x1a3   :  { %v1012_v62 = vadd.f32 %v11991_v0, %v944_v57  ;;  %v1013_v9 = vadd.f32 %v11991_v0, %v945_v34  ;;  %v12025_v10 = vmul.f32 %v11966_v38, %v11688_v26  ;;  %v12029_v15 = vmul.f32 %v11966_v38, %v11695_v31 }
 0x1a4   :  { %v12033_v8 = vmul.f32 %v11685_v24, %v11966_v38  ;;  %v12037_v14 = vmul.f32 %v11693_v30, %v11966_v38  ;;  %v12041_v16 = vmul.f32 %v11966_v38, %v11708_v48  ;;  %v12045_v26 = vmul.f32 %v11966_v38, %v11714_v51 }
 0x1a5   :  { %vm1076_vm6 = vcmp.ge.f32.partialorder %v1012_v62, 0.0  ;;  %vm1077_vm7 = vcmp.ge.f32.partialorder %v1013_v9, 0.0  ;;  %v1140_v31 = vmul.f32 0.1, %v1012_v62  ;;  %v1141_v37 = vmul.f32 0.1, %v1013_v9 }
 0x1a6   :  { %v12049_v24 = vmul.f32 %v11706_v44, %v11966_v38  ;;  %v12053_v30 = vmul.f32 %v11712_v50, %v11966_v38  ;;  %v12057_v48 = vmul.f32 %v11966_v38, %v11730_v2  ;;  %v12061_v51 = vmul.f32 %v11966_v38, %v11737_v7 }
 0x1a7   :  { %v1204_v17 = vsel %vm1076_vm6, %v1012_v62, %v1140_v31  ;;  %v1205_v13 = vsel %vm1077_vm7, %v1013_v9, %v1141_v37  ;;  %v12065_v21 = vmul.f32 %v11725_v61, %v11966_v38  ;;  %v12069_v44 = vmul.f32 %v11735_v5, %v11966_v38  ;;  %v17379_v31 = vld [vmem:[#allocation12_spill] sm:$0xff]  ;;  %v17381_v37 = vld [vmem:[#allocation9_spill] sm:$0xff] }
 0x1a8   :  { %v12071_v50 = vpack.c.bf16 %v1204_v17, %v1204_v17  ;;  %v9170_v41 = vpack.c.bf16 %v1205_v13, %v1205_v13  ;;  %v12075_v2 = vmul.f32 %v11966_v38, %v11750_v22  ;;  %v12079_v7 = vmul.f32 %v11966_v38, %v11759_v33  ;;  %v17383_v17 = vld [vmem:[#allocation11_spill] sm:$0xff] }
 0x1a9   :  { %v12083_v60 = vmul.f32 %v11745_v18, %v11966_v38  ;;  %v12087_v61 = vmul.f32 %v11755_v28, %v11966_v38  ;;  %v12091_v5 = vmul.f32 %v11966_v38, %v11772_v59  ;;  %v12095_v22 = vmul.f32 %v11966_v38, %v11783_v11 }
 0x1aa   :  { %17372 = vst [vmem:[#allocation32_spill] sm:$0xff] %v12071_v50  ;;  %v2147_v20 = vshrl.u32 %v12071_v50, 16  ;;  %v2155_v33 = vshrl.u32 %v9170_v41, 16  ;;  %v2158_v27 = vshll.u32 %v9170_v41, 16  ;;  %v12100_v18 = vmul.f32 %v11767_v53, %v11966_v38  ;;  %v17385_v41 = vld [vmem:[#allocation14_spill] sm:$0xff]  ;;  %v17399_v50 = vld [vmem:[#allocation24_spill] sm:$0xff] }
 0x1ab   :  { %v12104_v28 = vmul.f32 %v11777_v1, %v11966_v38  ;;  %v12108_v59 = vmul.f32 %v11966_v38, %v11797_v32  ;;  %v12112_v11 = vmul.f32 %v11966_v38, %v11801_v40  ;;  %v12116_v35 = vmul.f32 %v11793_v25, %v11966_v38  ;;  %v2493_v40 = vld [vmem:[#allocation2 + $0x194] sm:$0x1] }
 0x1ac   :  { %v12118_v55 = vrot.slane %v2147_v20, 7  ;;  %v2157_v53 = vrot.slane %v2155_v33, 7  ;;  %v12122_v42 = vmul.f32 %v11799_v36, %v11966_v38  ;;  %v12126_v1 = vmul.f32 %v11966_v38, %v11817_v23  ;;  %v17377_v36 = vld [vmem:[#allocation8_spill] sm:$0xff]  ;;  %v17378_v23 = vld [vmem:[#allocation10_spill] sm:$0xff] }
 0x1ad   :  { %v17374_v32 = vmov 0  ;;  %v12136_v25 = vmul.f32 %v11966_v38, %v11824_v54  ;;  %v12140_v12 = vmul.f32 %v11814_v19, %v11966_v38  ;;  %v12144_v6 = vmul.f32 %v17377_v36, %v11966_v38  ;;  %v17387_v33 = vld [vmem:[#allocation16_spill] sm:$0xff] }
 0x1ae   :  { %17373 = vst [vmem:[#allocation33_spill] sm:$0xff] %v12118_v55  ;;  %v17375_v32 = vsel %vm12130_vm8, 4294967295, %v17374_v32  ;;  %v12148_v57 = vmul.f32 %v11966_v38, %v17378_v23  ;;  %v2153_v34 = vrot.slane %v12118_v55, 4  ;;  %v2160_v62 = vor.u32 %v2158_v27, %v2157_v53  ;;  %v17395_v55 = vld [vmem:[#allocation20_spill] sm:$0xff] }
 0x1af   :  { %17376 = vst [vmem:[#allocation34_spill] sm:$0xff] %v17375_v32  ;;  %v2162_v9 = vrot.slane %v2157_v53, 4  ;;  %v12153_v54 = vmul.f32 %v11966_v38, %v17379_v31  ;;  %v12157_v19 = vmul.f32 %v17381_v37, %v11966_v38  ;;  %v12161_v13 = vmul.f32 %v17383_v17, %v11966_v38  ;;  %v17390_v31 = vld [vmem:[#allocation13_spill] sm:$0xff]  ;;  %v17392_v17 = vld [vmem:[#allocation15_spill] sm:$0xff] }
 0x1b0   :  { %v12165_v20 = vmul.f32 %v11966_v38, %v17385_v41  ;;  %v12169_v27 = vmul.f32 %v11966_v38, %v17387_v33  ;;  %v2161_v53 = vsel %vm12130_vm8, %v2153_v34, %v2160_v62  ;;  %v12177_v37 = vmul.f32 %v17390_v31, %v11966_v38  ;;  %v17394_v41 = vld [vmem:[#allocation18_spill] sm:$0xff]  ;;  %v17396_v34 = vld [vmem:[#allocation17_spill] sm:$0xff] }
 0x1b1   :  { %17380 = vst [vmem:[#allocation8_spill] sm:$0xff] %v12153_v54  ;;  %17382 = vst [vmem:[#allocation10_spill] sm:$0xff] %v12157_v19  ;;  %v2494_v23 = vsel %vm11469_vm2, %v2162_v9, %v2493_v40  ;;  %v12181_v52 = vmul.f32 %v17392_v17, %v11966_v38  ;;  %v932_v33 = vmul.f32 %v11966_v38, %v17394_v41  ;;  %v17397_v40 = vld [vmem:[#allocation19_spill] sm:$0xff]  ;;  %v17398_v31 = vld [vmem:[#allocation22_spill] sm:$0xff] }
 0x1b2   :  { %17384 = vst [vmem:[#allocation12_spill] sm:$0xff] %v12161_v13  ;;  %17386 = vst [vmem:[#allocation9_spill] sm:$0xff] %v12165_v20  ;;  %v933_v32 = vmul.f32 %v11966_v38, %v17395_v55  ;;  %v934_v62 = vmul.f32 %v17396_v34, %v11966_v38  ;;  %v935_v9 = vmul.f32 %v17397_v40, %v11966_v38  ;;  %v17401_v41 = vld [vmem:[#allocation23_spill] sm:$0xff]  ;;  %v17404_v40 = vld [vmem:[#allocation25_spill] sm:$0xff] }
 0x1b3   :  { %17388 = vst [vmem:[#allocation11_spill] sm:$0xff] %v12169_v27  ;;  %17391 = vst [vmem:[#allocation14_spill] sm:$0xff] %v12177_v37  ;;  %v936_v36 = vmul.f32 %v11966_v38, %v17398_v31  ;;  %v937_v17 = vmul.f32 %v11966_v38, %v17399_v50  ;;  %v17402_v37 = vld [vmem:[#allocation26_spill] sm:$0xff]  ;;  %v17403_v27 = vld [vmem:[#allocation28_spill] sm:$0xff]  ;;  %v942_v20 = vmul.f32 %v17404_v40, %v11966_v38 }
 0x1b4   :  { %17393 = vst [vmem:[#allocation16_spill] sm:$0xff] %v12181_v52  ;;  %2492 = vst [vmem:[#allocation2 + $0x190] sm:$0xf] %v2161_v53  ;;  %v17400_v53 = vld [vmem:[#allocation21_spill] sm:$0xff]  ;;  %v939_v52 = vmul.f32 %v17401_v41, %v11966_v38  ;;  %v940_v55 = vmul.f32 %v11966_v38, %v17402_v37  ;;  %v941_v34 = vmul.f32 %v11966_v38, %v17403_v27  ;;  %v17405_v31 = vld [vmem:[#allocation27_spill] sm:$0xff] }
 0x1b5   :  { %2495 = vst [vmem:[#allocation2 + $0x194] sm:$0x1] %v2494_v23  ;;  %v938_v23 = vmul.f32 %v17400_v53, %v11966_v38  ;;  %v943_v13 = vmul.f32 %v17405_v31, %v11966_v38  ;;  %v17406_v50 = vld [vmem:[#allocation29_spill] sm:$0xff]  ;;  %v17407_v53 = vld [vmem:[#allocation30_spill] sm:$0xff]  ;;  %v12213_v41 = vadd.f32 %v11991_v0, %v11972_v29  ;;  %v12217_v37 = vadd.f32 %v11991_v0, %v11976_v39 }
 0x1b6   :  { %v946_v19 = vmul.f32 %v17406_v50, %v11966_v38  ;;  %v947_v54 = vmul.f32 %v17407_v53, %v11966_v38  ;;  %v12221_v27 = vadd.f32 %v11991_v0, %v11980_v49  ;;  %v12225_v40 = vadd.f32 %v11991_v0, %v11984_v3 }
 0x1b7   :  { %v12229_v31 = vadd.f32 %v11991_v0, %v11988_v4  ;;  %v12233_v38 = vadd.f32 %v11991_v0, %v11995_v45  ;;  %v12237_v29 = vadd.f32 %v11991_v0, %v11999_v47  ;;  %v12241_v39 = vadd.f32 %v11991_v0, %v12003_v43 }
 0x1b8   :  { %v12245_v49 = vadd.f32 %v11991_v0, %v12007_v46  ;;  %v12249_v3 = vadd.f32 %v11991_v0, %v12011_v58  ;;  %v12253_v4 = vadd.f32 %v11991_v0, %v12015_v63  ;;  %v12257_v45 = vadd.f32 %v11991_v0, %v12019_v56  ;;  %v17413_v50 = vld [vmem:[#allocation10_spill] sm:$0xff] }
 0x1b9   :  { %v12261_v47 = vadd.f32 %v11991_v0, %v12025_v10  ;;  %v12265_v43 = vadd.f32 %v11991_v0, %v12029_v15  ;;  %v12269_v46 = vadd.f32 %v11991_v0, %v12033_v8  ;;  %v12273_v58 = vadd.f32 %v11991_v0, %v12037_v14  ;;  %v17415_v53 = vld [vmem:[#allocation12_spill] sm:$0xff] }
 0x1ba   :  { %v12277_v63 = vadd.f32 %v11991_v0, %v12041_v16  ;;  %v12281_v56 = vadd.f32 %v11991_v0, %v12045_v26  ;;  %v12285_v10 = vadd.f32 %v11991_v0, %v12049_v24  ;;  %v12289_v15 = vadd.f32 %v11991_v0, %v12053_v30 }
 0x1bb   :  { %v12293_v8 = vadd.f32 %v11991_v0, %v12057_v48  ;;  %v12297_v14 = vadd.f32 %v11991_v0, %v12061_v51  ;;  %v12301_v16 = vadd.f32 %v11991_v0, %v12065_v21  ;;  %v12305_v26 = vadd.f32 %v11991_v0, %v12069_v44 }
 0x1bc   :  { %v12309_v24 = vadd.f32 %v11991_v0, %v12075_v2  ;;  %v12313_v30 = vadd.f32 %v11991_v0, %v12079_v7  ;;  %v12317_v48 = vadd.f32 %v11991_v0, %v12083_v60  ;;  %v12321_v51 = vadd.f32 %v11991_v0, %v12087_v61 }
 0x1bd   :  { %v12325_v21 = vadd.f32 %v11991_v0, %v12091_v5  ;;  %v12329_v44 = vadd.f32 %v11991_v0, %v12095_v22  ;;  %v12333_v2 = vadd.f32 %v11991_v0, %v12100_v18  ;;  %v12337_v7 = vadd.f32 %v11991_v0, %v12104_v28 }
 0x1be   :  { %v12341_v60 = vadd.f32 %v11991_v0, %v12108_v59  ;;  %v12345_v61 = vadd.f32 %v11991_v0, %v12112_v11  ;;  %v12349_v5 = vadd.f32 %v11991_v0, %v12116_v35  ;;  %v12353_v22 = vadd.f32 %v11991_v0, %v12122_v42  ;;  %v17411_v42 = vld [vmem:[#allocation8_spill] sm:$0xff] }
 0x1bf   :  { %v12357_v18 = vadd.f32 %v11991_v0, %v12126_v1  ;;  %v12361_v28 = vadd.f32 %v11991_v0, %v12136_v25  ;;  %v12365_v59 = vadd.f32 %v11991_v0, %v12140_v12  ;;  %v12369_v11 = vadd.f32 %v11991_v0, %v12144_v6 }
 0x1c0   :  { %v12373_v35 = vadd.f32 %v11991_v0, %v12148_v57  ;;  %v12377_v1 = vadd.f32 %v11991_v0, %v17411_v42  ;;  %v12381_v25 = vadd.f32 %v11991_v0, %v17413_v50  ;;  %v12385_v12 = vadd.f32 %v11991_v0, %v17415_v53 }
 0x1c1   :  { %17408 = vst [vmem:[#allocation13_spill] sm:$0xff] %v12365_v59  ;;  %17409 = vst [vmem:[#allocation15_spill] sm:$0xff] %v12369_v11  ;;  %v17416_v59 = vld [vmem:[#allocation9_spill] sm:$0xff]  ;;  %v17417_v11 = vld [vmem:[#allocation11_spill] sm:$0xff]  ;;  %v12407_v53 = vadd.f32 %v11991_v0, %v933_v32  ;;  %v12428_v32 = vadd.f32 %v11991_v0, %v940_v55  ;;  %vm1016_vm11 = vcmp.ge.f32.partialorder %v12213_v41, 0.0  ;;  %vm1017_vm12 = vcmp.ge.f32.partialorder %v12217_v37, 0.0 }
 0x1c2   :  { %17410 = vst [vmem:[#allocation18_spill] sm:$0xff] %v12373_v35  ;;  %17412 = vst [vmem:[#allocation20_spill] sm:$0xff] %v12377_v1  ;;  %v12389_v6 = vadd.f32 %v11991_v0, %v17416_v59  ;;  %v12393_v57 = vadd.f32 %v11991_v0, %v17417_v11  ;;  %v17419_v35 = vld [vmem:[#allocation14_spill] sm:$0xff]  ;;  %v17420_v1 = vld [vmem:[#allocation16_spill] sm:$0xff]  ;;  %v12410_v59 = vadd.f32 %v11991_v0, %v934_v62  ;;  %vm1018_vm13 = vcmp.ge.f32.partialorder %v12221_v27, 0.0 }
 0x1c3   :  { %17414 = vst [vmem:[#allocation17_spill] sm:$0xff] %v12381_v25  ;;  %v12397_v42 = vadd.f32 %v11991_v0, %v17419_v35  ;;  %v12401_v50 = vadd.f32 %v11991_v0, %v17420_v1  ;;  %v12404_v25 = vadd.f32 %v11991_v0, %v932_v33  ;;  %v12413_v11 = vadd.f32 %v11991_v0, %v935_v9  ;;  %v17431_v55 = vld [vmem:[#allocation33_spill] sm:$0xff] }
 0x1c4   :  { %17418 = vst [vmem:[#allocation19_spill] sm:$0xff] %v12393_v57  ;;  %v12416_v57 = vadd.f32 %v11991_v0, %v936_v36  ;;  %v12419_v35 = vadd.f32 %v11991_v0, %v937_v17  ;;  %v12422_v1 = vadd.f32 %v11991_v0, %v938_v23  ;;  %v12425_v33 = vadd.f32 %v11991_v0, %v939_v52  ;;  %v17430_v52 = vld [vmem:[#allocation32_spill] sm:$0xff] }
 0x1c5   :  { %17421 = vst [vmem:[#allocation22_spill] sm:$0xff] %v12413_v11  ;;  %17424 = vst [vmem:[#allocation23_spill] sm:$0xff] %v12428_v32  ;;  %v12431_v62 = vadd.f32 %v11991_v0, %v941_v34  ;;  %v12434_v9 = vadd.f32 %v11991_v0, %v942_v20  ;;  %v12437_v36 = vadd.f32 %v11991_v0, %v943_v13  ;;  %v17432_v34 = vmov 0  ;;  %v2489_v20 = vld [vmem:[#allocation2 + $0x18c] sm:$0xf] }
 0x1c6   :  { %17422 = vst [vmem:[#allocation24_spill] sm:$0xff] %v12422_v1  ;;  %17423 = vst [vmem:[#allocation21_spill] sm:$0xff] %v12425_v33  ;;  %v12440_v17 = vadd.f32 %v11991_v0, %v946_v19  ;;  %v12443_v23 = vadd.f32 %v11991_v0, %v947_v54  ;;  %v2150_v33 = vshll.u32 %v17430_v52, 16  ;;  %v17433_v34 = vsel %vm12448_vm10, 4294967295, %v17432_v34 }
 0x1c7   :  { %17425 = vst [vmem:[#allocation26_spill] sm:$0xff] %v12431_v62  ;;  %17426 = vst [vmem:[#allocation28_spill] sm:$0xff] %v12434_v9  ;;  %vm1019_vm14 = vcmp.ge.f32.partialorder %v12225_v40, 0.0  ;;  %vm1020_vm15 = vcmp.ge.f32.partialorder %v12229_v31, 0.0  ;;  %vm1021_vm1 = vcmp.ge.f32.partialorder %v12233_v38, 0.0  ;;  %vm1022_vm5 = vcmp.ge.f32.partialorder %v12237_v29, 0.0 }
 0x1c8   :  { %17427 = vst [vmem:[#allocation25_spill] sm:$0xff] %v12437_v36  ;;  %17428 = vst [vmem:[#allocation27_spill] sm:$0xff] %v12440_v17  ;;  %v2152_v32 = vor.u32 %v2150_v33, %v17431_v55  ;;  %vm1023_vm3 = vcmp.ge.f32.partialorder %v12241_v39, 0.0  ;;  %vm1024_vm6 = vcmp.ge.f32.partialorder %v12245_v49, 0.0  ;;  %vm1025_vm7 = vcmp.ge.f32.partialorder %v12249_v3, 0.0 }
 0x1c9   :  { %17429 = vst [vmem:[#allocation29_spill] sm:$0xff] %v12443_v23  ;;  %17434 = vst [vmem:[#allocation30_spill] sm:$0xff] %v17433_v34  ;;  %v1080_v0 = vmul.f32 0.1, %v12213_v41  ;;  %v1081_v54 = vmul.f32 0.1, %v12217_v37 }
 0x1ca   :  { %v1082_v19 = vmul.f32 0.1, %v12221_v27  ;;  %v2490_v13 = vsel %vm12448_vm10, %v2152_v32, %v2489_v20  ;;  %v1083_v33 = vmul.f32 0.1, %v12225_v40  ;;  %v1084_v52 = vmul.f32 0.1, %v12229_v31 }
 0x1cb   :  { %v1085_v55 = vmul.f32 0.1, %v12233_v38  ;;  %2491 = vst [vmem:[#allocation2 + $0x18c] sm:$0xf] %v2490_v13  ;;  %v1086_v23 = vmul.f32 0.1, %v12237_v29  ;;  %v12478_v32 = vsel %vm1016_vm11, %v12213_v41, %v1080_v0  ;;  %v12489_v9 = vsel %vm1017_vm12, %v12217_v37, %v1081_v54 }
 0x1cc   :  { %v1087_v17 = vmul.f32 0.1, %v12241_v39  ;;  %v1088_v36 = vmul.f32 0.1, %v12245_v49  ;;  %17435 = vst [vmem:[#allocation8_spill] sm:$0xff] %v12478_v32  ;;  %vm1028_vm9 = vcmp.ge.f32.partialorder %v12261_v47, 0.0  ;;  %v12504_v32 = vsel %vm1018_vm13, %v12221_v27, %v1082_v19 }
 0x1cd   :  { %v1089_v20 = vmul.f32 0.1, %v12249_v3  ;;  %v1090_v34 = vmul.f32 0.1, %v12253_v4  ;;  %v12484_v13 = vmul.f32 0.1, %v12257_v45  ;;  %v12519_v1 = vsel %vm1019_vm14, %v12225_v40, %v1083_v33 }
 0x1ce   :  { %17436 = vst [vmem:[#allocation10_spill] sm:$0xff] %v12489_v9  ;;  %vm1029_vm0 = vcmp.ge.f32.partialorder %v12265_v43, 0.0  ;;  %v12493_v62 = vmul.f32 0.1, %v12261_v47  ;;  %v12496_v41 = vmul.f32 0.1, %v12265_v43 }
 0x1cf   :  { %v12499_v0 = vmul.f32 0.1, %v12269_v46  ;;  %17437 = vst [vmem:[#allocation12_spill] sm:$0xff] %v12504_v32  ;;  %vm1030_vm11 = vcmp.ge.f32.partialorder %v12269_v46, 0.0  ;;  %v12508_v37 = vmul.f32 0.1, %v12273_v58 }
 0x1d0   :  { %v12511_v54 = vmul.f32 0.1, %v12277_v63  ;;  %v12514_v9 = vmul.f32 0.1, %v12281_v56  ;;  %17439 = vst [vmem:[#allocation11_spill] sm:$0xff] %v12519_v1  ;;  %vm1031_vm12 = vcmp.ge.f32.partialorder %v12273_v58, 0.0 }
 0x1d1   :  { %v12523_v27 = vmul.f32 0.1, %v12285_v10  ;;  %v12526_v19 = vmul.f32 0.1, %v12289_v15  ;;  %v12529_v32 = vmul.f32 0.1, %v12293_v8 }
 0x1d2   :  { %17438 = vst [vmem:[#allocation9_spill] sm:$0xff] %v12514_v9  ;;  %v12534_v9 = vsel %vm1020_vm15, %v12229_v31, %v1084_v52  ;;  %vm1032_vm13 = vcmp.ge.f32.partialorder %v12277_v63, 0.0  ;;  %v12538_v40 = vmul.f32 0.1, %v12297_v14  ;;  %v12541_v33 = vmul.f32 0.1, %v12301_v16 }
 0x1d3   :  { %17440 = vst [vmem:[#allocation14_spill] sm:$0xff] %v12529_v32  ;;  %17441 = vst [vmem:[#allocation16_spill] sm:$0xff] %v12534_v9  ;;  %v12544_v1 = vmul.f32 0.1, %v12305_v26  ;;  %v12549_v32 = vsel %vm1021_vm1, %v12233_v38, %v1085_v55  ;;  %v12553_v31 = vmul.f32 0.1, %v12309_v24 }
 0x1d4   :  { %17443 = vst [vmem:[#allocation33_spill] sm:$0xff] %v12549_v32  ;;  %v12556_v52 = vmul.f32 0.1, %v12313_v30  ;;  %v12559_v9 = vmul.f32 0.1, %v12317_v48  ;;  %vm1052_vm15 = vcmp.ge.f32.partialorder %v12357_v18, 0.0 }
 0x1d5   :  { %17442 = vst [vmem:[#allocation32_spill] sm:$0xff] %v12544_v1  ;;  %v12564_v1 = vsel %vm1022_vm5, %v12237_v29, %v1086_v23  ;;  %v12569_v38 = vmul.f32 0.1, %v12321_v51  ;;  %v12572_v55 = vmul.f32 0.1, %v12325_v21  ;;  %vm1036_vm5 = vcmp.ge.f32.partialorder %v12293_v8, 0.0 }
 0x1d6   :  { %17444 = vst [vmem:[#allocation35_spill] sm:$0xff] %v12559_v9  ;;  %17445 = vst [vmem:[#allocation36_spill] sm:$0xff] %v12564_v1  ;;  %v12575_v32 = vmul.f32 0.1, %v12329_v44  ;;  %v12580_v9 = vsel %vm1023_vm3, %v12241_v39, %v1087_v17  ;;  %v12587_v29 = vmul.f32 0.1, %v12333_v2  ;;  %v12598_v39 = vsel %vm1024_vm6, %v12245_v49, %v1088_v36 }
 0x1d7   :  { %17446 = vst [vmem:[#allocation37_spill] sm:$0xff] %v12580_v9  ;;  %v12590_v23 = vmul.f32 0.1, %v12337_v7  ;;  %v12593_v1 = vmul.f32 0.1, %v12341_v60  ;;  %17448 = vst [vmem:[#allocation39_spill] sm:$0xff] %v12598_v39  ;;  %v12616_v49 = vsel %vm1025_vm7, %v12249_v3, %v1089_v20 }
 0x1d8   :  { %vm1040_vm3 = vcmp.ge.f32.partialorder %v12309_v24, 0.0  ;;  %v12605_v17 = vmul.f32 0.1, %v12345_v61  ;;  %v12608_v9 = vmul.f32 0.1, %v12349_v5  ;;  %17452 = vst [vmem:[#allocation43_spill] sm:$0xff] %v12616_v49 }
 0x1d9   :  { %17447 = vst [vmem:[#allocation38_spill] sm:$0xff] %v12593_v1  ;;  %v12611_v1 = vmul.f32 0.1, %v12353_v22  ;;  %v12623_v36 = vmul.f32 0.1, %v12357_v18  ;;  %vm17457_vm7 = vcmp.ge.f32.partialorder %v12253_v4, 0.0 }
 0x1da   :  { %17449 = vst [vmem:[#allocation40_spill] sm:$0xff] %v12605_v17  ;;  %17450 = vst [vmem:[#allocation41_spill] sm:$0xff] %v12608_v9  ;;  %v12626_v39 = vmul.f32 0.1, %v12361_v28  ;;  %v12634_v3 = vsel %vm17457_vm7, %v12253_v4, %v1090_v34  ;;  %v17459_v20 = vld [vmem:[#allocation15_spill] sm:$0xff]  ;;  %vm17464_vm7 = vcmp.ge.f32.partialorder %v12257_v45, 0.0 }
 0x1db   :  { %17451 = vst [vmem:[#allocation42_spill] sm:$0xff] %v12611_v1  ;;  %17453 = vst [vmem:[#allocation44_spill] sm:$0xff] %v12623_v36  ;;  %v17455_v1 = vld [vmem:[#allocation13_spill] sm:$0xff]  ;;  %v12641_v49 = vmul.f32 0.1, %v17459_v20  ;;  %v12653_v4 = vsel %vm17464_vm7, %v12257_v45, %v12484_v13  ;;  %v12672_v45 = vsel %vm1028_vm9, %v12261_v47, %v12493_v62  ;;  %v17470_v13 = vld [vmem:[#allocation19_spill] sm:$0xff]  ;;  %v12691_v47 = vsel %vm1029_vm0, %v12265_v43, %v12496_v41 }
 0x1dc   :  { %17454 = vst [vmem:[#allocation45_spill] sm:$0xff] %v12626_v39  ;;  %v12629_v9 = vmul.f32 0.1, %v17455_v1  ;;  %17458 = vst [vmem:[#allocation46_spill] sm:$0xff] %v12634_v3  ;;  %v17460_v39 = vld [vmem:[#allocation18_spill] sm:$0xff]  ;;  %v17466_v34 = vld [vmem:[#allocation17_spill] sm:$0xff]  ;;  %v12710_v43 = vsel %vm1030_vm11, %v12269_v46, %v12499_v0  ;;  %v12729_v46 = vsel %vm1031_vm12, %v12273_v58, %v12508_v37  ;;  %v12748_v58 = vsel %vm1032_vm13, %v12277_v63, %v12511_v54 }
 0x1dd   :  { %v12644_v36 = vmul.f32 0.1, %v17460_v39  ;;  %v12660_v3 = vmul.f32 0.1, %v17466_v34  ;;  %17469 = vst [vmem:[#allocation48_spill] sm:$0xff] %v12672_v45  ;;  %vm1056_vm7 = vcmp.ge.f32.partialorder %v17460_v39, 0.0 }
 0x1de   :  { %17456 = vst [vmem:[#allocation13_spill] sm:$0xff] %v12629_v9  ;;  %v17462_v9 = vld [vmem:[#allocation20_spill] sm:$0xff]  ;;  %17472 = vst [vmem:[#allocation49_spill] sm:$0xff] %v12691_v47  ;;  %vm1060_vm9 = vcmp.ge.f32.partialorder %v12389_v6, 0.0  ;;  %v12698_v62 = vmul.f32 0.1, %v12404_v25 }
 0x1df   :  { %17461 = vst [vmem:[#allocation15_spill] sm:$0xff] %v12644_v36  ;;  %v12647_v17 = vmul.f32 0.1, %v17462_v9  ;;  %17465 = vst [vmem:[#allocation20_spill] sm:$0xff] %v12653_v4  ;;  %v12663_v36 = vmul.f32 0.1, %v12385_v12 }
 0x1e0   :  { %v12679_v4 = vmul.f32 0.1, %v17470_v13  ;;  %v12701_v45 = vmul.f32 0.1, %v12407_v53  ;;  %17474 = vst [vmem:[#allocation51_spill] sm:$0xff] %v12710_v43  ;;  %vm1064_vm0 = vcmp.ge.f32.partialorder %v12404_v25, 0.0 }
 0x1e1   :  { %17463 = vst [vmem:[#allocation18_spill] sm:$0xff] %v12647_v17  ;;  %17467 = vst [vmem:[#allocation17_spill] sm:$0xff] %v12663_v36  ;;  %v12666_v17 = vmul.f32 0.1, %v12389_v6  ;;  %v12682_v36 = vmul.f32 0.1, %v12397_v42 }
 0x1e2   :  { %v12717_v41 = vmul.f32 0.1, %v12413_v11  ;;  %v12720_v47 = vmul.f32 0.1, %v12416_v57  ;;  %17478 = vst [vmem:[#allocation55_spill] sm:$0xff] %v12729_v46  ;;  %vm1068_vm11 = vcmp.ge.f32.partialorder %v12416_v57, 0.0 }
 0x1e3   :  { %17468 = vst [vmem:[#allocation47_spill] sm:$0xff] %v12666_v17  ;;  %v12685_v17 = vmul.f32 0.1, %v12401_v50  ;;  %v17479_v0 = vld [vmem:[#allocation24_spill] sm:$0xff]  ;;  %v17480_v43 = vld [vmem:[#allocation21_spill] sm:$0xff]  ;;  %17485 = vst [vmem:[#allocation59_spill] sm:$0xff] %v12748_v58 }
 0x1e4   :  { %17475 = vst [vmem:[#allocation52_spill] sm:$0xff] %v12717_v41  ;;  %17476 = vst [vmem:[#allocation53_spill] sm:$0xff] %v12720_v47  ;;  %v12736_v11 = vmul.f32 0.1, %v17479_v0  ;;  %v12739_v47 = vmul.f32 0.1, %v17480_v43 }
 0x1e5   :  { %17471 = vst [vmem:[#allocation19_spill] sm:$0xff] %v12685_v17  ;;  %v12704_v17 = vmul.f32 0.1, %v12410_v59  ;;  %v17486_v37 = vld [vmem:[#allocation26_spill] sm:$0xff]  ;;  %v17487_v46 = vld [vmem:[#allocation28_spill] sm:$0xff]  ;;  %v17488_v0 = vld [vmem:[#allocation25_spill] sm:$0xff] }
 0x1e6   :  { %17481 = vst [vmem:[#allocation56_spill] sm:$0xff] %v12736_v11  ;;  %17482 = vst [vmem:[#allocation57_spill] sm:$0xff] %v12739_v47  ;;  %v12755_v43 = vmul.f32 0.1, %v17486_v37  ;;  %v12758_v47 = vmul.f32 0.1, %v17487_v46 }
 0x1e7   :  { %17473 = vst [vmem:[#allocation50_spill] sm:$0xff] %v12704_v17  ;;  %v12723_v17 = vmul.f32 0.1, %v12419_v35  ;;  %v17489_v11 = vld [vmem:[#allocation9_spill] sm:$0xff]  ;;  %vm17490_vm13 = vcmp.ge.f32.partialorder %v12281_v56, 0.0  ;;  %v17492_v54 = vld [vmem:[#allocation27_spill] sm:$0xff] }
 0x1e8   :  { %v12767_v63 = vsel %vm17490_vm13, %v12281_v56, %v17489_v11  ;;  %vm1078_vm14 = vcmp.ge.f32.partialorder %v17492_v54, 0.0  ;;  %v17493_v58 = vld [vmem:[#allocation29_spill] sm:$0xff]  ;;  %vm17494_vm6 = vcmp.ge.f32.partialorder %v12285_v10, 0.0  ;;  %vm17495_vm12 = vcmp.ge.f32.partialorder %v12289_v15, 0.0  ;;  %v11101_v11 = vld [vmem:[%s17068_s1 + $0x80] sm:$0xff]  }
 0x1e9   :  { %17477 = vst [vmem:[#allocation54_spill] sm:$0xff] %v12723_v17  ;;  %v17483_v17 = vld [vmem:[#allocation23_spill] sm:$0xff]  ;;  %17491 = vst [vmem:[#allocation28_spill] sm:$0xff] %v12767_v63  ;;  %vm1079_vm1 = vcmp.ge.f32.partialorder %v17493_v58, 0.0  ;;  %v1143_v37 = vmul.f32 0.1, %v17493_v58  ;;  %v12783_v56 = vsel %vm17495_vm12, %v12289_v15, %v12526_v19  ;;  %9687 = vmatprep.subr.bf16.mxu0 %v11101_v11 }
 0x1ea   :  { %v12742_v41 = vmul.f32 0.1, %v17483_v17  ;;  %v1142_v17 = vmul.f32 0.1, %v17492_v54  ;;  %17496 = vst [vmem:[#allocation9_spill] sm:$0xff] %v12783_v56  ;;  %v11102_v63 = vld [vmem:[%s17068_s1 + $0x118] sm:$0xff]   ;;  %9688 = vmatpush3.bf16.msra.mxu0 %v11101_v11 }
 0x1eb   :  { %v17497_v58 = vld [vmem:[#allocation14_spill] sm:$0xff]  ;;  %vm17499_vm12 = vcmp.ge.f32.partialorder %v12301_v16, 0.0  ;;  %v17500_v19 = vld [vmem:[#allocation32_spill] sm:$0xff]  ;;  %vm17501_vm13 = vcmp.ge.f32.partialorder %v12305_v26, 0.0  ;;  %9933 = vmatprep.subr.bf16.mxu1 %v11102_v63  ;;  %v17524_v11 = vld [vmem:[#allocation15_spill] sm:$0xff] }
 0x1ec   :  { %17484 = vst [vmem:[#allocation58_spill] sm:$0xff] %v12742_v41  ;;  %v12761_v41 = vmul.f32 0.1, %v17488_v0  ;;  %v12777_v0 = vsel %vm17494_vm6, %v12285_v10, %v12523_v27  ;;  %v12795_v10 = vsel %vm1036_vm5, %v12293_v8, %v17497_v58  ;;  %vm17498_vm6 = vcmp.ge.f32.partialorder %v12297_v14, 0.0  ;;  %v11103_v8 = vld [vmem:[%s17068_s1 + $0x88] sm:$0xff]   ;;  %9934 = vmatpush3.bf16.msra.mxu1 %v11102_v63 }
 0x1ed   :  { %v12801_v15 = vsel %vm17498_vm6, %v12297_v14, %v12538_v40  ;;  %v12807_v27 = vsel %vm17499_vm12, %v12301_v16, %v12541_v33  ;;  %v12813_v56 = vsel %vm17501_vm13, %v12305_v26, %v17500_v19  ;;  %v12822_v14 = vsel %vm1040_vm3, %v12309_v24, %v12553_v31  ;;  %v17503_v40 = vld [vmem:[#allocation35_spill] sm:$0xff]  ;;  %9689 = vmatprep.subr.bf16.mxu0 %v11103_v8  ;;  %v17525_v19 = vld [vmem:[#allocation18_spill] sm:$0xff] }
 0x1ee   :  { %vm17502_vm5 = vcmp.ge.f32.partialorder %v12313_v30, 0.0  ;;  %vm17504_vm6 = vcmp.ge.f32.partialorder %v12317_v48, 0.0  ;;  %vm17505_vm12 = vcmp.ge.f32.partialorder %v12321_v51, 0.0  ;;  %vm17506_vm3 = vcmp.ge.f32.partialorder %v12325_v21, 0.0  ;;  %9690 = vmatpush3.bf16.msra.mxu0 %v11103_v8  ;;  %v17544_v8 = vld [vmem:[#allocation56_spill] sm:$0xff] }
 0x1ef   :  { %v12828_v16 = vsel %vm17502_vm5, %v12313_v30, %v12556_v52  ;;  %v12834_v26 = vsel %vm17504_vm6, %v12317_v48, %v17503_v40  ;;  %v12840_v33 = vsel %vm17505_vm12, %v12321_v51, %v12569_v38  ;;  %v12846_v24 = vsel %vm17506_vm3, %v12325_v21, %v12572_v55  ;;  %v17510_v21 = vld [vmem:[#allocation38_spill] sm:$0xff]  ;;  %v17518_v55 = vld [vmem:[#allocation44_spill] sm:$0xff] }
 0x1f0   :  { %vm17507_vm13 = vcmp.ge.f32.partialorder %v12329_v44, 0.0  ;;  %vm17508_vm5 = vcmp.ge.f32.partialorder %v12333_v2, 0.0  ;;  %vm17509_vm6 = vcmp.ge.f32.partialorder %v12337_v7, 0.0  ;;  %vm17511_vm12 = vcmp.ge.f32.partialorder %v12341_v60, 0.0 }
 0x1f1   :  { %v12852_v30 = vsel %vm17507_vm13, %v12329_v44, %v12575_v32  ;;  %v12858_v48 = vsel %vm17508_vm5, %v12333_v2, %v12587_v29  ;;  %v12864_v51 = vsel %vm17509_vm6, %v12337_v7, %v12590_v23  ;;  %v12870_v31 = vsel %vm17511_vm12, %v12341_v60, %v17510_v21  ;;  %v17512_v44 = vld [vmem:[#allocation40_spill] sm:$0xff]  ;;  %v17514_v2 = vld [vmem:[#allocation41_spill] sm:$0xff]  ;;  %v17516_v7 = vld [vmem:[#allocation42_spill] sm:$0xff] }
 0x1f2   :  { %vm17513_vm3 = vcmp.ge.f32.partialorder %v12345_v61, 0.0  ;;  %vm17515_vm13 = vcmp.ge.f32.partialorder %v12349_v5, 0.0  ;;  %vm17517_vm5 = vcmp.ge.f32.partialorder %v12353_v22, 0.0  ;;  %v11104_v60 = vld [vmem:[%s17068_s1 + $0x120] sm:$0xff]   ;;  %v17519_v29 = vld [vmem:[#allocation45_spill] sm:$0xff]  ;;  %vm17520_vm6 = vcmp.ge.f32.partialorder %v12361_v28, 0.0 }
 0x1f3   :  { %v12876_v32 = vsel %vm17513_vm3, %v12345_v61, %v17512_v44  ;;  %v12882_v52 = vsel %vm17515_vm13, %v12349_v5, %v17514_v2  ;;  %v12888_v38 = vsel %vm17517_vm5, %v12353_v22, %v17516_v7  ;;  %v12897_v61 = vsel %vm1052_vm15, %v12357_v18, %v17518_v55  ;;  %v17521_v23 = vld [vmem:[#allocation13_spill] sm:$0xff]  ;;  %9935 = vmatprep.subr.bf16.mxu1 %v11104_v60  ;;  %v17545_v44 = vld [vmem:[#allocation24_spill] sm:$0xff] }
 0x1f4   :  { %v12903_v5 = vsel %vm17520_vm6, %v12361_v28, %v17519_v29  ;;  %vm17522_vm12 = vcmp.ge.f32.partialorder %v17455_v1, 0.0  ;;  %vm17523_vm3 = vcmp.ge.f32.partialorder %v17459_v20, 0.0  ;;  %v11105_v18 = vld [vmem:[%s17068_s1 + $0x90] sm:$0xff]   ;;  %v12924_v28 = vsel %vm1056_vm7, %v17460_v39, %v17524_v11  ;;  %v17530_v39 = vld [vmem:[#allocation47_spill] sm:$0xff]  ;;  %9936 = vmatpush3.bf16.msra.mxu1 %v11104_v60 }
 0x1f5   :  { %v12909_v22 = vsel %vm17522_vm12, %v17455_v1, %v17521_v23  ;;  %v12915_v58 = vsel %vm17523_vm3, %v17459_v20, %v12641_v49  ;;  %vm17526_vm15 = vcmp.ge.f32.partialorder %v17462_v9, 0.0  ;;  %vm17527_vm13 = vcmp.ge.f32.partialorder %v17466_v34, 0.0  ;;  %v17528_v20 = vld [vmem:[#allocation17_spill] sm:$0xff]  ;;  %9691 = vmatprep.subr.bf16.mxu0 %v11105_v18  ;;  %v17550_v23 = vld [vmem:[#allocation58_spill] sm:$0xff] }
 0x1f6   :  { %v12930_v1 = vsel %vm17526_vm15, %v17462_v9, %v17525_v19  ;;  %v12936_v49 = vsel %vm17527_vm13, %v17466_v34, %v12660_v3  ;;  %vm17529_vm5 = vcmp.ge.f32.partialorder %v12385_v12, 0.0  ;;  %v12948_v21 = vsel %vm1060_vm9, %v12389_v6, %v17530_v39  ;;  %v17547_v7 = vld [vmem:[#allocation57_spill] sm:$0xff]  ;;  %v17553_v19 = vld [vmem:[#allocation26_spill] sm:$0xff]  ;;  %9692 = vmatpush3.bf16.msra.mxu0 %v11105_v18 }
 0x1f7   :  { %v12942_v40 = vsel %vm17529_vm5, %v12385_v12, %v17528_v20  ;;  %vm17531_vm7 = vcmp.ge.f32.partialorder %v17470_v13, 0.0  ;;  %vm17532_vm6 = vcmp.ge.f32.partialorder %v12397_v42, 0.0  ;;  %v17533_v12 = vld [vmem:[#allocation19_spill] sm:$0xff]  ;;  %vm17534_vm12 = vcmp.ge.f32.partialorder %v12401_v50, 0.0  ;;  %v17548_v55 = vld [vmem:[#allocation21_spill] sm:$0xff] }
 0x1f8   :  { %v12954_v9 = vsel %vm17531_vm7, %v17470_v13, %v12679_v4  ;;  %v12960_v3 = vsel %vm17532_vm6, %v12397_v42, %v12682_v36  ;;  %v12966_v34 = vsel %vm17534_vm12, %v12401_v50, %v17533_v12  ;;  %v12972_v6 = vsel %vm1064_vm0, %v12404_v25, %v12698_v62  ;;  %v17536_v42 = vld [vmem:[#allocation50_spill] sm:$0xff]  ;;  %v17538_v50 = vld [vmem:[#allocation52_spill] sm:$0xff]  ;;  %v17541_v62 = vld [vmem:[#allocation53_spill] sm:$0xff] }
 0x1f9   :  { %vm17535_vm9 = vcmp.ge.f32.partialorder %v12407_v53, 0.0  ;;  %vm17537_vm3 = vcmp.ge.f32.partialorder %v12410_v59, 0.0  ;;  %v17539_v13 = vld [vmem:[#allocation22_spill] sm:$0xff]  ;;  %v11106_v25 = vld [vmem:[%s17068_s1 + $0x128] sm:$0xff]   ;;  %vm17543_vm0 = vcmp.ge.f32.partialorder %v12419_v35, 0.0  ;;  %vm17546_vm13 = vcmp.ge.f32.partialorder %v17545_v44, 0.0 }
 0x1fa   :  { %v12978_v4 = vsel %vm17535_vm9, %v12407_v53, %v12701_v45  ;;  %v12984_v36 = vsel %vm17537_vm3, %v12410_v59, %v17536_v42  ;;  %vm17540_vm15 = vcmp.ge.f32.partialorder %v17539_v13, 0.0  ;;  %v12999_v53 = vsel %vm1068_vm11, %v12416_v57, %v17541_v62  ;;  %v17542_v45 = vld [vmem:[#allocation54_spill] sm:$0xff]  ;;  %v17556_v12 = vld [vmem:[#allocation25_spill] sm:$0xff]  ;;  %v17559_v62 = vld [vmem:[#allocation8_spill] sm:$0xff]  ;;  %9937 = vmatprep.subr.bf16.mxu1 %v11106_v25 }
 0x1fb   :  { %v12990_v63 = vsel %vm17540_vm15, %v17539_v13, %v17538_v50  ;;  %v13005_v59 = vsel %vm17543_vm0, %v12419_v35, %v17542_v45  ;;  %v13011_v2 = vsel %vm17546_vm13, %v17545_v44, %v17544_v8  ;;  %vm17549_vm5 = vcmp.ge.f32.partialorder %v17548_v55, 0.0  ;;  %v11107_v57 = vld [vmem:[%s17068_s1 + $0x98] sm:$0xff]   ;;  %v17567_v8 = vld [vmem:[#allocation16_spill] sm:$0xff]  ;;  %v17569_v44 = vld [vmem:[#allocation33_spill] sm:$0xff]  ;;  %9938 = vmatpush3.bf16.msra.mxu1 %v11106_v25 }
 0x1fc   :  { %v13017_v29 = vsel %vm17549_vm5, %v17548_v55, %v17547_v7  ;;  %v17551_v35 = vld [vmem:[#allocation23_spill] sm:$0xff]  ;;  %vm17554_vm7 = vcmp.ge.f32.partialorder %v17553_v19, 0.0  ;;  %vm17555_vm6 = vcmp.ge.f32.partialorder %v17487_v46, 0.0  ;;  %vm17557_vm12 = vcmp.ge.f32.partialorder %v17556_v12, 0.0  ;;  %v11108_v18 = vld [vmem:[%s17068_s1 + $0x130] sm:$0xff]   ;;  %v17571_v55 = vld [vmem:[#allocation36_spill] sm:$0xff]  ;;  %9693 = vmatprep.subr.bf16.mxu0 %v11107_v57 }
 0x1fd   :  { %vm17552_vm11 = vcmp.ge.f32.partialorder %v17551_v35, 0.0  ;;  %v13032_v20 = vsel %vm17554_vm7, %v17553_v19, %v12755_v43  ;;  %v13038_v39 = vsel %vm17555_vm6, %v17487_v46, %v12758_v47  ;;  %v13044_v42 = vsel %vm17557_vm12, %v17556_v12, %v12761_v41  ;;  %v17558_v43 = vld [vmem:[#allocation29_spill] sm:$0xff]  ;;  %v17561_v46 = vld [vmem:[#allocation10_spill] sm:$0xff]  ;;  %v17563_v41 = vld [vmem:[#allocation12_spill] sm:$0xff]  ;;  %9694 = vmatpush3.bf16.msra.mxu0 %v11107_v57  ;;  %9939 = vmatprep.subr.bf16.mxu1 %v11108_v18 }
 0x1fe   :  { %v13026_v11 = vsel %vm17552_vm11, %v17551_v35, %v17550_v23  ;;  %v13049_v50 = vsel %vm1078_vm14, %v17492_v54, %v1142_v17  ;;  %v13054_v13 = vsel %vm1079_vm1, %v17558_v43, %v1143_v37  ;;  %v13058_v47 = vpack.c.bf16 %v17559_v62, %v17559_v62  ;;  %v17565_v17 = vld [vmem:[#allocation11_spill] sm:$0xff]  ;;  %v17573_v35 = vld [vmem:[#allocation37_spill] sm:$0xff] }
 0x1ff   :  { %v13062_v45 = vpack.c.bf16 %v17561_v46, %v17561_v46  ;;  %v13066_v60 = vpack.c.bf16 %v17563_v41, %v17563_v41  ;;  %v13070_v54 = vpack.c.bf16 %v17565_v17, %v17565_v17  ;;  %v13074_v37 = vpack.c.bf16 %v17567_v8, %v17567_v8  ;;  %v17575_v12 = vld [vmem:[#allocation39_spill] sm:$0xff]  ;;  %v17579_v17 = vld [vmem:[#allocation46_spill] sm:$0xff]  ;;  %9940 = vmatpush3.bf16.msra.mxu1 %v11108_v18 }
 0x200   :  { %17560 = vst [vmem:[#allocation27_spill] sm:$0xff] %v13058_v47  ;;  %v13078_v7 = vpack.c.bf16 %v17569_v44, %v17569_v44  ;;  %v13085_v23 = vpack.c.bf16 %v17571_v55, %v17571_v55  ;;  %v13089_v19 = vpack.c.bf16 %v17573_v35, %v17573_v35  ;;  %v13093_v43 = vpack.c.bf16 %v17575_v12, %v17575_v12  ;;  %v17577_v62 = vld [vmem:[#allocation43_spill] sm:$0xff]  ;;  %v17581_v44 = vld [vmem:[#allocation20_spill] sm:$0xff]  ;;  %v11114_v18 = vld [vmem:[%s17068_s1 + $0xb0] sm:$0xff]  }
 0x201   :  { %17562 = vst [vmem:[#allocation14_spill] sm:$0xff] %v13062_v45  ;;  %17564 = vst [vmem:[#allocation32_spill] sm:$0xff] %v13066_v60  ;;  %v13097_v46 = vpack.c.bf16 %v17577_v62, %v17577_v62  ;;  %v11109_v41 = vld [vmem:[%s17068_s1 + $0xa0] sm:$0xff]   ;;  %v13104_v8 = vpack.c.bf16 %v17579_v17, %v17579_v17  ;;  %v13108_v55 = vpack.c.bf16 %v17581_v44, %v17581_v44  ;;  %v11110_v57 = vld [vmem:[%s17068_s1 + $0x138] sm:$0xff]   ;;  %vm4440_vm1 = vcmask 1042432  }
 0x202   :  { %17566 = vst [vmem:[#allocation35_spill] sm:$0xff] %v13070_v54  ;;  %17568 = vst [vmem:[#allocation38_spill] sm:$0xff] %v13074_v37  ;;  %v17583_v35 = vld [vmem:[#allocation48_spill] sm:$0xff]  ;;  %v13136_v25 = vpack.c.bf16 %v12777_v0, %v12777_v0  ;;  %v13155_v0 = vpack.c.bf16 %v12807_v27, %v12807_v27  ;;  %9695 = vmatprep.subr.bf16.mxu0 %v11109_v41  ;;  %v13174_v27 = vpack.c.bf16 %v12834_v26, %v12834_v26  ;;  %vm4441_vm9 = vcmask 1046532  }
 0x203   :  { %17570 = vst [vmem:[#allocation40_spill] sm:$0xff] %v13078_v7  ;;  %17572 = vst [vmem:[#allocation41_spill] sm:$0xff] %v13085_v23  ;;  %v13112_v12 = vpack.c.bf16 %v17583_v35, %v17583_v35  ;;  %v17586_v23 = vld [vmem:[#allocation55_spill] sm:$0xff]  ;;  %v13194_v26 = vpack.c.bf16 %v12864_v51, %v12864_v51  ;;  %9696 = vmatpush3.bf16.msra.mxu0 %v11109_v41  ;;  %v13214_v51 = vpack.c.bf16 %v12897_v61, %v12897_v61 }
 0x204   :  { %17574 = vst [vmem:[#allocation42_spill] sm:$0xff] %v13089_v19  ;;  %17576 = vst [vmem:[#allocation44_spill] sm:$0xff] %v13093_v43  ;;  %v17584_v43 = vld [vmem:[#allocation49_spill] sm:$0xff]  ;;  %v13124_v17 = vpack.c.bf16 %v17586_v23, %v17586_v23  ;;  %v13144_v23 = vpack.c.bf16 %v12795_v10, %v12795_v10  ;;  %v13163_v10 = vpack.c.bf16 %v12822_v14, %v12822_v14  ;;  %9941 = vmatprep.subr.bf16.mxu1 %v11110_v57 }
 0x205   :  { %17578 = vst [vmem:[#allocation45_spill] sm:$0xff] %v13097_v46  ;;  %17580 = vst [vmem:[#allocation13_spill] sm:$0xff] %v13104_v8  ;;  %v13116_v62 = vpack.c.bf16 %v17584_v43, %v17584_v43  ;;  %v17585_v46 = vld [vmem:[#allocation51_spill] sm:$0xff]  ;;  %v17589_v43 = vld [vmem:[#allocation9_spill] sm:$0xff]  ;;  %v13182_v14 = vpack.c.bf16 %v12846_v24, %v12846_v24  ;;  %v13202_v24 = vpack.c.bf16 %v12876_v32, %v12876_v32  ;;  %9942 = vmatpush3.bf16.msra.mxu1 %v11110_v57 }
 0x206   :  { %17582 = vst [vmem:[#allocation15_spill] sm:$0xff] %v13108_v55  ;;  %v13120_v19 = vpack.c.bf16 %v17585_v46, %v17585_v46  ;;  %v17587_v8 = vld [vmem:[#allocation59_spill] sm:$0xff]  ;;  %v17588_v55 = vld [vmem:[#allocation28_spill] sm:$0xff]  ;;  %v13140_v46 = vpack.c.bf16 %v17589_v43, %v17589_v43  ;;  %v13233_v61 = vpack.c.bf16 %v12924_v28, %v12924_v28  ;;  %v13252_v28 = vpack.c.bf16 %v12948_v21, %v12948_v21  ;;  %vm15004_vm3 = vmor %vm4440_vm1, %vm4441_vm9 }
 0x207   :  { %v13128_v44 = vpack.c.bf16 %v17587_v8, %v17587_v8  ;;  %v13132_v35 = vpack.c.bf16 %v17588_v55, %v17588_v55  ;;  %v13148_v8 = vpack.c.bf16 %v12801_v15, %v12801_v15  ;;  %v13159_v55 = vpack.c.bf16 %v12813_v56, %v12813_v56  ;;  %v11111_v43 = vld [vmem:[%s17068_s1 + $0xa8] sm:$0xff]   ;;  %v11113_v32 = vld [vmem:[%s17068_s1 + $0x140] sm:$0xff]  }
 0x208   :  { %v13167_v15 = vpack.c.bf16 %v12828_v16, %v12828_v16  ;;  %v13178_v56 = vpack.c.bf16 %v12840_v33, %v12840_v33  ;;  %v13186_v16 = vpack.c.bf16 %v12852_v30, %v12852_v30  ;;  %v13198_v33 = vpack.c.bf16 %v12870_v31, %v12870_v31  ;;  %9697 = vmatprep.subr.bf16.mxu0 %v11111_v43 }
 0x209   :  { %v13206_v30 = vpack.c.bf16 %v12882_v52, %v12882_v52  ;;  %v13218_v31 = vpack.c.bf16 %v12903_v5, %v12903_v5  ;;  %v13225_v52 = vpack.c.bf16 %v12909_v22, %v12909_v22  ;;  %v13237_v5 = vpack.c.bf16 %v12930_v1, %v12930_v1  ;;  %9698 = vmatpush3.bf16.msra.mxu0 %v11111_v43 }
 0x20a   :  { %17590 = vst [vmem:[#allocation18_spill] sm:$0xff] %v13167_v15  ;;  %v13190_v15 = vpack.c.bf16 %v12858_v48, %v12858_v48  ;;  %v13210_v48 = vpack.c.bf16 %v12888_v38, %v12888_v38  ;;  %v13229_v38 = vpack.c.bf16 %v12915_v58, %v12915_v58  ;;  %v13244_v22 = vpack.c.bf16 %v12936_v49, %v12936_v49  ;;  %v17608_v47 = vld [vmem:[#allocation41_spill] sm:$0xff] }
 0x20b   :  { %v13248_v58 = vpack.c.bf16 %v12942_v40, %v12942_v40  ;;  %v13256_v1 = vpack.c.bf16 %v12954_v9, %v12954_v9  ;;  %v13260_v41 = vpack.c.bf16 %v12960_v3, %v12960_v3  ;;  %v13264_v49 = vpack.c.bf16 %v12966_v34, %v12966_v34  ;;  %10007 = vmatprep.subr.bf16.mxu1 %v11113_v32 }
 0x20c   :  { %v13268_v40 = vpack.c.bf16 %v12972_v6, %v12972_v6  ;;  %v13272_v21 = vpack.c.bf16 %v12978_v4, %v12978_v4  ;;  %v13276_v9 = vpack.c.bf16 %v12984_v36, %v12984_v36  ;;  %v13280_v3 = vpack.c.bf16 %v12990_v63, %v12990_v63  ;;  %v11117_v4 = vld [vmem:[%s17068_s1 + $0xb8] sm:$0xff]   ;;  %9699 = vmatprep.subr.bf16.mxu0 %v11114_v18  ;;  %v17611_v54 = vld [vmem:[#allocation45_spill] sm:$0xff] }
 0x20d   :  { %17591 = vst [vmem:[#allocation17_spill] sm:$0xff] %v13256_v1  ;;  %17592 = vst [vmem:[#allocation47_spill] sm:$0xff] %v13260_v41  ;;  %v13284_v34 = vpack.c.bf16 %v12999_v53, %v12999_v53  ;;  %v13288_v6 = vpack.c.bf16 %v13005_v59, %v13005_v59  ;;  %v13295_v36 = vpack.c.bf16 %v13011_v2, %v13011_v2  ;;  %9700 = vmatpush3.bf16.msra.mxu0 %v11114_v18  ;;  %v17612_v43 = vld [vmem:[#allocation13_spill] sm:$0xff] }
 0x20e   :  { %17593 = vst [vmem:[#allocation19_spill] sm:$0xff] %v13264_v49  ;;  %17594 = vst [vmem:[#allocation50_spill] sm:$0xff] %v13268_v40  ;;  %v13299_v63 = vpack.c.bf16 %v13017_v29, %v13017_v29  ;;  %v13303_v53 = vpack.c.bf16 %v13026_v11, %v13026_v11  ;;  %v13307_v59 = vpack.c.bf16 %v13032_v20, %v13032_v20  ;;  %9701 = vmatprep.subr.bf16.mxu0 %v11117_v4  ;;  %v17625_v20 = vld [vmem:[#allocation38_spill] sm:$0xff] }
 0x20f   :  { %17595 = vst [vmem:[#allocation52_spill] sm:$0xff] %v13272_v21  ;;  %17596 = vst [vmem:[#allocation22_spill] sm:$0xff] %v13276_v9  ;;  %v13311_v57 = vpack.c.bf16 %v13038_v39, %v13038_v39  ;;  %v13315_v2 = vpack.c.bf16 %v13044_v42, %v13044_v42  ;;  %v13319_v29 = vpack.c.bf16 %v13049_v50, %v13049_v50  ;;  %v17609_v42 = vld [vmem:[#allocation42_spill] sm:$0xff]  ;;  %v17610_v50 = vld [vmem:[#allocation44_spill] sm:$0xff]  ;;  %v17626_v32 = vshrl.u32 %v17625_v20, 16 }
 0x210   :  { %17597 = vst [vmem:[#allocation53_spill] sm:$0xff] %v13280_v3  ;;  %17598 = vst [vmem:[#allocation54_spill] sm:$0xff] %v13284_v34  ;;  %v13323_v11 = vpack.c.bf16 %v13054_v13, %v13054_v13  ;;  %v17613_v39 = vld [vmem:[#allocation15_spill] sm:$0xff]  ;;  %v17627_v3 = vshrl.u32 %v13078_v7, 16 }
 0x211   :  { %17599 = vst [vmem:[#allocation56_spill] sm:$0xff] %v13288_v6  ;;  %17600 = vst [vmem:[#allocation24_spill] sm:$0xff] %v13295_v36  ;;  %9702 = vmatpush3.bf16.msra.mxu0 %v11117_v4  ;;  %v17614_v37 = vld [vmem:[#allocation18_spill] sm:$0xff]  ;;  %v17623_v34 = vld [vmem:[#allocation35_spill] sm:$0xff]  ;;  %v1673_v36 = vrot.slane %v17626_v32, 7 }
 0x212   :  { %17601 = vst [vmem:[#allocation57_spill] sm:$0xff] %v13299_v63  ;;  %17602 = vst [vmem:[#allocation21_spill] sm:$0xff] %v13303_v53  ;;  %v17617_v53 = vld [vmem:[#allocation27_spill] sm:$0xff]  ;;  %v17624_v4 = vshrl.u32 %v17623_v34, 16  ;;  %v13465_v18 = vrot.slane %v17627_v3, 7 }
 0x213   :  { %17603 = vst [vmem:[#allocation58_spill] sm:$0xff] %v13307_v59  ;;  %17604 = vst [vmem:[#allocation23_spill] sm:$0xff] %v13311_v57  ;;  %v17618_v45 = vshrl.u32 %v17617_v53, 16 }
 0x214   :  { %17605 = vst [vmem:[#allocation26_spill] sm:$0xff] %v13315_v2  ;;  %17606 = vst [vmem:[#allocation25_spill] sm:$0xff] %v13319_v29  ;;  %v17619_v2 = vld [vmem:[#allocation14_spill] sm:$0xff]  ;;  %v17621_v29 = vld [vmem:[#allocation32_spill] sm:$0xff]  ;;  %v13459_v6 = vrot.slane %v17624_v4, 7 }
 0x215   :  { %17607 = vst [vmem:[#allocation29_spill] sm:$0xff] %v13323_v11  ;;  %v1639_v63 = vrot.slane %v17618_v45, 7  ;;  %v17620_v59 = vshrl.u32 %v17619_v2, 16  ;;  %v17622_v57 = vshrl.u32 %v17621_v29, 16  ;;  %v17628_v45 = vshrl.u32 %v17608_v47, 16 }
 0x216   :  { %v17632_v40 = vshll.u32 %v17619_v2, 16  ;;  %v17633_v3 = vshll.u32 %v17621_v29, 16  ;;  %v17637_v29 = vshll.u32 %v13078_v7, 16 }
 0x217   :  { %v13453_v60 = vrot.slane %v17620_v59, 7  ;;  %v1656_v13 = vrot.slane %v17622_v57, 7  ;;  %v1690_v11 = vrot.slane %v17628_v45, 7  ;;  %v17629_v59 = vshrl.u32 %v17609_v42, 16 }
 0x218   :  { %v17630_v57 = vshll.u32 %v17617_v53, 16  ;;  %v1643_v4 = vrot.slane %v1639_v63, 4 }
 0x219   :  { %v13471_v9 = vrot.slane %v17629_v59, 7  ;;  %v1650_v32 = vor.u32 %v17632_v40, %v13453_v60  ;;  %v13483_v41 = vor.u32 %v17633_v3, %v1656_v13  ;;  %v1660_v45 = vrot.slane %v1656_v13, 4 }
 0x21a   :  { %v13475_v21 = vor.u32 %v17630_v57, %v1639_v63  ;;  %v17634_v59 = vshll.u32 %v17623_v34, 16  ;;  %v1677_v40 = vrot.slane %v1673_v36, 4  ;;  %v1684_v3 = vor.u32 %v17637_v29, %v13465_v18  ;;  %v2367_v57 = vld [vmem:[#allocation2 + $0xa4] sm:$0x1] }
 0x21b   :  { %v1651_v63 = vsel %vm12130_vm8, %v1643_v4, %v1650_v32  ;;  %v1694_v49 = vrot.slane %v1690_v11, 4  ;;  %v17640_v4 = vshrl.u32 %v17610_v50, 16  ;;  %v17641_v32 = vshrl.u32 %v17611_v54, 16 }
 0x21c   :  { %17631 = vst [vmem:[#allocation8_spill] sm:$0xff] %v13475_v21  ;;  %v1667_v1 = vor.u32 %v17634_v59, %v13459_v6  ;;  %v17636_v21 = vshll.u32 %v17625_v20, 16  ;;  %v17638_v59 = vshll.u32 %v17608_v47, 16  ;;  %2282 = vst [vmem:[#allocation2 + $0x10] sm:$0xf] %v1651_v63  ;;  %v17643_v63 = vshrl.u32 %v17613_v39, 16 }
 0x21d   :  { %v13515_v47 = vrot.slane %v17641_v32, 7 }
 0x21e   :  { %v13493_v2 = vor.u32 %v17636_v21, %v1673_v36  ;;  %v1668_v13 = vsel %vm12130_vm8, %v1660_v45, %v1667_v1  ;;  %v13503_v53 = vor.u32 %v17638_v59, %v1690_v11  ;;  %v1685_v21 = vsel %vm12130_vm8, %v1677_v40, %v1684_v3 }
 0x21f   :  { %v17639_v36 = vshll.u32 %v17609_v42, 16  ;;  %v1707_v1 = vrot.slane %v17640_v4, 7  ;;  %2289 = vst [vmem:[#allocation2 + $0x1c] sm:$0xf] %v1668_v13  ;;  %v17642_v11 = vshrl.u32 %v17612_v43, 16  ;;  %v13521_v40 = vrot.slane %v17643_v63, 7 }
 0x220   :  { %v17644_v42 = vshrl.u32 %v13112_v12, 16  ;;  %2296 = vst [vmem:[#allocation2 + $0x28] sm:$0xf] %v1685_v21  ;;  %v17645_v13 = vshll.u32 %v17610_v50, 16  ;;  %v17646_v4 = vshrl.u32 %v13116_v62, 16  ;;  %v17648_v21 = vshll.u32 %v17612_v43, 16 }
 0x221   :  { %v1701_v20 = vor.u32 %v17639_v36, %v13471_v9  ;;  %v1724_v45 = vrot.slane %v17642_v11, 7  ;;  %v1711_v36 = vrot.slane %v1707_v1, 4  ;;  %v17647_v11 = vshll.u32 %v17611_v54, 16 }
 0x222   :  { %v1741_v29 = vrot.slane %v17644_v42, 7  ;;  %v13529_v59 = vor.u32 %v17645_v13, %v1707_v1  ;;  %v13533_v32 = vrot.slane %v17646_v4, 7  ;;  %v17649_v50 = vshll.u32 %v17613_v39, 16 }
 0x223   :  { %v1702_v3 = vsel %vm12130_vm8, %v1694_v49, %v1701_v20  ;;  %v1718_v63 = vor.u32 %v17647_v11, %v13515_v47  ;;  %v13541_v42 = vor.u32 %v17648_v21, %v1724_v45  ;;  %v1728_v49 = vrot.slane %v1724_v45, 4 }
 0x224   :  { %2303 = vst [vmem:[#allocation2 + $0x34] sm:$0xf] %v1702_v3  ;;  %v1735_v20 = vor.u32 %v17649_v50, %v13521_v40  ;;  %v17650_v13 = vshll.u32 %v13112_v12, 16  ;;  %v1745_v54 = vrot.slane %v1741_v29, 4  ;;  %v17651_v43 = vshll.u32 %v13116_v62, 16 }
 0x225   :  { %v1719_v11 = vsel %vm12130_vm8, %v1711_v36, %v1718_v63  ;;  %v17652_v3 = vshrl.u32 %v13120_v19, 16  ;;  %v17653_v12 = vshrl.u32 %v13124_v17, 16  ;;  %v17655_v36 = vshrl.u32 %v13132_v35, 16 }
 0x226   :  { %v13549_v4 = vor.u32 %v17650_v13, %v1741_v29  ;;  %v1752_v21 = vor.u32 %v17651_v43, %v13533_v32  ;;  %v1736_v50 = vsel %vm12130_vm8, %v1728_v49, %v1735_v20  ;;  %v17654_v29 = vshrl.u32 %v13128_v44, 16  ;;  %2310 = vst [vmem:[#allocation2 + $0x40] sm:$0xf] %v1719_v11 }
 0x227   :  { %v1758_v39 = vrot.slane %v17652_v3, 7  ;;  %v13563_v13 = vrot.slane %v17653_v12, 7  ;;  %v13569_v63 = vrot.slane %v17655_v36, 7  ;;  %v17656_v43 = vshll.u32 %v13120_v19, 16  ;;  %2317 = vst [vmem:[#allocation2 + $0x4c] sm:$0xf] %v1736_v50 }
 0x228   :  { %v1775_v1 = vrot.slane %v17654_v29, 7  ;;  %v1753_v62 = vsel %vm12130_vm8, %v1745_v54, %v1752_v21  ;;  %v17657_v20 = vshrl.u32 %v13136_v25, 16  ;;  %v17658_v29 = vshll.u32 %v13124_v17, 16 }
 0x229   :  { %v13575_v3 = vor.u32 %v17656_v43, %v1758_v39  ;;  %v1762_v49 = vrot.slane %v1758_v39, 4  ;;  %v17659_v11 = vshll.u32 %v13128_v44, 16  ;;  %2324 = vst [vmem:[#allocation2 + $0x58] sm:$0xf] %v1753_v62  ;;  %v17660_v19 = vshll.u32 %v13132_v35, 16 }
 0x22a   :  { %v1792_v12 = vrot.slane %v17657_v20, 7  ;;  %v1769_v45 = vor.u32 %v17658_v29, %v13563_v13  ;;  %v1779_v54 = vrot.slane %v1775_v1, 4  ;;  %v17661_v50 = vshll.u32 %v13136_v25, 16 }
 0x22b   :  { %v13585_v7 = vor.u32 %v17659_v11, %v1775_v1  ;;  %v1786_v21 = vor.u32 %v17660_v19, %v13569_v63  ;;  %v17662_v44 = vshrl.u32 %v13140_v46, 16  ;;  %v17663_v1 = vshrl.u32 %v13144_v23, 16 }
 0x22c   :  { %v13593_v43 = vor.u32 %v17661_v50, %v1792_v12  ;;  %v1796_v17 = vrot.slane %v1792_v12, 4  ;;  %v1770_v20 = vsel %vm12130_vm8, %v1762_v49, %v1769_v45  ;;  %v17664_v35 = vshrl.u32 %v13148_v8, 16 }
 0x22d   :  { %v13599_v29 = vrot.slane %v17662_v44, 7  ;;  %v1809_v62 = vrot.slane %v17663_v1, 7  ;;  %v1787_v25 = vsel %vm12130_vm8, %v1779_v54, %v1786_v21  ;;  %v17665_v19 = vshrl.u32 %v13155_v0, 16  ;;  %2331 = vst [vmem:[#allocation2 + $0x64] sm:$0xf] %v1770_v20 }
 0x22e   :  { %v13605_v11 = vrot.slane %v17664_v35, 7  ;;  %v17666_v50 = vshrl.u32 %v13159_v55, 16  ;;  %v17667_v49 = vshrl.u32 %v13163_v10, 16  ;;  %v17668_v1 = vshll.u32 %v13140_v46, 16  ;;  %2338 = vst [vmem:[#allocation2 + $0x70] sm:$0xf] %v1787_v25 }
 0x22f   :  { %v1826_v12 = vrot.slane %v17665_v19, 7  ;;  %v17669_v36 = vshll.u32 %v13144_v23, 16  ;;  %v1813_v21 = vrot.slane %v1809_v62, 4  ;;  %v17670_v19 = vshll.u32 %v13148_v8, 16 }
 0x230   :  { %v13613_v45 = vrot.slane %v17666_v50, 7  ;;  %v1843_v44 = vrot.slane %v17667_v49, 7  ;;  %v1803_v39 = vor.u32 %v17668_v1, %v13599_v29  ;;  %v17671_v20 = vshll.u32 %v13155_v0, 16 }
 0x231   :  { %v13623_v54 = vor.u32 %v17669_v36, %v1809_v62  ;;  %v1820_v50 = vor.u32 %v17670_v19, %v13605_v11  ;;  %v1830_v46 = vrot.slane %v1826_v12, 4  ;;  %v17672_v23 = vshll.u32 %v13159_v55, 16 }
 0x232   :  { %v13631_v49 = vor.u32 %v17671_v20, %v1826_v12  ;;  %v1804_v1 = vsel %vm12130_vm8, %v1796_v17, %v1803_v39  ;;  %v17673_v25 = vshll.u32 %v13163_v10, 16  ;;  %v1847_v0 = vrot.slane %v1843_v44, 4 }
 0x233   :  { %v1837_v36 = vor.u32 %v17672_v23, %v13613_v45  ;;  %v1821_v19 = vsel %vm12130_vm8, %v1813_v21, %v1820_v50  ;;  %v17674_v20 = vshrl.u32 %v17614_v37, 16  ;;  %v17675_v39 = vshrl.u32 %v13174_v27, 16  ;;  %2345 = vst [vmem:[#allocation2 + $0x7c] sm:$0xf] %v1804_v1 }
 0x234   :  { %v13641_v8 = vor.u32 %v17673_v25, %v1843_v44  ;;  %v17676_v23 = vshrl.u32 %v13178_v56, 16  ;;  %v17678_v25 = vshrl.u32 %v13182_v14, 16  ;;  %v17679_v44 = vshrl.u32 %v13186_v16, 16  ;;  %2352 = vst [vmem:[#allocation2 + $0x88] sm:$0xf] %v1821_v19 }
 0x235   :  { %v13647_v12 = vrot.slane %v17674_v20, 7  ;;  %v1860_v17 = vrot.slane %v17675_v39, 7  ;;  %v1838_v55 = vsel %vm12130_vm8, %v1830_v46, %v1837_v36  ;;  %v17681_v50 = vshll.u32 %v17614_v37, 16 }
 0x236   :  { %v13655_v10 = vrot.slane %v17676_v23, 7  ;;  %v1877_v62 = vrot.slane %v17678_v25, 7  ;;  %v13661_v21 = vrot.slane %v17679_v44, 7  ;;  %v17682_v46 = vshll.u32 %v13174_v27, 16  ;;  %2359 = vst [vmem:[#allocation2 + $0x94] sm:$0xf] %v1838_v55 }
 0x237   :  { %v1854_v20 = vor.u32 %v17681_v50, %v13647_v12  ;;  %v1864_v39 = vrot.slane %v1860_v17, 4  ;;  %v17683_v23 = vshll.u32 %v13178_v56, 16  ;;  %v17684_v19 = vshll.u32 %v13182_v14, 16 }
 0x238   :  { %17677 = vst [vmem:[#allocation10_spill] sm:$0xff] %v13655_v10  ;;  %17680 = vst [vmem:[#allocation12_spill] sm:$0xff] %v13661_v21  ;;  %v13669_v36 = vor.u32 %v17682_v46, %v1860_v17  ;;  %v1881_v37 = vrot.slane %v1877_v62, 4  ;;  %v17686_v27 = vshll.u32 %v13186_v16, 16  ;;  %v17687_v55 = vshrl.u32 %v13190_v15, 16 }
 0x239   :  { %v1871_v25 = vor.u32 %v17683_v23, %v13655_v10  ;;  %v13677_v34 = vor.u32 %v17684_v19, %v1877_v62  ;;  %v1855_v50 = vsel %vm12130_vm8, %v1847_v0, %v1854_v20  ;;  %v17688_v14 = vshrl.u32 %v13194_v26, 16  ;;  %v2353_v10 = vld [vmem:[#allocation2 + $0x8c] sm:$0x1] }
 0x23a   :  { %v1888_v46 = vor.u32 %v17686_v27, %v13661_v21  ;;  %v1894_v56 = vrot.slane %v17687_v55, 7  ;;  %v17690_v62 = vshrl.u32 %v13198_v33, 16  ;;  %v17691_v0 = vshrl.u32 %v13202_v24, 16  ;;  %2366 = vst [vmem:[#allocation2 + $0xa0] sm:$0xf] %v1855_v50 }
 0x23b   :  { %17685 = vst [vmem:[#allocation11_spill] sm:$0xff] %v13677_v34  ;;  %v1872_v23 = vsel %vm12130_vm8, %v1864_v39, %v1871_v25  ;;  %v13691_v19 = vrot.slane %v17688_v14, 7  ;;  %v17693_v27 = vshll.u32 %v13190_v15, 16  ;;  %v17695_v25 = vshrl.u32 %v13206_v30, 16  ;;  %v13958_v34 = vld [vmem:[#allocation2 + $0x84] sm:$0xf] }
 0x23c   :  { %v1911_v44 = vrot.slane %v17690_v62, 7  ;;  %v13697_v20 = vrot.slane %v17691_v0, 7  ;;  %v1889_v16 = vsel %vm12130_vm8, %v1881_v37, %v1888_v46  ;;  %v1898_v39 = vrot.slane %v1894_v56, 4  ;;  %2373 = vst [vmem:[#allocation2 + $0xac] sm:$0xf] %v1872_v23 }
 0x23d   :  { %17689 = vst [vmem:[#allocation16_spill] sm:$0xff] %v13691_v19  ;;  %v13703_v55 = vor.u32 %v17693_v27, %v1894_v56  ;;  %v1928_v14 = vrot.slane %v17695_v25, 7  ;;  %v17696_v62 = vshll.u32 %v13194_v26, 16  ;;  %v17697_v50 = vshll.u32 %v13198_v33, 16  ;;  %2380 = vst [vmem:[#allocation2 + $0xb8] sm:$0xf] %v1889_v16 }
 0x23e   :  { %17692 = vst [vmem:[#allocation33_spill] sm:$0xff] %v13697_v20  ;;  %v1915_v37 = vrot.slane %v1911_v44, 4  ;;  %v17699_v15 = vshll.u32 %v13202_v24, 16  ;;  %v17700_v23 = vshll.u32 %v13206_v30, 16  ;;  %v17702_v33 = vshrl.u32 %v13210_v48, 16 }
 0x23f   :  { %17694 = vst [vmem:[#allocation36_spill] sm:$0xff] %v13703_v55  ;;  %v1905_v17 = vor.u32 %v17696_v62, %v13691_v19  ;;  %v13713_v1 = vor.u32 %v17697_v50, %v1911_v44  ;;  %v1932_v26 = vrot.slane %v1928_v14, 4  ;;  %v17704_v44 = vshrl.u32 %v13214_v51, 16  ;;  %v2325_v19 = vld [vmem:[#allocation2 + $0x5c] sm:$0x1] }
 0x240   :  { %v1922_v46 = vor.u32 %v17699_v15, %v13697_v20  ;;  %v13721_v27 = vor.u32 %v17700_v23, %v1928_v14  ;;  %v13727_v62 = vrot.slane %v17702_v33, 7  ;;  %v17705_v24 = vshrl.u32 %v13218_v31, 16 }
 0x241   :  { %17698 = vst [vmem:[#allocation37_spill] sm:$0xff] %v13713_v1  ;;  %v1906_v25 = vsel %vm12130_vm8, %v1898_v39, %v1905_v17  ;;  %v1945_v16 = vrot.slane %v17704_v44, 7  ;;  %v17707_v15 = vshrl.u32 %v13225_v52, 16  ;;  %v17708_v23 = vshrl.u32 %v13229_v38, 16  ;;  %v13929_v1 = vld [vmem:[#allocation2 + $0x60] sm:$0xf] }
 0x242   :  { %17701 = vst [vmem:[#allocation39_spill] sm:$0xff] %v13721_v27  ;;  %17703 = vst [vmem:[#allocation43_spill] sm:$0xff] %v13727_v62  ;;  %v13733_v50 = vrot.slane %v17705_v24, 7  ;;  %v1923_v30 = vsel %vm12130_vm8, %v1915_v37, %v1922_v46  ;;  %v17710_v39 = vshrl.u32 %v13233_v61, 16  ;;  %v17711_v44 = vshll.u32 %v13210_v48, 16 }
 0x243   :  { %v1962_v14 = vrot.slane %v17707_v15, 7  ;;  %v13741_v17 = vrot.slane %v17708_v23, 7  ;;  %2387 = vst [vmem:[#allocation2 + $0xc4] sm:$0xf] %v1906_v25  ;;  %v17712_v0 = vshll.u32 %v13214_v51, 16  ;;  %v1949_v46 = vrot.slane %v1945_v16, 4 }
 0x244   :  { %17706 = vst [vmem:[#allocation46_spill] sm:$0xff] %v13733_v50  ;;  %v1979_v33 = vrot.slane %v17710_v39, 7  ;;  %v1939_v56 = vor.u32 %v17711_v44, %v13727_v62  ;;  %2394 = vst [vmem:[#allocation2 + $0xe8] sm:$0xf] %v1923_v30  ;;  %v17714_v15 = vshll.u32 %v13218_v31, 16  ;;  %v17715_v25 = vshll.u32 %v13225_v52, 16 }
 0x245   :  { %17709 = vst [vmem:[#allocation20_spill] sm:$0xff] %v13741_v17  ;;  %v13751_v37 = vor.u32 %v17712_v0, %v1945_v16  ;;  %v1966_v48 = vrot.slane %v1962_v14, 4  ;;  %v17717_v51 = vshll.u32 %v13229_v38, 16  ;;  %v17718_v30 = vshll.u32 %v13233_v61, 16  ;;  %v2311_v62 = vld [vmem:[#allocation2 + $0x44] sm:$0x1] }
 0x246   :  { %v1956_v23 = vor.u32 %v17714_v15, %v13733_v50  ;;  %v13759_v39 = vor.u32 %v17715_v25, %v1962_v14  ;;  %v1940_v44 = vsel %vm12130_vm8, %v1932_v26, %v1939_v56  ;;  %v1983_v52 = vrot.slane %v1979_v33, 4 }
 0x247   :  { %17713 = vst [vmem:[#allocation48_spill] sm:$0xff] %v13751_v37  ;;  %v1973_v0 = vor.u32 %v17717_v51, %v13741_v17  ;;  %v13769_v31 = vor.u32 %v17718_v30, %v1979_v33  ;;  %v17720_v25 = vshrl.u32 %v13237_v5, 16  ;;  %v17722_v56 = vshrl.u32 %v13244_v22, 16  ;;  %2401 = vst [vmem:[#allocation2 + $0xf4] sm:$0xf] %v1940_v44 }
 0x248   :  { %17716 = vst [vmem:[#allocation49_spill] sm:$0xff] %v13759_v39  ;;  %v1957_v15 = vsel %vm12130_vm8, %v1949_v46, %v1956_v23  ;;  %v17723_v51 = vshrl.u32 %v13248_v58, 16  ;;  %v17725_v30 = vshrl.u32 %v13252_v28, 16  ;;  %v17726_v46 = vld [vmem:[#allocation17_spill] sm:$0xff]  ;;  %v2290_v17 = vld [vmem:[#allocation2 + $0x20] sm:$0x1] }
 0x249   :  { %17719 = vst [vmem:[#allocation51_spill] sm:$0xff] %v13769_v31  ;;  %v13775_v14 = vrot.slane %v17720_v25, 7  ;;  %v1996_v26 = vrot.slane %v17722_v56, 7  ;;  %v1974_v38 = vsel %vm12130_vm8, %v1966_v48, %v1973_v0  ;;  %v17727_v33 = vshrl.u32 %v17726_v46, 16  ;;  %2408 = vst [vmem:[#allocation2 + $0x100] sm:$0xf] %v1957_v15 }
 0x24a   :  { %v13783_v61 = vrot.slane %v17723_v51, 7  ;;  %v2013_v16 = vrot.slane %v17725_v30, 7  ;;  %v17729_v25 = vshll.u32 %v13237_v5, 16  ;;  %v17730_v48 = vshll.u32 %v13244_v22, 16  ;;  %2415 = vst [vmem:[#allocation2 + $0x10c] sm:$0xf] %v1974_v38 }
 0x24b   :  { %17721 = vst [vmem:[#allocation55_spill] sm:$0xff] %v13775_v14  ;;  %v13789_v23 = vrot.slane %v17727_v33, 7  ;;  %v2000_v51 = vrot.slane %v1996_v26, 4  ;;  %v17732_v30 = vshll.u32 %v13248_v58, 16  ;;  %v17733_v15 = vshll.u32 %v13252_v28, 16  ;;  %v17736_v38 = vld [vmem:[#allocation47_spill] sm:$0xff] }
 0x24c   :  { %17724 = vst [vmem:[#allocation59_spill] sm:$0xff] %v13783_v61  ;;  %v1990_v56 = vor.u32 %v17729_v25, %v13775_v14  ;;  %v13797_v0 = vor.u32 %v17730_v48, %v1996_v26  ;;  %v2017_v5 = vrot.slane %v2013_v16, 4  ;;  %v17735_v22 = vshll.u32 %v17726_v46, 16  ;;  %v17738_v33 = vld [vmem:[#allocation19_spill] sm:$0xff]  ;;  %v17790_v39 = vld [vmem:[#allocation29_spill] sm:$0xff] }
 0x24d   :  { %17728 = vst [vmem:[#allocation28_spill] sm:$0xff] %v13789_v23  ;;  %v2007_v35 = vor.u32 %v17732_v30, %v13783_v61  ;;  %v13805_v24 = vor.u32 %v17733_v15, %v2013_v16  ;;  %v17737_v44 = vshrl.u32 %v17736_v38, 16  ;;  %v17739_v28 = vshrl.u32 %v17738_v33, 16  ;;  %v17741_v16 = vld [vmem:[#allocation50_spill] sm:$0xff]  ;;  %v2307_v37 = vld [vmem:[#allocation2 + $0x3c] sm:$0xf] }
 0x24e   :  { %17731 = vst [vmem:[#allocation9_spill] sm:$0xff] %v13797_v0  ;;  %v1991_v25 = vsel %vm12130_vm8, %v1983_v52, %v1990_v56  ;;  %v2024_v48 = vor.u32 %v17735_v22, %v13789_v23  ;;  %v17743_v52 = vld [vmem:[#allocation52_spill] sm:$0xff] }
 0x24f   :  { %17734 = vst [vmem:[#allocation41_spill] sm:$0xff] %v13805_v24  ;;  %v2030_v58 = vrot.slane %v17737_v44, 7  ;;  %v2008_v30 = vsel %vm12130_vm8, %v2000_v51, %v2007_v35  ;;  %v13819_v15 = vrot.slane %v17739_v28, 7  ;;  %v17742_v24 = vshrl.u32 %v17741_v16, 16  ;;  %2422 = vst [vmem:[#allocation2 + $0x118] sm:$0xf] %v1991_v25 }
 0x250   :  { %v17744_v56 = vshrl.u32 %v17743_v52, 16  ;;  %v2025_v46 = vsel %vm12130_vm8, %v2017_v5, %v2024_v48  ;;  %v17746_v44 = vshll.u32 %v17736_v38, 16  ;;  %v17748_v51 = vld [vmem:[#allocation22_spill] sm:$0xff]  ;;  %2429 = vst [vmem:[#allocation2 + $0x124] sm:$0xf] %v2008_v30  ;;  %v17751_v25 = vshll.u32 %v17741_v16, 16 }
 0x251   :  { %17740 = vst [vmem:[#allocation42_spill] sm:$0xff] %v13819_v15  ;;  %v2047_v61 = vrot.slane %v17742_v24, 7  ;;  %v2034_v35 = vrot.slane %v2030_v58, 4  ;;  %v17749_v26 = vshrl.u32 %v17748_v51, 16  ;;  %v17750_v24 = vshll.u32 %v17738_v33, 16 }
 0x252   :  { %v13825_v0 = vrot.slane %v17744_v56, 7  ;;  %v13831_v22 = vor.u32 %v17746_v44, %v2030_v58  ;;  %2436 = vst [vmem:[#allocation2 + $0x130] sm:$0xf] %v2025_v46  ;;  %v17753_v48 = vshll.u32 %v17743_v52, 16 }
 0x253   :  { %v2064_v28 = vrot.slane %v17749_v26, 7  ;;  %v2041_v23 = vor.u32 %v17750_v24, %v13819_v15  ;;  %v13841_v14 = vor.u32 %v17751_v25, %v2047_v61  ;;  %v2051_v5 = vrot.slane %v2047_v61, 4  ;;  %v17756_v24 = vld [vmem:[#allocation53_spill] sm:$0xff]  ;;  %v17759_v61 = vld [vmem:[#allocation54_spill] sm:$0xff] }
 0x254   :  { %17745 = vst [vmem:[#allocation44_spill] sm:$0xff] %v13825_v0  ;;  %17747 = vst [vmem:[#allocation45_spill] sm:$0xff] %v13831_v22  ;;  %v2058_v38 = vor.u32 %v17753_v48, %v13825_v0  ;;  %v17754_v26 = vshll.u32 %v17748_v51, 16  ;;  %v17757_v16 = vshrl.u32 %v17756_v24, 16  ;;  %v17760_v46 = vshrl.u32 %v17759_v61, 16 }
 0x255   :  { %17752 = vst [vmem:[#allocation13_spill] sm:$0xff] %v13841_v14  ;;  %v2068_v33 = vrot.slane %v2064_v28, 4  ;;  %v2042_v44 = vsel %vm12130_vm8, %v2034_v35, %v2041_v23  ;;  %v17761_v14 = vld [vmem:[#allocation56_spill] sm:$0xff]  ;;  %v17769_v35 = vld [vmem:[#allocation21_spill] sm:$0xff]  ;;  %v17772_v31 = vshll.u32 %v17759_v61, 16 }
 0x256   :  { %v13849_v30 = vor.u32 %v17754_v26, %v2064_v28  ;;  %v13855_v25 = vrot.slane %v17757_v16, 7  ;;  %v2081_v56 = vrot.slane %v17760_v46, 7  ;;  %v17762_v52 = vshrl.u32 %v17761_v14, 16  ;;  %v17764_v26 = vld [vmem:[#allocation24_spill] sm:$0xff]  ;;  %2443 = vst [vmem:[#allocation2 + $0x13c] sm:$0xf] %v2042_v44 }
 0x257   :  { %v2059_v51 = vsel %vm12130_vm8, %v2051_v5, %v2058_v38  ;;  %v17765_v58 = vshrl.u32 %v17764_v26, 16  ;;  %v17770_v16 = vshrl.u32 %v17769_v35, 16  ;;  %v17771_v46 = vshll.u32 %v17756_v24, 16  ;;  %v2300_v61 = vld [vmem:[#allocation2 + $0x30] sm:$0xf] }
 0x258   :  { %17755 = vst [vmem:[#allocation15_spill] sm:$0xff] %v13849_v30  ;;  %17758 = vst [vmem:[#allocation18_spill] sm:$0xff] %v13855_v25  ;;  %v13861_v48 = vrot.slane %v17762_v52, 7  ;;  %v17766_v30 = vld [vmem:[#allocation57_spill] sm:$0xff]  ;;  %v13879_v5 = vor.u32 %v17772_v31, %v2081_v56  ;;  %v2085_v38 = vrot.slane %v2081_v56, 4  ;;  %v17775_v44 = vshll.u32 %v17764_v26, 16 }
 0x259   :  { %v2098_v28 = vrot.slane %v17765_v58, 7  ;;  %v17767_v0 = vshrl.u32 %v17766_v30, 16  ;;  %v2115_v15 = vrot.slane %v17770_v16, 7  ;;  %v2075_v22 = vor.u32 %v17771_v46, %v13855_v25  ;;  %2450 = vst [vmem:[#allocation2 + $0x148] sm:$0xf] %v2059_v51 }
 0x25a   :  { %17763 = vst [vmem:[#allocation27_spill] sm:$0xff] %v13861_v48  ;;  %17773 = vst [vmem:[#allocation32_spill] sm:$0xff] %v13879_v5  ;;  %v2279_v46 = vld [vmem:[#allocation2 + $0xc] sm:$0xf]  ;;  %v17777_v31 = vshll.u32 %v17766_v30, 16 }
 0x25b   :  { %v13869_v23 = vrot.slane %v17767_v0, 7  ;;  %v17774_v0 = vshll.u32 %v17761_v14, 16  ;;  %v13887_v16 = vor.u32 %v17775_v44, %v2098_v28  ;;  %v2102_v24 = vrot.slane %v2098_v28, 4  ;;  %v2283_v26 = vld [vmem:[#allocation2 + $0x14] sm:$0x1] }
 0x25c   :  { %v2076_v52 = vsel %vm12130_vm8, %v2068_v33, %v2075_v22  ;;  %v17778_v14 = vshll.u32 %v17769_v35, 16  ;;  %v2119_v44 = vrot.slane %v2115_v15, 4  ;;  %v17783_v33 = vld [vmem:[#allocation23_spill] sm:$0xff]  ;;  %v2297_v35 = vld [vmem:[#allocation2 + $0x2c] sm:$0x1] }
 0x25d   :  { %17768 = vst [vmem:[#allocation14_spill] sm:$0xff] %v13869_v23  ;;  %v2092_v58 = vor.u32 %v17774_v0, %v13861_v48  ;;  %17776 = vst [vmem:[#allocation35_spill] sm:$0xff] %v13887_v16  ;;  %v2109_v56 = vor.u32 %v17777_v31, %v13869_v23  ;;  %v2286_v0 = vld [vmem:[#allocation2 + $0x18] sm:$0xf]  ;;  %v17784_v30 = vshrl.u32 %v17783_v33, 16  ;;  %v17794_v27 = vshll.u32 %v17783_v33, 16 }
 0x25e   :  { %v13897_v51 = vor.u32 %v17778_v14, %v2115_v15  ;;  %v17780_v16 = vld [vmem:[#allocation58_spill] sm:$0xff]  ;;  %2457 = vst [vmem:[#allocation2 + $0x154] sm:$0xf] %v2076_v52  ;;  %v2293_v23 = vld [vmem:[#allocation2 + $0x24] sm:$0xf] }
 0x25f   :  { %v2093_v28 = vsel %vm12130_vm8, %v2085_v38, %v2092_v58  ;;  %v17781_v48 = vshrl.u32 %v17780_v16, 16  ;;  %v2132_v31 = vrot.slane %v17784_v30, 7  ;;  %v2110_v14 = vsel %vm12130_vm8, %v2102_v24, %v2109_v56  ;;  %v17788_v38 = vld [vmem:[#allocation25_spill] sm:$0xff]  ;;  %v2304_v30 = vld [vmem:[#allocation2 + $0x38] sm:$0x1] }
 0x260   :  { %17779 = vst [vmem:[#allocation38_spill] sm:$0xff] %v13897_v51  ;;  %v17785_v51 = vld [vmem:[#allocation26_spill] sm:$0xff]  ;;  %v17789_v15 = vshrl.u32 %v17788_v38, 16  ;;  %2464 = vst [vmem:[#allocation2 + $0x160] sm:$0xf] %v2093_v28  ;;  %v17793_v24 = vshll.u32 %v17780_v16, 16 }
 0x261   :  { %v13903_v22 = vrot.slane %v17781_v48, 7  ;;  %v17786_v5 = vshrl.u32 %v17785_v51, 16  ;;  %v17791_v48 = vshrl.u32 %v17790_v39, 16  ;;  %v13919_v52 = vld [vmem:[#allocation2 + $0x48] sm:$0xf]  ;;  %v13927_v20 = vor.u32 %v17794_v27, %v2132_v31 }
 0x262   :  { %v2166_v58 = vrot.slane %v17789_v15, 7  ;;  %v2136_v15 = vrot.slane %v2132_v31, 4  ;;  %2471 = vst [vmem:[#allocation2 + $0x16c] sm:$0xf] %v2110_v14  ;;  %v13931_v28 = vld [vmem:[#allocation2 + $0x54] sm:$0xf] }
 0x263   :  { %17782 = vst [vmem:[#allocation40_spill] sm:$0xff] %v13903_v22  ;;  %v13911_v25 = vrot.slane %v17786_v5, 7  ;;  %v13917_v50 = vrot.slane %v17791_v48, 7  ;;  %v2126_v56 = vor.u32 %v17793_v24, %v13903_v22  ;;  %17795 = vst [vmem:[#allocation47_spill] sm:$0xff] %v13927_v20  ;;  %v2318_v48 = vld [vmem:[#allocation2 + $0x50] sm:$0x1] }
 0x264   :  { %v17796_v55 = vshll.u32 %v17785_v51, 16  ;;  %v17797_v24 = vshll.u32 %v17788_v38, 16  ;;  %v2170_v27 = vrot.slane %v2166_v58, 4  ;;  %v2332_v33 = vld [vmem:[#allocation2 + $0x68] sm:$0x1]  ;;  %v17799_v22 = vshll.u32 %v17790_v39, 16 }
 0x265   :  { %17787 = vst [vmem:[#allocation34_spill] sm:$0xff] %v13911_v25  ;;  %17792 = vst [vmem:[#allocation17_spill] sm:$0xff] %v13917_v50  ;;  %v13941_v31 = vld [vmem:[#allocation2 + $0x78] sm:$0xf]  ;;  %v13943_v14 = vld [vmem:[#allocation2 + $0x6c] sm:$0xf]  ;;  %v2127_v20 = vsel %vm12130_vm8, %v2119_v44, %v2126_v56 }
 0x266   :  { %v2143_v21 = vor.u32 %v17796_v55, %v13911_v25  ;;  %v13939_v5 = vor.u32 %v17797_v24, %v2166_v58  ;;  %v2177_v51 = vor.u32 %v17799_v22, %v13917_v50  ;;  %v17800_v16 = vld [vmem:[#allocation8_spill] sm:$0xff]  ;;  %v13954_v24 = vld [vmem:[#allocation2 + $0x80] sm:$0x1]  ;;  %v2339_v58 = vld [vmem:[#allocation2 + $0x74] sm:$0x1]  ;;  %v17802_v39 = vrot.slane %v13453_v60, 4 }
 0x267   :  { %v2280_v38 = vsel %vm12448_vm10, %v17800_v16, %v2279_v46  ;;  %v2287_v46 = vsel %vm12448_vm10, %v13483_v41, %v2286_v0  ;;  %v17804_v16 = vrot.slane %v13459_v6, 4  ;;  %2478 = vst [vmem:[#allocation2 + $0x178] sm:$0xf] %v2127_v20  ;;  %v13973_v50 = vld [vmem:[#allocation2 + $0x98] sm:$0x1]  ;;  %v2294_v41 = vsel %vm12448_vm10, %v13493_v2, %v2293_v23 }
 0x268   :  { %17798 = vst [vmem:[#allocation19_spill] sm:$0xff] %v13939_v5  ;;  %v13956_v5 = vld [vmem:[#allocation2 + $0x90] sm:$0xf]  ;;  %v2144_v44 = vsel %vm12130_vm8, %v2136_v15, %v2143_v21  ;;  %2281 = vst [vmem:[#allocation2 + $0xc] sm:$0xf] %v2280_v38  ;;  %v2284_v56 = vsel %vm11469_vm2, %v17802_v39, %v2283_v26  ;;  %v2178_v60 = vsel %vm12130_vm8, %v2170_v27, %v2177_v51  ;;  %v17805_v6 = vrot.slane %v13465_v18, 4 }
 0x269   :  { %v2291_v55 = vsel %vm11469_vm2, %v17804_v16, %v2290_v17  ;;  %v13975_v21 = vld [vmem:[#allocation2 + $0xa8] sm:$0xf]  ;;  %v13977_v15 = vld [vmem:[#allocation2 + $0x9c] sm:$0xf]  ;;  %2285 = vst [vmem:[#allocation2 + $0x14] sm:$0x1] %v2284_v56  ;;  %v2301_v17 = vsel %vm12448_vm10, %v13503_v53, %v2300_v61  ;;  %v2308_v53 = vsel %vm12448_vm10, %v13529_v59, %v2307_v37 }
 0x26a   :  { %2288 = vst [vmem:[#allocation2 + $0x18] sm:$0xf] %v2287_v46  ;;  %2292 = vst [vmem:[#allocation2 + $0x20] sm:$0x1] %v2291_v55  ;;  %v2298_v20 = vsel %vm11469_vm2, %v17805_v6, %v2297_v35  ;;  %v13991_v0 = vld [vmem:[#allocation2 + $0xb0] sm:$0x1]  ;;  %v2315_v35 = vsel %vm12448_vm10, %v13541_v42, %v13919_v52  ;;  %v2322_v42 = vsel %vm12448_vm10, %v13549_v4, %v13931_v28 }
 0x26b   :  { %2485 = vst [vmem:[#allocation2 + $0x184] sm:$0xf] %v2144_v44  ;;  %v13993_v26 = vld [vmem:[#allocation2 + $0xc0] sm:$0xf]  ;;  %v13995_v27 = vld [vmem:[#allocation2 + $0xb4] sm:$0xf]  ;;  %v2329_v52 = vsel %vm12448_vm10, %v13575_v3, %v13929_v1  ;;  %v2336_v3 = vsel %vm12448_vm10, %v13585_v7, %v13943_v14  ;;  %v2343_v28 = vsel %vm12448_vm10, %v13593_v43, %v13941_v31  ;;  %v2350_v43 = vsel %vm12448_vm10, %v13623_v54, %v13958_v34 }
 0x26c   :  { %2295 = vst [vmem:[#allocation2 + $0x24] sm:$0xf] %v2294_v41  ;;  %2299 = vst [vmem:[#allocation2 + $0x2c] sm:$0x1] %v2298_v20  ;;  %v17806_v18 = vrot.slane %v13471_v9, 4  ;;  %v17807_v23 = vrot.slane %v13515_v47, 4  ;;  %v2364_v54 = vsel %vm12448_vm10, %v13641_v8, %v13977_v15 }
 0x26d   :  { %2302 = vst [vmem:[#allocation2 + $0x30] sm:$0xf] %v2301_v17  ;;  %2499 = vst [vmem:[#allocation2 + $0x19c] sm:$0xf] %v2178_v60  ;;  %v14012_v51 = vld [vmem:[#allocation2 + $0xc8] sm:$0x1] }
 0x26e   :  { %v2305_v2 = vsel %vm11469_vm2, %v17806_v18, %v2304_v30  ;;  %v2312_v61 = vsel %vm11469_vm2, %v17807_v23, %v2311_v62  ;;  %v2381_v9 = vld [vmem:[#allocation2 + $0xbc] sm:$0x1]  ;;  %v14014_v55 = vld [vmem:[#allocation2 + $0xf0] sm:$0xf]  ;;  %v14016_v30 = vld [vmem:[#allocation2 + $0xe4] sm:$0xf] }
 0x26f   :  { %2306 = vst [vmem:[#allocation2 + $0x38] sm:$0x1] %v2305_v2  ;;  %2309 = vst [vmem:[#allocation2 + $0x3c] sm:$0xf] %v2308_v53  ;;  %v17808_v47 = vrot.slane %v13521_v40, 4  ;;  %v17809_v62 = vrot.slane %v13533_v32, 4 }
 0x270   :  { %2313 = vst [vmem:[#allocation2 + $0x44] sm:$0x1] %v2312_v61  ;;  %2316 = vst [vmem:[#allocation2 + $0x48] sm:$0xf] %v2315_v35  ;;  %v14034_v38 = vld [vmem:[#allocation2 + $0xf8] sm:$0x1] }
 0x271   :  { %v2319_v59 = vsel %vm11469_vm2, %v17808_v47, %v2318_v48  ;;  %v2326_v37 = vsel %vm11469_vm2, %v17809_v62, %v2325_v19  ;;  %v2395_v40 = vld [vmem:[#allocation2 + $0xec] sm:$0x1]  ;;  %v14036_v44 = vld [vmem:[#allocation2 + $0x108] sm:$0xf]  ;;  %v14038_v48 = vld [vmem:[#allocation2 + $0xfc] sm:$0xf] }
 0x272   :  { %2320 = vst [vmem:[#allocation2 + $0x50] sm:$0x1] %v2319_v59  ;;  %2323 = vst [vmem:[#allocation2 + $0x54] sm:$0xf] %v2322_v42  ;;  %v17810_v32 = vrot.slane %v13563_v13, 4  ;;  %v17811_v1 = vrot.slane %v13569_v63, 4 }
 0x273   :  { %2327 = vst [vmem:[#allocation2 + $0x5c] sm:$0x1] %v2326_v37  ;;  %2330 = vst [vmem:[#allocation2 + $0x60] sm:$0xf] %v2329_v52  ;;  %v14056_v39 = vld [vmem:[#allocation2 + $0x110] sm:$0x1] }
 0x274   :  { %v2333_v4 = vsel %vm11469_vm2, %v17810_v32, %v2332_v33  ;;  %v2340_v19 = vsel %vm11469_vm2, %v17811_v1, %v2339_v58  ;;  %v2409_v13 = vld [vmem:[#allocation2 + $0x104] sm:$0x1]  ;;  %v14058_v56 = vld [vmem:[#allocation2 + $0x120] sm:$0xf]  ;;  %v14060_v33 = vld [vmem:[#allocation2 + $0x114] sm:$0xf]  ;;  %v2357_v58 = vsel %vm12448_vm10, %v13631_v49, %v13956_v5  ;;  %v2371_v5 = vsel %vm12448_vm10, %v13669_v36, %v13975_v21 }
 0x275   :  { %2334 = vst [vmem:[#allocation2 + $0x68] sm:$0x1] %v2333_v4  ;;  %2337 = vst [vmem:[#allocation2 + $0x6c] sm:$0xf] %v2336_v3  ;;  %v17812_v7 = vrot.slane %v13599_v29, 4  ;;  %v17813_v31 = vrot.slane %v13605_v11, 4 }
 0x276   :  { %2341 = vst [vmem:[#allocation2 + $0x74] sm:$0x1] %v2340_v19  ;;  %2344 = vst [vmem:[#allocation2 + $0x78] sm:$0xf] %v2343_v28  ;;  %v14079_v46 = vld [vmem:[#allocation2 + $0x128] sm:$0x1] }
 0x277   :  { %v2347_v63 = vsel %vm11469_vm2, %v17812_v7, %v13954_v24  ;;  %v2354_v14 = vsel %vm11469_vm2, %v17813_v31, %v2353_v10  ;;  %v2423_v29 = vld [vmem:[#allocation2 + $0x11c] sm:$0x1]  ;;  %v14081_v16 = vld [vmem:[#allocation2 + $0x138] sm:$0xf]  ;;  %2351 = vst [vmem:[#allocation2 + $0x84] sm:$0xf] %v2350_v43 }
 0x278   :  { %2348 = vst [vmem:[#allocation2 + $0x80] sm:$0x1] %v2347_v63  ;;  %2355 = vst [vmem:[#allocation2 + $0x8c] sm:$0x1] %v2354_v14  ;;  %v17814_v34 = vrot.slane %v13613_v45, 4  ;;  %v17815_v49 = vrot.slane %v13647_v12, 4 }
 0x279   :  { %2358 = vst [vmem:[#allocation2 + $0x90] sm:$0xf] %v2357_v58  ;;  %v2433_v24 = vld [vmem:[#allocation2 + $0x12c] sm:$0xf]  ;;  %v2444_v45 = vld [vmem:[#allocation2 + $0x140] sm:$0x1] }
 0x27a   :  { %v2361_v11 = vsel %vm11469_vm2, %v17814_v34, %v13973_v50  ;;  %v2368_v10 = vsel %vm11469_vm2, %v17815_v49, %v2367_v57  ;;  %v2437_v60 = vld [vmem:[#allocation2 + $0x134] sm:$0x1]  ;;  %2365 = vst [vmem:[#allocation2 + $0x9c] sm:$0xf] %v2364_v54  ;;  %2372 = vst [vmem:[#allocation2 + $0xa8] sm:$0xf] %v2371_v5 }
 0x27b   :  { %2362 = vst [vmem:[#allocation2 + $0x98] sm:$0x1] %v2361_v11  ;;  %2369 = vst [vmem:[#allocation2 + $0xa4] sm:$0x1] %v2368_v10  ;;  %v17816_v50 = vld [vmem:[#allocation10_spill] sm:$0xff]  ;;  %v17818_v15 = vld [vmem:[#allocation11_spill] sm:$0xff] }
 0x27c   :  { %v17817_v8 = vrot.slane %v17816_v50, 4  ;;  %v2378_v41 = vsel %vm12448_vm10, %v17818_v15, %v13995_v27  ;;  %v17819_v6 = vld [vmem:[#allocation12_spill] sm:$0xff]  ;;  %v2454_v57 = vld [vmem:[#allocation2 + $0x150] sm:$0xf]  ;;  %v2458_v2 = vld [vmem:[#allocation2 + $0x158] sm:$0x1] }
 0x27d   :  { %v17820_v36 = vrot.slane %v17819_v6, 4  ;;  %v17821_v20 = vld [vmem:[#allocation36_spill] sm:$0xff]  ;;  %2379 = vst [vmem:[#allocation2 + $0xb4] sm:$0xf] %v2378_v41  ;;  %v17824_v23 = vld [vmem:[#allocation37_spill] sm:$0xff]  ;;  %v17827_v47 = vld [vmem:[#allocation39_spill] sm:$0xff] }
 0x27e   :  { %v2375_v12 = vsel %vm11469_vm2, %v17817_v8, %v13991_v0  ;;  %v2385_v17 = vsel %vm12448_vm10, %v17821_v20, %v13993_v26  ;;  %v2447_v18 = vld [vmem:[#allocation2 + $0x144] sm:$0xf]  ;;  %v2392_v61 = vsel %vm12448_vm10, %v17824_v23, %v14016_v30  ;;  %v17825_v35 = vld [vmem:[#allocation33_spill] sm:$0xff]  ;;  %v2399_v59 = vsel %vm12448_vm10, %v17827_v47, %v14014_v55  ;;  %v2461_v37 = vld [vmem:[#allocation2 + $0x15c] sm:$0xf] }
 0x27f   :  { %v2382_v21 = vsel %vm11469_vm2, %v17820_v36, %v2381_v9  ;;  %2376 = vst [vmem:[#allocation2 + $0xb0] sm:$0x1] %v2375_v12  ;;  %2386 = vst [vmem:[#allocation2 + $0xc0] sm:$0xf] %v2385_v17  ;;  %v17822_v0 = vld [vmem:[#allocation16_spill] sm:$0xff]  ;;  %v17826_v26 = vrot.slane %v17825_v35, 4 }
 0x280   :  { %2383 = vst [vmem:[#allocation2 + $0xbc] sm:$0x1] %v2382_v21  ;;  %v17823_v27 = vrot.slane %v17822_v0, 4  ;;  %v2451_v42 = vld [vmem:[#allocation2 + $0x14c] sm:$0x1]  ;;  %v17831_v4 = vld [vmem:[#allocation46_spill] sm:$0xff] }
 0x281   :  { %v2396_v9 = vsel %vm11469_vm2, %v17826_v26, %v2395_v40  ;;  %v2468_v62 = vld [vmem:[#allocation2 + $0x168] sm:$0xf]  ;;  %2393 = vst [vmem:[#allocation2 + $0xe4] sm:$0xf] %v2392_v61  ;;  %2400 = vst [vmem:[#allocation2 + $0xf0] sm:$0xf] %v2399_v59 }
 0x282   :  { %v2389_v53 = vsel %vm11469_vm2, %v17823_v27, %v14012_v51  ;;  %2397 = vst [vmem:[#allocation2 + $0xec] sm:$0x1] %v2396_v9  ;;  %v17828_v51 = vld [vmem:[#allocation43_spill] sm:$0xff]  ;;  %v17830_v40 = vld [vmem:[#allocation48_spill] sm:$0xff]  ;;  %v17832_v55 = vrot.slane %v17831_v4, 4  ;;  %v17833_v1 = vld [vmem:[#allocation49_spill] sm:$0xff] }
 0x283   :  { %2390 = vst [vmem:[#allocation2 + $0xc8] sm:$0x1] %v2389_v53  ;;  %v17829_v30 = vrot.slane %v17828_v51, 4  ;;  %v2406_v32 = vsel %vm12448_vm10, %v17830_v40, %v14038_v48  ;;  %v2413_v19 = vsel %vm12448_vm10, %v17833_v1, %v14036_v44  ;;  %v2472_v28 = vld [vmem:[#allocation2 + $0x170] sm:$0x1]  ;;  %v17837_v14 = vld [vmem:[#allocation55_spill] sm:$0xff] }
 0x284   :  { %v2410_v3 = vsel %vm11469_vm2, %v17832_v55, %v2409_v13  ;;  %v2465_v7 = vld [vmem:[#allocation2 + $0x164] sm:$0x1]  ;;  %v2482_v63 = vld [vmem:[#allocation2 + $0x180] sm:$0xf]  ;;  %2407 = vst [vmem:[#allocation2 + $0xfc] sm:$0xf] %v2406_v32 }
 0x285   :  { %v2403_v52 = vsel %vm11469_vm2, %v17829_v30, %v14034_v38  ;;  %2411 = vst [vmem:[#allocation2 + $0x104] sm:$0x1] %v2410_v3  ;;  %2414 = vst [vmem:[#allocation2 + $0x108] sm:$0xf] %v2413_v19  ;;  %v17834_v38 = vld [vmem:[#allocation20_spill] sm:$0xff]  ;;  %v17836_v13 = vld [vmem:[#allocation51_spill] sm:$0xff] }
 0x286   :  { %2404 = vst [vmem:[#allocation2 + $0xf8] sm:$0x1] %v2403_v52  ;;  %v17835_v48 = vrot.slane %v17834_v38, 4  ;;  %v2420_v31 = vsel %vm12448_vm10, %v17836_v13, %v14060_v33  ;;  %v17838_v44 = vrot.slane %v17837_v14, 4  ;;  %v17839_v34 = vld [vmem:[#allocation9_spill] sm:$0xff]  ;;  %v17843_v8 = vld [vmem:[#allocation28_spill] sm:$0xff] }
 0x287   :  { %v2427_v11 = vsel %vm12448_vm10, %v17839_v34, %v14058_v56  ;;  %v2475_v54 = vld [vmem:[#allocation2 + $0x174] sm:$0xf]  ;;  %v2486_v49 = vld [vmem:[#allocation2 + $0x188] sm:$0x1]  ;;  %v2479_v10 = vld [vmem:[#allocation2 + $0x17c] sm:$0x1] }
 0x288   :  { %v2417_v43 = vsel %vm11469_vm2, %v17835_v48, %v14056_v39  ;;  %v2424_v58 = vsel %vm11469_vm2, %v17838_v44, %v2423_v29  ;;  %2421 = vst [vmem:[#allocation2 + $0x114] sm:$0xf] %v2420_v31  ;;  %2428 = vst [vmem:[#allocation2 + $0x120] sm:$0xf] %v2427_v11  ;;  %v17840_v39 = vld [vmem:[#allocation59_spill] sm:$0xff]  ;;  %v17842_v50 = vld [vmem:[#allocation41_spill] sm:$0xff] }
 0x289   :  { %2418 = vst [vmem:[#allocation2 + $0x110] sm:$0x1] %v2417_v43  ;;  %2425 = vst [vmem:[#allocation2 + $0x11c] sm:$0x1] %v2424_v58  ;;  %v17841_v33 = vrot.slane %v17840_v39, 4  ;;  %v2434_v29 = vsel %vm12448_vm10, %v17842_v50, %v2433_v24  ;;  %v17844_v12 = vrot.slane %v17843_v8, 4 }
 0x28a   :  { %v17845_v15 = vld [vmem:[#allocation45_spill] sm:$0xff]  ;;  %v2496_v6 = vld [vmem:[#allocation2 + $0x198] sm:$0xf]  ;;  %v2500_v36 = vld [vmem:[#allocation2 + $0x1a0] sm:$0x1] }
 0x28b   :  { %v2431_v5 = vsel %vm11469_vm2, %v17841_v33, %v14079_v46  ;;  %v2438_v56 = vsel %vm11469_vm2, %v17844_v12, %v2437_v60  ;;  %v2441_v41 = vsel %vm12448_vm10, %v17845_v15, %v14081_v16  ;;  %2435 = vst [vmem:[#allocation2 + $0x12c] sm:$0xf] %v2434_v29  ;;  %v17846_v46 = vld [vmem:[#allocation42_spill] sm:$0xff]  ;;  %v17848_v20 = vld [vmem:[#allocation13_spill] sm:$0xff]  ;;  %v17849_v17 = vld [vmem:[#allocation44_spill] sm:$0xff] }
 0x28c   :  { %2432 = vst [vmem:[#allocation2 + $0x128] sm:$0x1] %v2431_v5  ;;  %2439 = vst [vmem:[#allocation2 + $0x134] sm:$0x1] %v2438_v56  ;;  %v17847_v21 = vrot.slane %v17846_v46, 4  ;;  %v2448_v60 = vsel %vm12448_vm10, %v17848_v20, %v2447_v18  ;;  %v17850_v0 = vrot.slane %v17849_v17, 4 }
 0x28d   :  { %2442 = vst [vmem:[#allocation2 + $0x138] sm:$0xf] %v2441_v41  ;;  %v17851_v27 = vld [vmem:[#allocation15_spill] sm:$0xff]  ;;  %v2506_v23 = vld [vmem:[#allocation2 + $0xc] sm:$0xf]  ;;  %v17852_v61 = vld [vmem:[#allocation18_spill] sm:$0xff] }
 0x28e   :  { %v2445_v24 = vsel %vm11469_vm2, %v17847_v21, %v2444_v45  ;;  %v2452_v16 = vsel %vm11469_vm2, %v17850_v0, %v2451_v42  ;;  %v2455_v53 = vsel %vm12448_vm10, %v17851_v27, %v2454_v57  ;;  %2449 = vst [vmem:[#allocation2 + $0x144] sm:$0xf] %v2448_v60  ;;  %v17853_v45 = vrot.slane %v17852_v61, 4  ;;  %v17854_v18 = vld [vmem:[#allocation32_spill] sm:$0xff]  ;;  %v17855_v9 = vld [vmem:[#allocation27_spill] sm:$0xff]  ;;  %v17858_v30 = vld [vmem:[#allocation14_spill] sm:$0xff] }
 0x28f   :  { %2446 = vst [vmem:[#allocation2 + $0x140] sm:$0x1] %v2445_v24  ;;  %2453 = vst [vmem:[#allocation2 + $0x14c] sm:$0x1] %v2452_v16  ;;  %v2462_v26 = vsel %vm12448_vm10, %v17854_v18, %v2461_v37  ;;  %v17856_v47 = vrot.slane %v17855_v9, 4  ;;  %v17857_v57 = vld [vmem:[#allocation35_spill] sm:$0xff] }
 0x290   :  { %2456 = vst [vmem:[#allocation2 + $0x150] sm:$0xf] %v2455_v53  ;;  %v2459_v35 = vsel %vm11469_vm2, %v17853_v45, %v2458_v2  ;;  %v2469_v42 = vsel %vm12448_vm10, %v17857_v57, %v2468_v62  ;;  %v2507_v51 = vld [vmem:[#allocation2 + $0x10] sm:$0xf]  ;;  %2463 = vst [vmem:[#allocation2 + $0x15c] sm:$0xf] %v2462_v26 }
 0x291   :  { %v2466_v59 = vsel %vm11469_vm2, %v17856_v47, %v2465_v7  ;;  %2460 = vst [vmem:[#allocation2 + $0x158] sm:$0x1] %v2459_v35  ;;  %2470 = vst [vmem:[#allocation2 + $0x168] sm:$0xf] %v2469_v42  ;;  %v17859_v2 = vrot.slane %v17858_v30, 4  ;;  %v17860_v37 = vld [vmem:[#allocation38_spill] sm:$0xff]  ;;  %v14239_v11 = vcombine.low %v2506_v23, %v2507_v51 }
 0x292   :  { %2467 = vst [vmem:[#allocation2 + $0x164] sm:$0x1] %v2466_v59  ;;  %v2476_v40 = vsel %vm12448_vm10, %v17860_v37, %v2475_v54  ;;  %v17861_v32 = vld [vmem:[#allocation40_spill] sm:$0xff]  ;;  %v17863_v62 = vld [vmem:[#allocation47_spill] sm:$0xff]  ;;  %v17864_v1 = vld [vmem:[#allocation34_spill] sm:$0xff]  ;;  %v2655_v31 = vshrl.u32 %v2506_v23, 16 }
 0x293   :  { %v2473_v52 = vsel %vm11469_vm2, %v17859_v2, %v2472_v28  ;;  %v17862_v4 = vrot.slane %v17861_v32, 4  ;;  %v2483_v3 = vsel %vm12448_vm10, %v17863_v62, %v2482_v63  ;;  %2477 = vst [vmem:[#allocation2 + $0x174] sm:$0xf] %v2476_v40  ;;  %v17865_v19 = vrot.slane %v17864_v1, 4  ;;  %v17866_v7 = vld [vmem:[#allocation19_spill] sm:$0xff]  ;;  %v17867_v48 = vld [vmem:[#allocation17_spill] sm:$0xff]  ;;  %9943 = vmatprep.mubr.bf16.mxu1 %v14239_v11 }
 0x294   :  { %2474 = vst [vmem:[#allocation2 + $0x170] sm:$0x1] %v2473_v52  ;;  %2484 = vst [vmem:[#allocation2 + $0x180] sm:$0xf] %v2483_v3  ;;  %v2497_v38 = vsel %vm12448_vm10, %v17866_v7, %v2496_v6  ;;  %v17868_v43 = vrot.slane %v17867_v48, 4  ;;  %v2658_v44 = vshll.u32 %v2506_v23, 16 }
 0x295   :  { %v2480_v55 = vsel %vm11469_vm2, %v17862_v4, %v2479_v10  ;;  %v2487_v28 = vsel %vm11469_vm2, %v17865_v19, %v2486_v49  ;;  %v2509_v63 = vld [vmem:[#allocation2 + $0x18] sm:$0xf]  ;;  %v14237_v14 = vld [vmem:[#allocation2 + $0x1c] sm:$0xf]  ;;  %2498 = vst [vmem:[#allocation2 + $0x198] sm:$0xf] %v2497_v38 }
 0x296   :  { %2481 = vst [vmem:[#allocation2 + $0x17c] sm:$0x1] %v2480_v55  ;;  %v2501_v13 = vsel %vm11469_vm2, %v17868_v43, %v2500_v36  ;;  %2488 = vst [vmem:[#allocation2 + $0x188] sm:$0x1] %v2487_v28  ;;  %v2664_v58 = vshll.u32 %v2507_v51, 16  ;;  %v2668_v34 = vshrl.u32 %v2507_v51, 16  ;;  %v14249_v5 = vcombine.low %v2509_v63, %v14237_v14 }
 0x297   :  { %2502 = vst [vmem:[#allocation2 + $0x1a0] sm:$0x1] %v2501_v13  ;;  %v2657_v54 = vrot.slane %v2655_v31, 4  ;;  %v14241_v25 = vld [vmem:[#allocation2 + $0x24] sm:$0xf]  ;;  %v2660_v10 = vrot.slane %v2658_v44, 5 }
 0x298   :  { %v14243_v49 = vld [vmem:[#allocation2 + $0x28] sm:$0xf]  ;;  %v14245_v39 = vrot.slane %v2664_v58, 5  ;;  %v2670_v33 = vrot.slane %v2668_v34, 4  ;;  %v2679_v29 = vshrl.u32 %v2509_v63, 16  ;;  %v2682_v15 = vshll.u32 %v2509_v63, 16  ;;  %9944 = vmatmul.mubr.bf16.vlgmr.msra.gmra.mrb[0].mxu1 %v14249_v5 }
 0x299   :  { %v11120_v50 = vld [vmem:[%s17068_s1 + $0x148] sm:$0xff]   ;;  %v2508_v8 = vld [vmem:[#allocation2 + $0x14] sm:$0x1]  ;;  %v2661_v12 = vor.u32 %v2660_v10, %v2657_v54  ;;  %v14258_v41 = vcombine.low %v14241_v25, %v14243_v49  ;;  %v14260_v6 = vld [vmem:[#allocation2 + $0x30] sm:$0xf]  ;;  %v2692_v21 = vshrl.u32 %v14237_v14, 16 }
 0x29a   :  { %v2671_v56 = vor.u32 %v2670_v33, %v14245_v39  ;;  %v14262_v36 = vld [vmem:[#allocation2 + $0x34] sm:$0xf]  ;;  %v14267_v46 = vld [vmem:[%s17068_s1 + $0x40] sm:$0xff]   ;;  %vm2627_vm8 = vsmask.f32 3328  ;;  %v11338_v17 = vmov 0  }
 0x29b   :  { %v11212_v24 = vld [vmem:[%s17068_s1 + $0x140] sm:$0xff]   ;;  %vm2628_vm10 = vsmask.f32 7440  ;;  %v2662_v20 = vrot.slane %v2661_v12, 4  ;;  %9947 = vmatprep.mubr.bf16.mxu1 %v14258_v41  ;;  %1208 = vst [vmem:[#allocation2] sm:$0xf] %v11338_v17  ;;  %9767 = vmatprep.subr.bf16.mxu0 %v14267_v46  ;;  %v14297_v30 = vcombine.low %v14260_v6, %v14262_v36 }
 0x29c   :  { %10008 = vmatpush3.bf16.msra.mxu1 %v11212_v24  ;;  %v2672_v60 = vrot.slane %v2671_v56, 4  ;;  %1209 = vst [vmem:[#allocation2 + $0x4] sm:$0xf] %v11338_v17  ;;  %1210 = vst [vmem:[#allocation2 + $0x8] sm:$0x1] %v11338_v17  ;;  %v2674_v0 = vshll.u32 %v2508_v8, 16 }
 0x29d   :  { %1211 = vst [vmem:[#allocation2 + $0xd8] sm:$0xf] %v11338_v17  ;;  %1212 = vst [vmem:[#allocation2 + $0xdc] sm:$0xf] %v11338_v17  ;;  %v14274_v16 = vld [vmem:[#allocation2 + $0x40] sm:$0xf]  ;;  %10009 = vmatprep.subr.bf16.mxu1 %v11120_v50 }
 0x29e   :  { %1213 = vst [vmem:[#allocation2 + $0xe0] sm:$0x1] %v11338_v17  ;;  %1215 = vst [vmem:[#allocation2 + $0xcc] sm:$0xf] %v11338_v17  ;;  %v11125_v27 = vld [vmem:[%s17068_s1 + $0x150] sm:$0xff]   ;;  %v2703_v53 = vshrl.u32 %v14241_v25, 16 }
 0x29f   :  { %1216 = vst [vmem:[#allocation2 + $0xd0] sm:$0xf] %v11338_v17  ;;  %1217 = vst [vmem:[#allocation2 + $0xd4] sm:$0x1] %v11338_v17  ;;  %v2706_v23 = vshll.u32 %v14241_v25, 16  ;;  %v2716_v61 = vshrl.u32 %v14243_v49, 16 }
 0x2a0   :  { %1218 = vst [vmem:[#allocation2 + $0x1a4] sm:$0xf] %v11338_v17  ;;  %1219 = vst [vmem:[#allocation2 + $0x1a8] sm:$0xf] %v11338_v17  ;;  %v17869_v45 = vmov 0  ;;  %v2681_v18 = vrot.slane %v2679_v29, 4  ;;  %10010 = vmatpush3.bf16.msra.mxu1 %v11120_v50 }
 0x2a1   :  { %1220 = vst [vmem:[#allocation2 + $0x1ac] sm:$0x1] %v11338_v17  ;;  %vm14284_vm14 = vmor %vm2627_vm8, %vm2628_vm10  ;;  %v2511_v35 = vld [vmem:[#allocation2 + $0x20] sm:$0x1]  ;;  %v2676_v26 = vrot.slane %v2674_v0, 5  ;;  %v2727_v9 = vshrl.u32 %v14260_v6, 16  ;;  %10011 = vmatprep.subr.bf16.mxu1 %v11125_v27  ;;  %9948 = vmatmul.mubr.bf16.gmra.mrb[4].mxu1 %v14297_v30 }
 0x2a2   :  { %v17870_v45 = vsel %vm14284_vm14, 4294967295, %v17869_v45  ;;  %v2684_v47 = vrot.slane %v2682_v15, 5  ;;  %v2688_v59 = vshll.u32 %v14237_v14, 16  ;;  %v14291_v57 = vld [vmem:[#allocation2 + $0x3c] sm:$0xf]  ;;  %v2730_v42 = vshll.u32 %v14260_v6, 16 }
 0x2a3   :  { %17871 = vst [vmem:[#allocation50_spill] sm:$0xff] %v17870_v45  ;;  %v2740_v51 = vshrl.u32 %v14262_v36, 16  ;;  %v2694_v2 = vrot.slane %v2692_v21, 4  ;;  %v2667_v52 = vsel %vm14284_vm14, %v2662_v20, %v14245_v39  ;;  %v2677_v37 = vsel %vm14284_vm14, %v2672_v60, %v2676_v26  ;;  %v11130_v1 = vld [vmem:[%s17068_s1 + $0x158] sm:$0xff]   ;;  %v2514_v7 = vld [vmem:[#allocation2 + $0x2c] sm:$0x1] }
 0x2a4   :  { %v2685_v40 = vor.u32 %v2684_v47, %v2681_v18  ;;  %v14304_v32 = vrot.slane %v2688_v59, 5  ;;  %v2698_v4 = vshll.u32 %v2511_v35, 16  ;;  %v2751_v55 = vshrl.u32 %v14291_v57, 16  ;;  %v14317_v43 = vld [vmem:[#allocation2 + $0x48] sm:$0xf]  ;;  %10012 = vmatpush3.bf16.msra.mxu1 %v11125_v27  ;;  %v11135_v24 = vld [vmem:[%s17068_s1 + $0x160] sm:$0xff]  }
 0x2a5   :  { %v2754_v62 = vshll.u32 %v14291_v57, 16  ;;  %v14310_v3 = vcombine.low %v14291_v57, %v14274_v16  ;;  %v2705_v38 = vrot.slane %v2703_v53, 4  ;;  %v2708_v48 = vrot.slane %v2706_v23, 5  ;;  %v14319_v13 = vld [vmem:[#allocation2 + $0x4c] sm:$0xf]  ;;  %10013 = vmatprep.subr.bf16.mxu1 %v11130_v1 }
 0x2a6   :  { %v2686_v19 = vrot.slane %v2685_v40, 4  ;;  %v2695_v28 = vor.u32 %v2694_v2, %v14304_v32  ;;  %v14321_v31 = vld [vmem:[#allocation2 + $0x58] sm:$0xf]  ;;  %v1224_v63 = vld [vmem:[#allocation2] sm:$0x1]  ;;  %v14323_v58 = vcombine.low %v2667_v52, %v2677_v37  ;;  %v2700_v12 = vrot.slane %v2698_v4, 5 }
 0x2a7   :  { %v1334_v14 = vld [vmem:[#allocation2 + $0x8] sm:$0x1]  ;;  %v2504_v44 = vld [vmem:[#allocation2 + $0x4] sm:$0xf]  ;;  %9951 = vmatprep.mubr.bf16.mxu1 %v14310_v3  ;;  %v1225_v34 = vsel %vm11469_vm2, 0, %v1224_v63  ;;  %v2709_v56 = vor.u32 %v2708_v48, %v2705_v38  ;;  %v2712_v15 = vshll.u32 %v14243_v49, 16  ;;  %v14351_v49 = vcombine.low %v14317_v43, %v14319_v13 }
 0x2a8   :  { %v1335_v25 = vsel %vm11479_vm4, 0, %v1334_v14  ;;  %v2640_v10 = vshll.u32 %v2504_v44, 16  ;;  %v2644_v39 = vshrl.u32 %v2504_v44, 16  ;;  %v14330_v33 = vld [vmem:[#allocation2 + $0x54] sm:$0xf]  ;;  %v2696_v8 = vrot.slane %v2695_v28, 4  ;;  %10014 = vmatpush3.bf16.msra.mxu1 %v11130_v1 }
 0x2a9   :  { %v14332_v50 = vld [vmem:[#allocation2 + $0x64] sm:$0xf]  ;;  %v14334_v29 = vld [vmem:[#allocation2 + $0x70] sm:$0xf]  ;;  %1226 = vst [vmem:[#allocation2] sm:$0x1] %v1225_v34  ;;  %v14355_v35 = vcombine.low %v14330_v33, %v14321_v31  ;;  %v2691_v26 = vsel %vm14284_vm14, %v2686_v19, %v14304_v32  ;;  %10015 = vmatprep.subr.bf16.mxu1 %v11135_v24  ;;  %9952 = vmatmul.mubr.bf16.gmra.mrb[8].mxu1 %v14351_v49 }
 0x2aa   :  { %1336 = vst [vmem:[#allocation2 + $0x8] sm:$0x1] %v1335_v25  ;;  %v14337_v21 = vld [vmem:[#allocation2 + $0x60] sm:$0xf]  ;;  %v14342_v20 = vrot.slane %v2640_v10, 5  ;;  %v2646_v60 = vrot.slane %v2644_v39, 4 }
 0x2ab   :  { %v2764_v17 = vshrl.u32 %v14274_v16, 16  ;;  %v2718_v0 = vrot.slane %v2716_v61, 4  ;;  %v14345_v27 = vld [vmem:[#allocation2 + $0x6c] sm:$0xf]  ;;  %v14347_v53 = vrot.slane %v2712_v15, 5  ;;  %v2722_v23 = vshll.u32 %v2514_v7, 16  ;;  %9955 = vmatprep.mubr.bf16.mxu1 %v14355_v35 }
 0x2ac   :  { %v2647_v18 = vor.u32 %v2646_v60, %v14342_v20  ;;  %v2701_v61 = vsel %vm14284_vm14, %v2696_v8, %v2700_v12  ;;  %v14363_v47 = vrot.slane %v2709_v56, 4  ;;  %v2729_v2 = vrot.slane %v2727_v9, 4  ;;  %v11140_v40 = vld [vmem:[%s17068_s1 + $0x168] sm:$0xff]   ;;  %v2517_v48 = vld [vmem:[#allocation2 + $0x38] sm:$0x1]  ;;  %10016 = vmatpush3.bf16.msra.mxu1 %v11135_v24  ;;  %v11145_v39 = vld [vmem:[%s17068_s1 + $0x170] sm:$0xff]  }
 0x2ad   :  { %v2719_v59 = vor.u32 %v2718_v0, %v14347_v53  ;;  %v14370_v52 = vcombine.low %v14337_v21, %v14332_v50  ;;  %v14374_v37 = vcombine.low %v14345_v27, %v14334_v29  ;;  %v2775_v32 = vshrl.u32 %v14317_v43, 16  ;;  %v14397_v44 = vld [vmem:[#allocation2 + $0x7c] sm:$0xf]  ;;  %10017 = vmatprep.subr.bf16.mxu1 %v11140_v40  ;;  %v14403_v60 = vld [vmem:[#allocation2 + $0x78] sm:$0xf] }
 0x2ae   :  { %v2732_v9 = vrot.slane %v2730_v42, 5  ;;  %v2736_v4 = vshll.u32 %v14262_v36, 16  ;;  %v2742_v1 = vrot.slane %v2740_v51, 4  ;;  %v14386_v19 = vcombine.low %v2691_v26, %v2701_v61  ;;  %v2520_v61 = vld [vmem:[#allocation2 + $0x44] sm:$0x1] }
 0x2af   :  { %v14388_v28 = vrot.slane %v2722_v23, 5  ;;  %v2778_v7 = vshll.u32 %v14317_v43, 16  ;;  %v2788_v38 = vshrl.u32 %v14319_v13, 16  ;;  %v2648_v6 = vrot.slane %v2647_v18, 4 }
 0x2b0   :  { %17873 = vst [vmem:[#allocation52_spill] sm:$0xff] %v14386_v19  ;;  %v2503_v63 = vld [vmem:[#allocation2] sm:$0xf]  ;;  %v2715_v36 = vsel %vm14284_vm14, %v14363_v47, %v14347_v53  ;;  %v2733_v42 = vor.u32 %v2732_v9, %v2729_v2  ;;  %v2738_v51 = vrot.slane %v2736_v4, 5  ;;  %v2720_v10 = vrot.slane %v2719_v59, 4  ;;  %10018 = vmatpush3.bf16.msra.mxu1 %v11140_v40 }
 0x2b1   :  { %v2505_v14 = vld [vmem:[#allocation2 + $0x8] sm:$0x1]  ;;  %v2631_v34 = vshrl.u32 %v2503_v63, 16  ;;  %v2634_v43 = vshll.u32 %v2503_v63, 16  ;;  %v2746_v56 = vshll.u32 %v2517_v48, 16  ;;  %v2799_v15 = vshrl.u32 %v14330_v33, 16  ;;  %10019 = vmatprep.subr.bf16.mxu1 %v11145_v39  ;;  %9956 = vmatmul.mubr.bf16.gmra.mrb[12].mxu1 %v14370_v52 }
 0x2b2   :  { %v2650_v25 = vshll.u32 %v2505_v14, 16  ;;  %v2734_v8 = vrot.slane %v2733_v42, 4  ;;  %v2743_v12 = vor.u32 %v2742_v1, %v2738_v51  ;;  %v2753_v24 = vrot.slane %v2751_v55, 4  ;;  %v11152_v55 = vld [vmem:[%s17068_s1 + $0x178] sm:$0xff]   ;;  %9959 = vmatprep.mubr.bf16.mxu1 %v14374_v37 }
 0x2b3   :  { %v2633_v0 = vrot.slane %v2631_v34, 4  ;;  %v2636_v53 = vrot.slane %v2634_v43, 5  ;;  %v2802_v26 = vshll.u32 %v14330_v33, 16  ;;  %v2756_v47 = vrot.slane %v2754_v62, 5  ;;  %v2523_v34 = vld [vmem:[#allocation2 + $0x50] sm:$0x1] }
 0x2b4   :  { %v2652_v23 = vrot.slane %v2650_v25, 5  ;;  %v2744_v18 = vrot.slane %v2743_v12, 4  ;;  %v2760_v59 = vshll.u32 %v14274_v16, 16  ;;  %v2812_v9 = vshrl.u32 %v14321_v31, 16  ;;  %10020 = vmatpush3.bf16.msra.mxu1 %v11145_v39 }
 0x2b5   :  { %v2637_v2 = vor.u32 %v2636_v53, %v2633_v0  ;;  %v2766_v4 = vrot.slane %v2764_v17, 4  ;;  %v14414_v1 = vcombine.low %v14403_v60, %v14397_v44  ;;  %v2725_v57 = vsel %vm14284_vm14, %v2720_v10, %v14388_v28  ;;  %10021 = vmatprep.subr.bf16.mxu1 %v11152_v55 }
 0x2b6   :  { %v2748_v62 = vrot.slane %v2746_v56, 5  ;;  %v2757_v16 = vor.u32 %v2756_v47, %v2753_v24  ;;  %v2762_v33 = vrot.slane %v2760_v59, 5  ;;  %v2653_v17 = vsel %vm14284_vm14, %v2648_v6, %v2652_v23  ;;  %v2526_v59 = vld [vmem:[#allocation2 + $0x5c] sm:$0x1] }
 0x2b7   :  { %v2638_v40 = vrot.slane %v2637_v2, 4  ;;  %v2739_v48 = vsel %vm14284_vm14, %v2734_v8, %v2738_v51  ;;  %v2770_v63 = vshll.u32 %v2520_v61, 16  ;;  %v2777_v43 = vrot.slane %v2775_v32, 4  ;;  %v11160_v51 = vld [vmem:[%s17068_s1 + $0x180] sm:$0xff]  }
 0x2b8   :  { %v2749_v14 = vsel %vm14284_vm14, %v2744_v18, %v2748_v62  ;;  %v2758_v42 = vrot.slane %v2757_v16, 4  ;;  %v2767_v28 = vor.u32 %v2766_v4, %v2762_v33  ;;  %v2780_v10 = vrot.slane %v2778_v7, 5  ;;  %10022 = vmatpush3.bf16.msra.mxu1 %v11152_v55 }
 0x2b9   :  { %v2643_v25 = vsel %vm14284_vm14, %v2638_v40, %v14342_v20  ;;  %v2784_v6 = vshll.u32 %v14319_v13, 16  ;;  %v2790_v12 = vrot.slane %v2788_v38, 4  ;;  %v14437_v56 = vcombine.low %v2715_v36, %v2725_v57  ;;  %v11151_v36 = vld [vmem:[%s17068_s1 + $0x48] sm:$0xff]   ;;  %10087 = vmatprep.subr.bf16.mxu1 %v11160_v51  ;;  %9960 = vmatmul.mubr.bf16.gmra.mrb[16].mxu1 %v14414_v1 }
 0x2ba   :  { %v8892_v8 = vcombine.low %v2643_v25, %v2653_v17  ;;  %v2768_v0 = vrot.slane %v2767_v28, 4  ;;  %v2823_v32 = vshrl.u32 %v14337_v21, 16  ;;  %v14440_v39 = vcombine.low %v2739_v48, %v2749_v14  ;;  %v2529_v40 = vld [vmem:[#allocation2 + $0x68] sm:$0x1]  ;;  %v14472_v25 = vld [vmem:[#allocation2 + $0x84] sm:$0xf] }
 0x2bb   :  { %17874 = vst [vmem:[#allocation22_spill] sm:$0xff] %v14437_v56  ;;  %v2781_v53 = vor.u32 %v2780_v10, %v2777_v43  ;;  %v14442_v23 = vrot.slane %v2784_v6, 5  ;;  %v2794_v20 = vshll.u32 %v2523_v34, 16  ;;  %v2772_v13 = vrot.slane %v2770_v63, 5  ;;  %v14474_v10 = vld [vmem:[#allocation2 + $0x88] sm:$0xf] }
 0x2bc   :  { %17875 = vst [vmem:[#allocation53_spill] sm:$0xff] %v14440_v39  ;;  %9703 = vmatprep.mubr.bf16.mxu0 %v8892_v8  ;;  %v2826_v7 = vshll.u32 %v14337_v21, 16  ;;  %v2836_v38 = vshrl.u32 %v14332_v50, 16  ;;  %v2801_v24 = vrot.slane %v2799_v15, 4  ;;  %v2763_v18 = vsel %vm14284_vm14, %v2758_v42, %v2762_v33 }
 0x2bd   :  { %9704 = vmatmul.mubr.bf16.vlgmr.msra.gmra.mrb[64].mxu0 %v14323_v58  ;;  %v2791_v61 = vor.u32 %v2790_v12, %v14442_v23  ;;  %v2847_v47 = vshrl.u32 %v14345_v27, 16  ;;  %v2804_v2 = vrot.slane %v2802_v26, 5  ;;  %v2773_v21 = vsel %vm14284_vm14, %v2768_v0, %v2772_v13 }
 0x2be   :  { %9707 = vmatprep.mubr.bf16.mxu0 %v14386_v19  ;;  %v2782_v15 = vrot.slane %v2781_v53, 4  ;;  %v2808_v4 = vshll.u32 %v14321_v31, 16  ;;  %v2814_v55 = vrot.slane %v2812_v9, 4  ;;  %v2796_v57 = vrot.slane %v2794_v20, 5  ;;  %9768 = vmatpush3.bf16.msra.mxu0 %v14267_v46  ;;  %v11153_v31 = vld [vmem:[%s17068_s1 + $0x50] sm:$0xff]  }
 0x2bf   :  { %v2850_v62 = vshll.u32 %v14345_v27, 16  ;;  %v2860_v16 = vshrl.u32 %v14334_v29, 16  ;;  %v2805_v33 = vor.u32 %v2804_v2, %v2801_v24  ;;  %v2792_v26 = vrot.slane %v2791_v61, 4  ;;  %9769 = vmatprep.subr.bf16.mxu0 %v11151_v36  ;;  %v14494_v24 = vld [vmem:[#allocation2 + $0x94] sm:$0xf] }
 0x2c0   :  { %v2810_v17 = vrot.slane %v2808_v4, 5  ;;  %v2818_v48 = vshll.u32 %v2526_v59, 16  ;;  %v2825_v63 = vrot.slane %v2823_v32, 4  ;;  %v14465_v9 = vcombine.low %v2763_v18, %v2773_v21  ;;  %v14500_v2 = vld [vmem:[#allocation2 + $0x90] sm:$0xf] }
 0x2c1   :  { %v2806_v14 = vrot.slane %v2805_v33, 4  ;;  %v2828_v42 = vrot.slane %v2826_v7, 5  ;;  %v2832_v27 = vshll.u32 %v14332_v50, 16  ;;  %v2787_v28 = vsel %vm14284_vm14, %v2782_v15, %v14442_v23  ;;  %v11156_v23 = vld [vmem:[%s17068_s1 + $0x58] sm:$0xff]   ;;  %v2532_v7 = vld [vmem:[#allocation2 + $0x74] sm:$0x1] }
 0x2c2   :  { %17876 = vst [vmem:[#allocation54_spill] sm:$0xff] %v14465_v9  ;;  %v2815_v46 = vor.u32 %v2814_v55, %v2810_v17  ;;  %v2871_v34 = vshrl.u32 %v14403_v60, 16  ;;  %v2838_v43 = vrot.slane %v2836_v38, 4  ;;  %v2874_v6 = vshll.u32 %v14403_v60, 16  ;;  %9770 = vmatpush3.bf16.msra.mxu0 %v11151_v36 }
 0x2c3   :  { %v2829_v12 = vor.u32 %v2828_v42, %v2825_v63  ;;  %v14477_v51 = vrot.slane %v2832_v27, 5  ;;  %v2842_v8 = vshll.u32 %v2529_v40, 16  ;;  %v2797_v50 = vsel %vm14284_vm14, %v2792_v26, %v2796_v57  ;;  %9771 = vmatprep.subr.bf16.mxu0 %v11153_v31  ;;  %v14522_v27 = vld [vmem:[#allocation2 + $0xa0] sm:$0xf] }
 0x2c4   :  { %v2811_v0 = vsel %vm14284_vm14, %v2806_v14, %v2810_v17  ;;  %v2816_v32 = vrot.slane %v2815_v46, 4  ;;  %v2820_v53 = vrot.slane %v2818_v48, 5  ;;  %v14492_v13 = vcombine.low %v14472_v25, %v14474_v10  ;;  %v2535_v14 = vld [vmem:[#allocation2 + $0x80] sm:$0x1] }
 0x2c5   :  { %9708 = vmatmul.mubr.bf16.gmra.mrb[68].mxu0 %v14437_v56  ;;  %v14487_v60 = vrot.slane %v2829_v12, 4  ;;  %v2839_v20 = vor.u32 %v2838_v43, %v14477_v51  ;;  %v2849_v38 = vrot.slane %v2847_v47, 4  ;;  %v2852_v18 = vrot.slane %v2850_v62, 5  ;;  %v14527_v12 = vld [vmem:[#allocation2 + $0x9c] sm:$0xf] }
 0x2c6   :  { %9711 = vmatprep.mubr.bf16.mxu0 %v14440_v39  ;;  %v2821_v36 = vsel %vm14284_vm14, %v2816_v32, %v2820_v53  ;;  %v2856_v61 = vshll.u32 %v14334_v29, 16  ;;  %v2862_v59 = vrot.slane %v2860_v16, 4  ;;  %v14502_v21 = vcombine.low %v2787_v28, %v2797_v50  ;;  %9963 = vmatprep.mubr.bf16.mxu1 %v14492_v13  ;;  %v11157_v29 = vld [vmem:[%s17068_s1 + $0x60] sm:$0xff]  }
 0x2c7   :  { %v2884_v15 = vshrl.u32 %v14397_v44, 16  ;;  %v2844_v4 = vrot.slane %v2842_v8, 5  ;;  %v2895_v47 = vshrl.u32 %v14472_v25, 16  ;;  %9772 = vmatpush3.bf16.msra.mxu0 %v11153_v31  ;;  %v2840_v55 = vrot.slane %v2839_v20, 4 }
 0x2c8   :  { %17877 = vst [vmem:[#allocation56_spill] sm:$0xff] %v14502_v21  ;;  %v2853_v57 = vor.u32 %v2852_v18, %v2849_v38  ;;  %v2858_v33 = vrot.slane %v2856_v61, 5  ;;  %v2866_v40 = vshll.u32 %v2532_v7, 16  ;;  %9773 = vmatprep.subr.bf16.mxu0 %v11156_v23  ;;  %v14510_v62 = vcombine.low %v2811_v0, %v2821_v36  ;;  %v11159_v0 = vld [vmem:[%s17068_s1 + $0x68] sm:$0xff]  }
 0x2c9   :  { %v2898_v16 = vshll.u32 %v14472_v25, 16  ;;  %v2908_v26 = vshrl.u32 %v14474_v10, 16  ;;  %v14516_v17 = vcombine.low %v14500_v2, %v14494_v24  ;;  %v2835_v48 = vsel %vm14284_vm14, %v14487_v60, %v14477_v51  ;;  %v14544_v38 = vld [vmem:[#allocation2 + $0xac] sm:$0xf] }
 0x2ca   :  { %17878 = vst [vmem:[#allocation24_spill] sm:$0xff] %v14510_v62  ;;  %v2854_v63 = vrot.slane %v2853_v57, 4  ;;  %v2863_v31 = vor.u32 %v2862_v59, %v2858_v33  ;;  %v2873_v42 = vrot.slane %v2871_v34, 4  ;;  %v2919_v28 = vshrl.u32 %v14500_v2, 16  ;;  %v2538_v59 = vld [vmem:[#allocation2 + $0x8c] sm:$0x1] }
 0x2cb   :  { %9964 = vmatmul.mubr.bf16.gmra.mrb[20].mxu1 %v14516_v17  ;;  %v2876_v46 = vrot.slane %v2874_v6, 5  ;;  %v2880_v43 = vshll.u32 %v14397_v44, 16  ;;  %v2886_v25 = vrot.slane %v2884_v15, 4  ;;  %9774 = vmatpush3.bf16.msra.mxu0 %v11156_v23  ;;  %v2845_v51 = vsel %vm14284_vm14, %v2840_v55, %v2844_v4  ;;  %v14549_v15 = vld [vmem:[#allocation2 + $0xa8] sm:$0xf] }
 0x2cc   :  { %v2864_v8 = vrot.slane %v2863_v31, 4  ;;  %v2868_v50 = vrot.slane %v2866_v40, 5  ;;  %v2922_v34 = vshll.u32 %v14500_v2, 16  ;;  %9775 = vmatprep.subr.bf16.mxu0 %v11157_v29  ;;  %v2932_v44 = vshrl.u32 %v14494_v24, 16 }
 0x2cd   :  { %9712 = vmatmul.mubr.bf16.gmra.mrb[72].mxu0 %v14465_v9  ;;  %v2877_v6 = vor.u32 %v2876_v46, %v2873_v42  ;;  %v2882_v32 = vrot.slane %v2880_v43, 5  ;;  %v2890_v53 = vshll.u32 %v2535_v14, 16  ;;  %v2859_v23 = vsel %vm14284_vm14, %v2854_v63, %v2858_v33  ;;  %v11161_v33 = vld [vmem:[%s17068_s1 + $0x70] sm:$0xff]  }
 0x2ce   :  { %9715 = vmatprep.mubr.bf16.mxu0 %v14502_v21  ;;  %v14542_v60 = vcombine.low %v14527_v12, %v14522_v27  ;;  %v2897_v20 = vrot.slane %v2895_v47, 4  ;;  %v2900_v7 = vrot.slane %v2898_v16, 5  ;;  %v2869_v36 = vsel %vm14284_vm14, %v2864_v8, %v2868_v50 }
 0x2cf   :  { %v2878_v18 = vrot.slane %v2877_v6, 4  ;;  %v2887_v61 = vor.u32 %v2886_v25, %v2882_v32  ;;  %v2904_v2 = vshll.u32 %v14474_v10, 16  ;;  %9776 = vmatpush3.bf16.msra.mxu0 %v11157_v29  ;;  %v14551_v4 = vcombine.low %v2835_v48, %v2845_v51  ;;  %v14573_v51 = vld [vmem:[#allocation2 + $0xb8] sm:$0xf] }
 0x2d0   :  { %17879 = vst [vmem:[#allocation57_spill] sm:$0xff] %v14542_v60  ;;  %v2943_v55 = vshrl.u32 %v14527_v12, 16  ;;  %9967 = vmatprep.mubr.bf16.mxu1 %v14542_v60  ;;  %v2901_v47 = vor.u32 %v2900_v7, %v2897_v20  ;;  %v2910_v57 = vrot.slane %v2908_v26, 4  ;;  %9777 = vmatprep.subr.bf16.mxu0 %v11159_v0  ;;  %v2892_v16 = vrot.slane %v2890_v53, 5  ;;  %v2541_v26 = vld [vmem:[#allocation2 + $0x98] sm:$0x1] }
 0x2d1   :  { %17880 = vst [vmem:[#allocation21_spill] sm:$0xff] %v14551_v4  ;;  %v2888_v40 = vrot.slane %v2887_v61, 4  ;;  %v2946_v10 = vshll.u32 %v14527_v12, 16  ;;  %v14559_v63 = vrot.slane %v2904_v2, 5  ;;  %v14561_v29 = vcombine.low %v2859_v23, %v2869_v36  ;;  %v14571_v12 = vld [vmem:[#allocation2 + $0xb4] sm:$0xf] }
 0x2d2   :  { %v2956_v48 = vshrl.u32 %v14522_v27, 16  ;;  %v2914_v31 = vshll.u32 %v2538_v59, 16  ;;  %v14566_v14 = vcombine.low %v14549_v15, %v14544_v38  ;;  %v2883_v42 = vsel %vm14284_vm14, %v2878_v18, %v2882_v32  ;;  %v2552_v20 = vld [vmem:[#allocation2 + $0xc4] sm:$0xf] }
 0x2d3   :  { %17881 = vst [vmem:[#allocation58_spill] sm:$0xff] %v14561_v29  ;;  %v2911_v46 = vor.u32 %v2910_v57, %v14559_v63  ;;  %v2921_v43 = vrot.slane %v2919_v28, 4  ;;  %v2924_v25 = vrot.slane %v2922_v34, 5  ;;  %9778 = vmatpush3.bf16.msra.mxu0 %v11159_v0  ;;  %v2893_v8 = vsel %vm14284_vm14, %v2888_v40, %v2892_v16  ;;  %v11162_v28 = vld [vmem:[%s17068_s1 + $0x78] sm:$0xff]   ;;  %v2544_v18 = vld [vmem:[#allocation2 + $0xa4] sm:$0x1] }
 0x2d4   :  { %17882 = vst [vmem:[#allocation23_spill] sm:$0xff] %v14566_v14  ;;  %v2902_v50 = vrot.slane %v2901_v47, 4  ;;  %9968 = vmatmul.mubr.bf16.gmra.mrb[24].mxu1 %v14566_v14  ;;  %v2928_v6 = vshll.u32 %v14494_v24, 16  ;;  %v2934_v53 = vrot.slane %v2932_v44, 4  ;;  %9779 = vmatprep.subr.bf16.mxu0 %v11161_v33  ;;  %v2967_v34 = vshrl.u32 %v14549_v15, 16 }
 0x2d5   :  { %9716 = vmatmul.mubr.bf16.gmra.mrb[76].mxu0 %v14510_v62  ;;  %v2970_v0 = vshll.u32 %v14549_v15, 16  ;;  %v2925_v32 = vor.u32 %v2924_v25, %v2921_v43  ;;  %v2938_v23 = vshll.u32 %v2541_v26, 16  ;;  %v2916_v7 = vrot.slane %v2914_v31, 5  ;;  %v2551_v15 = vld [vmem:[#allocation2 + $0xc0] sm:$0xf] }
 0x2d6   :  { %9719 = vmatprep.mubr.bf16.mxu0 %v14551_v4  ;;  %v2980_v24 = vshrl.u32 %v14544_v38, 16  ;;  %v2930_v44 = vrot.slane %v2928_v6, 5  ;;  %v14589_v36 = vcombine.low %v14571_v12, %v14573_v51  ;;  %v14591_v61 = vcombine.low %v2883_v42, %v2893_v8  ;;  %v2547_v6 = vld [vmem:[#allocation2 + $0xb0] sm:$0x1] }
 0x2d7   :  { %v2912_v59 = vrot.slane %v2911_v46, 4  ;;  %v2926_v2 = vrot.slane %v2925_v32, 4  ;;  %v2945_v47 = vrot.slane %v2943_v55, 4  ;;  %9780 = vmatpush3.bf16.msra.mxu0 %v11161_v33  ;;  %v2907_v57 = vsel %vm14284_vm14, %v2902_v50, %v14559_v63 }
 0x2d8   :  { %17883 = vst [vmem:[#allocation26_spill] sm:$0xff] %v14589_v36  ;;  %17884 = vst [vmem:[#allocation25_spill] sm:$0xff] %v14591_v61  ;;  %v2935_v40 = vor.u32 %v2934_v53, %v2930_v44  ;;  %9971 = vmatprep.mubr.bf16.mxu1 %v14589_v36  ;;  %v2948_v16 = vrot.slane %v2946_v10, 5  ;;  %v2952_v31 = vshll.u32 %v14522_v27, 16  ;;  %9781 = vmatprep.subr.bf16.mxu0 %v11162_v28  ;;  %v2940_v26 = vrot.slane %v2938_v23, 5 }
 0x2d9   :  { %v2991_v42 = vshrl.u32 %v14571_v12, 16  ;;  %v2958_v43 = vrot.slane %v2956_v48, 4  ;;  %v2962_v46 = vshll.u32 %v2544_v18, 16  ;;  %v14599_v33 = vcombine.low %v2551_v15, %v2552_v20  ;;  %v14609_v20 = vld [vmem:[#allocation2 + $0xe4] sm:$0xf] }
 0x2da   :  { %v2936_v25 = vrot.slane %v2935_v40, 4  ;;  %v2949_v55 = vor.u32 %v2948_v16, %v2945_v47  ;;  %v2954_v8 = vrot.slane %v2952_v31, 5  ;;  %v2917_v63 = vsel %vm14284_vm14, %v2912_v59, %v2916_v7  ;;  %v14715_v36 = vld [vmem:[#allocation2 + $0x118] sm:$0xf] }
 0x2db   :  { %17885 = vst [vmem:[#allocation29_spill] sm:$0xff] %v14599_v33  ;;  %v2931_v10 = vsel %vm14284_vm14, %v2926_v2, %v2930_v44  ;;  %v2994_v27 = vshll.u32 %v14571_v12, 16  ;;  %v2969_v50 = vrot.slane %v2967_v34, 4  ;;  %9782 = vmatpush3.bf16.msra.mxu0 %v11162_v28  ;;  %v2972_v23 = vrot.slane %v2970_v0, 5  ;;  %v14614_v34 = vld [vmem:[#allocation2 + $0xe8] sm:$0xf] }
 0x2dc   :  { %v2941_v48 = vsel %vm14284_vm14, %v2936_v25, %v2940_v26  ;;  %v2950_v53 = vrot.slane %v2949_v55, 4  ;;  %v2959_v32 = vor.u32 %v2958_v43, %v2954_v8  ;;  %9972 = vmatmul.mubr.bf16.gmra.mrb[28].mxu1 %v14599_v33  ;;  %v3004_v7 = vshrl.u32 %v14573_v51, 16  ;;  %v14632_v43 = vld [vmem:[#allocation2 + $0xf4] sm:$0xf] }
 0x2dd   :  { %9720 = vmatmul.mubr.bf16.gmra.mrb[80].mxu0 %v14561_v29  ;;  %v2976_v44 = vshll.u32 %v14544_v38, 16  ;;  %v2982_v18 = vrot.slane %v2980_v24, 4  ;;  %v2986_v12 = vshll.u32 %v2547_v6, 16  ;;  %v14617_v28 = vcombine.low %v2907_v57, %v2917_v63  ;;  %v2550_v24 = vld [vmem:[#allocation2 + $0xbc] sm:$0x1] }
 0x2de   :  { %9723 = vmatprep.mubr.bf16.mxu0 %v14591_v61  ;;  %v2960_v59 = vrot.slane %v2959_v32, 4  ;;  %v2964_v2 = vrot.slane %v2962_v46, 5  ;;  %v2973_v47 = vor.u32 %v2972_v23, %v2969_v50  ;;  %v14619_v0 = vcombine.low %v2931_v10, %v2941_v48  ;;  %v14636_v6 = vld [vmem:[#allocation2 + $0xf0] sm:$0xf] }
 0x2df   :  { %17886 = vst [vmem:[#allocation8_spill] sm:$0xff] %v14617_v28  ;;  %v2955_v15 = vsel %vm14284_vm14, %v2950_v53, %v2954_v8  ;;  %v14623_v40 = vrot.slane %v2976_v44, 5  ;;  %v3039_v38 = vshrl.u32 %v14609_v20, 16  ;;  %v14630_v57 = vcombine.low %v14609_v20, %v14614_v34  ;;  %v14641_v53 = vld [vmem:[#allocation2 + $0x100] sm:$0xf] }
 0x2e0   :  { %17887 = vst [vmem:[#allocation30_spill] sm:$0xff] %v14619_v0  ;;  %v2965_v16 = vsel %vm14284_vm14, %v2960_v59, %v2964_v2  ;;  %v2974_v31 = vrot.slane %v2973_v47, 4  ;;  %v2993_v26 = vrot.slane %v2991_v42, 4  ;;  %v2988_v25 = vrot.slane %v2986_v12, 5  ;;  %v1388_v59 = vld [vmem:[#allocation2 + $0xe0] sm:$0x1] }
 0x2e1   :  { %17888 = vst [vmem:[#allocation10_spill] sm:$0xff] %v14630_v57  ;;  %v2983_v46 = vor.u32 %v2982_v18, %v14623_v40  ;;  %v2996_v55 = vrot.slane %v2994_v27, 5  ;;  %v3000_v8 = vshll.u32 %v14573_v51, 16  ;;  %v3042_v63 = vshll.u32 %v14609_v20, 16  ;;  %9975 = vmatprep.mubr.bf16.mxu1 %v14630_v57  ;;  %v14645_v27 = vld [vmem:[#allocation2 + $0xfc] sm:$0xf] }
 0x2e2   :  { %v3052_v10 = vshrl.u32 %v14614_v34, 16  ;;  %v3006_v50 = vrot.slane %v3004_v7, 4  ;;  %v3010_v48 = vshll.u32 %v2550_v24, 16  ;;  %v14643_v42 = vcombine.low %v2955_v15, %v2965_v16  ;;  %v1278_v51 = vld [vmem:[#allocation2 + $0xd8] sm:$0x1] }
 0x2e3   :  { %v2984_v32 = vrot.slane %v2983_v46, 4  ;;  %v2997_v23 = vor.u32 %v2996_v55, %v2993_v26  ;;  %v3002_v44 = vrot.slane %v3000_v8, 5  ;;  %v2979_v20 = vsel %vm14284_vm14, %v2974_v31, %v14623_v40  ;;  %v14656_v2 = vld [vmem:[#allocation2 + $0xdc] sm:$0xf]  ;;  %v2562_v55 = vld [vmem:[#allocation2 + $0xec] sm:$0x1] }
 0x2e4   :  { %17889 = vst [vmem:[#allocation11_spill] sm:$0xff] %v14643_v42  ;;  %v3063_v18 = vshrl.u32 %v14636_v6, 16  ;;  %v3066_v12 = vshll.u32 %v14636_v6, 16  ;;  %v14654_v7 = vcombine.low %v14636_v6, %v14632_v43  ;;  %17891 = vst [vmem:[#allocation36_spill] sm:$0xff] %v14656_v2  ;;  %v3012_v24 = vrot.slane %v3010_v48, 5 }
 0x2e5   :  { %9724 = vmatmul.mubr.bf16.gmra.mrb[84].mxu0 %v14617_v28  ;;  %v2998_v47 = vrot.slane %v2997_v23, 4  ;;  %v3007_v15 = vor.u32 %v3006_v50, %v3002_v44  ;;  %v3076_v16 = vshrl.u32 %v14632_v43, 16  ;;  %v2989_v40 = vsel %vm14284_vm14, %v2984_v32, %v2988_v25  ;;  %v14679_v31 = vld [vmem:[#allocation2 + $0x10c] sm:$0xf] }
 0x2e6   :  { %17890 = vst [vmem:[#allocation12_spill] sm:$0xff] %v14654_v7  ;;  %9727 = vmatprep.mubr.bf16.mxu0 %v14619_v0  ;;  %9976 = vmatmul.mubr.bf16.gmra.mrb[32].mxu1 %v14654_v7  ;;  %v14667_v26 = vcombine.low %v14645_v27, %v14641_v53  ;;  %v1279_v46 = vsel %vm11469_vm2, 0, %v1278_v51  ;;  %v1389_v25 = vsel %vm11479_vm4, 0, %v1388_v59  ;;  %v3024_v50 = vshll.u32 %v14656_v2, 16  ;;  %v2565_v7 = vld [vmem:[#allocation2 + $0xf8] sm:$0x1] }
 0x2e7   :  { %v3003_v8 = vsel %vm14284_vm14, %v2998_v47, %v3002_v44  ;;  %v3008_v6 = vrot.slane %v3007_v15, 4  ;;  %1280 = vst [vmem:[#allocation2 + $0xd8] sm:$0x1] %v1279_v46  ;;  %1390 = vst [vmem:[#allocation2 + $0xe0] sm:$0x1] %v1389_v25  ;;  %v3028_v48 = vshrl.u32 %v14656_v2, 16 }
 0x2e8   :  { %17892 = vst [vmem:[#allocation16_spill] sm:$0xff] %v14667_v26  ;;  %9979 = vmatprep.mubr.bf16.mxu1 %v14667_v26  ;;  %v3041_v32 = vrot.slane %v3039_v38, 4  ;;  %v3044_v23 = vrot.slane %v3042_v63, 5  ;;  %v3048_v51 = vshll.u32 %v14614_v34, 16  ;;  %v14683_v47 = vrot.slane %v3024_v50, 5 }
 0x2e9   :  { %v3013_v44 = vsel %vm14284_vm14, %v3008_v6, %v3012_v24  ;;  %v3054_v15 = vrot.slane %v3052_v10, 4  ;;  %v3058_v59 = vshll.u32 %v2562_v55, 16  ;;  %v14685_v46 = vld [vmem:[#allocation2 + $0x108] sm:$0xf]  ;;  %v3090_v33 = vshll.u32 %v14645_v27, 16 }
 0x2ea   :  { %v3030_v25 = vrot.slane %v3028_v48, 4  ;;  %v3045_v54 = vor.u32 %v3044_v23, %v3041_v32  ;;  %v3050_v22 = vrot.slane %v3048_v51, 5  ;;  %v14688_v38 = vcombine.low %v2979_v20, %v2989_v40  ;;  %v14701_v48 = vld [vmem:[#allocation2 + $0x114] sm:$0xf] }
 0x2eb   :  { %v14690_v63 = vcombine.low %v3003_v8, %v3013_v44  ;;  %v3100_v34 = vshrl.u32 %v14641_v53, 16  ;;  %v3060_v26 = vrot.slane %v3058_v59, 5  ;;  %v14696_v55 = vcombine.low %v14685_v46, %v14679_v31 }
 0x2ec   :  { %17893 = vst [vmem:[#allocation37_spill] sm:$0xff] %v14688_v38  ;;  %v3046_v24 = vrot.slane %v3045_v54, 4  ;;  %v3055_v6 = vor.u32 %v3054_v15, %v3050_v22  ;;  %v3031_v50 = vor.u32 %v3030_v25, %v14683_v47  ;;  %v3065_v20 = vrot.slane %v3063_v18, 4 }
 0x2ed   :  { %17894 = vst [vmem:[#allocation33_spill] sm:$0xff] %v14690_v63  ;;  %17895 = vst [vmem:[#allocation39_spill] sm:$0xff] %v14696_v55  ;;  %9728 = vmatmul.mubr.bf16.gmra.mrb[88].mxu0 %v14643_v42  ;;  %v3068_v40 = vrot.slane %v3066_v12, 5  ;;  %v3072_v8 = vshll.u32 %v14632_v43, 16  ;;  %v3114_v23 = vshll.u32 %v14685_v46, 16  ;;  %v3078_v51 = vrot.slane %v3076_v16, 4 }
 0x2ee   :  { %9731 = vmatprep.mubr.bf16.mxu0 %v14688_v38  ;;  %v14704_v54 = vld [vmem:[#allocation2 + $0xd8] sm:$0xf]  ;;  %v3056_v32 = vrot.slane %v3055_v6, 4  ;;  %9980 = vmatmul.mubr.bf16.gmra.mrb[36].mxu1 %v14696_v55  ;;  %v3082_v44 = vshll.u32 %v2565_v7, 16  ;;  %v2559_v15 = vld [vmem:[#allocation2 + $0xe0] sm:$0x1]  ;;  %v3051_v10 = vsel %vm14284_vm14, %v3046_v24, %v3050_v22  ;;  %v14722_v22 = vcombine.low %v14701_v48, %v14715_v36 }
 0x2ef   :  { %17896 = vst [vmem:[#allocation43_spill] sm:$0xff] %v14704_v54  ;;  %v3015_v59 = vshrl.u32 %v14704_v54, 16  ;;  %v3018_v18 = vshll.u32 %v14704_v54, 16  ;;  %v3069_v12 = vor.u32 %v3068_v40, %v3065_v20  ;;  %v3074_v43 = vrot.slane %v3072_v8, 5 }
 0x2f0   :  { %v3034_v25 = vshll.u32 %v2559_v15, 16  ;;  %v3061_v6 = vsel %vm14284_vm14, %v3056_v32, %v3060_v26  ;;  %v3124_v57 = vshrl.u32 %v14679_v31, 16  ;;  %v3032_v55 = vrot.slane %v3031_v50, 4  ;;  %17897 = vst [vmem:[#allocation48_spill] sm:$0xff] %v14722_v22  ;;  %v2568_v26 = vld [vmem:[#allocation2 + $0x104] sm:$0x1]  ;;  %9983 = vmatprep.mubr.bf16.mxu1 %v14722_v22 }
 0x2f1   :  { %v3017_v16 = vrot.slane %v3015_v59, 4  ;;  %v3020_v7 = vrot.slane %v3018_v18, 5  ;;  %v3084_v2 = vrot.slane %v3082_v44, 5  ;;  %v3070_v60 = vrot.slane %v3069_v12, 4 }
 0x2f2   :  { %v3036_v14 = vrot.slane %v3034_v25, 5  ;;  %v3079_v54 = vor.u32 %v3078_v51, %v3074_v43  ;;  %v3135_v20 = vshrl.u32 %v14701_v48, 16  ;;  %v14718_v8 = vcombine.low %v3051_v10, %v3061_v6  ;;  %v14728_v51 = vld [vmem:[#allocation2 + $0x120] sm:$0xf]  ;;  %v14735_v25 = vld [vmem:[#allocation2 + $0x124] sm:$0xf] }
 0x2f3   :  { %v3021_v40 = vor.u32 %v3020_v7, %v3017_v16  ;;  %v17898_v24 = vshrl.u32 %v14645_v27, 16  ;;  %v3138_v50 = vshll.u32 %v14701_v48, 16  ;;  %v3092_v44 = vrot.slane %v3090_v33, 5 }
 0x2f4   :  { %v3080_v15 = vrot.slane %v3079_v54, 4  ;;  %v3096_v59 = vshll.u32 %v14641_v53, 16  ;;  %v3037_v18 = vsel %vm14284_vm14, %v3032_v55, %v3036_v14  ;;  %v3148_v12 = vshrl.u32 %v14715_v36, 16 }
 0x2f5   :  { %v3089_v32 = vrot.slane %v17898_v24, 4  ;;  %9732 = vmatmul.mubr.bf16.gmra.mrb[92].mxu0 %v14690_v63  ;;  %v3022_v10 = vrot.slane %v3021_v40, 4  ;;  %v3102_v27 = vrot.slane %v3100_v34, 4  ;;  %v3075_v33 = vsel %vm14284_vm14, %v3070_v60, %v3074_v43  ;;  %v2571_v34 = vld [vmem:[#allocation2 + $0x110] sm:$0x1] }
 0x2f6   :  { %v3098_v53 = vrot.slane %v3096_v59, 5  ;;  %v3106_v54 = vshll.u32 %v2568_v26, 16  ;;  %v3085_v14 = vsel %vm14284_vm14, %v3080_v15, %v3084_v2  ;;  %v3159_v55 = vshrl.u32 %v14728_v51, 16  ;;  %v14750_v43 = vld [vmem:[#allocation2 + $0x130] sm:$0xf] }
 0x2f7   :  { %v3093_v48 = vor.u32 %v3092_v44, %v3089_v32  ;;  %v3027_v6 = vsel %vm14284_vm14, %v3022_v10, %v14683_v47  ;;  %v3162_v16 = vshll.u32 %v14728_v51, 16  ;;  %v14748_v60 = vcombine.low %v14728_v51, %v14735_v25  ;;  %v14755_v44 = vld [vmem:[#allocation2 + $0x12c] sm:$0xf] }
 0x2f8   :  { %v8908_v7 = vcombine.low %v3027_v6, %v3037_v18  ;;  %v3103_v24 = vor.u32 %v3102_v27, %v3098_v53  ;;  %v17900_v26 = vshrl.u32 %v14685_v46, 16  ;;  %v3116_v32 = vrot.slane %v3114_v23, 5 }
 0x2f9   :  { %v3094_v40 = vrot.slane %v3093_v48, 4  ;;  %17899 = vst [vmem:[#allocation46_spill] sm:$0xff] %v14748_v60  ;;  %v3120_v2 = vshll.u32 %v14679_v31, 16  ;;  %v3126_v15 = vrot.slane %v3124_v57, 4  ;;  %v14757_v59 = vcombine.low %v3075_v33, %v3085_v14  ;;  %9984 = vmatmul.mubr.bf16.gmra.mrb[40].mxu1 %v14748_v60  ;;  %v14770_v14 = vld [vmem:[#allocation2 + $0x13c] sm:$0xf] }
 0x2fa   :  { %v3113_v47 = vrot.slane %v17900_v26, 4  ;;  %9735 = vmatprep.mubr.bf16.mxu0 %v8908_v7  ;;  %v3104_v10 = vrot.slane %v3103_v24, 4  ;;  %v3108_v18 = vrot.slane %v3106_v54, 5  ;;  %v3130_v51 = vshll.u32 %v2571_v34, 16  ;;  %v2574_v54 = vld [vmem:[#allocation2 + $0x11c] sm:$0x1] }
 0x2fb   :  { %17901 = vst [vmem:[#allocation49_spill] sm:$0xff] %v14757_v59  ;;  %v3099_v27 = vsel %vm14284_vm14, %v3094_v40, %v3098_v53  ;;  %v3172_v46 = vshrl.u32 %v14735_v25, 16  ;;  %v3122_v23 = vrot.slane %v3120_v2, 5  ;;  %v3183_v31 = vshrl.u32 %v14755_v44, 16  ;;  %v14774_v24 = vld [vmem:[#allocation2 + $0x138] sm:$0xf] }
 0x2fc   :  { %v3117_v48 = vor.u32 %v3116_v32, %v3113_v47  ;;  %v3109_v57 = vsel %vm14284_vm14, %v3104_v10, %v3108_v18  ;;  %v14768_v33 = vcombine.low %v14755_v44, %v14750_v43  ;;  %v3137_v6 = vrot.slane %v3135_v20, 4  ;;  %v14789_v60 = vld [vmem:[#allocation2 + $0x148] sm:$0xf] }
 0x2fd   :  { %9736 = vmatmul.mubr.bf16.gmra.mrb[96].mxu0 %v14718_v8  ;;  %v3127_v34 = vor.u32 %v3126_v15, %v3122_v23  ;;  %v3186_v7 = vshll.u32 %v14755_v44, 16  ;;  %v3140_v40 = vrot.slane %v3138_v50, 5  ;;  %v3132_v26 = vrot.slane %v3130_v51, 5 }
 0x2fe   :  { %17902 = vst [vmem:[#allocation20_spill] sm:$0xff] %v14768_v33  ;;  %v3118_v53 = vrot.slane %v3117_v48, 4  ;;  %9739 = vmatprep.mubr.bf16.mxu0 %v14757_v59  ;;  %v3196_v47 = vshrl.u32 %v14750_v43, 16  ;;  %9987 = vmatprep.mubr.bf16.mxu1 %v14768_v33  ;;  %v3144_v20 = vshll.u32 %v14715_v36, 16  ;;  %v3150_v32 = vrot.slane %v3148_v12, 4 }
 0x2ff   :  { %v14780_v2 = vcombine.low %v3099_v27, %v3109_v57  ;;  %v3128_v10 = vrot.slane %v3127_v34, 4  ;;  %v3141_v18 = vor.u32 %v3140_v40, %v3137_v6  ;;  %v3154_v15 = vshll.u32 %v2574_v54, 16  ;;  %v2577_v27 = vld [vmem:[#allocation2 + $0x128] sm:$0x1]  ;;  %v14796_v40 = vld [vmem:[#allocation2 + $0x144] sm:$0xf] }
 0x300   :  { %v3123_v50 = vsel %vm14284_vm14, %v3118_v53, %v3122_v23  ;;  %v3146_v44 = vrot.slane %v3144_v20, 5  ;;  %v3207_v48 = vshrl.u32 %v14774_v24, 16  ;;  %v14787_v51 = vcombine.low %v14774_v24, %v14770_v14 }
 0x301   :  { %17903 = vst [vmem:[#allocation51_spill] sm:$0xff] %v14780_v2  ;;  %v3133_v36 = vsel %vm14284_vm14, %v3128_v10, %v3132_v26  ;;  %v3142_v12 = vrot.slane %v3141_v18, 4  ;;  %v3161_v57 = vrot.slane %v3159_v55, 4  ;;  %v3164_v6 = vrot.slane %v3162_v16, 5 }
 0x302   :  { %17904 = vst [vmem:[#allocation55_spill] sm:$0xff] %v14787_v51  ;;  %v3151_v54 = vor.u32 %v3150_v32, %v3146_v44  ;;  %v3210_v34 = vshll.u32 %v14774_v24, 16  ;;  %9988 = vmatmul.mubr.bf16.gmra.mrb[44].mxu1 %v14787_v51  ;;  %v3168_v23 = vshll.u32 %v14735_v25, 16  ;;  %v3174_v53 = vrot.slane %v3172_v46, 4  ;;  %v2580_v24 = vld [vmem:[#allocation2 + $0x134] sm:$0x1] }
 0x303   :  { %v14798_v20 = vcombine.low %v3123_v50, %v3133_v36  ;;  %v3156_v33 = vrot.slane %v3154_v15, 5  ;;  %v3220_v22 = vshrl.u32 %v14770_v14, 16  ;;  %v3165_v26 = vor.u32 %v3164_v6, %v3161_v57  ;;  %v14815_v57 = vld [vmem:[#allocation2 + $0x154] sm:$0xf] }
 0x304   :  { %v3147_v55 = vsel %vm14284_vm14, %v3142_v12, %v3146_v44  ;;  %v3152_v16 = vrot.slane %v3151_v54, 4  ;;  %v3170_v32 = vrot.slane %v3168_v23, 5  ;;  %v3178_v10 = vshll.u32 %v2577_v27, 16  ;;  %v14813_v27 = vld [vmem:[#allocation2 + $0x150] sm:$0xf] }
 0x305   :  { %17905 = vst [vmem:[#allocation9_spill] sm:$0xff] %v14798_v20  ;;  %9740 = vmatmul.mubr.bf16.gmra.mrb[100].mxu0 %v14780_v2  ;;  %v3166_v18 = vrot.slane %v3165_v26, 4  ;;  %v3231_v25 = vshrl.u32 %v14796_v40, 16  ;;  %v14807_v46 = vcombine.low %v14796_v40, %v14789_v60  ;;  %v3185_v15 = vrot.slane %v3183_v31, 4 }
 0x306   :  { %9743 = vmatprep.mubr.bf16.mxu0 %v14798_v20  ;;  %v3157_v50 = vsel %vm14284_vm14, %v3152_v16, %v3156_v33  ;;  %v3175_v44 = vor.u32 %v3174_v53, %v3170_v32  ;;  %v3188_v36 = vrot.slane %v3186_v7, 5  ;;  %v3192_v12 = vshll.u32 %v14750_v43, 16  ;;  %v2583_v16 = vld [vmem:[#allocation2 + $0x140] sm:$0x1] }
 0x307   :  { %17906 = vst [vmem:[#allocation59_spill] sm:$0xff] %v14807_v46  ;;  %v3234_v6 = vshll.u32 %v14796_v40, 16  ;;  %v3244_v54 = vshrl.u32 %v14789_v60, 16  ;;  %9991 = vmatprep.mubr.bf16.mxu1 %v14807_v46  ;;  %v3198_v31 = vrot.slane %v3196_v47, 4  ;;  %v3202_v23 = vshll.u32 %v2580_v24, 16 }
 0x308   :  { %v3176_v26 = vrot.slane %v3175_v44, 4  ;;  %v3180_v51 = vrot.slane %v3178_v10, 5  ;;  %v3189_v20 = vor.u32 %v3188_v36, %v3185_v15  ;;  %v3194_v33 = vrot.slane %v3192_v12, 5  ;;  %v14831_v15 = vld [vmem:[#allocation2 + $0x160] sm:$0xf] }
 0x309   :  { %v14820_v53 = vcombine.low %v3147_v55, %v3157_v50  ;;  %v3171_v43 = vsel %vm14284_vm14, %v3166_v18, %v3170_v32  ;;  %v3255_v7 = vshrl.u32 %v14813_v27, 16  ;;  %v14827_v40 = vcombine.low %v14813_v27, %v14815_v57  ;;  %v14835_v36 = vld [vmem:[#allocation2 + $0x15c] sm:$0xf] }
 0x30a   :  { %v3181_v47 = vsel %vm14284_vm14, %v3176_v26, %v3180_v51  ;;  %v3190_v24 = vrot.slane %v3189_v20, 4  ;;  %v3199_v44 = vor.u32 %v3198_v31, %v3194_v33  ;;  %v3209_v10 = vrot.slane %v3207_v48, 4 }
 0x30b   :  { %17907 = vst [vmem:[#allocation41_spill] sm:$0xff] %v14820_v53  ;;  %17908 = vst [vmem:[#allocation28_spill] sm:$0xff] %v14827_v40  ;;  %v3204_v55 = vrot.slane %v3202_v23, 5  ;;  %9992 = vmatmul.mubr.bf16.gmra.mrb[48].mxu1 %v14827_v40  ;;  %v3212_v50 = vrot.slane %v3210_v34, 5  ;;  %v3216_v32 = vshll.u32 %v14770_v14, 16  ;;  %v3222_v18 = vrot.slane %v3220_v22, 4 }
 0x30c   :  { %v14837_v12 = vcombine.low %v3171_v43, %v3181_v47  ;;  %v3200_v46 = vrot.slane %v3199_v44, 4  ;;  %v3258_v2 = vshll.u32 %v14813_v27, 16  ;;  %v3226_v51 = vshll.u32 %v2583_v16, 16  ;;  %v2586_v27 = vld [vmem:[#allocation2 + $0x14c] sm:$0x1] }
 0x30d   :  { %9744 = vmatmul.mubr.bf16.gmra.mrb[104].mxu0 %v14820_v53  ;;  %v3195_v48 = vsel %vm14284_vm14, %v3190_v24, %v3194_v33  ;;  %v3268_v20 = vshrl.u32 %v14815_v57, 16  ;;  %v3213_v31 = vor.u32 %v3212_v50, %v3209_v10  ;;  %v3218_v34 = vrot.slane %v3216_v32, 5  ;;  %v14853_v24 = vld [vmem:[#allocation2 + $0x168] sm:$0xf]  ;;  %v14855_v44 = vld [vmem:[#allocation2 + $0x16c] sm:$0xf] }
 0x30e   :  { %17909 = vst [vmem:[#allocation45_spill] sm:$0xff] %v14837_v12  ;;  %9747 = vmatprep.mubr.bf16.mxu0 %v14837_v12  ;;  %v3279_v22 = vshrl.u32 %v14835_v36, 16  ;;  %v3282_v14 = vshll.u32 %v14835_v36, 16  ;;  %v14849_v23 = vcombine.low %v14835_v36, %v14831_v15  ;;  %v3233_v26 = vrot.slane %v3231_v25, 4  ;;  %v2589_v12 = vld [vmem:[#allocation2 + $0x158] sm:$0x1] }
 0x30f   :  { %v3205_v43 = vsel %vm14284_vm14, %v3200_v46, %v3204_v55  ;;  %v3214_v33 = vrot.slane %v3213_v31, 4  ;;  %v3223_v16 = vor.u32 %v3222_v18, %v3218_v34  ;;  %v3236_v47 = vrot.slane %v3234_v6, 5 }
 0x310   :  { %17910 = vst [vmem:[#allocation42_spill] sm:$0xff] %v14849_v23  ;;  %v3228_v10 = vrot.slane %v3226_v51, 5  ;;  %v3292_v50 = vshrl.u32 %v14831_v15, 16  ;;  %9995 = vmatprep.mubr.bf16.mxu1 %v14849_v23  ;;  %v3240_v32 = vshll.u32 %v14789_v60, 16  ;;  %v3246_v36 = vrot.slane %v3244_v54, 4 }
 0x311   :  { %v3219_v25 = vsel %vm14284_vm14, %v3214_v33, %v3218_v34  ;;  %v3224_v40 = vrot.slane %v3223_v16, 4  ;;  %v3237_v46 = vor.u32 %v3236_v47, %v3233_v26  ;;  %v3250_v55 = vshll.u32 %v2586_v27, 16  ;;  %v14877_v33 = vld [vmem:[#allocation2 + $0x178] sm:$0xf] }
 0x312   :  { %v14862_v18 = vcombine.low %v3195_v48, %v3205_v43  ;;  %v3242_v6 = vrot.slane %v3240_v32, 5  ;;  %v3303_v31 = vshrl.u32 %v14853_v24, 16  ;;  %v14867_v51 = vcombine.low %v14853_v24, %v14855_v44  ;;  %v14875_v43 = vld [vmem:[#allocation2 + $0x174] sm:$0xf] }
 0x313   :  { %v3229_v60 = vsel %vm14284_vm14, %v3224_v40, %v3228_v10  ;;  %v3238_v54 = vrot.slane %v3237_v46, 4  ;;  %v3257_v23 = vrot.slane %v3255_v7, 4  ;;  %v3260_v53 = vrot.slane %v3258_v2, 5  ;;  %v2592_v46 = vld [vmem:[#allocation2 + $0x164] sm:$0x1] }
 0x314   :  { %17911 = vst [vmem:[#allocation13_spill] sm:$0xff] %v14862_v18  ;;  %17912 = vst [vmem:[#allocation44_spill] sm:$0xff] %v14867_v51  ;;  %v14871_v34 = vcombine.low %v3219_v25, %v3229_v60  ;;  %v3247_v26 = vor.u32 %v3246_v36, %v3242_v6  ;;  %9996 = vmatmul.mubr.bf16.gmra.mrb[52].mxu1 %v14867_v51  ;;  %v3264_v48 = vshll.u32 %v14815_v57, 16  ;;  %v3270_v27 = vrot.slane %v3268_v20, 4  ;;  %v14895_v60 = vld [vmem:[#allocation2 + $0x184] sm:$0xf] }
 0x315   :  { %9748 = vmatmul.mubr.bf16.gmra.mrb[108].mxu0 %v14862_v18  ;;  %v3252_v16 = vrot.slane %v3250_v55, 5  ;;  %v3306_v40 = vshll.u32 %v14853_v24, 16  ;;  %v3261_v47 = vor.u32 %v3260_v53, %v3257_v23  ;;  %v3274_v7 = vshll.u32 %v2589_v12, 16 }
 0x316   :  { %17913 = vst [vmem:[#allocation15_spill] sm:$0xff] %v14871_v34  ;;  %9751 = vmatprep.mubr.bf16.mxu0 %v14871_v34  ;;  %v3243_v2 = vsel %vm14284_vm14, %v3238_v54, %v3242_v6  ;;  %v3248_v10 = vrot.slane %v3247_v26, 4  ;;  %v3316_v57 = vshrl.u32 %v14855_v44, 16  ;;  %v3266_v20 = vrot.slane %v3264_v48, 5  ;;  %v14893_v6 = vld [vmem:[#allocation2 + $0x180] sm:$0xf] }
 0x317   :  { %v3262_v32 = vrot.slane %v3261_v47, 4  ;;  %v3327_v36 = vshrl.u32 %v14875_v43, 16  ;;  %v14888_v25 = vcombine.low %v14875_v43, %v14877_v33  ;;  %v3281_v24 = vrot.slane %v3279_v22, 4 }
 0x318   :  { %v3253_v53 = vsel %vm14284_vm14, %v3248_v10, %v3252_v16  ;;  %v3271_v12 = vor.u32 %v3270_v27, %v3266_v20  ;;  %v3284_v23 = vrot.slane %v3282_v14, 5  ;;  %v3288_v55 = vshll.u32 %v14831_v15, 16 }
 0x319   :  { %17914 = vst [vmem:[#allocation18_spill] sm:$0xff] %v14888_v25  ;;  %v3267_v54 = vsel %vm14284_vm14, %v3262_v32, %v3266_v20  ;;  %v3276_v26 = vrot.slane %v3274_v7, 5  ;;  %v3330_v48 = vshll.u32 %v14875_v43, 16  ;;  %9999 = vmatprep.mubr.bf16.mxu1 %v14888_v25  ;;  %v3294_v22 = vrot.slane %v3292_v50, 4  ;;  %v2595_v7 = vld [vmem:[#allocation2 + $0x170] sm:$0x1] }
 0x31a   :  { %v3272_v47 = vrot.slane %v3271_v12, 4  ;;  %v3285_v51 = vor.u32 %v3284_v23, %v3281_v24  ;;  %v3290_v16 = vrot.slane %v3288_v55, 5  ;;  %v3298_v27 = vshll.u32 %v2592_v46, 16  ;;  %v14911_v24 = vld [vmem:[#allocation2 + $0x18c] sm:$0xf] }
 0x31b   :  { %v14901_v14 = vcombine.low %v3243_v2, %v3253_v53  ;;  %v3340_v15 = vshrl.u32 %v14877_v33, 16  ;;  %v3351_v10 = vshrl.u32 %v14893_v6, 16  ;;  %v14907_v34 = vcombine.low %v14893_v6, %v14895_v60  ;;  %v14918_v23 = vld [vmem:[#allocation2 + $0x190] sm:$0xf] }
 0x31c   :  { %v3277_v43 = vsel %vm14284_vm14, %v3272_v47, %v3276_v26  ;;  %v3286_v20 = vrot.slane %v3285_v51, 4  ;;  %v3295_v50 = vor.u32 %v3294_v22, %v3290_v16  ;;  %v3305_v32 = vrot.slane %v3303_v31, 4  ;;  %v14923_v51 = vld [vmem:[%s17068_s1 + $0xc0] sm:$0xff]   ;;  %v2598_v47 = vld [vmem:[#allocation2 + $0x17c] sm:$0x1] }
 0x31d   :  { %17915 = vst [vmem:[#allocation32_spill] sm:$0xff] %v14901_v14  ;;  %17916 = vst [vmem:[#allocation27_spill] sm:$0xff] %v14907_v34  ;;  %9752 = vmatmul.mubr.bf16.gmra.mrb[112].mxu0 %v14901_v14  ;;  %v14914_v2 = vcombine.low %v3267_v54, %v3277_v43  ;;  %10000 = vmatmul.mubr.bf16.gmra.mrb[56].mxu1 %v14907_v34  ;;  %v3308_v46 = vrot.slane %v3306_v40, 5  ;;  %v3312_v53 = vshll.u32 %v14855_v44, 16  ;;  %v3318_v12 = vrot.slane %v3316_v57, 4 }
 0x31e   :  { %v3296_v31 = vrot.slane %v3295_v50, 4  ;;  %v3300_v55 = vrot.slane %v3298_v27, 5  ;;  %v3354_v26 = vshll.u32 %v14893_v6, 16  ;;  %v3322_v22 = vshll.u32 %v2595_v7, 16  ;;  %9847 = vmatprep.subr.bf16.mxu0 %v14923_v51  ;;  %v14938_v50 = vld [vmem:[#allocation2 + $0x198] sm:$0xf] }
 0x31f   :  { %17917 = vst [vmem:[#allocation35_spill] sm:$0xff] %v14914_v2  ;;  %9755 = vmatprep.mubr.bf16.mxu0 %v14914_v2  ;;  %v3291_v40 = vsel %vm14284_vm14, %v3286_v20, %v3290_v16  ;;  %v3364_v44 = vshrl.u32 %v14895_v60, 16  ;;  %v3309_v57 = vor.u32 %v3308_v46, %v3305_v32  ;;  %v3314_v54 = vrot.slane %v3312_v53, 5  ;;  %v14940_v16 = vld [vmem:[#allocation2 + $0x19c] sm:$0xf] }
 0x320   :  { %v3301_v43 = vsel %vm14284_vm14, %v3296_v31, %v3300_v55  ;;  %v3375_v27 = vshrl.u32 %v14911_v24, 16  ;;  %v14936_v6 = vcombine.low %v14911_v24, %v14918_v23  ;;  %v3329_v7 = vrot.slane %v3327_v36, 4 }
 0x321   :  { %v3310_v20 = vrot.slane %v3309_v57, 4  ;;  %v3319_v32 = vor.u32 %v3318_v12, %v3314_v54  ;;  %v3324_v46 = vrot.slane %v3322_v22, 5  ;;  %v3332_v53 = vrot.slane %v3330_v48, 5  ;;  %v2601_v57 = vld [vmem:[#allocation2 + $0x188] sm:$0x1] }
 0x322   :  { %17918 = vst [vmem:[#allocation14_spill] sm:$0xff] %v14936_v6  ;;  %v14942_v34 = vcombine.low %v3291_v40, %v3301_v43  ;;  %10003 = vmatprep.mubr.bf16.mxu1 %v14936_v6  ;;  %v3336_v31 = vshll.u32 %v14877_v33, 16  ;;  %v3342_v55 = vrot.slane %v3340_v15, 4  ;;  %v3346_v25 = vshll.u32 %v2598_v47, 16 }
 0x323   :  { %v3315_v2 = vsel %vm14284_vm14, %v3310_v20, %v3314_v54  ;;  %v3320_v36 = vrot.slane %v3319_v32, 4  ;;  %v3333_v14 = vor.u32 %v3332_v53, %v3329_v7  ;;  %v14950_v18 = vcombine.low %v14938_v50, %v14940_v16 }
 0x324   :  { %17919 = vst [vmem:[#allocation38_spill] sm:$0xff] %v14942_v34  ;;  %v3378_v12 = vshll.u32 %v14911_v24, 16  ;;  %v3388_v48 = vshrl.u32 %v14918_v23, 16  ;;  %v3338_v22 = vrot.slane %v3336_v31, 5  ;;  %v3348_v40 = vrot.slane %v3346_v25, 5 }
 0x325   :  { %17920 = vst [vmem:[#allocation40_spill] sm:$0xff] %v14950_v18  ;;  %9756 = vmatmul.mubr.bf16.gmra.mrb[116].mxu0 %v14942_v34  ;;  %v3325_v33 = vsel %vm14284_vm14, %v3320_v36, %v3324_v46  ;;  %v3334_v15 = vrot.slane %v3333_v14, 4  ;;  %10004 = vmatmul.mubr.bf16.gmra.mrb[60].mxu1 %v14950_v18  ;;  %v3353_v54 = vrot.slane %v3351_v10, 4  ;;  %v3356_v47 = vrot.slane %v3354_v26, 5  ;;  %v2604_v25 = vld [vmem:[#allocation2 + $0x194] sm:$0x1] }
 0x326   :  { %v14958_v43 = vcombine.low %v3315_v2, %v3325_v33  ;;  %v3343_v7 = vor.u32 %v3342_v55, %v3338_v22  ;;  %v3360_v24 = vshll.u32 %v14895_v60, 16  ;;  %v3366_v20 = vrot.slane %v3364_v44, 4  ;;  %10023 = vmatprep.mubr.bf16.mxu1 %v14323_v58 }
 0x327   :  { %v3339_v32 = vsel %vm14284_vm14, %v3334_v15, %v3338_v22  ;;  %v3357_v53 = vor.u32 %v3356_v47, %v3353_v54  ;;  %v3370_v31 = vshll.u32 %v2601_v57, 16  ;;  %v3377_v46 = vrot.slane %v3375_v27, 4  ;;  %v11164_v27 = vld [vmem:[%s17068_s1 + $0x188] sm:$0xff]   ;;  %v11213_v54 = vld [vmem:[#allocation2 + $0x1c] sm:$0xf] }
 0x328   :  { %17921 = vst [vmem:[#allocation47_spill] sm:$0xff] %v14958_v43  ;;  %9759 = vmatprep.mubr.bf16.mxu0 %v14958_v43  ;;  %v3344_v14 = vrot.slane %v3343_v7, 4  ;;  %v3362_v10 = vrot.slane %v3360_v24, 5  ;;  %v3380_v26 = vrot.slane %v3378_v12, 5  ;;  %v3384_v2 = vshll.u32 %v14918_v23, 16 }
 0x329   :  { %v3358_v55 = vrot.slane %v3357_v53, 4  ;;  %v3390_v36 = vrot.slane %v3388_v48, 4  ;;  %v3394_v60 = vshll.u32 %v2604_v25, 16  ;;  %v3372_v57 = vrot.slane %v3370_v31, 5 }
 0x32a   :  { %v3349_v58 = vsel %vm14284_vm14, %v3344_v14, %v3348_v40  ;;  %v3367_v44 = vor.u32 %v3366_v20, %v3362_v10  ;;  %v3381_v33 = vor.u32 %v3380_v26, %v3377_v46  ;;  %v3386_v18 = vrot.slane %v3384_v2, 5  ;;  %v11214_v20 = vld [vmem:[%s17068_s1 + $0x180] sm:$0xff]   ;;  %v11215_v46 = vld [vmem:[#allocation2 + $0x18] sm:$0xf] }
 0x32b   :  { %v14968_v22 = vcombine.low %v3339_v32, %v3349_v58  ;;  %v3363_v12 = vsel %vm14284_vm14, %v3358_v55, %v3362_v10  ;;  %v4459_v47 = vrot.slane %v11213_v54, 5  ;;  %v3396_v24 = vrot.slane %v3394_v60, 5  ;;  %v11165_v32 = vld [vmem:[%s17068_s1 + $0x190] sm:$0xff]   ;;  %v14993_v26 = vld [vmem:[#allocation2 + $0x4] sm:$0xf]  ;;  %v11166_v58 = vld [vmem:[%s17068_s1 + $0x198] sm:$0xff]  }
 0x32c   :  { %v3368_v23 = vrot.slane %v3367_v44, 4  ;;  %v3382_v15 = vrot.slane %v3381_v33, 4  ;;  %v3391_v48 = vor.u32 %v3390_v36, %v3386_v18  ;;  %v8974_v14 = vrot.slane %v11215_v46, 9  ;;  %v14995_v2 = vld [vmem:[#allocation2] sm:$0xf]  ;;  %v11174_v54 = vld [vmem:[%s17068_s1 + $0xd0] sm:$0xff]  }
 0x32d   :  { %17922 = vst [vmem:[#allocation34_spill] sm:$0xff] %v14968_v22  ;;  %9760 = vmatmul.mubr.bf16.gmra.mrb[120].mxu0 %v14968_v22  ;;  %10024 = vmatmul.mubr.bf16.vlgmr.msra.gmra.mrb[0].mxu1 %v14386_v19  ;;  %v4461_v10 = vrot.slane %v4459_v47, 4  ;;  %v8932_v55 = vcombine.low %v14995_v2, %v14993_v26  ;;  %v11218_v36 = vld [vmem:[#allocation2 + $0x20] sm:$0x1] }
 0x32e   :  { %v3373_v40 = vsel %vm14284_vm14, %v3368_v23, %v3372_v57  ;;  %v3392_v7 = vrot.slane %v3391_v48, 4  ;;  %10088 = vmatpush3.bf16.msra.mxu1 %v11214_v20  ;;  %10027 = vmatprep.mubr.bf16.mxu1 %v14437_v56  ;;  %v3387_v53 = vsel %vm14284_vm14, %v3382_v15, %v3386_v18  ;;  %v4462_v60 = vrot.slane %v11218_v36, 5  ;;  %v11169_v23 = vld [vmem:[%s17068_s1 + $0x1a8] sm:$0xff]   ;;  %v11170_v48 = vld [vmem:[%s17068_s1 + $0x1b0] sm:$0xff]  }
 0x32f   :  { %v14983_v25 = vcombine.low %v3363_v12, %v3373_v40  ;;  %10089 = vmatprep.subr.bf16.mxu1 %v11164_v27  ;;  %v4460_v33 = vsel %vm15004_vm3, %v8974_v14, %v4459_v47  ;;  %v11167_v12 = vld [vmem:[%s17068_s1 + $0x1a0] sm:$0xff]   ;;  %v11172_v15 = vld [vmem:[%s17068_s1 + $0xc8] sm:$0xff]   ;;  %v11179_v14 = vld [vmem:[%s17068_s1 + $0xf0] sm:$0xff]  }
 0x330   :  { %v3397_v31 = vsel %vm14284_vm14, %v3392_v7, %v3396_v24  ;;  %v4463_v57 = vsel %vm15004_vm3, %v4461_v10, %v4462_v60  ;;  %v11176_v47 = vld [vmem:[%s17068_s1 + $0xe0] sm:$0xff]   ;;  %v11177_v7 = vld [vmem:[%s17068_s1 + $0xe8] sm:$0xff]   ;;  %v15303_v56 = vld [vmem:[%s17068_s1 + $0x270] sm:$0xff]  }
 0x331   :  { %17923 = vst [vmem:[#allocation19_spill] sm:$0xff] %v14983_v25  ;;  %9763 = vmatprep.mubr.bf16.mxu0 %v14983_v25  ;;  %v14999_v18 = vcombine.low %v3387_v53, %v3397_v31  ;;  %v15053_v40 = vld [vmem:[%s17068_s1 + $0x1c0] sm:$0xff]  }
 0x332   :  { %10090 = vmatpush3.bf16.msra.mxu1 %v11164_v27  ;;  %v15015_v27 = vcombine.low %v4460_v33, %v4463_v57  ;;  %v15063_v24 = vld [vmem:[#allocation2 + $0xc0] sm:$0xf]  ;;  %v15067_v53 = vld [vmem:[#allocation2 + $0xc4] sm:$0xf]  ;;  %v15081_v33 = vld [vmem:[#allocation2 + $0xc8] sm:$0x1] }
 0x333   :  { %17924 = vst [vmem:[#allocation17_spill] sm:$0xff] %v14999_v18  ;;  %10091 = vmatprep.subr.bf16.mxu1 %v11165_v32  ;;  %v5642_v20 = vshrl.u32 %v15063_v24, 16  ;;  %v5655_v31 = vshrl.u32 %v15067_v53, 16  ;;  %v5651_v46 = vshll.u32 %v15067_v53, 16 }
 0x335   :  { %9764 = vmatmul.mubr.bf16.gmra.mrb[124].mxu0 %v14999_v18  ;;  %10028 = vmatmul.mubr.bf16.gmra.mrb[4].mxu1 %v14440_v39  ;;  %v5644_v10 = vrot.slane %v5642_v20, 4  ;;  %v5653_v36 = vrot.slane %v5651_v46, 5  ;;  %v5657_v60 = vrot.slane %v5655_v31, 4  ;;  %v17929_v20 = vld [vmem:[#allocation23_spill] sm:$0xff]  ;;  %v17931_v31 = vld [vmem:[#allocation36_spill] sm:$0xff] }
 0x336   :  { %9783 = vmatprep.mubr.bf16.mxu0 %v8932_v55  ;;  %10031 = vmatprep.mubr.bf16.mxu1 %v14465_v9  ;;  %v17932_v46 = vld [vmem:[#allocation43_spill] sm:$0xff]  ;;  %v11252_v9 = vld [vmem:[#allocation2 + $0x94] sm:$0xf] }
 0x337   :  { %10092 = vmatpush3.bf16.msra.mxu1 %v11165_v32  ;;  %v5645_v32 = vshll.u32 %v15063_v24, 16 }
 0x338   :  { %10093 = vmatprep.subr.bf16.mxu1 %v11166_v58 }
 0x339   :  { %v5647_v55 = vrot.slane %v5645_v32, 5  ;;  %v17930_v32 = vld [vmem:[#allocation51_spill] sm:$0xff] }
 0x33b   :  { %10094 = vmatpush3.bf16.msra.mxu1 %v11166_v58  ;;  %v11180_v58 = vld [vmem:[%s17068_s1 + $0xf8] sm:$0xff]   ;;  %v5648_v57 = vor.u32 %v5647_v55, %v5644_v10  ;;  %v17934_v55 = vld [vmem:[#allocation9_spill] sm:$0xff] }
 0x33c   :  { %10095 = vmatprep.subr.bf16.mxu1 %v11167_v12  ;;  %v17933_v10 = vld [vmem:[#allocation26_spill] sm:$0xff] }
 0x33d   :  { %9784 = vmatmul.mubr.bf16.vlgmr.msra.gmra.mrb[64].mxu0 %v14239_v11  ;;  %10032 = vmatmul.mubr.bf16.gmra.mrb[8].mxu1 %v14502_v21  ;;  %v11173_v11 = vld [vmem:[%s17068_s1 + $0x1b8] sm:$0xff]  }
 0x33e   :  { %9787 = vmatprep.mubr.bf16.mxu0 %v14249_v5  ;;  %10035 = vmatprep.mubr.bf16.mxu1 %v14510_v62 }
 0x33f   :  { %10096 = vmatpush3.bf16.msra.mxu1 %v11167_v12  ;;  %9848 = vmatpush3.bf16.msra.mxu0 %v14923_v51  ;;  %v11175_v51 = vld [vmem:[%s17068_s1 + $0xd8] sm:$0xff]   ;;  %v5658_v12 = vor.u32 %v5657_v60, %v5653_v36 }
 0x340   :  { %10097 = vmatprep.subr.bf16.mxu1 %v11169_v23  ;;  %9849 = vmatprep.subr.bf16.mxu0 %v11172_v15  ;;  %v17936_v60 = vld [vmem:[#allocation10_spill] sm:$0xff] }
 0x343   :  { %10098 = vmatpush3.bf16.msra.mxu1 %v11169_v23  ;;  %9850 = vmatpush3.bf16.msra.mxu0 %v11172_v15  ;;  %v5661_v23 = vshll.u32 %v15081_v33, 16  ;;  %v5649_v15 = vrot.slane %v5648_v57, 4  ;;  %v17939_v57 = vld [vmem:[#allocation13_spill] sm:$0xff] }
 0x344   :  { %10099 = vmatprep.subr.bf16.mxu1 %v11170_v48  ;;  %9851 = vmatprep.subr.bf16.mxu0 %v11174_v54 }
 0x345   :  { %9788 = vmatmul.mubr.bf16.gmra.mrb[68].mxu0 %v14258_v41  ;;  %10036 = vmatmul.mubr.bf16.gmra.mrb[12].mxu1 %v14551_v4 }
 0x346   :  { %9791 = vmatprep.mubr.bf16.mxu0 %v14297_v30  ;;  %10039 = vmatprep.mubr.bf16.mxu1 %v14561_v29 }
 0x347   :  { %10100 = vmatpush3.bf16.msra.mxu1 %v11170_v48  ;;  %9852 = vmatpush3.bf16.msra.mxu0 %v11174_v54  ;;  %v5659_v48 = vrot.slane %v5658_v12, 4  ;;  %v5663_v54 = vrot.slane %v5661_v23, 5  ;;  %v17940_v12 = vld [vmem:[#allocation16_spill] sm:$0xff]  ;;  %v17941_v23 = vld [vmem:[#allocation15_spill] sm:$0xff] }
 0x348   :  { %10101 = vmatprep.subr.bf16.mxu1 %v11173_v11  ;;  %9853 = vmatprep.subr.bf16.mxu0 %v11175_v51 }
 0x34b   :  { %10102 = vmatpush3.bf16.msra.mxu1 %v11173_v11  ;;  %9854 = vmatpush3.bf16.msra.mxu0 %v11175_v51  ;;  %v5654_v11 = vsel %vm14284_vm14, %v5649_v15, %v5653_v36  ;;  %v5664_v51 = vsel %vm14284_vm14, %v5659_v48, %v5663_v54  ;;  %v17935_v36 = vld [vmem:[#allocation41_spill] sm:$0xff]  ;;  %v17942_v15 = vld [vmem:[#allocation39_spill] sm:$0xff]  ;;  %v17943_v48 = vld [vmem:[#allocation32_spill] sm:$0xff] }
 0x34c   :  { %9855 = vmatprep.subr.bf16.mxu0 %v11176_v47  ;;  %10167 = vmatprep.subr.bf16.mxu1 %v15053_v40  ;;  %v17944_v54 = vld [vmem:[#allocation48_spill] sm:$0xff] }
 0x34d   :  { %9792 = vmatmul.mubr.bf16.gmra.mrb[72].mxu0 %v14310_v3  ;;  %10040 = vmatmul.mubr.bf16.gmra.mrb[16].mxu1 %v14591_v61  ;;  %v11232_v61 = vld [vmem:[#allocation2 + $0x3c] sm:$0xf] }
 0x34e   :  { %9795 = vmatprep.mubr.bf16.mxu0 %v14351_v49  ;;  %10043 = vmatprep.mubr.bf16.mxu1 %v14617_v28 }
 0x34f   :  { %9856 = vmatpush3.bf16.msra.mxu0 %v11176_v47  ;;  %v15092_v47 = vcombine.low %v5654_v11, %v5664_v51  ;;  %v17945_v11 = vld [vmem:[#allocation35_spill] sm:$0xff]  ;;  %v17946_v51 = vld [vmem:[#allocation46_spill] sm:$0xff] }
 0x350   :  { %9857 = vmatprep.subr.bf16.mxu0 %v11177_v7 }
 0x351   :  { %17927 = vst [vmem:[#allocation60_spill] sm:$0xff] %v15092_v47 }
 0x353   :  { %9858 = vmatpush3.bf16.msra.mxu0 %v11177_v7  ;;  %v17928_v7 = vld [vmem:[#allocation57_spill] sm:$0xff] }
 0x354   :  { %9859 = vmatprep.subr.bf16.mxu0 %v11179_v14 }
 0x355   :  { %9796 = vmatmul.mubr.bf16.gmra.mrb[76].mxu0 %v14355_v35  ;;  %10044 = vmatmul.mubr.bf16.gmra.mrb[20].mxu1 %v14619_v0  ;;  %v17954_v0 = vld [vmem:[#allocation18_spill] sm:$0xff] }
 0x356   :  { %9799 = vmatprep.mubr.bf16.mxu0 %v14370_v52  ;;  %10047 = vmatprep.mubr.bf16.mxu1 %v14643_v42 }
 0x357   :  { %9860 = vmatpush3.bf16.msra.mxu0 %v11179_v14  ;;  %v8948_v14 = vcombine.low %v17932_v46, %v17931_v31  ;;  %v5666_v31 = vshrl.u32 %v14938_v50, 16  ;;  %v5669_v46 = vshll.u32 %v14938_v50, 16 }
 0x358   :  { %9861 = vmatprep.subr.bf16.mxu0 %v11180_v58 }
 0x35b   :  { %9862 = vmatpush3.bf16.msra.mxu0 %v11180_v58  ;;  %v17938_v58 = vld [vmem:[#allocation12_spill] sm:$0xff] }
 0x35c   :  { %17961 = vst [vmem:[#allocation12_spill] sm:$0xff] %v15303_v56 }
 0x35d   :  { %9800 = vmatmul.mubr.bf16.gmra.mrb[80].mxu0 %v14374_v37  ;;  %10048 = vmatmul.mubr.bf16.gmra.mrb[24].mxu1 %v14688_v38 }
 0x35e   :  { %9803 = vmatprep.mubr.bf16.mxu0 %v14414_v1  ;;  %10051 = vmatprep.mubr.bf16.mxu1 %v14690_v63  ;;  %v11224_v63 = vld [vmem:[#allocation2 + $0x28] sm:$0xf] }
 0x35f   :  { %v4466_v38 = vrot.slane %v11224_v63, 5 }
 0x365   :  { %9804 = vmatmul.mubr.bf16.gmra.mrb[84].mxu0 %v14492_v13  ;;  %10052 = vmatmul.mubr.bf16.gmra.mrb[28].mxu1 %v15092_v47 }
 0x366   :  { %9807 = vmatprep.mubr.bf16.mxu0 %v14516_v17  ;;  %10055 = vmatprep.mubr.bf16.mxu1 %v14718_v8  ;;  %v17937_v8 = vld [vmem:[#allocation45_spill] sm:$0xff] }
 0x36d   :  { %9808 = vmatmul.mubr.bf16.gmra.mrb[88].mxu0 %v17928_v7  ;;  %10056 = vmatmul.mubr.bf16.gmra.mrb[32].mxu1 %v14757_v59 }
 0x36e   :  { %9811 = vmatprep.mubr.bf16.mxu0 %v17929_v20  ;;  %10059 = vmatprep.mubr.bf16.mxu1 %v17930_v32  ;;  %v11221_v32 = vld [vmem:[#allocation2 + $0x10] sm:$0xf] }
 0x36f   :  { %v4452_v59 = vrot.slane %v11221_v32, 5  ;;  %v11222_v32 = vld [vmem:[#allocation2 + $0xc] sm:$0xf] }
 0x375   :  { %9812 = vmatmul.mubr.bf16.gmra.mrb[92].mxu0 %v17933_v10  ;;  %10060 = vmatmul.mubr.bf16.gmra.mrb[36].mxu1 %v17934_v55 }
 0x376   :  { %9815 = vmatprep.mubr.bf16.mxu0 %v8948_v14  ;;  %10063 = vmatprep.mubr.bf16.mxu1 %v17935_v36  ;;  %v5679_v14 = vshrl.u32 %v14940_v16, 16  ;;  %v17947_v36 = vld [vmem:[#allocation20_spill] sm:$0xff] }
 0x37d   :  { %9816 = vmatmul.mubr.bf16.gmra.mrb[96].mxu0 %v17936_v60  ;;  %10064 = vmatmul.mubr.bf16.gmra.mrb[40].mxu1 %v17937_v8  ;;  %v5675_v60 = vshll.u32 %v14940_v16, 16 }
 0x37e   :  { %9819 = vmatprep.mubr.bf16.mxu0 %v17938_v58  ;;  %10067 = vmatprep.mubr.bf16.mxu1 %v17939_v57  ;;  %v5671_v57 = vrot.slane %v5669_v46, 5 }
 0x37f   :  { %v5677_v8 = vrot.slane %v5675_v60, 5  ;;  %v17949_v60 = vld [vmem:[#allocation59_spill] sm:$0xff] }
 0x385   :  { %9820 = vmatmul.mubr.bf16.gmra.mrb[100].mxu0 %v17940_v12  ;;  %10068 = vmatmul.mubr.bf16.gmra.mrb[44].mxu1 %v17941_v23  ;;  %v5668_v23 = vrot.slane %v5666_v31, 4 }
 0x386   :  { %9823 = vmatprep.mubr.bf16.mxu0 %v17942_v15  ;;  %10071 = vmatprep.mubr.bf16.mxu1 %v17943_v48  ;;  %v5681_v48 = vrot.slane %v5679_v14, 4  ;;  %v4454_v14 = vrot.slane %v4452_v59, 4 }
 0x387   :  { %v5672_v55 = vor.u32 %v5671_v57, %v5668_v23  ;;  %v8973_v23 = vrot.slane %v11222_v32, 9 }
 0x388   :  { %v5682_v50 = vor.u32 %v5681_v48, %v5677_v8  ;;  %v11223_v48 = vld [vmem:[#allocation2 + $0x14] sm:$0x1] }
 0x389   :  { %v5673_v31 = vrot.slane %v5672_v55, 4  ;;  %v4455_v55 = vrot.slane %v11223_v48, 5  ;;  %v17952_v48 = vld [vmem:[#allocation42_spill] sm:$0xff] }
 0x38a   :  { %v5683_v46 = vrot.slane %v5682_v50, 4 }
 0x38b   :  { %v5678_v50 = vsel %vm14284_vm14, %v5673_v31, %v5677_v8  ;;  %v4456_v47 = vsel %vm15004_vm3, %v4454_v14, %v4455_v55  ;;  %v17953_v8 = vld [vmem:[#allocation44_spill] sm:$0xff]  ;;  %v4468_v31 = vrot.slane %v4466_v38, 4  ;;  %v11227_v55 = vld [vmem:[#allocation2 + $0x34] sm:$0xf] }
 0x38c   :  { %v11225_v14 = vld [vmem:[#allocation2 + $0x24] sm:$0xf] }
 0x38d   :  { %9824 = vmatmul.mubr.bf16.gmra.mrb[104].mxu0 %v17944_v54  ;;  %10072 = vmatmul.mubr.bf16.gmra.mrb[48].mxu1 %v17945_v11  ;;  %v17948_v11 = vld [vmem:[#allocation55_spill] sm:$0xff]  ;;  %v8975_v63 = vrot.slane %v11225_v14, 9 }
 0x38e   :  { %9827 = vmatprep.mubr.bf16.mxu0 %v17946_v51  ;;  %10075 = vmatprep.mubr.bf16.mxu1 %v14942_v34  ;;  %v15127_v34 = vld [vmem:[#allocation2 + $0x1a0] sm:$0x1] }
 0x38f   :  { %v5685_v16 = vshll.u32 %v15127_v34, 16  ;;  %v4467_v14 = vsel %vm15004_vm3, %v8975_v63, %v4466_v38 }
 0x391   :  { %v5687_v57 = vrot.slane %v5685_v16, 5  ;;  %v4453_v16 = vsel %vm15004_vm3, %v8973_v23, %v4452_v59  ;;  %v11228_v59 = vld [vmem:[#allocation2 + $0x40] sm:$0xf] }
 0x392   :  { %v15150_v32 = vcombine.low %v4453_v16, %v4456_v47  ;;  %v4480_v47 = vrot.slane %v11228_v59, 5  ;;  %v8972_v16 = vrot.slane %v14995_v2, 9  ;;  %v11230_v2 = vld [vmem:[#allocation2 + $0x30] sm:$0xf]  ;;  %v11231_v59 = vld [vmem:[#allocation2 + $0x38] sm:$0x1] }
 0x393   :  { %v4476_v28 = vrot.slane %v11231_v59, 5  ;;  %v11234_v59 = vld [vmem:[#allocation2 + $0x4c] sm:$0xf] }
 0x394   :  { %v4487_v4 = vrot.slane %v11234_v59, 5  ;;  %v11240_v59 = vld [vmem:[#allocation2 + $0x64] sm:$0xf] }
 0x395   :  { %9828 = vmatmul.mubr.bf16.gmra.mrb[108].mxu0 %v17947_v36  ;;  %10076 = vmatmul.mubr.bf16.gmra.mrb[52].mxu1 %v14958_v43  ;;  %v15135_v43 = vld [vmem:[%s17068_s1 + $0x240] sm:$0xff]  }
 0x396   :  { %9831 = vmatprep.mubr.bf16.mxu0 %v17948_v11  ;;  %10079 = vmatprep.mubr.bf16.mxu1 %v14968_v22  ;;  %v17950_v22 = vld [vmem:[#allocation28_spill] sm:$0xff] }
 0x397   :  { %10327 = vmatprep.subr.bf16.mxu0 %v15135_v43 }
 0x39d   :  { %9832 = vmatmul.mubr.bf16.gmra.mrb[112].mxu0 %v17949_v60  ;;  %10080 = vmatmul.mubr.bf16.gmra.mrb[56].mxu1 %v14983_v25  ;;  %v5688_v25 = vsel %vm14284_vm14, %v5683_v46, %v5687_v57  ;;  %v4445_v46 = vrot.slane %v14993_v26, 5  ;;  %v11181_v26 = vld [vmem:[%s17068_s1 + $0x1c8] sm:$0xff]  }
 0x39e   :  { %9835 = vmatprep.mubr.bf16.mxu0 %v17950_v22  ;;  %10083 = vmatprep.mubr.bf16.mxu1 %v14999_v18  ;;  %v15146_v42 = vcombine.low %v5678_v50, %v5688_v25  ;;  %v11226_v25 = vld [vmem:[#allocation2 + $0x2c] sm:$0x1]  ;;  %v4473_v50 = vrot.slane %v11227_v55, 5  ;;  %v11229_v18 = vld [vmem:[#allocation2 + $0x8] sm:$0x1] }
 0x39f   :  { %v4469_v57 = vrot.slane %v11226_v25, 5  ;;  %v4448_v45 = vrot.slane %v11229_v18, 5  ;;  %v8976_v18 = vrot.slane %v11230_v2, 9  ;;  %v4446_v38 = vsel %vm15004_vm3, %v8972_v16, %v4445_v46  ;;  %v11235_v16 = vld [vmem:[#allocation2 + $0x58] sm:$0xf] }
 0x3a0   :  { %17951 = vst [vmem:[#allocation57_spill] sm:$0xff] %v15146_v42  ;;  %v4475_v25 = vrot.slane %v4473_v50, 4  ;;  %v4494_v62 = vrot.slane %v11235_v16, 5  ;;  %v11184_v16 = vld [vmem:[%s17068_s1 + $0x1e0] sm:$0xff]  }
 0x3a1   :  { %v4470_v23 = vsel %vm15004_vm3, %v4468_v31, %v4469_v57  ;;  %v4482_v31 = vrot.slane %v4480_v47, 4  ;;  %v17955_v57 = vld [vmem:[#allocation27_spill] sm:$0xff] }
 0x3a2   :  { %v15167_v55 = vcombine.low %v4467_v14, %v4470_v23  ;;  %v8977_v23 = vrot.slane %v11232_v61, 9  ;;  %v11233_v14 = vld [vmem:[#allocation2 + $0x44] sm:$0x1]  ;;  %v4477_v2 = vsel %vm15004_vm3, %v4475_v25, %v4476_v28  ;;  %v4474_v61 = vsel %vm15004_vm3, %v8976_v18, %v4473_v50  ;;  %v11236_v50 = vld [vmem:[#allocation2 + $0x48] sm:$0xf] }
 0x3a3   :  { %v4483_v29 = vrot.slane %v11233_v14, 5  ;;  %v4489_v28 = vrot.slane %v4487_v4, 4  ;;  %v4496_v25 = vrot.slane %v4494_v62, 4  ;;  %v11238_v18 = vld [vmem:[#allocation2 + $0x54] sm:$0xf] }
 0x3a4   :  { %v4481_v14 = vsel %vm15004_vm3, %v8977_v23, %v4480_v47 }
 0x3a5   :  { %9836 = vmatmul.mubr.bf16.gmra.mrb[116].mxu0 %v17952_v48  ;;  %10084 = vmatmul.mubr.bf16.gmra.mrb[60].mxu1 %v15146_v42  ;;  %v4447_v42 = vrot.slane %v4445_v46, 4  ;;  %v4484_v46 = vsel %vm15004_vm3, %v4482_v31, %v4483_v29  ;;  %v11183_v29 = vld [vmem:[%s17068_s1 + $0x1d8] sm:$0xff]   ;;  %v11237_v31 = vld [vmem:[#allocation2 + $0x50] sm:$0x1] }
 0x3a6   :  { %9839 = vmatprep.mubr.bf16.mxu0 %v17953_v8  ;;  %10103 = vmatprep.mubr.bf16.mxu1 %v15150_v32  ;;  %v15189_v21 = vcombine.low %v4481_v14, %v4484_v46  ;;  %v4490_v47 = vrot.slane %v11237_v31, 5  ;;  %v4501_v46 = vrot.slane %v11240_v59, 5 }
 0x3a7   :  { %v4449_v63 = vsel %vm15004_vm3, %v4447_v42, %v4448_v45  ;;  %v15185_v42 = vcombine.low %v4474_v61, %v4477_v2  ;;  %v11241_v61 = vld [vmem:[#allocation2 + $0x70] sm:$0xf] }
 0x3a8   :  { %v9004_v45 = vcombine.low %v4446_v38, %v4449_v63  ;;  %v8979_v38 = vrot.slane %v11238_v18, 9  ;;  %v11239_v63 = vld [vmem:[#allocation2 + $0x5c] sm:$0x1]  ;;  %v4491_v2 = vsel %vm15004_vm3, %v4489_v28, %v4490_v47  ;;  %v4508_v14 = vrot.slane %v11241_v61, 5  ;;  %v11185_v18 = vld [vmem:[%s17068_s1 + $0x1e8] sm:$0xff]  }
 0x3a9   :  { %v4497_v23 = vrot.slane %v11239_v63, 5  ;;  %v4503_v47 = vrot.slane %v4501_v46, 4  ;;  %v11244_v63 = vld [vmem:[#allocation2 + $0x6c] sm:$0xf] }
 0x3ad   :  { %9840 = vmatmul.mubr.bf16.gmra.mrb[120].mxu0 %v17954_v0  ;;  %10104 = vmatmul.mubr.bf16.vlgmr.msra.gmra.mrb[0].mxu1 %v15015_v27  ;;  %v11274_v0 = vld [vmem:[#allocation2 + $0x10c] sm:$0xf] }
 0x3ae   :  { %9843 = vmatprep.mubr.bf16.mxu0 %v17955_v57  ;;  %10168 = vmatpush3.bf16.msra.mxu1 %v15053_v40  ;;  %v11182_v40 = vld [vmem:[%s17068_s1 + $0x1d0] sm:$0xff]   ;;  %v4585_v8 = vrot.slane %v11274_v0, 5 }
 0x3af   :  { %10107 = vmatprep.mubr.bf16.mxu1 %v15167_v55  ;;  %10169 = vmatprep.subr.bf16.mxu1 %v11181_v26 }
 0x3b2   :  { %10170 = vmatpush3.bf16.msra.mxu1 %v11181_v26  ;;  %v8978_v26 = vrot.slane %v11236_v50, 9 }
 0x3b3   :  { %10171 = vmatprep.subr.bf16.mxu1 %v11182_v40 }
 0x3b4   :  { %v4488_v50 = vsel %vm15004_vm3, %v8978_v26, %v4487_v4  ;;  %v4510_v4 = vrot.slane %v4508_v14, 4  ;;  %v11243_v26 = vld [vmem:[#allocation2 + $0x68] sm:$0x1] }
 0x3b5   :  { %9844 = vmatmul.mubr.bf16.gmra.mrb[124].mxu0 %v14936_v6  ;;  %10108 = vmatmul.mubr.bf16.gmra.mrb[4].mxu1 %v15185_v42  ;;  %v15206_v31 = vcombine.low %v4488_v50, %v4491_v2  ;;  %v11245_v2 = vld [vmem:[#allocation2 + $0x74] sm:$0x1]  ;;  %v11264_v6 = vld [vmem:[#allocation2 + $0xe8] sm:$0xf] }
 0x3b6   :  { %9863 = vmatprep.mubr.bf16.mxu0 %v9004_v45  ;;  %10111 = vmatprep.mubr.bf16.mxu1 %v15189_v21  ;;  %v4498_v45 = vsel %vm15004_vm3, %v4496_v25, %v4497_v23  ;;  %v15218_v25 = vld [vmem:[%s17068_s1 + $0x248] sm:$0xff]   ;;  %v8981_v23 = vrot.slane %v11244_v63, 9  ;;  %v4511_v59 = vrot.slane %v11245_v2, 5  ;;  %v11186_v50 = vld [vmem:[%s17068_s1 + $0x1f0] sm:$0xff]  }
 0x3b7   :  { %10172 = vmatpush3.bf16.msra.mxu1 %v11182_v40  ;;  %v4495_v40 = vsel %vm15004_vm3, %v8979_v38, %v4494_v62  ;;  %17956 = vst [vmem:[#allocation23_spill] sm:$0xff] %v15218_v25  ;;  %v11242_v62 = vld [vmem:[#allocation2 + $0x60] sm:$0xf]  ;;  %v4504_v38 = vrot.slane %v11243_v26, 5 }
 0x3b8   :  { %10173 = vmatprep.subr.bf16.mxu1 %v11183_v29  ;;  %v15210_v28 = vcombine.low %v4495_v40, %v4498_v45  ;;  %v11246_v45 = vld [vmem:[#allocation2 + $0x7c] sm:$0xf]  ;;  %v15234_v40 = vld [vmem:[%s17068_s1 + $0x250] sm:$0xff]   ;;  %v4509_v63 = vsel %vm15004_vm3, %v8981_v23, %v4508_v14  ;;  %v11249_v23 = vld [vmem:[#allocation2 + $0x80] sm:$0x1] }
 0x3b9   :  { %v4515_v61 = vrot.slane %v11246_v45, 5  ;;  %17957 = vst [vmem:[#allocation36_spill] sm:$0xff] %v15234_v40 }
 0x3bb   :  { %10174 = vmatpush3.bf16.msra.mxu1 %v11183_v29  ;;  %v8980_v29 = vrot.slane %v11242_v62, 9  ;;  %v11247_v62 = vld [vmem:[#allocation2 + $0x88] sm:$0xf]  ;;  %v4517_v45 = vrot.slane %v4515_v61, 4 }
 0x3bc   :  { %10175 = vmatprep.subr.bf16.mxu1 %v11184_v16  ;;  %v4522_v26 = vrot.slane %v11247_v62, 5  ;;  %v11251_v62 = vld [vmem:[#allocation2 + $0x8c] sm:$0x1] }
 0x3bd   :  { %9864 = vmatmul.mubr.bf16.vlgmr.msra.gmra.mrb[64].mxu0 %v15150_v32  ;;  %10112 = vmatmul.mubr.bf16.gmra.mrb[8].mxu1 %v15206_v31  ;;  %v4505_v32 = vsel %vm15004_vm3, %v4503_v47, %v4504_v38  ;;  %v4502_v47 = vsel %vm15004_vm3, %v8980_v29, %v4501_v46  ;;  %v15254_v46 = vld [vmem:[%s17068_s1 + $0x258] sm:$0xff]  }
 0x3be   :  { %9867 = vmatprep.mubr.bf16.mxu0 %v15015_v27  ;;  %10115 = vmatprep.mubr.bf16.mxu1 %v15210_v28  ;;  %v15240_v38 = vcombine.low %v4502_v47, %v4505_v32  ;;  %17958 = vst [vmem:[#allocation43_spill] sm:$0xff] %v15254_v46  ;;  %v4524_v14 = vrot.slane %v4522_v26, 4  ;;  %v11250_v32 = vld [vmem:[#allocation2 + $0x84] sm:$0xf]  ;;  %v4525_v47 = vrot.slane %v11251_v62, 5 }
 0x3bf   :  { %10176 = vmatpush3.bf16.msra.mxu1 %v11184_v16  ;;  %10328 = vmatpush3.bf16.msra.mxu0 %v15135_v43  ;;  %v4512_v16 = vsel %vm15004_vm3, %v4510_v4, %v4511_v59  ;;  %v11189_v4 = vld [vmem:[%s17068_s1 + $0x1f8] sm:$0xff]   ;;  %v4518_v59 = vrot.slane %v11249_v23, 5  ;;  %v15272_v23 = vld [vmem:[%s17068_s1 + $0x200] sm:$0xff]  }
 0x3c0   :  { %10177 = vmatprep.subr.bf16.mxu1 %v11185_v18  ;;  %10329 = vmatprep.subr.bf16.mxu0 %v15218_v25  ;;  %v15245_v2 = vcombine.low %v4509_v63, %v4512_v16  ;;  %v8983_v16 = vrot.slane %v11250_v32, 9  ;;  %v11253_v32 = vld [vmem:[#allocation2 + $0xa0] sm:$0xf] }
 0x3c1   :  { %v4519_v63 = vsel %vm15004_vm3, %v4517_v45, %v4518_v59  ;;  %v4536_v45 = vrot.slane %v11253_v32, 5 }
 0x3c2   :  { %v4523_v62 = vsel %vm15004_vm3, %v8983_v16, %v4522_v26  ;;  %v11254_v26 = vld [vmem:[#allocation2 + $0x90] sm:$0xf] }
 0x3c3   :  { %10178 = vmatpush3.bf16.msra.mxu1 %v11185_v18  ;;  %10330 = vmatpush3.bf16.msra.mxu0 %v15218_v25  ;;  %v11248_v18 = vld [vmem:[#allocation2 + $0x78] sm:$0xf]  ;;  %v4529_v25 = vrot.slane %v11252_v9, 5 }
 0x3c4   :  { %10179 = vmatprep.subr.bf16.mxu1 %v11186_v50  ;;  %10331 = vmatprep.subr.bf16.mxu0 %v15234_v40  ;;  %v8982_v29 = vrot.slane %v11248_v18, 9  ;;  %v15267_v18 = vld [vmem:[%s17068_s1 + $0x260] sm:$0xff]  }
 0x3c5   :  { %9868 = vmatmul.mubr.bf16.gmra.mrb[68].mxu0 %v15167_v55  ;;  %10116 = vmatmul.mubr.bf16.gmra.mrb[12].mxu1 %v15240_v38  ;;  %17959 = vst [vmem:[#allocation26_spill] sm:$0xff] %v15267_v18  ;;  %v4531_v39 = vrot.slane %v4529_v25, 4 }
 0x3c6   :  { %9871 = vmatprep.mubr.bf16.mxu0 %v15185_v42  ;;  %10119 = vmatprep.mubr.bf16.mxu1 %v15245_v2  ;;  %v4516_v9 = vsel %vm15004_vm3, %v8982_v29, %v4515_v61  ;;  %v4538_v61 = vrot.slane %v4536_v45, 4  ;;  %v11255_v29 = vld [vmem:[#allocation2 + $0x98] sm:$0x1] }
 0x3c7   :  { %10180 = vmatpush3.bf16.msra.mxu1 %v11186_v50  ;;  %10332 = vmatpush3.bf16.msra.mxu0 %v15234_v40  ;;  %v4526_v50 = vsel %vm15004_vm3, %v4524_v14, %v4525_v47  ;;  %v15278_v59 = vcombine.low %v4516_v9, %v4519_v63  ;;  %v15289_v14 = vld [vmem:[%s17068_s1 + $0x268] sm:$0xff]   ;;  %v4532_v16 = vrot.slane %v11255_v29, 5  ;;  %v11256_v47 = vld [vmem:[#allocation2 + $0x9c] sm:$0xf]  ;;  %v11259_v29 = vld [vmem:[#allocation2 + $0xb8] sm:$0xf] }
 0x3c8   :  { %10181 = vmatprep.subr.bf16.mxu1 %v11189_v4  ;;  %10333 = vmatprep.subr.bf16.mxu0 %v15254_v46  ;;  %v15283_v40 = vcombine.low %v4523_v62, %v4526_v50  ;;  %17960 = vst [vmem:[#allocation10_spill] sm:$0xff] %v15289_v14  ;;  %v8985_v63 = vrot.slane %v11256_v47, 9  ;;  %v11257_v50 = vld [vmem:[#allocation2 + $0xa4] sm:$0x1]  ;;  %v11258_v62 = vld [vmem:[#allocation2 + $0xac] sm:$0xf] }
 0x3c9   :  { %v4539_v32 = vrot.slane %v11257_v50, 5  ;;  %v4533_v9 = vsel %vm15004_vm3, %v4531_v39, %v4532_v16  ;;  %v4550_v47 = vrot.slane %v11259_v29, 5  ;;  %v11263_v29 = vld [vmem:[#allocation2 + $0xbc] sm:$0x1] }
 0x3ca   :  { %v4537_v39 = vsel %vm15004_vm3, %v8985_v63, %v4536_v45  ;;  %v11260_v45 = vld [vmem:[#allocation2 + $0xa8] sm:$0xf]  ;;  %v11261_v63 = vld [vmem:[#allocation2 + $0xb0] sm:$0x1] }
 0x3cb   :  { %10182 = vmatpush3.bf16.msra.mxu1 %v11189_v4  ;;  %10334 = vmatpush3.bf16.msra.mxu0 %v15254_v46  ;;  %v8984_v4 = vrot.slane %v11254_v26, 9  ;;  %v4543_v46 = vrot.slane %v11258_v62, 5  ;;  %v4540_v26 = vsel %vm15004_vm3, %v4538_v61, %v4539_v32  ;;  %v15320_v61 = vld [vmem:[%s17068_s1 + $0x278] sm:$0xff]   ;;  %v4546_v32 = vrot.slane %v11261_v63, 5 }
 0x3cc   :  { %10335 = vmatprep.subr.bf16.mxu0 %v15267_v18  ;;  %10247 = vmatprep.subr.bf16.mxu1 %v15272_v23  ;;  %v15314_v16 = vcombine.low %v4537_v39, %v4540_v26  ;;  %17962 = vst [vmem:[#allocation16_spill] sm:$0xff] %v15320_v61 }
 0x3cd   :  { %9872 = vmatmul.mubr.bf16.gmra.mrb[72].mxu0 %v15189_v21  ;;  %10120 = vmatmul.mubr.bf16.gmra.mrb[16].mxu1 %v15278_v59  ;;  %v4530_v50 = vsel %vm15004_vm3, %v8984_v4, %v4529_v25  ;;  %v4545_v62 = vrot.slane %v4543_v46, 4  ;;  %v4552_v25 = vrot.slane %v4550_v47, 4  ;;  %v8986_v4 = vrot.slane %v11260_v45, 9 }
 0x3ce   :  { %9875 = vmatprep.mubr.bf16.mxu0 %v15206_v31  ;;  %10123 = vmatprep.mubr.bf16.mxu1 %v15283_v40  ;;  %v4564_v45 = vrot.slane %v11264_v6, 5  ;;  %v9064_v6 = vrot.slane %v15063_v24, 9 }
 0x3cf   :  { %10336 = vmatpush3.bf16.msra.mxu0 %v15267_v18  ;;  %v15309_v18 = vcombine.low %v4530_v50, %v4533_v9  ;;  %v11262_v9 = vld [vmem:[#allocation2 + $0xb4] sm:$0xf]  ;;  %v4553_v50 = vrot.slane %v11263_v29, 5  ;;  %v4547_v39 = vsel %vm15004_vm3, %v4545_v62, %v4546_v32  ;;  %v4544_v63 = vsel %vm15004_vm3, %v8986_v4, %v4543_v46  ;;  %v11265_v4 = vld [vmem:[#allocation2 + $0xe4] sm:$0xf] }
 0x3d0   :  { %10337 = vmatprep.subr.bf16.mxu0 %v15289_v14  ;;  %v8987_v26 = vrot.slane %v11262_v9, 9  ;;  %v15335_v9 = vcombine.low %v4544_v63, %v4547_v39  ;;  %v6121_v46 = vrot.slane %v15081_v33, 5  ;;  %v11266_v32 = vld [vmem:[#allocation2 + $0xec] sm:$0x1] }
 0x3d1   :  { %v4554_v19 = vsel %vm15004_vm3, %v4552_v25, %v4553_v50  ;;  %v4566_v25 = vrot.slane %v4564_v45, 4  ;;  %v11267_v50 = vld [vmem:[#allocation2 + $0xf4] sm:$0xf] }
 0x3d2   :  { %v4551_v29 = vsel %vm15004_vm3, %v8987_v26, %v4550_v47  ;;  %v8989_v47 = vrot.slane %v11265_v4, 9  ;;  %v4567_v26 = vrot.slane %v11266_v32, 5  ;;  %v4571_v39 = vrot.slane %v11267_v50, 5  ;;  %v11273_v50 = vld [vmem:[#allocation2 + $0xdc] sm:$0xf] }
 0x3d3   :  { %10338 = vmatpush3.bf16.msra.mxu0 %v15289_v14  ;;  %v6118_v14 = vrot.slane %v15067_v53, 5  ;;  %v15340_v62 = vcombine.low %v4551_v29, %v4554_v19  ;;  %v11268_v29 = vld [vmem:[#allocation2 + $0x100] sm:$0xf] }
 0x3d4   :  { %10339 = vmatprep.subr.bf16.mxu0 %v15303_v56  ;;  %v4568_v63 = vsel %vm15004_vm3, %v4566_v25, %v4567_v26  ;;  %v4565_v33 = vsel %vm15004_vm3, %v8989_v47, %v4564_v45  ;;  %v4573_v32 = vrot.slane %v4571_v39, 4  ;;  %v11269_v25 = vld [vmem:[#allocation2 + $0xf0] sm:$0xf]  ;;  %v11272_v45 = vld [vmem:[#allocation2 + $0x104] sm:$0x1] }
 0x3d5   :  { %9876 = vmatmul.mubr.bf16.gmra.mrb[76].mxu0 %v15210_v28  ;;  %10124 = vmatmul.mubr.bf16.gmra.mrb[20].mxu1 %v15309_v18  ;;  %v6120_v53 = vrot.slane %v6118_v14, 4  ;;  %v15358_v4 = vcombine.low %v4565_v33, %v4568_v63  ;;  %v4581_v47 = vrot.slane %v11272_v45, 5  ;;  %v4557_v63 = vrot.slane %v11273_v50, 5 }
 0x3d6   :  { %9879 = vmatprep.mubr.bf16.mxu0 %v15240_v38  ;;  %10127 = vmatprep.mubr.bf16.mxu1 %v15314_v16 }
 0x3d7   :  { %10340 = vmatpush3.bf16.msra.mxu0 %v15303_v56  ;;  %v6122_v19 = vsel %vm15004_vm3, %v6120_v53, %v6121_v46  ;;  %v6119_v56 = vsel %vm15004_vm3, %v9064_v6, %v6118_v14  ;;  %v8990_v46 = vrot.slane %v11269_v25, 9  ;;  %v11270_v14 = vld [vmem:[#allocation2 + $0xf8] sm:$0x1]  ;;  %v11271_v6 = vld [vmem:[#allocation2 + $0xfc] sm:$0xf]  ;;  %v4559_v60 = vrot.slane %v4557_v63, 4 }
 0x3d8   :  { %10341 = vmatprep.subr.bf16.mxu0 %v15320_v61  ;;  %v15354_v24 = vcombine.low %v6119_v56, %v6122_v19  ;;  %v4574_v56 = vrot.slane %v11270_v14, 5  ;;  %v8991_v26 = vrot.slane %v11271_v6, 9  ;;  %v1275_v19 = vld [vmem:[#allocation2 + $0xcc] sm:$0x1]  ;;  %v11275_v14 = vld [vmem:[#allocation2 + $0x118] sm:$0xf] }
 0x3d9   :  { %v1276_v33 = vsel %vm11469_vm2, 0, %v1275_v19  ;;  %v4592_v48 = vrot.slane %v11275_v14, 5  ;;  %v4572_v6 = vsel %vm15004_vm3, %v8990_v46, %v4571_v39  ;;  %v11276_v19 = vld [vmem:[#allocation2 + $0xd8] sm:$0xf]  ;;  %v11279_v39 = vld [vmem:[#allocation2 + $0x110] sm:$0x1] }
 0x3da   :  { %v4575_v57 = vsel %vm15004_vm3, %v4573_v32, %v4574_v56  ;;  %1277 = vst [vmem:[#allocation2 + $0xcc] sm:$0x1] %v1276_v33  ;;  %v8988_v22 = vrot.slane %v11276_v19, 9  ;;  %v11277_v32 = vld [vmem:[#allocation2 + $0xe0] sm:$0x1]  ;;  %v4587_v33 = vrot.slane %v4585_v8, 4 }
 0x3db   :  { %10342 = vmatpush3.bf16.msra.mxu0 %v15320_v61  ;;  %v4578_v61 = vrot.slane %v11268_v29, 5  ;;  %v15374_v50 = vcombine.low %v4572_v6, %v4575_v57  ;;  %v4560_v56 = vrot.slane %v11277_v32, 5  ;;  %v4588_v46 = vrot.slane %v11279_v39, 5  ;;  %v1385_v14 = vld [vmem:[#allocation2 + $0xd4] sm:$0x1]  ;;  %v11199_v29 = vld [vmem:[%s17068_s1 + $0x218] sm:$0xff]  }
 0x3dc   :  { %v1386_v11 = vsel %vm11479_vm4, 0, %v1385_v14 }
 0x3dd   :  { %9880 = vmatmul.mubr.bf16.gmra.mrb[80].mxu0 %v15245_v2  ;;  %10128 = vmatmul.mubr.bf16.gmra.mrb[24].mxu1 %v15335_v9  ;;  %v4580_v53 = vrot.slane %v4578_v61, 4  ;;  %v4579_v45 = vsel %vm15004_vm3, %v8991_v26, %v4578_v61  ;;  %v11278_v61 = vld [vmem:[#allocation2 + $0x108] sm:$0xf]  ;;  %v11280_v26 = vld [vmem:[#allocation2 + $0x114] sm:$0xf]  ;;  %v4561_v6 = vsel %vm15004_vm3, %v4559_v60, %v4560_v56  ;;  %v4589_v36 = vsel %vm15004_vm3, %v4587_v33, %v4588_v46 }
 0x3de   :  { %9883 = vmatprep.mubr.bf16.mxu0 %v15278_v59  ;;  %10131 = vmatprep.mubr.bf16.mxu1 %v15340_v62  ;;  %v8992_v57 = vrot.slane %v11278_v61, 9  ;;  %v11282_v61 = vld [vmem:[#allocation2 + $0x124] sm:$0xf]  ;;  %1387 = vst [vmem:[#allocation2 + $0xd4] sm:$0x1] %v1386_v11 }
 0x3df   :  { %v4582_v25 = vsel %vm15004_vm3, %v4580_v53, %v4581_v47  ;;  %v4594_v53 = vrot.slane %v4592_v48, 4  ;;  %v8993_v47 = vrot.slane %v11280_v26, 9  ;;  %v4599_v51 = vrot.slane %v11282_v61, 5  ;;  %v11283_v26 = vld [vmem:[#allocation2 + $0x130] sm:$0xf] }
 0x3e0   :  { %v15376_v0 = vcombine.low %v4579_v45, %v4582_v25  ;;  %v4558_v25 = vsel %vm15004_vm3, %v8988_v22, %v4557_v63  ;;  %v11281_v45 = vld [vmem:[#allocation2 + $0x11c] sm:$0x1]  ;;  %v4606_v54 = vrot.slane %v11283_v26, 5  ;;  %v4586_v60 = vsel %vm15004_vm3, %v8992_v57, %v4585_v8 }
 0x3e1   :  { %v4595_v19 = vrot.slane %v11281_v45, 5  ;;  %v9020_v22 = vcombine.low %v4558_v25, %v4561_v6  ;;  %v15394_v63 = vcombine.low %v4586_v60, %v4589_v36  ;;  %v4593_v56 = vsel %vm15004_vm3, %v8993_v47, %v4592_v48  ;;  %v11285_v25 = vld [vmem:[#allocation2 + $0x128] sm:$0x1]  ;;  %v11286_v36 = vld [vmem:[#allocation2 + $0x12c] sm:$0xf] }
 0x3e2   :  { %v4601_v33 = vrot.slane %v4599_v51, 4  ;;  %v4608_v11 = vrot.slane %v4606_v54, 4  ;;  %v4602_v8 = vrot.slane %v11285_v25, 5  ;;  %v8995_v57 = vrot.slane %v11286_v36, 9  ;;  %v11287_v6 = vld [vmem:[#allocation2 + $0x134] sm:$0x1] }
 0x3e3   :  { %v4596_v39 = vsel %vm15004_vm3, %v4594_v53, %v4595_v19  ;;  %v11284_v53 = vld [vmem:[#allocation2 + $0x120] sm:$0xf]  ;;  %v4609_v45 = vrot.slane %v11287_v6, 5  ;;  %v11288_v47 = vld [vmem:[#allocation2 + $0x13c] sm:$0xf] }
 0x3e4   :  { %v15398_v14 = vcombine.low %v4593_v56, %v4596_v39  ;;  %v8994_v46 = vrot.slane %v11284_v53, 9  ;;  %v4603_v48 = vsel %vm15004_vm3, %v4601_v33, %v4602_v8  ;;  %v4613_v19 = vrot.slane %v11288_v47, 5  ;;  %v11289_v39 = vld [vmem:[#allocation2 + $0x148] sm:$0xf]  ;;  %v11292_v36 = vld [vmem:[#allocation2 + $0x144] sm:$0xf] }
 0x3e5   :  { %9884 = vmatmul.mubr.bf16.gmra.mrb[84].mxu0 %v15283_v40  ;;  %10132 = vmatmul.mubr.bf16.gmra.mrb[28].mxu1 %v15354_v24  ;;  %v4610_v61 = vsel %vm15004_vm3, %v4608_v11, %v4609_v45  ;;  %v4620_v26 = vrot.slane %v11289_v39, 5  ;;  %v4607_v56 = vsel %vm15004_vm3, %v8995_v57, %v4606_v54  ;;  %v11290_v11 = vld [vmem:[#allocation2 + $0x138] sm:$0xf]  ;;  %v8997_v6 = vrot.slane %v11292_v36, 9  ;;  %v11293_v45 = vld [vmem:[#allocation2 + $0x14c] sm:$0x1] }
 0x3e6   :  { %9887 = vmatprep.mubr.bf16.mxu0 %v15309_v18  ;;  %10135 = vmatprep.mubr.bf16.mxu1 %v15358_v4  ;;  %17965 = vst [vmem:[#allocation39_spill] sm:$0xff] %v15398_v14  ;;  %v15413_v53 = vcombine.low %v4607_v56, %v4610_v61  ;;  %v4615_v25 = vrot.slane %v4613_v19, 4  ;;  %v8996_v8 = vrot.slane %v11290_v11, 9  ;;  %v4623_v54 = vrot.slane %v11293_v45, 5  ;;  %v11295_v61 = vld [vmem:[#allocation2 + $0x160] sm:$0xf] }
 0x3e7   :  { %v4622_v33 = vrot.slane %v4620_v26, 4  ;;  %v4634_v39 = vrot.slane %v11295_v61, 5  ;;  %v4621_v11 = vsel %vm15004_vm3, %v8997_v6, %v4620_v26  ;;  %v11298_v45 = vld [vmem:[#allocation2 + $0x15c] sm:$0xf] }
 0x3e9   :  { %v4624_v47 = vsel %vm15004_vm3, %v4622_v33, %v4623_v54  ;;  %v11296_v33 = vld [vmem:[#allocation2 + $0x150] sm:$0xf]  ;;  %v8999_v54 = vrot.slane %v11298_v45, 9 }
 0x3ed   :  { %9888 = vmatmul.mubr.bf16.gmra.mrb[88].mxu0 %v15314_v16  ;;  %10136 = vmatmul.mubr.bf16.gmra.mrb[32].mxu1 %v15374_v50 }
 0x3ee   :  { %9891 = vmatprep.mubr.bf16.mxu0 %v15335_v9  ;;  %10139 = vmatprep.mubr.bf16.mxu1 %v15376_v0 }
 0x3f5   :  { %9892 = vmatmul.mubr.bf16.gmra.mrb[92].mxu0 %v15340_v62  ;;  %10140 = vmatmul.mubr.bf16.gmra.mrb[36].mxu1 %v15394_v63 }
 0x3f6   :  { %9895 = vmatprep.mubr.bf16.mxu0 %v9020_v22  ;;  %10143 = vmatprep.mubr.bf16.mxu1 %v15398_v14  ;;  %v4600_v22 = vsel %vm15004_vm3, %v8994_v46, %v4599_v51  ;;  %v11291_v51 = vld [vmem:[#allocation2 + $0x140] sm:$0x1] }
 0x3f7   :  { %v15409_v60 = vcombine.low %v4600_v22, %v4603_v48  ;;  %v4616_v46 = vrot.slane %v11291_v51, 5  ;;  %v11294_v48 = vld [vmem:[#allocation2 + $0x154] sm:$0xf]  ;;  %v4614_v22 = vsel %vm15004_vm3, %v8996_v8, %v4613_v19  ;;  %v15429_v51 = vcombine.low %v4621_v11, %v4624_v47  ;;  %v11297_v19 = vld [vmem:[#allocation2 + $0x158] sm:$0x1] }
 0x3f8   :  { %v4630_v8 = vrot.slane %v11297_v19, 5  ;;  %v4635_v19 = vsel %vm15004_vm3, %v8999_v54, %v4634_v39 }
 0x3f9   :  { %17966 = vst [vmem:[#allocation6_spill] sm:$0xff] %v15409_v60  ;;  %v4617_v57 = vsel %vm15004_vm3, %v4615_v25, %v4616_v46  ;;  %v4636_v25 = vrot.slane %v4634_v39, 4  ;;  %v8998_v46 = vrot.slane %v11296_v33, 9 }
 0x3fa   :  { %v15425_v56 = vcombine.low %v4614_v22, %v4617_v57  ;;  %v11299_v57 = vld [vmem:[#allocation2 + $0x164] sm:$0x1]  ;;  %v11301_v22 = vld [vmem:[#allocation2 + $0x178] sm:$0xf] }
 0x3fb   :  { %v4637_v26 = vrot.slane %v11299_v57, 5  ;;  %v4648_v11 = vrot.slane %v11301_v22, 5 }
 0x3fc   :  { %17967 = vst [vmem:[#allocation61_spill] sm:$0xff] %v15425_v56 }
 0x3fd   :  { %9896 = vmatmul.mubr.bf16.gmra.mrb[96].mxu0 %v15358_v4  ;;  %10144 = vmatmul.mubr.bf16.gmra.mrb[40].mxu1 %v15409_v60  ;;  %v4627_v4 = vrot.slane %v11294_v48, 5  ;;  %v11300_v48 = vld [vmem:[#allocation2 + $0x16c] sm:$0xf]  ;;  %v4638_v61 = vsel %vm15004_vm3, %v4636_v25, %v4637_v26  ;;  %v11302_v25 = vld [vmem:[#allocation2 + $0x168] sm:$0xf] }
 0x3fe   :  { %9899 = vmatprep.mubr.bf16.mxu0 %v15374_v50  ;;  %10147 = vmatprep.mubr.bf16.mxu1 %v15413_v53  ;;  %v4641_v47 = vrot.slane %v11300_v48, 5  ;;  %v15445_v45 = vcombine.low %v4635_v19, %v4638_v61  ;;  %v11306_v48 = vld [vmem:[#allocation2 + $0x184] sm:$0xf]  ;;  %v11307_v19 = vld [vmem:[#allocation2 + $0x190] sm:$0xf] }
 0x3ff   :  { %v4629_v36 = vrot.slane %v4627_v4, 4  ;;  %v4628_v32 = vsel %vm15004_vm3, %v8998_v46, %v4627_v4  ;;  %v11303_v4 = vld [vmem:[#allocation2 + $0x170] sm:$0x1]  ;;  %v11304_v46 = vld [vmem:[#allocation2 + $0x174] sm:$0xf]  ;;  %v4655_v61 = vrot.slane %v11306_v48, 5 }
 0x400   :  { %v4643_v57 = vrot.slane %v4641_v47, 4  ;;  %v9001_v26 = vrot.slane %v11304_v46, 9  ;;  %v11312_v48 = vld [vmem:[#allocation2 + $0x19c] sm:$0xf] }
 0x401   :  { %v4631_v6 = vsel %vm15004_vm3, %v4629_v36, %v4630_v8  ;;  %v4650_v36 = vrot.slane %v4648_v11, 4  ;;  %v9000_v8 = vrot.slane %v11302_v25, 9 }
 0x402   :  { %v15441_v33 = vcombine.low %v4628_v32, %v4631_v6  ;;  %v4644_v32 = vrot.slane %v11303_v4, 5  ;;  %v11305_v6 = vld [vmem:[#allocation2 + $0x17c] sm:$0x1]  ;;  %v4649_v4 = vsel %vm15004_vm3, %v9001_v26, %v4648_v11 }
 0x403   :  { %v4651_v39 = vrot.slane %v11305_v6, 5  ;;  %v4657_v6 = vrot.slane %v4655_v61, 4 }
 0x404   :  { %v4645_v54 = vsel %vm15004_vm3, %v4643_v57, %v4644_v32 }
 0x405   :  { %9900 = vmatmul.mubr.bf16.gmra.mrb[100].mxu0 %v15376_v0  ;;  %10148 = vmatmul.mubr.bf16.gmra.mrb[44].mxu1 %v15425_v56  ;;  %v4652_v22 = vsel %vm15004_vm3, %v4650_v36, %v4651_v39  ;;  %v11308_v36 = vld [vmem:[#allocation2 + $0x180] sm:$0xf] }
 0x406   :  { %9903 = vmatprep.mubr.bf16.mxu0 %v15394_v63  ;;  %10151 = vmatprep.mubr.bf16.mxu1 %v15429_v51  ;;  %v15461_v46 = vcombine.low %v4649_v4, %v4652_v22  ;;  %v9002_v32 = vrot.slane %v11308_v36, 9  ;;  %v6125_v22 = vrot.slane %v11312_v48, 5  ;;  %v17983_v48 = vld [vmem:[#allocation40_spill] sm:$0xff] }
 0x408   :  { %v4656_v4 = vsel %vm15004_vm3, %v9002_v32, %v4655_v61  ;;  %v6128_v61 = vrot.slane %v15127_v34, 5  ;;  %v11197_v34 = vld [vmem:[%s17068_s1 + $0x208] sm:$0xff]  }
 0x40d   :  { %9904 = vmatmul.mubr.bf16.gmra.mrb[104].mxu0 %v15398_v14  ;;  %10152 = vmatmul.mubr.bf16.gmra.mrb[48].mxu1 %v15441_v33  ;;  %v4642_v14 = vsel %vm15004_vm3, %v9000_v8, %v4641_v47  ;;  %v11309_v47 = vld [vmem:[#allocation2 + $0x188] sm:$0x1]  ;;  %v11310_v8 = vld [vmem:[#allocation2 + $0x18c] sm:$0xf] }
 0x40e   :  { %9907 = vmatprep.mubr.bf16.mxu0 %v15409_v60  ;;  %10155 = vmatprep.mubr.bf16.mxu1 %v15445_v45  ;;  %v4662_v60 = vrot.slane %v11307_v19, 5  ;;  %v15457_v25 = vcombine.low %v4642_v14, %v4645_v54  ;;  %v4658_v14 = vrot.slane %v11309_v47, 5  ;;  %v9003_v39 = vrot.slane %v11310_v8, 9  ;;  %v11311_v54 = vld [vmem:[#allocation2 + $0x194] sm:$0x1] }
 0x40f   :  { %v4665_v11 = vrot.slane %v11311_v54, 5  ;;  %v6127_v8 = vrot.slane %v6125_v22, 4 }
 0x410   :  { %v4664_v57 = vrot.slane %v4662_v60, 4  ;;  %v4659_v26 = vsel %vm15004_vm3, %v4657_v6, %v4658_v14  ;;  %v4663_v36 = vsel %vm15004_vm3, %v9003_v39, %v4662_v60  ;;  %v11313_v6 = vld [vmem:[#allocation2 + $0x198] sm:$0xf]  ;;  %v1329_v39 = vld [vmem:[#allocation2 + $0x1a4] sm:$0x1] }
 0x411   :  { %v6129_v32 = vsel %vm15004_vm3, %v6127_v8, %v6128_v61  ;;  %v1330_v54 = vsel %vm11469_vm2, 0, %v1329_v39 }
 0x412   :  { %v4666_v19 = vsel %vm15004_vm3, %v4664_v57, %v4665_v11  ;;  %v9065_v57 = vrot.slane %v11313_v6, 9  ;;  %1331 = vst [vmem:[#allocation2 + $0x1a4] sm:$0x1] %v1330_v54  ;;  %v17986_v54 = vld [vmem:[#allocation22_spill] sm:$0xff] }
 0x413   :  { %v15477_v47 = vcombine.low %v4663_v36, %v4666_v19 }
 0x414   :  { %v6126_v60 = vsel %vm15004_vm3, %v9065_v57, %v6125_v22  ;;  %v15609_v22 = vld [vmem:[#allocation2 + $0x1a8] sm:$0xf] }
 0x415   :  { %9908 = vmatmul.mubr.bf16.gmra.mrb[108].mxu0 %v15413_v53  ;;  %10156 = vmatmul.mubr.bf16.gmra.mrb[52].mxu1 %v15457_v25  ;;  %v15488_v14 = vcombine.low %v6126_v60, %v6129_v32  ;;  %v1439_v60 = vld [vmem:[#allocation2 + $0x1ac] sm:$0x1] }
 0x416   :  { %9911 = vmatprep.mubr.bf16.mxu0 %v15425_v56  ;;  %10159 = vmatprep.mubr.bf16.mxu1 %v15461_v46  ;;  %v15473_v56 = vcombine.low %v4656_v4, %v4659_v26  ;;  %v17982_v26 = vld [vmem:[#allocation14_spill] sm:$0xff]  ;;  %v1440_v39 = vsel %vm11479_vm4, 0, %v1439_v60 }
 0x417   :  { %1441 = vst [vmem:[#allocation2 + $0x1ac] sm:$0x1] %v1440_v39 }
 0x41d   :  { %9912 = vmatmul.mubr.bf16.gmra.mrb[112].mxu0 %v15429_v51  ;;  %10160 = vmatmul.mubr.bf16.gmra.mrb[56].mxu1 %v15473_v56 }
 0x41e   :  { %9915 = vmatprep.mubr.bf16.mxu0 %v15441_v33  ;;  %10163 = vmatprep.mubr.bf16.mxu1 %v15477_v47 }
 0x425   :  { %9916 = vmatmul.mubr.bf16.gmra.mrb[116].mxu0 %v15445_v45  ;;  %10164 = vmatmul.mubr.bf16.gmra.mrb[60].mxu1 %v15488_v14 }
 0x426   :  { %9919 = vmatprep.mubr.bf16.mxu0 %v15457_v25  ;;  %10183 = vmatprep.mubr.bf16.mxu1 %v14249_v5  ;;  %v11198_v5 = vld [vmem:[%s17068_s1 + $0x210] sm:$0xff]  }
 0x42d   :  { %9920 = vmatmul.mubr.bf16.gmra.mrb[120].mxu0 %v15461_v46  ;;  %10184 = vmatmul.mubr.bf16.vlgmr.msra.gmra.mrb[0].mxu1 %v14258_v41  ;;  %v11201_v41 = vld [vmem:[%s17068_s1 + $0x220] sm:$0xff]  }
 0x42e   :  { %9923 = vmatprep.mubr.bf16.mxu0 %v15473_v56  ;;  %10248 = vmatpush3.bf16.msra.mxu1 %v15272_v23  ;;  %v17979_v23 = vld [vmem:[#allocation44_spill] sm:$0xff] }
 0x42f   :  { %10187 = vmatprep.mubr.bf16.mxu1 %v14297_v30  ;;  %10249 = vmatprep.subr.bf16.mxu1 %v11197_v34  ;;  %v11202_v30 = vld [vmem:[%s17068_s1 + $0x228] sm:$0xff]  }
 0x432   :  { %10250 = vmatpush3.bf16.msra.mxu1 %v11197_v34  ;;  %v18007_v34 = vld [vmem:[#allocation30_spill] sm:$0xff] }
 0x433   :  { %10251 = vmatprep.subr.bf16.mxu1 %v11198_v5 }
 0x435   :  { %9924 = vmatmul.mubr.bf16.gmra.mrb[124].mxu0 %v15477_v47  ;;  %10188 = vmatmul.mubr.bf16.gmra.mrb[4].mxu1 %v14310_v3  ;;  %v11203_v3 = vld [vmem:[%s17068_s1 + $0x230] sm:$0xff]  }
 0x436   :  { %10343 = vmatprep.mubr.bf16.mxu0 %v15015_v27  ;;  %10191 = vmatprep.mubr.bf16.mxu1 %v14351_v49  ;;  %v11204_v49 = vld [vmem:[%s17068_s1 + $0x238] sm:$0xff]  }
 0x437   :  { %10252 = vmatpush3.bf16.msra.mxu1 %v11198_v5  ;;  %v17987_v5 = vld [vmem:[#allocation53_spill] sm:$0xff] }
 0x438   :  { %10253 = vmatprep.subr.bf16.mxu1 %v11199_v29 }
 0x43b   :  { %10254 = vmatpush3.bf16.msra.mxu1 %v11199_v29  ;;  %v17988_v29 = vld [vmem:[#allocation23_spill] sm:$0xff] }
 0x43c   :  { %10255 = vmatprep.subr.bf16.mxu1 %v11201_v41 }
 0x43d   :  { %10344 = vmatmul.mubr.bf16.vlgmr.msra.gmra.mrb[128].mxu0 %v15167_v55  ;;  %10192 = vmatmul.mubr.bf16.gmra.mrb[8].mxu1 %v14355_v35  ;;  %v17968_v35 = vld [vmem:[#allocation29_spill] sm:$0xff]  ;;  %v17969_v55 = vld [vmem:[#allocation48_spill] sm:$0xff] }
 0x43e   :  { %10347 = vmatprep.mubr.bf16.mxu0 %v15185_v42  ;;  %10195 = vmatprep.mubr.bf16.mxu1 %v14370_v52  ;;  %v15547_v52 = vld [vmem:[#allocation2 + $0xcc] sm:$0xf]  ;;  %v17970_v42 = vld [vmem:[#allocation46_spill] sm:$0xff] }
 0x43f   :  { %10256 = vmatpush3.bf16.msra.mxu1 %v11201_v41 }
 0x440   :  { %10257 = vmatprep.subr.bf16.mxu1 %v11202_v30 }
 0x443   :  { %10258 = vmatpush3.bf16.msra.mxu1 %v11202_v30 }
 0x444   :  { %10259 = vmatprep.subr.bf16.mxu1 %v11203_v3 }
 0x445   :  { %10348 = vmatmul.mubr.bf16.gmra.mrb[132].mxu0 %v15189_v21  ;;  %10196 = vmatmul.mubr.bf16.gmra.mrb[12].mxu1 %v14374_v37  ;;  %v15549_v37 = vld [vmem:[#allocation2 + $0xd0] sm:$0xf]  ;;  %v15557_v21 = vld [vmem:[#allocation2 + $0xd4] sm:$0x1] }
 0x446   :  { %10351 = vmatprep.mubr.bf16.mxu0 %v15206_v31  ;;  %10199 = vmatprep.mubr.bf16.mxu1 %v14414_v1  ;;  %v9076_v1 = vcombine.low %v15547_v52, %v15549_v37  ;;  %v17972_v31 = vld [vmem:[#allocation55_spill] sm:$0xff]  ;;  %v6998_v60 = vshrl.u32 %v15549_v37, 16  ;;  %v6994_v39 = vshll.u32 %v15549_v37, 16 }
 0x447   :  { %10260 = vmatpush3.bf16.msra.mxu1 %v11203_v3 }
 0x448   :  { %10261 = vmatprep.subr.bf16.mxu1 %v11204_v49 }
 0x44b   :  { %10262 = vmatpush3.bf16.msra.mxu1 %v11204_v49 }
 0x44c   :  { %10525 = vmatprep.subr.bf16.mxu1 %v15135_v43 }
 0x44d   :  { %10352 = vmatmul.mubr.bf16.gmra.mrb[136].mxu0 %v15210_v28  ;;  %10200 = vmatmul.mubr.bf16.gmra.mrb[16].mxu1 %v14492_v13  ;;  %v7461_v13 = vrot.slane %v15549_v37, 5  ;;  %v17973_v28 = vld [vmem:[#allocation39_spill] sm:$0xff]  ;;  %v7004_v37 = vshll.u32 %v15557_v21, 16 }
 0x44e   :  { %10355 = vmatprep.mubr.bf16.mxu0 %v15240_v38  ;;  %10203 = vmatprep.mubr.bf16.mxu1 %v14516_v17  ;;  %v9096_v17 = vrot.slane %v15547_v52, 9  ;;  %v17976_v38 = vld [vmem:[#allocation28_spill] sm:$0xff] }
 0x44f   :  { %v7463_v27 = vrot.slane %v7461_v13, 4 }
 0x455   :  { %10356 = vmatmul.mubr.bf16.gmra.mrb[140].mxu0 %v15245_v2  ;;  %10204 = vmatmul.mubr.bf16.gmra.mrb[20].mxu1 %v17928_v7  ;;  %v7464_v7 = vrot.slane %v15557_v21, 5  ;;  %v17977_v2 = vld [vmem:[#allocation42_spill] sm:$0xff] }
 0x456   :  { %10359 = vmatprep.mubr.bf16.mxu0 %v15278_v59  ;;  %10207 = vmatprep.mubr.bf16.mxu1 %v17929_v20  ;;  %v7462_v20 = vsel %vm15004_vm3, %v9096_v17, %v7461_v13  ;;  %v17991_v13 = vld [vmem:[#allocation56_spill] sm:$0xff] }
 0x45d   :  { %10360 = vmatmul.mubr.bf16.gmra.mrb[144].mxu0 %v15283_v40  ;;  %10208 = vmatmul.mubr.bf16.gmra.mrb[24].mxu1 %v17933_v10  ;;  %v7465_v10 = vsel %vm15004_vm3, %v7463_v27, %v7464_v7  ;;  %v17974_v40 = vld [vmem:[#allocation59_spill] sm:$0xff] }
 0x45e   :  { %10363 = vmatprep.mubr.bf16.mxu0 %v15309_v18  ;;  %10211 = vmatprep.mubr.bf16.mxu1 %v17968_v35  ;;  %v17978_v18 = vld [vmem:[#allocation61_spill] sm:$0xff]  ;;  %v17989_v35 = vld [vmem:[#allocation36_spill] sm:$0xff] }
 0x465   :  { %10364 = vmatmul.mubr.bf16.gmra.mrb[148].mxu0 %v15314_v16  ;;  %10212 = vmatmul.mubr.bf16.gmra.mrb[28].mxu1 %v9076_v1  ;;  %v17990_v1 = vld [vmem:[#allocation54_spill] sm:$0xff] }
 0x466   :  { %10367 = vmatprep.mubr.bf16.mxu0 %v15335_v9  ;;  %10215 = vmatprep.mubr.bf16.mxu1 %v17938_v58  ;;  %v9098_v58 = vcombine.low %v7462_v20, %v7465_v10  ;;  %v17993_v10 = vld [vmem:[#allocation26_spill] sm:$0xff] }
 0x46d   :  { %10368 = vmatmul.mubr.bf16.gmra.mrb[152].mxu0 %v15340_v62  ;;  %10216 = vmatmul.mubr.bf16.gmra.mrb[32].mxu1 %v17940_v12  ;;  %v17971_v12 = vld [vmem:[#allocation20_spill] sm:$0xff] }
 0x46e   :  { %10371 = vmatprep.mubr.bf16.mxu0 %v15354_v24  ;;  %10219 = vmatprep.mubr.bf16.mxu1 %v17942_v15  ;;  %v17975_v15 = vld [vmem:[#allocation6_spill] sm:$0xff] }
 0x46f   :  { %v17980_v24 = vld [vmem:[#allocation18_spill] sm:$0xff] }
 0x475   :  { %10372 = vmatmul.mubr.bf16.gmra.mrb[156].mxu0 %v9098_v58  ;;  %10220 = vmatmul.mubr.bf16.gmra.mrb[36].mxu1 %v17969_v55  ;;  %v17994_v58 = vld [vmem:[#allocation24_spill] sm:$0xff]  ;;  %v17995_v55 = vld [vmem:[#allocation21_spill] sm:$0xff] }
 0x476   :  { %10375 = vmatprep.mubr.bf16.mxu0 %v15374_v50  ;;  %10223 = vmatprep.mubr.bf16.mxu1 %v17970_v42  ;;  %v17981_v50 = vld [vmem:[#allocation27_spill] sm:$0xff]  ;;  %v17996_v42 = vld [vmem:[#allocation10_spill] sm:$0xff] }
 0x47d   :  { %10376 = vmatmul.mubr.bf16.gmra.mrb[160].mxu0 %v15376_v0  ;;  %10224 = vmatmul.mubr.bf16.gmra.mrb[40].mxu1 %v17971_v12 }
 0x47e   :  { %10379 = vmatprep.mubr.bf16.mxu0 %v15394_v63  ;;  %10227 = vmatprep.mubr.bf16.mxu1 %v17972_v31 }
 0x485   :  { %10380 = vmatmul.mubr.bf16.gmra.mrb[164].mxu0 %v17973_v28  ;;  %10228 = vmatmul.mubr.bf16.gmra.mrb[44].mxu1 %v17974_v40 }
 0x486   :  { %10383 = vmatprep.mubr.bf16.mxu0 %v17975_v15  ;;  %10231 = vmatprep.mubr.bf16.mxu1 %v17976_v38  ;;  %v17998_v15 = vld [vmem:[#allocation12_spill] sm:$0xff]  ;;  %v17999_v38 = vld [vmem:[#allocation58_spill] sm:$0xff] }
 0x48d   :  { %10384 = vmatmul.mubr.bf16.gmra.mrb[168].mxu0 %v15413_v53  ;;  %10232 = vmatmul.mubr.bf16.gmra.mrb[48].mxu1 %v17977_v2  ;;  %v18000_v2 = vld [vmem:[#allocation25_spill] sm:$0xff] }
 0x48e   :  { %10387 = vmatprep.mubr.bf16.mxu0 %v17978_v18  ;;  %10235 = vmatprep.mubr.bf16.mxu1 %v17979_v23  ;;  %v18001_v18 = vld [vmem:[#allocation16_spill] sm:$0xff] }
 0x490   :  { %v15584_v59 = vpop.f32.mrb[64].mxu0 }
 0x491   :  { %v15586_v16 = vpop.f32.mrb[65].mxu0 }
 0x492   :  { %v15588_v9 = vpop.f32.mrb[66].mxu0 }
 0x493   :  { %v15590_v62 = vpop.f32.mrb[67].mxu0 }
 0x495   :  { %10388 = vmatmul.mubr.bf16.gmra.mrb[172].mxu0 %v15429_v51  ;;  %10236 = vmatmul.mubr.bf16.gmra.mrb[52].mxu1 %v17980_v24  ;;  %v15607_v51 = vld [vmem:[#allocation2 + $0x1a4] sm:$0xf] }
 0x496   :  { %10391 = vmatprep.mubr.bf16.mxu0 %v15441_v33  ;;  %10239 = vmatprep.mubr.bf16.mxu1 %v17981_v50  ;;  %v9077_v4 = vcombine.low %v15607_v51, %v15609_v22 }
 0x498   :  { %v15596_v0 = vpop.f32.mrb[68].mxu0 }
 0x499   :  { %v15598_v63 = vpop.f32.mrb[69].mxu0 }
 0x49a   :  { %v15600_v53 = vpop.f32.mrb[70].mxu0 }
 0x49b   :  { %v15602_v11 = vpop.f32.mrb[71].mxu0 }
 0x49d   :  { %10392 = vmatmul.mubr.bf16.gmra.mrb[176].mxu0 %v15445_v45  ;;  %10240 = vmatmul.mubr.bf16.gmra.mrb[56].mxu1 %v17982_v26  ;;  %v17984_v45 = vld [vmem:[#allocation52_spill] sm:$0xff] }
 0x49e   :  { %10243 = vmatprep.mubr.bf16.mxu1 %v17983_v48  ;;  %v18006_v48 = vld [vmem:[#allocation8_spill] sm:$0xff] }
 0x4a0   :  { %v15611_v33 = vpop.f32.mrb[72].mxu0 }
 0x4a1   :  { %v15613_v19 = vpop.f32.mrb[73].mxu0 }
 0x4a2   :  { %v15617_v36 = vpop.f32.mrb[74].mxu0 }
 0x4a3   :  { %v15619_v8 = vpop.f32.mrb[75].mxu0 }
 0x4a5   :  { %10244 = vmatmul.mubr.bf16.gmra.mrb[60].mxu1 %v9077_v4  ;;  %v6985_v4 = vshrl.u32 %v15547_v52, 16 }
 0x4a6   :  { %10263 = vmatprep.mubr.bf16.mxu1 %v17984_v45  ;;  %v6988_v45 = vshll.u32 %v15547_v52, 16  ;;  %v18013_v52 = vld [vmem:[#allocation37_spill] sm:$0xff] }
 0x4a8   :  { %v15622_v6 = vpop.f32.mrb[76].mxu0 }
 0x4a9   :  { %v15624_v57 = vpop.f32.mrb[77].mxu0 }
 0x4aa   :  { %v15626_v61 = vpop.f32.mrb[78].mxu0 }
 0x4ab   :  { %v15628_v32 = vpop.f32.mrb[79].mxu0 }
 0x4ad   :  { %10264 = vmatmul.mubr.bf16.vlgmr.msra.gmra.mrb[0].mxu1 %v17986_v54 }
 0x4ae   :  { %10533 = vmatpush3.bf16.msra.mxu1 %v15135_v43  ;;  %10267 = vmatprep.mubr.bf16.mxu1 %v17987_v5  ;;  %v17992_v43 = vld [vmem:[#allocation43_spill] sm:$0xff] }
 0x4af   :  { %10526 = vmatprep.subr.bf16.mxu1 %v17988_v29 }
 0x4b0   :  { %v15636_v41 = vpop.f32.mrb[80].mxu0 }
 0x4b1   :  { %v15638_v30 = vpop.f32.mrb[81].mxu0 }
 0x4b2   :  { %v15640_v3 = vpop.f32.mrb[82].mxu0  ;;  %10534 = vmatpush3.bf16.msra.mxu1 %v17988_v29 }
 0x4b3   :  { %v15643_v49 = vpop.f32.mrb[83].mxu0  ;;  %10527 = vmatprep.subr.bf16.mxu1 %v17989_v35 }
 0x4b5   :  { %10268 = vmatmul.mubr.bf16.gmra.mrb[4].mxu1 %v17990_v1  ;;  %v6990_v1 = vrot.slane %v6988_v45, 5 }
 0x4b6   :  { %10271 = vmatprep.mubr.bf16.mxu1 %v17991_v13  ;;  %10535 = vmatpush3.bf16.msra.mxu1 %v17989_v35  ;;  %v6987_v35 = vrot.slane %v6985_v4, 4  ;;  %v6996_v13 = vrot.slane %v6994_v39, 5  ;;  %v7006_v4 = vrot.slane %v7004_v37, 5 }
 0x4b7   :  { %10528 = vmatprep.subr.bf16.mxu1 %v17992_v43 }
 0x4b8   :  { %v15650_v17 = vpop.f32.mrb[84].mxu0 }
 0x4b9   :  { %v15652_v27 = vpop.f32.mrb[85].mxu0 }
 0x4ba   :  { %v15654_v7 = vpop.f32.mrb[86].mxu0  ;;  %10536 = vmatpush3.bf16.msra.mxu1 %v17992_v43  ;;  %v7000_v43 = vrot.slane %v6998_v60, 4  ;;  %v18018_v60 = vld [vmem:[#allocation33_spill] sm:$0xff] }
 0x4bb   :  { %v15657_v20 = vpop.f32.mrb[87].mxu0  ;;  %10529 = vmatprep.subr.bf16.mxu1 %v17993_v10 }
 0x4bd   :  { %10272 = vmatmul.mubr.bf16.gmra.mrb[8].mxu1 %v17994_v58  ;;  %v18012_v58 = vld [vmem:[#allocation11_spill] sm:$0xff] }
 0x4be   :  { %10275 = vmatprep.mubr.bf16.mxu1 %v17995_v55  ;;  %10537 = vmatpush3.bf16.msra.mxu1 %v17993_v10  ;;  %v6991_v55 = vor.u32 %v6990_v1, %v6987_v35 }
 0x4bf   :  { %10530 = vmatprep.subr.bf16.mxu1 %v17996_v42 }
 0x4c0   :  { %v15664_v12 = vpop.f32.mrb[88].mxu0 }
 0x4c1   :  { %v15666_v31 = vpop.f32.mrb[89].mxu0 }
 0x4c2   :  { %v15668_v28 = vpop.f32.mrb[90].mxu0  ;;  %10538 = vmatpush3.bf16.msra.mxu1 %v17996_v42  ;;  %v7001_v42 = vor.u32 %v7000_v43, %v6996_v13 }
 0x4c3   :  { %v15671_v40 = vpop.f32.mrb[91].mxu0  ;;  %10531 = vmatprep.subr.bf16.mxu1 %v17998_v15 }
 0x4c4   :  { %17997 = vst [vmem:[#allocation29_spill] sm:$0xff] %v15671_v40 }
 0x4c5   :  { %10276 = vmatmul.mubr.bf16.gmra.mrb[12].mxu1 %v17999_v38 }
 0x4c6   :  { %10279 = vmatprep.mubr.bf16.mxu1 %v18000_v2  ;;  %10539 = vmatpush3.bf16.msra.mxu1 %v17998_v15 }
 0x4c7   :  { %10532 = vmatprep.subr.bf16.mxu1 %v18001_v18 }
 0x4c8   :  { %v15678_v23 = vpop.f32.mrb[92].mxu0 }
 0x4c9   :  { %18002 = vst [vmem:[#allocation48_spill] sm:$0xff] %v15678_v23  ;;  %v15680_v24 = vpop.f32.mrb[93].mxu0 }
 0x4ca   :  { %18003 = vst [vmem:[#allocation46_spill] sm:$0xff] %v15680_v24  ;;  %v15682_v50 = vpop.f32.mrb[94].mxu0  ;;  %10540 = vmatpush3.bf16.msra.mxu1 %v18001_v18  ;;  %v6992_v18 = vrot.slane %v6991_v55, 4 }
 0x4cb   :  { %18004 = vst [vmem:[#allocation20_spill] sm:$0xff] %v15682_v50  ;;  %v15685_v26 = vpop.f32.mrb[95].mxu0 }
 0x4cc   :  { %18005 = vst [vmem:[#allocation55_spill] sm:$0xff] %v15685_v26  ;;  %v6997_v35 = vsel %vm14284_vm14, %v6992_v18, %v6996_v13 }
 0x4cd   :  { %10280 = vmatmul.mubr.bf16.gmra.mrb[16].mxu1 %v18006_v48  ;;  %v7002_v48 = vrot.slane %v7001_v42, 4  ;;  %v18025_v42 = vld [vmem:[#allocation49_spill] sm:$0xff] }
 0x4ce   :  { %10283 = vmatprep.mubr.bf16.mxu1 %v18007_v34  ;;  %v18019_v34 = vld [vmem:[#allocation60_spill] sm:$0xff] }
 0x4cf   :  { %v7007_v21 = vsel %vm14284_vm14, %v7002_v48, %v7006_v4  ;;  %v18030_v48 = vld [vmem:[#allocation51_spill] sm:$0xff]  ;;  %v18031_v4 = vld [vmem:[#allocation9_spill] sm:$0xff] }
 0x4d0   :  { %v15693_v54 = vpop.f32.mrb[96].mxu0 }
 0x4d1   :  { %18008 = vst [vmem:[#allocation39_spill] sm:$0xff] %v15693_v54  ;;  %v15695_v5 = vpop.f32.mrb[97].mxu0  ;;  %v18059_v54 = vld [vmem:[#allocation57_spill] sm:$0xff] }
 0x4d2   :  { %18009 = vst [vmem:[#allocation59_spill] sm:$0xff] %v15695_v5  ;;  %v15697_v29 = vpop.f32.mrb[98].mxu0  ;;  %v18058_v5 = vld [vmem:[#allocation17_spill] sm:$0xff] }
 0x4d3   :  { %18010 = vst [vmem:[#allocation6_spill] sm:$0xff] %v15697_v29  ;;  %v15699_v10 = vpop.f32.mrb[99].mxu0 }
 0x4d4   :  { %18011 = vst [vmem:[#allocation28_spill] sm:$0xff] %v15699_v10 }
 0x4d5   :  { %10284 = vmatmul.mubr.bf16.gmra.mrb[20].mxu1 %v18012_v58  ;;  %v9086_v58 = vcombine.low %v6997_v35, %v7007_v21 }
 0x4d6   :  { %10287 = vmatprep.mubr.bf16.mxu1 %v18013_v52 }
 0x4d8   :  { %v15704_v15 = vpop.f32.mrb[100].mxu0 }
 0x4d9   :  { %18014 = vst [vmem:[#allocation42_spill] sm:$0xff] %v15704_v15  ;;  %v15706_v38 = vpop.f32.mrb[101].mxu0 }
 0x4da   :  { %18015 = vst [vmem:[#allocation61_spill] sm:$0xff] %v15706_v38  ;;  %v15708_v2 = vpop.f32.mrb[102].mxu0 }
 0x4db   :  { %18016 = vst [vmem:[#allocation44_spill] sm:$0xff] %v15708_v2  ;;  %v15710_v45 = vpop.f32.mrb[103].mxu0 }
 0x4dc   :  { %18017 = vst [vmem:[#allocation18_spill] sm:$0xff] %v15710_v45  ;;  %v18057_v45 = vld [vmem:[#allocation19_spill] sm:$0xff] }
 0x4dd   :  { %10288 = vmatmul.mubr.bf16.gmra.mrb[24].mxu1 %v18018_v60 }
 0x4de   :  { %10291 = vmatprep.mubr.bf16.mxu1 %v18019_v34 }
 0x4e0   :  { %v15718_v1 = vpop.f32.mrb[104].mxu0 }
 0x4e1   :  { %18021 = vst [vmem:[#allocation27_spill] sm:$0xff] %v15718_v1  ;;  %v15720_v43 = vpop.f32.mrb[105].mxu0  ;;  %v18056_v1 = vld [vmem:[#allocation34_spill] sm:$0xff] }
 0x4e2   :  { %18022 = vst [vmem:[#allocation14_spill] sm:$0xff] %v15720_v43  ;;  %v15722_v52 = vpop.f32.mrb[106].mxu0  ;;  %v2610_v43 = vld [vmem:[#allocation2 + $0x1ac] sm:$0x1] }
 0x4e3   :  { %18023 = vst [vmem:[#allocation40_spill] sm:$0xff] %v15722_v52  ;;  %v15724_v55 = vpop.f32.mrb[107].mxu0  ;;  %v7028_v38 = vshll.u32 %v2610_v43, 16 }
 0x4e4   :  { %18024 = vst [vmem:[#allocation52_spill] sm:$0xff] %v15724_v55 }
 0x4e5   :  { %10292 = vmatmul.mubr.bf16.gmra.mrb[28].mxu1 %v9086_v58 }
 0x4e6   :  { %10295 = vmatprep.mubr.bf16.mxu1 %v18025_v42  ;;  %v18036_v42 = vld [vmem:[#allocation41_spill] sm:$0xff] }
 0x4e8   :  { %v15727_v37 = vpop.f32.mrb[108].mxu0 }
 0x4e9   :  { %18026 = vst [vmem:[#allocation7_spill] sm:$0xff] %v15727_v37  ;;  %v15729_v60 = vpop.f32.mrb[109].mxu0  ;;  %v18037_v37 = vld [vmem:[#allocation45_spill] sm:$0xff] }
 0x4ea   :  { %18027 = vst [vmem:[#allocation22_spill] sm:$0xff] %v15729_v60  ;;  %v15731_v13 = vpop.f32.mrb[110].mxu0 }
 0x4eb   :  { %18028 = vst [vmem:[#allocation53_spill] sm:$0xff] %v15731_v13  ;;  %v15733_v18 = vpop.f32.mrb[111].mxu0 }
 0x4ec   :  { %18029 = vst [vmem:[#allocation23_spill] sm:$0xff] %v15733_v18 }
 0x4ed   :  { %10296 = vmatmul.mubr.bf16.gmra.mrb[32].mxu1 %v18030_v48 }
 0x4ee   :  { %10299 = vmatprep.mubr.bf16.mxu1 %v18031_v4  ;;  %v18042_v4 = vld [vmem:[#allocation13_spill] sm:$0xff] }
 0x4f0   :  { %v15737_v34 = vpop.f32.mrb[112].mxu0 }
 0x4f1   :  { %18032 = vst [vmem:[#allocation36_spill] sm:$0xff] %v15737_v34  ;;  %v15739_v35 = vpop.f32.mrb[113].mxu0  ;;  %v18043_v34 = vld [vmem:[#allocation15_spill] sm:$0xff] }
 0x4f2   :  { %18033 = vst [vmem:[#allocation54_spill] sm:$0xff] %v15739_v35  ;;  %v15741_v21 = vpop.f32.mrb[114].mxu0 }
 0x4f3   :  { %18034 = vst [vmem:[#allocation56_spill] sm:$0xff] %v15741_v21  ;;  %v15743_v58 = vpop.f32.mrb[115].mxu0 }
 0x4f4   :  { %18035 = vst [vmem:[#allocation43_spill] sm:$0xff] %v15743_v58 }
 0x4f5   :  { %10300 = vmatmul.mubr.bf16.gmra.mrb[36].mxu1 %v18036_v42 }
 0x4f6   :  { %10303 = vmatprep.mubr.bf16.mxu1 %v18037_v37  ;;  %v18048_v37 = vld [vmem:[#allocation32_spill] sm:$0xff] }
 0x4f8   :  { %v15747_v60 = vpop.f32.mrb[116].mxu0 }
 0x4f9   :  { %18038 = vst [vmem:[#allocation26_spill] sm:$0xff] %v15747_v60  ;;  %v15749_v13 = vpop.f32.mrb[117].mxu0  ;;  %v18049_v60 = vld [vmem:[#allocation35_spill] sm:$0xff] }
 0x4fa   :  { %18039 = vst [vmem:[#allocation24_spill] sm:$0xff] %v15749_v13  ;;  %v15751_v18 = vpop.f32.mrb[118].mxu0 }
 0x4fb   :  { %18040 = vst [vmem:[#allocation21_spill] sm:$0xff] %v15751_v18  ;;  %v15753_v48 = vpop.f32.mrb[119].mxu0 }
 0x4fc   :  { %18041 = vst [vmem:[#allocation10_spill] sm:$0xff] %v15753_v48 }
 0x4fd   :  { %10304 = vmatmul.mubr.bf16.gmra.mrb[40].mxu1 %v18042_v4 }
 0x4fe   :  { %10307 = vmatprep.mubr.bf16.mxu1 %v18043_v34  ;;  %v18054_v34 = vld [vmem:[#allocation38_spill] sm:$0xff] }
 0x500   :  { %v15757_v35 = vpop.f32.mrb[120].mxu0 }
 0x501   :  { %18044 = vst [vmem:[#allocation12_spill] sm:$0xff] %v15757_v35  ;;  %v15759_v21 = vpop.f32.mrb[121].mxu0  ;;  %v18055_v35 = vld [vmem:[#allocation47_spill] sm:$0xff] }
 0x502   :  { %18045 = vst [vmem:[#allocation58_spill] sm:$0xff] %v15759_v21  ;;  %v15761_v58 = vpop.f32.mrb[122].mxu0  ;;  %v7009_v21 = vshrl.u32 %v15607_v51, 16 }
 0x503   :  { %18046 = vst [vmem:[#allocation25_spill] sm:$0xff] %v15761_v58  ;;  %v15763_v42 = vpop.f32.mrb[123].mxu0  ;;  %v7012_v58 = vshll.u32 %v15607_v51, 16 }
 0x504   :  { %18047 = vst [vmem:[#allocation16_spill] sm:$0xff] %v15763_v42  ;;  %v7022_v42 = vshrl.u32 %v15609_v22, 16 }
 0x505   :  { %10308 = vmatmul.mubr.bf16.gmra.mrb[44].mxu1 %v18048_v37 }
 0x506   :  { %10311 = vmatprep.mubr.bf16.mxu1 %v18049_v60  ;;  %v7018_v60 = vshll.u32 %v15609_v22, 16 }
 0x508   :  { %v15767_v13 = vpop.f32.mrb[124].mxu0  ;;  %v7020_v55 = vrot.slane %v7018_v60, 5  ;;  %v7030_v60 = vrot.slane %v7028_v38, 5 }
 0x509   :  { %18050 = vst [vmem:[#allocation8_spill] sm:$0xff] %v15767_v13  ;;  %v15769_v18 = vpop.f32.mrb[125].mxu0 }
 0x50a   :  { %18051 = vst [vmem:[#allocation30_spill] sm:$0xff] %v15769_v18  ;;  %v15771_v48 = vpop.f32.mrb[126].mxu0 }
 0x50b   :  { %18052 = vst [vmem:[#allocation11_spill] sm:$0xff] %v15771_v48  ;;  %v15773_v4 = vpop.f32.mrb[127].mxu0  ;;  %v7011_v48 = vrot.slane %v7009_v21, 4 }
 0x50c   :  { %18053 = vst [vmem:[#allocation37_spill] sm:$0xff] %v15773_v4  ;;  %v7014_v4 = vrot.slane %v7012_v58, 5 }
 0x50d   :  { %10312 = vmatmul.mubr.bf16.gmra.mrb[48].mxu1 %v18054_v34  ;;  %v7024_v34 = vrot.slane %v7022_v42, 4 }
 0x50e   :  { %10315 = vmatprep.mubr.bf16.mxu1 %v18055_v35  ;;  %v7015_v35 = vor.u32 %v7014_v4, %v7011_v48 }
 0x50f   :  { %v7025_v2 = vor.u32 %v7024_v34, %v7020_v55 }
 0x510   :  { %v15781_v37 = vpop.f32.mrb[128].mxu0  ;;  %v7016_v21 = vrot.slane %v7015_v35, 4 }
 0x511   :  { %v15783_v13 = vpop.f32.mrb[129].mxu0  ;;  %v7026_v58 = vrot.slane %v7025_v2, 4 }
 0x512   :  { %v15785_v18 = vpop.f32.mrb[130].mxu0 }
 0x513   :  { %v15787_v52 = vpop.f32.mrb[131].mxu0 }
 0x515   :  { %10316 = vmatmul.mubr.bf16.gmra.mrb[52].mxu1 %v18056_v1  ;;  %v7031_v1 = vsel %vm14284_vm14, %v7026_v58, %v7030_v60 }
 0x516   :  { %10319 = vmatprep.mubr.bf16.mxu1 %v18057_v45  ;;  %v7021_v45 = vsel %vm14284_vm14, %v7016_v21, %v7020_v55  ;;  %v7468_v55 = vrot.slane %v15609_v22, 5 }
 0x517   :  { %v9087_v34 = vcombine.low %v7021_v45, %v7031_v1  ;;  %v7471_v1 = vrot.slane %v2610_v43, 5 }
 0x518   :  { %v15791_v15 = vpop.f32.mrb[132].mxu0  ;;  %v7470_v45 = vrot.slane %v7468_v55, 4 }
 0x519   :  { %v15793_v10 = vpop.f32.mrb[133].mxu0 }
 0x51a   :  { %v15795_v29 = vpop.f32.mrb[134].mxu0 }
 0x51b   :  { %v15797_v42 = vpop.f32.mrb[135].mxu0 }
 0x51d   :  { %10320 = vmatmul.mubr.bf16.gmra.mrb[56].mxu1 %v18058_v5 }
 0x51e   :  { %10323 = vmatprep.mubr.bf16.mxu1 %v18059_v54 }
 0x520   :  { %v15805_v48 = vpop.f32.mrb[136].mxu0 }
 0x521   :  { %v15807_v4 = vpop.f32.mrb[137].mxu0 }
 0x522   :  { %v15809_v35 = vpop.f32.mrb[138].mxu0 }
 0x523   :  { %v15811_v38 = vpop.f32.mrb[139].mxu0 }
 0x525   :  { %10324 = vmatmul.mubr.bf16.gmra.mrb[60].mxu1 %v9087_v34 }
 0x526   :  { %10395 = vmatprep.mubr.bf16.mxu1 %v15457_v25  ;;  %v9097_v25 = vrot.slane %v15607_v51, 9 }
 0x528   :  { %v15814_v5 = vpop.f32.mrb[140].mxu0 }
 0x529   :  { %v15816_v54 = vpop.f32.mrb[141].mxu0 }
 0x52a   :  { %v15818_v2 = vpop.f32.mrb[142].mxu0 }
 0x52b   :  { %v15820_v39 = vpop.f32.mrb[143].mxu0 }
 0x52d   :  { %10396 = vmatmul.mubr.bf16.vlgmr.msra.gmra.mrb[52].mxu1 %v15461_v46  ;;  %v7472_v46 = vsel %vm15004_vm3, %v7470_v45, %v7471_v1 }
 0x52e   :  { %10399 = vmatprep.mubr.bf16.mxu1 %v15473_v56  ;;  %v7469_v56 = vsel %vm15004_vm3, %v9097_v25, %v7468_v55 }
 0x52f   :  { %v9099_v50 = vcombine.low %v7469_v56, %v7472_v46 }
 0x530   :  { %v15825_v21 = vpop.f32.mrb[144].mxu0 }
 0x531   :  { %v15827_v58 = vpop.f32.mrb[145].mxu0 }
 0x532   :  { %v15829_v60 = vpop.f32.mrb[146].mxu0 }
 0x533   :  { %v15832_v34 = vpop.f32.mrb[147].mxu0 }
 0x535   :  { %10400 = vmatmul.mubr.bf16.gmra.mrb[56].mxu1 %v15477_v47 }
 0x536   :  { %10403 = vmatprep.mubr.bf16.mxu1 %v15488_v14 }
 0x538   :  { %v15840_v22 = vpop.f32.mrb[148].mxu0 }
 0x539   :  { %v15842_v26 = vpop.f32.mrb[149].mxu0 }
 0x53a   :  { %v15844_v51 = vpop.f32.mrb[150].mxu0 }
 0x53b   :  { %v15846_v43 = vpop.f32.mrb[151].mxu0 }
 0x53d   :  { %10404 = vmatmul.mubr.bf16.gmra.mrb[60].mxu1 %v9099_v50 }
 0x540   :  { %v15848_v24 = vpop.f32.mrb[152].mxu0 }
 0x541   :  { %v15850_v47 = vpop.f32.mrb[153].mxu0 }
 0x542   :  { %18060 = vst [vmem:[#allocation33_spill] sm:$0xff] %v15850_v47  ;;  %v15852_v14 = vpop.f32.mrb[154].mxu0 }
 0x543   :  { %18061 = vst [vmem:[#allocation60_spill] sm:$0xff] %v15852_v14  ;;  %v15854_v55 = vpop.f32.mrb[155].mxu0 }
 0x544   :  { %18062 = vst [vmem:[#allocation50_spill] sm:$0xff] %v15854_v55 }
 0x548   :  { %v15856_v44 = vpop.f32.mrb[156].mxu0 }
 0x549   :  { %18063 = vst [vmem:[#allocation49_spill] sm:$0xff] %v15856_v44  ;;  %v15858_v25 = vpop.f32.mrb[157].mxu0 }
 0x54a   :  { %18064 = vst [vmem:[#allocation51_spill] sm:$0xff] %v15858_v25  ;;  %v15860_v45 = vpop.f32.mrb[158].mxu0 }
 0x54b   :  { %18065 = vst [vmem:[#allocation9_spill] sm:$0xff] %v15860_v45  ;;  %v15862_v1 = vpop.f32.mrb[159].mxu0 }
 0x54c   :  { %18066 = vst [vmem:[#allocation41_spill] sm:$0xff] %v15862_v1 }
 0x550   :  { %v15864_v56 = vpop.f32.mrb[160].mxu0 }
 0x551   :  { %18067 = vst [vmem:[#allocation45_spill] sm:$0xff] %v15864_v56  ;;  %v15866_v46 = vpop.f32.mrb[161].mxu0 }
 0x552   :  { %18068 = vst [vmem:[#allocation13_spill] sm:$0xff] %v15866_v46  ;;  %v15868_v50 = vpop.f32.mrb[162].mxu0 }
 0x553   :  { %18069 = vst [vmem:[#allocation15_spill] sm:$0xff] %v15868_v50  ;;  %v15870_v23 = vpop.f32.mrb[163].mxu0 }
 0x554   :  { %18070 = vst [vmem:[#allocation32_spill] sm:$0xff] %v15870_v23 }
 0x558   :  { %v15872_v40 = vpop.f32.mrb[164].mxu0 }
 0x559   :  { %18071 = vst [vmem:[#allocation35_spill] sm:$0xff] %v15872_v40  ;;  %v15874_v14 = vpop.f32.mrb[165].mxu0 }
 0x55a   :  { %18072 = vst [vmem:[#allocation38_spill] sm:$0xff] %v15874_v14  ;;  %v15876_v55 = vpop.f32.mrb[166].mxu0 }
 0x55b   :  { %18073 = vst [vmem:[#allocation47_spill] sm:$0xff] %v15876_v55  ;;  %v15878_v44 = vpop.f32.mrb[167].mxu0 }
 0x55c   :  { %18074 = vst [vmem:[#allocation34_spill] sm:$0xff] %v15878_v44 }
 0x560   :  { %v15880_v25 = vpop.f32.mrb[168].mxu0 }
 0x561   :  { %18075 = vst [vmem:[#allocation19_spill] sm:$0xff] %v15880_v25  ;;  %v15882_v45 = vpop.f32.mrb[169].mxu0 }
 0x562   :  { %18076 = vst [vmem:[#allocation17_spill] sm:$0xff] %v15882_v45  ;;  %v15884_v1 = vpop.f32.mrb[170].mxu0 }
 0x563   :  { %18077 = vst [vmem:[#allocation57_spill] sm:$0xff] %v15884_v1  ;;  %v15886_v56 = vpop.f32.mrb[171].mxu0 }
 0x564   :  { %18078 = vst [vmem:[#allocation62_spill] sm:$0xff] %v15886_v56 }
 0x568   :  { %v15888_v46 = vpop.f32.mrb[172].mxu0 }
 0x569   :  { %18079 = vst [vmem:[#allocation63_spill] sm:$0xff] %v15888_v46  ;;  %v15890_v50 = vpop.f32.mrb[173].mxu0 }
 0x56a   :  { %18080 = vst [vmem:[#allocation64_spill] sm:$0xff] %v15890_v50  ;;  %v15892_v23 = vpop.f32.mrb[174].mxu0 }
 0x56b   :  { %18081 = vst [vmem:[#allocation65_spill] sm:$0xff] %v15892_v23  ;;  %v15894_v40 = vpop.f32.mrb[175].mxu0 }
 0x56c   :  { %18082 = vst [vmem:[#allocation66_spill] sm:$0xff] %v15894_v40 }
 0x570   :  { %v15896_v14 = vpop.f32.mrb[176].mxu0 }
 0x571   :  { %18083 = vst [vmem:[#allocation67_spill] sm:$0xff] %v15896_v14  ;;  %v15898_v55 = vpop.f32.mrb[177].mxu0 }
 0x572   :  { %v15900_v44 = vpop.f32.mrb[178].mxu0 }
 0x573   :  { %18084 = vst [vmem:[#allocation68_spill] sm:$0xff] %v15900_v44  ;;  %v15902_v25 = vpop.f32.mrb[179].mxu0 }
 0x574   :  { %18085 = vst [vmem:[#allocation69_spill] sm:$0xff] %v15902_v25 }
 0x580   :  { %v10265_v45 = vpop.f32.mrb[0].mxu1 }
 0x581   :  { %v10541_v1 = vadd.f32 %v10265_v45, %v15584_v59  ;;  %v7138_v56 = vpop.f32.mrb[1].mxu1 }
 0x582   :  { %v10543_v46 = vadd.f32 %v7138_v56, %v15586_v16  ;;  %v10266_v47 = vpop.f32.mrb[2].mxu1 }
 0x583   :  { %v15907_v50 = vadd.f32 %v10541_v1, %v15781_v37  ;;  %v10545_v40 = vadd.f32 %v10266_v47, %v15588_v9  ;;  %v7141_v23 = vpop.f32.mrb[3].mxu1 }
 0x584   :  { %v15911_v14 = vadd.f32 %v10543_v46, %v15783_v13  ;;  %v10547_v44 = vadd.f32 %v7141_v23, %v15590_v62 }
 0x585   :  { %18086 = vst [vmem:[#allocation70_spill] sm:$0xff] %v15907_v50  ;;  %v15915_v25 = vadd.f32 %v10545_v40, %v15785_v18 }
 0x586   :  { %18087 = vst [vmem:[#allocation71_spill] sm:$0xff] %v15911_v14  ;;  %v15918_v59 = vadd.f32 %v10547_v44, %v15787_v52 }
 0x587   :  { %18088 = vst [vmem:[#allocation72_spill] sm:$0xff] %v15915_v25 }
 0x588   :  { %18089 = vst [vmem:[#allocation73_spill] sm:$0xff] %v15918_v59  ;;  %v10269_v45 = vpop.f32.mrb[4].mxu1 }
 0x589   :  { %v10549_v16 = vadd.f32 %v10269_v45, %v15596_v0  ;;  %v7154_v56 = vpop.f32.mrb[5].mxu1 }
 0x58a   :  { %v10551_v37 = vadd.f32 %v7154_v56, %v15598_v63  ;;  %v10270_v1 = vpop.f32.mrb[6].mxu1 }
 0x58b   :  { %v15923_v9 = vadd.f32 %v10549_v16, %v15791_v15  ;;  %v10553_v13 = vadd.f32 %v10270_v1, %v15600_v53  ;;  %v7157_v47 = vpop.f32.mrb[7].mxu1 }
 0x58c   :  { %v15927_v62 = vadd.f32 %v10551_v37, %v15793_v10  ;;  %v10555_v40 = vadd.f32 %v7157_v47, %v15602_v11 }
 0x58d   :  { %18090 = vst [vmem:[#allocation74_spill] sm:$0xff] %v15923_v9  ;;  %v15931_v23 = vadd.f32 %v10553_v13, %v15795_v29 }
 0x58e   :  { %18091 = vst [vmem:[#allocation75_spill] sm:$0xff] %v15927_v62  ;;  %v15934_v0 = vadd.f32 %v10555_v40, %v15797_v42 }
 0x58f   :  { %18092 = vst [vmem:[#allocation76_spill] sm:$0xff] %v15931_v23 }
 0x590   :  { %18093 = vst [vmem:[#allocation77_spill] sm:$0xff] %v15934_v0  ;;  %v10273_v52 = vpop.f32.mrb[8].mxu1 }
 0x591   :  { %v10557_v63 = vadd.f32 %v10273_v52, %v15611_v33  ;;  %v7170_v18 = vpop.f32.mrb[9].mxu1 }
 0x592   :  { %v10559_v15 = vadd.f32 %v7170_v18, %v15613_v19  ;;  %v10274_v44 = vpop.f32.mrb[10].mxu1 }
 0x593   :  { %v15939_v53 = vadd.f32 %v10557_v63, %v15805_v48  ;;  %v10561_v10 = vadd.f32 %v10274_v44, %v15617_v36  ;;  %v7173_v46 = vpop.f32.mrb[11].mxu1 }
 0x594   :  { %v15943_v11 = vadd.f32 %v10559_v15, %v15807_v4  ;;  %v10563_v29 = vadd.f32 %v7173_v46, %v15619_v8 }
 0x595   :  { %18094 = vst [vmem:[#allocation78_spill] sm:$0xff] %v15939_v53  ;;  %v15947_v42 = vadd.f32 %v10561_v10, %v15809_v35 }
 0x596   :  { %18095 = vst [vmem:[#allocation79_spill] sm:$0xff] %v15943_v11  ;;  %v15950_v33 = vadd.f32 %v10563_v29, %v15811_v38 }
 0x597   :  { %18096 = vst [vmem:[#allocation80_spill] sm:$0xff] %v15947_v42 }
 0x598   :  { %18097 = vst [vmem:[#allocation81_spill] sm:$0xff] %v15950_v33  ;;  %v10277_v45 = vpop.f32.mrb[12].mxu1 }
 0x599   :  { %v10565_v19 = vadd.f32 %v10277_v45, %v15622_v6  ;;  %v7186_v16 = vpop.f32.mrb[13].mxu1 }
 0x59a   :  { %v10567_v48 = vadd.f32 %v7186_v16, %v15624_v57  ;;  %v10278_v56 = vpop.f32.mrb[14].mxu1 }
 0x59b   :  { %v15955_v36 = vadd.f32 %v10565_v19, %v15814_v5  ;;  %v10569_v4 = vadd.f32 %v10278_v56, %v15626_v61  ;;  %v7189_v37 = vpop.f32.mrb[15].mxu1 }
 0x59c   :  { %v15959_v8 = vadd.f32 %v10567_v48, %v15816_v54  ;;  %v10571_v35 = vadd.f32 %v7189_v37, %v15628_v32  ;;  %v18116_v48 = vld [vmem:[#allocation50_spill] sm:$0xff] }
 0x59d   :  { %18098 = vst [vmem:[#allocation82_spill] sm:$0xff] %v15955_v36  ;;  %v15963_v38 = vadd.f32 %v10569_v4, %v15818_v2 }
 0x59e   :  { %18099 = vst [vmem:[#allocation83_spill] sm:$0xff] %v15959_v8  ;;  %v15966_v6 = vadd.f32 %v10571_v35, %v15820_v39 }
 0x59f   :  { %18100 = vst [vmem:[#allocation84_spill] sm:$0xff] %v15963_v38 }
 0x5a0   :  { %18101 = vst [vmem:[#allocation85_spill] sm:$0xff] %v15966_v6  ;;  %v10281_v1 = vpop.f32.mrb[16].mxu1 }
 0x5a1   :  { %v10573_v57 = vadd.f32 %v10281_v1, %v15636_v41  ;;  %v7202_v13 = vpop.f32.mrb[17].mxu1 }
 0x5a2   :  { %v10575_v5 = vadd.f32 %v7202_v13, %v15638_v30  ;;  %v10282_v47 = vpop.f32.mrb[18].mxu1  ;;  %v18122_v13 = vld [vmem:[#allocation20_spill] sm:$0xff] }
 0x5a3   :  { %v15971_v61 = vadd.f32 %v10573_v57, %v15825_v21  ;;  %v10577_v54 = vadd.f32 %v10282_v47, %v15640_v3  ;;  %v7205_v40 = vpop.f32.mrb[19].mxu1 }
 0x5a4   :  { %v15975_v32 = vadd.f32 %v10575_v5, %v15827_v58  ;;  %v10579_v2 = vadd.f32 %v7205_v40, %v15643_v49 }
 0x5a5   :  { %18102 = vst [vmem:[#allocation86_spill] sm:$0xff] %v15971_v61  ;;  %v15979_v39 = vadd.f32 %v10577_v54, %v15829_v60  ;;  %v18123_v54 = vld [vmem:[#allocation51_spill] sm:$0xff] }
 0x5a6   :  { %18103 = vst [vmem:[#allocation87_spill] sm:$0xff] %v15975_v32  ;;  %v15982_v41 = vadd.f32 %v10579_v2, %v15832_v34  ;;  %v18125_v2 = vld [vmem:[#allocation55_spill] sm:$0xff] }
 0x5a7   :  { %18104 = vst [vmem:[#allocation88_spill] sm:$0xff] %v15979_v39 }
 0x5a8   :  { %18105 = vst [vmem:[#allocation89_spill] sm:$0xff] %v15982_v41  ;;  %v10285_v52 = vpop.f32.mrb[20].mxu1 }
 0x5a9   :  { %v10581_v30 = vadd.f32 %v10285_v52, %v15650_v17  ;;  %v7218_v63 = vpop.f32.mrb[21].mxu1 }
 0x5aa   :  { %v10286_v21 = vpop.f32.mrb[22].mxu1  ;;  %v10583_v3 = vadd.f32 %v7218_v63, %v15652_v27 }
 0x5ab   :  { %v15986_v18 = vadd.f32 %v10581_v30, %v15840_v22  ;;  %v10585_v58 = vadd.f32 %v10286_v21, %v15654_v7  ;;  %v7221_v15 = vpop.f32.mrb[23].mxu1  ;;  %v18126_v30 = vld [vmem:[#allocation9_spill] sm:$0xff] }
 0x5ac   :  { %v15991_v49 = vadd.f32 %v10583_v3, %v15842_v26  ;;  %v10587_v34 = vadd.f32 %v7221_v15, %v15657_v20  ;;  %v18113_v20 = vld [vmem:[#allocation29_spill] sm:$0xff]  ;;  %v18130_v15 = vld [vmem:[#allocation39_spill] sm:$0xff] }
 0x5ad   :  { %18106 = vst [vmem:[#allocation90_spill] sm:$0xff] %v15986_v18  ;;  %v15994_v60 = vadd.f32 %v10585_v58, %v15844_v51  ;;  %v18111_v51 = vld [vmem:[#allocation33_spill] sm:$0xff] }
 0x5ae   :  { %18107 = vst [vmem:[#allocation91_spill] sm:$0xff] %v15991_v49  ;;  %v15998_v17 = vadd.f32 %v10587_v34, %v15846_v43  ;;  %v18114_v43 = vld [vmem:[#allocation60_spill] sm:$0xff]  ;;  %v18128_v21 = vld [vmem:[#allocation41_spill] sm:$0xff] }
 0x5af   :  { %18108 = vst [vmem:[#allocation92_spill] sm:$0xff] %v15994_v60 }
 0x5b0   :  { %18109 = vst [vmem:[#allocation93_spill] sm:$0xff] %v15998_v17  ;;  %v10289_v44 = vpop.f32.mrb[24].mxu1 }
 0x5b1   :  { %v10589_v22 = vadd.f32 %v10289_v44, %v15664_v12  ;;  %v7234_v10 = vpop.f32.mrb[25].mxu1 }
 0x5b2   :  { %v10591_v27 = vadd.f32 %v7234_v10, %v15666_v31  ;;  %v10290_v46 = vpop.f32.mrb[26].mxu1  ;;  %v18118_v31 = vld [vmem:[#allocation48_spill] sm:$0xff] }
 0x5b3   :  { %v16003_v7 = vadd.f32 %v10589_v22, %v15848_v24  ;;  %v10593_v26 = vadd.f32 %v10290_v46, %v15668_v28  ;;  %v7237_v29 = vpop.f32.mrb[27].mxu1  ;;  %v18119_v24 = vld [vmem:[#allocation46_spill] sm:$0xff]  ;;  %v18120_v28 = vld [vmem:[#allocation49_spill] sm:$0xff]  ;;  %v18131_v22 = vld [vmem:[#allocation59_spill] sm:$0xff] }
 0x5b4   :  { %v16007_v45 = vadd.f32 %v10591_v27, %v18111_v51  ;;  %v10595_v19 = vadd.f32 %v7237_v29, %v18113_v20  ;;  %v18132_v46 = vld [vmem:[#allocation45_spill] sm:$0xff]  ;;  %v18133_v29 = vld [vmem:[#allocation6_spill] sm:$0xff] }
 0x5b5   :  { %18110 = vst [vmem:[#allocation94_spill] sm:$0xff] %v16003_v7  ;;  %v16011_v16 = vadd.f32 %v10593_v26, %v18114_v43 }
 0x5b6   :  { %18112 = vst [vmem:[#allocation33_spill] sm:$0xff] %v16007_v45  ;;  %v16014_v12 = vadd.f32 %v10595_v19, %v18116_v48  ;;  %v18134_v19 = vld [vmem:[#allocation13_spill] sm:$0xff]  ;;  %v18135_v48 = vld [vmem:[#allocation28_spill] sm:$0xff] }
 0x5b7   :  { %18115 = vst [vmem:[#allocation29_spill] sm:$0xff] %v16011_v16 }
 0x5b8   :  { %18117 = vst [vmem:[#allocation60_spill] sm:$0xff] %v16014_v12  ;;  %v10293_v56 = vpop.f32.mrb[28].mxu1 }
 0x5b9   :  { %v10597_v4 = vadd.f32 %v10293_v56, %v18118_v31  ;;  %v7250_v37 = vpop.f32.mrb[29].mxu1  ;;  %v18136_v31 = vld [vmem:[#allocation15_spill] sm:$0xff] }
 0x5ba   :  { %v10599_v35 = vadd.f32 %v7250_v37, %v18119_v24  ;;  %v10294_v1 = vpop.f32.mrb[30].mxu1  ;;  %v18137_v37 = vld [vmem:[#allocation32_spill] sm:$0xff] }
 0x5bb   :  { %v16019_v57 = vadd.f32 %v10597_v4, %v18120_v28  ;;  %v10601_v5 = vadd.f32 %v10294_v1, %v18122_v13  ;;  %v7253_v47 = vpop.f32.mrb[31].mxu1  ;;  %v18138_v1 = vld [vmem:[#allocation42_spill] sm:$0xff] }
 0x5bc   :  { %v16023_v40 = vadd.f32 %v10599_v35, %v18123_v54  ;;  %v10603_v52 = vadd.f32 %v7253_v47, %v18125_v2  ;;  %v18140_v2 = vld [vmem:[#allocation35_spill] sm:$0xff] }
 0x5bd   :  { %18121 = vst [vmem:[#allocation50_spill] sm:$0xff] %v16019_v57  ;;  %v16027_v63 = vadd.f32 %v10601_v5, %v18126_v30  ;;  %v18139_v5 = vld [vmem:[#allocation61_spill] sm:$0xff]  ;;  %v18141_v30 = vld [vmem:[#allocation44_spill] sm:$0xff] }
 0x5be   :  { %18124 = vst [vmem:[#allocation48_spill] sm:$0xff] %v16023_v40  ;;  %v16030_v3 = vadd.f32 %v10603_v52, %v18128_v21 }
 0x5bf   :  { %18127 = vst [vmem:[#allocation46_spill] sm:$0xff] %v16027_v63 }
 0x5c0   :  { %18129 = vst [vmem:[#allocation49_spill] sm:$0xff] %v16030_v3  ;;  %v10297_v58 = vpop.f32.mrb[32].mxu1 }
 0x5c1   :  { %v10605_v34 = vadd.f32 %v10297_v58, %v18130_v15  ;;  %v7266_v44 = vpop.f32.mrb[33].mxu1  ;;  %v7900_v15 = vadd.f32 %v15918_v59, %v15911_v14 }
 0x5c2   :  { %v10607_v10 = vadd.f32 %v7266_v44, %v18131_v22  ;;  %v10298_v27 = vpop.f32.mrb[34].mxu1  ;;  %v18142_v44 = vld [vmem:[#allocation38_spill] sm:$0xff] }
 0x5c3   :  { %v16035_v26 = vadd.f32 %v10605_v34, %v18132_v46  ;;  %v10609_v51 = vadd.f32 %v10298_v27, %v18133_v29  ;;  %v7269_v20 = vpop.f32.mrb[35].mxu1  ;;  %v7983_v34 = vmul.f32 %v15982_v41, %v15982_v41  ;;  %v18144_v46 = vld [vmem:[#allocation47_spill] sm:$0xff] }
 0x5c4   :  { %v16039_v43 = vadd.f32 %v10607_v10, %v18134_v19  ;;  %v10611_v56 = vadd.f32 %v7269_v20, %v18135_v48  ;;  %v18143_v10 = vld [vmem:[#allocation18_spill] sm:$0xff]  ;;  %v7982_v20 = vmul.f32 %v15975_v32, %v15975_v32  ;;  %v7960_v19 = vadd.f32 %v15982_v41, %v15975_v32 }
 0x5c5   :  { %v16043_v4 = vadd.f32 %v10609_v51, %v18136_v31  ;;  %v7923_v51 = vmul.f32 %v15918_v59, %v15918_v59  ;;  %v18145_v48 = vld [vmem:[#allocation34_spill] sm:$0xff]  ;;  %v18158_v59 = vld [vmem:[#allocation64_spill] sm:$0xff] }
 0x5c6   :  { %v16046_v24 = vadd.f32 %v10611_v56, %v18137_v37  ;;  %v7922_v37 = vmul.f32 %v15911_v14, %v15911_v14 }
 0x5c8   :  { %v10301_v35 = vpop.f32.mrb[36].mxu1  ;;  %v8043_v31 = vmul.f32 %v16046_v24, %v16046_v24 }
 0x5c9   :  { %v10613_v28 = vadd.f32 %v10301_v35, %v18138_v1  ;;  %v7282_v13 = vpop.f32.mrb[37].mxu1  ;;  %v7901_v35 = vadd.f32 %v15907_v50, %v7900_v15  ;;  %v7998_v1 = vadd.f32 %v7983_v34, %v7982_v20  ;;  %v7924_v34 = vmul.f32 %v15907_v50, %v15907_v50 }
 0x5ca   :  { %v10615_v47 = vadd.f32 %v7282_v13, %v18139_v5  ;;  %v10302_v54 = vpop.f32.mrb[38].mxu1  ;;  %v8042_v13 = vmul.f32 %v16039_v43, %v16039_v43  ;;  %v8020_v5 = vadd.f32 %v16046_v24, %v16039_v43 }
 0x5cb   :  { %v16051_v52 = vadd.f32 %v10613_v28, %v18140_v2  ;;  %v10617_v21 = vadd.f32 %v10302_v54, %v18141_v30  ;;  %v7285_v58 = vpop.f32.mrb[39].mxu1  ;;  %v7938_v30 = vadd.f32 %v7923_v51, %v7922_v37  ;;  %v7902_v51 = vadd.f32 %v15915_v25, %v7901_v35 }
 0x5cc   :  { %v16059_v22 = vadd.f32 %v10615_v47, %v18142_v44  ;;  %v10619_v27 = vadd.f32 %v7285_v58, %v18143_v10  ;;  %v18146_v47 = vld [vmem:[#allocation27_spill] sm:$0xff]  ;;  %v7961_v58 = vadd.f32 %v15971_v61, %v7960_v19  ;;  %v18147_v44 = vld [vmem:[#allocation14_spill] sm:$0xff]  ;;  %v18151_v19 = vld [vmem:[#allocation52_spill] sm:$0xff] }
 0x5cd   :  { %v16063_v29 = vadd.f32 %v10617_v21, %v18144_v46  ;;  %v7984_v21 = vmul.f32 %v15971_v61, %v15971_v61  ;;  %v18148_v46 = vld [vmem:[#allocation19_spill] sm:$0xff] }
 0x5ce   :  { %v16072_v56 = vadd.f32 %v10619_v27, %v18145_v48  ;;  %v8058_v27 = vadd.f32 %v8043_v31, %v8042_v13  ;;  %v18149_v48 = vld [vmem:[#allocation40_spill] sm:$0xff]  ;;  %v18152_v31 = vld [vmem:[#allocation57_spill] sm:$0xff]  ;;  %v7962_v35 = vadd.f32 %v15979_v39, %v7961_v58  ;;  %v18154_v58 = vld [vmem:[#allocation7_spill] sm:$0xff] }
 0x5cf   :  { %v7999_v37 = vadd.f32 %v7998_v1, %v7984_v21  ;;  %v18153_v1 = vld [vmem:[#allocation62_spill] sm:$0xff] }
 0x5d0   :  { %v10305_v28 = vpop.f32.mrb[40].mxu1 }
 0x5d1   :  { %v10621_v54 = vadd.f32 %v10305_v28, %v18146_v47  ;;  %v7298_v2 = vpop.f32.mrb[41].mxu1  ;;  %v18150_v47 = vld [vmem:[#allocation17_spill] sm:$0xff] }
 0x5d2   :  { %v10623_v10 = vadd.f32 %v7298_v2, %v18147_v44  ;;  %v10306_v15 = vpop.f32.mrb[42].mxu1  ;;  %v8044_v2 = vmul.f32 %v16035_v26, %v16035_v26  ;;  %v8021_v44 = vadd.f32 %v16035_v26, %v8020_v5 }
 0x5d3   :  { %v16091_v20 = vadd.f32 %v10621_v54, %v18148_v46  ;;  %v10625_v41 = vadd.f32 %v10306_v15, %v18149_v48  ;;  %v7301_v28 = vpop.f32.mrb[43].mxu1  ;;  %v7939_v54 = vadd.f32 %v7938_v30, %v7924_v34  ;;  %v7985_v15 = vmul.f32 %v15979_v39, %v15979_v39  ;;  %v18156_v39 = vld [vmem:[#allocation63_spill] sm:$0xff] }
 0x5d4   :  { %v16096_v32 = vadd.f32 %v10623_v10, %v18150_v47  ;;  %v10627_v61 = vadd.f32 %v7301_v28, %v18151_v19  ;;  %v8059_v10 = vadd.f32 %v8058_v27, %v8044_v2  ;;  %v7925_v46 = vmul.f32 %v15915_v25, %v15915_v25 }
 0x5d5   :  { %v16103_v13 = vadd.f32 %v10625_v41, %v18152_v31  ;;  %v7903_v48 = vadd.f32 %v15927_v62, %v7902_v51  ;;  %v8000_v28 = vadd.f32 %v7999_v37, %v7985_v15  ;;  %v7986_v41 = vmul.f32 %v15991_v49, %v15991_v49  ;;  %v18155_v51 = vld [vmem:[#allocation22_spill] sm:$0xff] }
 0x5d6   :  { %v16109_v21 = vadd.f32 %v10627_v61, %v18153_v1  ;;  %v8045_v30 = vmul.f32 %v16043_v4, %v16043_v4  ;;  %v8022_v34 = vadd.f32 %v16043_v4, %v8021_v44  ;;  %v7926_v27 = vmul.f32 %v15927_v62, %v15927_v62  ;;  %v18157_v44 = vld [vmem:[#allocation53_spill] sm:$0xff] }
 0x5d7   :  { %v7940_v19 = vadd.f32 %v7939_v54, %v7925_v46  ;;  %v7963_v2 = vadd.f32 %v15991_v49, %v7962_v35  ;;  %v8046_v15 = vmul.f32 %v16059_v22, %v16059_v22  ;;  %v18159_v54 = vld [vmem:[#allocation23_spill] sm:$0xff]  ;;  %v8001_v46 = vadd.f32 %v8000_v28, %v7986_v41 }
 0x5d8   :  { %v10309_v5 = vpop.f32.mrb[44].mxu1  ;;  %v8060_v1 = vadd.f32 %v8059_v10, %v8045_v30  ;;  %v18160_v10 = vld [vmem:[#allocation65_spill] sm:$0xff]  ;;  %v8047_v28 = vmul.f32 %v16072_v56, %v16072_v56 }
 0x5d9   :  { %v10629_v47 = vadd.f32 %v10309_v5, %v18154_v58  ;;  %v7314_v61 = vpop.f32.mrb[45].mxu1  ;;  %v7904_v58 = vadd.f32 %v15934_v0, %v7903_v48 }
 0x5da   :  { %v10631_v37 = vadd.f32 %v7314_v61, %v18155_v51  ;;  %v10310_v31 = vpop.f32.mrb[46].mxu1  ;;  %v7987_v61 = vmul.f32 %v15998_v17, %v15998_v17  ;;  %v8023_v51 = vadd.f32 %v16059_v22, %v8022_v34 }
 0x5db   :  { %v16127_v25 = vadd.f32 %v10629_v47, %v18156_v39  ;;  %v10633_v50 = vadd.f32 %v10310_v31, %v18157_v44  ;;  %v7317_v5 = vpop.f32.mrb[47].mxu1  ;;  %v7941_v39 = vadd.f32 %v7940_v19, %v7926_v27  ;;  %v7927_v47 = vmul.f32 %v15934_v0, %v15934_v0  ;;  %v18161_v31 = vld [vmem:[#allocation66_spill] sm:$0xff] }
 0x5dc   :  { %v16132_v62 = vadd.f32 %v10631_v37, %v18158_v59  ;;  %v10635_v35 = vadd.f32 %v7317_v5, %v18159_v54  ;;  %v7964_v59 = vadd.f32 %v15998_v17, %v7963_v2  ;;  %v8061_v37 = vadd.f32 %v8060_v1, %v8046_v15  ;;  %v18162_v5 = vld [vmem:[#allocation36_spill] sm:$0xff]  ;;  %v18164_v17 = vld [vmem:[#allocation67_spill] sm:$0xff] }
 0x5dd   :  { %v16139_v30 = vadd.f32 %v10633_v50, %v18160_v10  ;;  %v7905_v41 = vadd.f32 %v15923_v9, %v7904_v58  ;;  %v8002_v34 = vadd.f32 %v8001_v46, %v7987_v61  ;;  %v8024_v50 = vadd.f32 %v16072_v56, %v8023_v51  ;;  %v18163_v10 = vld [vmem:[#allocation54_spill] sm:$0xff]  ;;  %v18165_v58 = vld [vmem:[#allocation56_spill] sm:$0xff] }
 0x5de   :  { %v16144_v48 = vadd.f32 %v10635_v35, %v18161_v31  ;;  %v7942_v54 = vadd.f32 %v7941_v39, %v7927_v47  ;;  %v7988_v35 = vmul.f32 %v15986_v18, %v15986_v18  ;;  %v7965_v15 = vadd.f32 %v15986_v18, %v7964_v59 }
 0x5df   :  { %v8062_v1 = vadd.f32 %v8061_v37, %v8047_v28  ;;  %v7928_v51 = vmul.f32 %v15923_v9, %v15923_v9  ;;  %v7906_v39 = vadd.f32 %v15931_v23, %v7905_v41  ;;  %v8048_v59 = vmul.f32 %v16051_v52, %v16051_v52  ;;  %v18167_v37 = vld [vmem:[#allocation68_spill] sm:$0xff] }
 0x5e0   :  { %v10313_v44 = vpop.f32.mrb[48].mxu1  ;;  %v7989_v41 = vmul.f32 %v15994_v60, %v15994_v60 }
 0x5e1   :  { %v10637_v27 = vadd.f32 %v10313_v44, %v18162_v5  ;;  %v7330_v19 = vpop.f32.mrb[49].mxu1  ;;  %v18166_v44 = vld [vmem:[#allocation43_spill] sm:$0xff] }
 0x5e2   :  { %v10639_v31 = vadd.f32 %v7330_v19, %v18163_v10  ;;  %v10314_v2 = vpop.f32.mrb[50].mxu1  ;;  %v8003_v19 = vadd.f32 %v8002_v34, %v7988_v35  ;;  %v18168_v10 = vld [vmem:[#allocation69_spill] sm:$0xff]  ;;  %v7929_v34 = vmul.f32 %v15931_v23, %v15931_v23  ;;  %v7907_v35 = vadd.f32 %v15943_v11, %v7906_v39 }
 0x5e3   :  { %v16157_v49 = vadd.f32 %v10637_v27, %v18164_v17  ;;  %v10641_v46 = vadd.f32 %v10314_v2, %v18165_v58  ;;  %v7333_v61 = vpop.f32.mrb[51].mxu1  ;;  %v8025_v17 = vadd.f32 %v16051_v52, %v8024_v50  ;;  %v7943_v27 = vadd.f32 %v7942_v54, %v7928_v51 }
 0x5e4   :  { %v16164_v47 = vadd.f32 %v10639_v31, %v15898_v55  ;;  %v10643_v5 = vadd.f32 %v7333_v61, %v18166_v44  ;;  %v7966_v55 = vadd.f32 %v15994_v60, %v7965_v15  ;;  %v8063_v31 = vadd.f32 %v8062_v1, %v8048_v59 }
 0x5e5   :  { %v16171_v28 = vadd.f32 %v10641_v46, %v18167_v37  ;;  %v7990_v50 = vmul.f32 %v16007_v45, %v16007_v45  ;;  %v8004_v58 = vadd.f32 %v8003_v19, %v7989_v41  ;;  %v8049_v54 = vmul.f32 %v16063_v29, %v16063_v29 }
 0x5e6   :  { %v16174_v2 = vadd.f32 %v10643_v5, %v18168_v10  ;;  %v8026_v46 = vadd.f32 %v16063_v29, %v8025_v17  ;;  %v7930_v61 = vmul.f32 %v15943_v11, %v15943_v11  ;;  %v7944_v51 = vadd.f32 %v7943_v27, %v7929_v34 }
 0x5e7   :  { %v7967_v15 = vadd.f32 %v16007_v45, %v7966_v55  ;;  %v8050_v1 = vmul.f32 %v16096_v32, %v16096_v32  ;;  %v8064_v44 = vadd.f32 %v8063_v31, %v8049_v54  ;;  %v7908_v39 = vadd.f32 %v15950_v33, %v7907_v35  ;;  %v18178_v45 = vld [vmem:[#allocation25_spill] sm:$0xff] }
 0x5e8   :  { %v8005_v5 = vadd.f32 %v8004_v58, %v7990_v50  ;;  %v7991_v19 = vmul.f32 %v16014_v12, %v16014_v12  ;;  %v8027_v59 = vadd.f32 %v16096_v32, %v8026_v46  ;;  %v7945_v37 = vadd.f32 %v7944_v51, %v7930_v61 }
 0x5e9   :  { %v7931_v17 = vmul.f32 %v15950_v33, %v15950_v33  ;;  %v7968_v27 = vadd.f32 %v16014_v12, %v7967_v15  ;;  %v8065_v10 = vadd.f32 %v8064_v44, %v8050_v1  ;;  %v8051_v41 = vmul.f32 %v16109_v21, %v16109_v21 }
 0x5ea   :  { %v7909_v55 = vadd.f32 %v15939_v53, %v7908_v39  ;;  %v8006_v31 = vadd.f32 %v8005_v5, %v7991_v19  ;;  %v8028_v34 = vadd.f32 %v16109_v21, %v8027_v59  ;;  %v7992_v50 = vmul.f32 %v16003_v7, %v16003_v7 }
 0x5eb   :  { %v7946_v35 = vadd.f32 %v7945_v37, %v7931_v17  ;;  %v7969_v58 = vadd.f32 %v16003_v7, %v7968_v27  ;;  %v8066_v54 = vadd.f32 %v8065_v10, %v8051_v41  ;;  %v7932_v46 = vmul.f32 %v15939_v53, %v15939_v53 }
 0x5ec   :  { %v7910_v61 = vadd.f32 %v15947_v42, %v7909_v55  ;;  %v8007_v51 = vadd.f32 %v8006_v31, %v7992_v50  ;;  %v8052_v15 = vmul.f32 %v16091_v20, %v16091_v20  ;;  %v8029_v1 = vadd.f32 %v16091_v20, %v8028_v34 }
 0x5ed   :  { %v7947_v44 = vadd.f32 %v7946_v35, %v7932_v46  ;;  %v7993_v39 = vmul.f32 %v16011_v16, %v16011_v16  ;;  %v7970_v5 = vadd.f32 %v16011_v16, %v7969_v58  ;;  %v7933_v59 = vmul.f32 %v15947_v42, %v15947_v42 }
 0x5ee   :  { %v8067_v19 = vadd.f32 %v8066_v54, %v8052_v15  ;;  %v7911_v37 = vadd.f32 %v15959_v8, %v7910_v61  ;;  %v8103_v17 = vmul.f32 %v16174_v2, %v16174_v2  ;;  %v7994_v27 = vmul.f32 %v16023_v40, %v16023_v40 }
 0x5ef   :  { %v8008_v10 = vadd.f32 %v8007_v51, %v7993_v39  ;;  %v8053_v41 = vmul.f32 %v16103_v13, %v16103_v13  ;;  %v8030_v55 = vadd.f32 %v16103_v13, %v8029_v1  ;;  %v7934_v31 = vmul.f32 %v15959_v8, %v15959_v8 }
 0x5f0   :  { %v7948_v34 = vadd.f32 %v7947_v44, %v7933_v59  ;;  %v8102_v35 = vmul.f32 %v16164_v47, %v16164_v47  ;;  %v8080_v50 = vadd.f32 %v16174_v2, %v16164_v47  ;;  %v7971_v58 = vadd.f32 %v16023_v40, %v7970_v5 }
 0x5f1   :  { %v8054_v54 = vmul.f32 %v16132_v62, %v16132_v62  ;;  %v8068_v46 = vadd.f32 %v8067_v19, %v8053_v41  ;;  %v7912_v51 = vadd.f32 %v15966_v6, %v7911_v37  ;;  %v8009_v15 = vadd.f32 %v8008_v10, %v7994_v27 }
 0x5f2   :  { %v8118_v61 = vadd.f32 %v8103_v17, %v8102_v35  ;;  %v7995_v1 = vmul.f32 %v16030_v3, %v16030_v3  ;;  %v8031_v44 = vadd.f32 %v16132_v62, %v8030_v55  ;;  %v7949_v39 = vadd.f32 %v7948_v34, %v7934_v31  ;;  %v18169_v34 = vld [vmem:[#allocation26_spill] sm:$0xff] }
 0x5f3   :  { %v7935_v59 = vmul.f32 %v15966_v6, %v15966_v6  ;;  %v8104_v5 = vmul.f32 %v16157_v49, %v16157_v49  ;;  %v8081_v40 = vadd.f32 %v16157_v49, %v8080_v50  ;;  %v7972_v19 = vadd.f32 %v16030_v3, %v7971_v58  ;;  %v18171_v58 = vld [vmem:[#allocation24_spill] sm:$0xff] }
 0x5f4   :  { %v8069_v17 = vadd.f32 %v8068_v46, %v8054_v54  ;;  %v8055_v37 = vmul.f32 %v16144_v48, %v16144_v48  ;;  %v7913_v41 = vadd.f32 %v15955_v36, %v7912_v51  ;;  %v8010_v55 = vadd.f32 %v8009_v15, %v7995_v1  ;;  %v18172_v1 = vld [vmem:[#allocation21_spill] sm:$0xff]  ;;  %v18180_v6 = vld [vmem:[#allocation8_spill] sm:$0xff] }
 0x5f5   :  { %v8119_v10 = vadd.f32 %v8118_v61, %v8104_v5  ;;  %v8032_v31 = vadd.f32 %v16144_v48, %v8031_v44  ;;  %v7950_v7 = vadd.f32 %v7949_v39, %v7935_v59  ;;  %v8105_v50 = vmul.f32 %v16171_v28, %v16171_v28 }
 0x5f6   :  { %v8082_v46 = vadd.f32 %v16171_v28, %v8081_v40  ;;  %v7996_v61 = vmul.f32 %v16019_v57, %v16019_v57  ;;  %v7973_v51 = vadd.f32 %v16019_v57, %v7972_v19  ;;  %v8070_v15 = vadd.f32 %v8069_v17, %v8055_v37 }
 0x5f7   :  { %v7936_v40 = vmul.f32 %v15955_v36, %v15955_v36  ;;  %v8056_v19 = vmul.f32 %v16127_v25, %v16127_v25  ;;  %v7937_v17 = vmul.f32 %v15963_v38, %v15963_v38  ;;  %v8057_v57 = vmul.f32 %v16139_v30, %v16139_v30 }
 0x600   :  { %v10397_v27 = vpop.f32.mrb[52].mxu1 }
 0x601   :  { %v16249_v35 = vadd.f32 %v10397_v27, %v18169_v34  ;;  %v7787_v16 = vpop.f32.mrb[53].mxu1  ;;  %v18174_v27 = vld [vmem:[#allocation10_spill] sm:$0xff] }
 0x602   :  { %v16254_v54 = vadd.f32 %v7787_v16, %v18171_v58  ;;  %v10398_v3 = vpop.f32.mrb[54].mxu1  ;;  %v8120_v16 = vadd.f32 %v8119_v10, %v8105_v50  ;;  %v8011_v58 = vadd.f32 %v8010_v55, %v7996_v61  ;;  %v7951_v50 = vadd.f32 %v7950_v7, %v7936_v40  ;;  %v18176_v40 = vld [vmem:[#allocation12_spill] sm:$0xff] }
 0x603   :  { %18170 = vst [vmem:[#allocation20_spill] sm:$0xff] %v16249_v35  ;;  %v16261_v44 = vadd.f32 %v10398_v3, %v18172_v1  ;;  %v7790_v5 = vpop.f32.mrb[55].mxu1  ;;  %v8033_v3 = vadd.f32 %v16127_v25, %v8032_v31  ;;  %v7997_v1 = vmul.f32 %v16027_v63, %v16027_v63  ;;  %v7974_v55 = vadd.f32 %v16027_v63, %v7973_v51 }
 0x604   :  { %v8083_v39 = vadd.f32 %v16254_v54, %v8082_v46  ;;  %v8106_v59 = vmul.f32 %v16254_v54, %v16254_v54  ;;  %v16267_v34 = vadd.f32 %v7790_v5, %v18174_v27  ;;  %v8071_v61 = vadd.f32 %v8070_v15, %v8056_v19  ;;  %v18177_v19 = vld [vmem:[#allocation58_spill] sm:$0xff] }
 0x605   :  { %18173 = vst [vmem:[#allocation51_spill] sm:$0xff] %v16261_v44  ;;  %v7914_v5 = vadd.f32 %v15963_v38, %v7913_v41  ;;  %v8108_v31 = vmul.f32 %v16249_v35, %v16249_v35  ;;  %v8034_v7 = vadd.f32 %v16139_v30, %v8033_v3  ;;  %v8109_v41 = vmul.f32 %v16261_v44, %v16261_v44 }
 0x606   :  { %18175 = vst [vmem:[#allocation55_spill] sm:$0xff] %v16267_v34  ;;  %v8121_v37 = vadd.f32 %v8120_v16, %v8106_v59  ;;  %v8084_v46 = vadd.f32 %v16267_v34, %v8083_v39  ;;  %v8107_v10 = vmul.f32 %v16267_v34, %v16267_v34  ;;  %v8012_v39 = vadd.f32 %v8011_v58, %v7997_v1 }
 0x607   :  { %v7952_v58 = vadd.f32 %v7951_v50, %v7937_v17  ;;  %v8072_v1 = vadd.f32 %v8071_v61, %v8057_v57 }
 0x608   :  { %v8085_v27 = vadd.f32 %v16249_v35, %v8084_v46  ;;  %v8122_v59 = vadd.f32 %v8121_v37, %v8107_v10  ;;  %v10401_v16 = vpop.f32.mrb[56].mxu1  ;;  %v7975_v10 = vrot.slane %v7974_v55, 4 }
 0x609   :  { %v16290_v12 = vadd.f32 %v10401_v16, %v18176_v40  ;;  %v7803_v51 = vpop.f32.mrb[57].mxu1  ;;  %v7953_v57 = vrot.slane %v7952_v58, 4  ;;  %v8073_v61 = vrot.slane %v8072_v1, 4 }
 0x60a   :  { %v8123_v15 = vadd.f32 %v8122_v59, %v8108_v31  ;;  %v16295_v63 = vadd.f32 %v7803_v51, %v18177_v19  ;;  %v8086_v37 = vadd.f32 %v16261_v44, %v8085_v27  ;;  %v10402_v46 = vpop.f32.mrb[58].mxu1  ;;  %v18179_v31 = vld [vmem:[#allocation16_spill] sm:$0xff]  ;;  %v7915_v51 = vrot.slane %v7914_v5, 4 }
 0x60b   :  { %v16299_v60 = vadd.f32 %v10402_v46, %v18178_v45  ;;  %v7806_v3 = vpop.f32.mrb[59].mxu1  ;;  %v8013_v19 = vrot.slane %v8012_v39, 4  ;;  %v8035_v27 = vrot.slane %v8034_v7, 4  ;;  %v7976_v50 = vadd.f32 %v7975_v10, %v7974_v55  ;;  %v18181_v55 = vld [vmem:[#allocation30_spill] sm:$0xff] }
 0x60c   :  { %v8087_v16 = vadd.f32 %v16295_v63, %v8086_v37  ;;  %v8110_v40 = vmul.f32 %v16295_v63, %v16295_v63  ;;  %v8124_v18 = vadd.f32 %v8123_v15, %v8109_v41  ;;  %v16305_v59 = vadd.f32 %v7806_v3, %v18179_v31 }
 0x60d   :  { %v8112_v37 = vmul.f32 %v16290_v12, %v16290_v12  ;;  %v7916_v3 = vadd.f32 %v7915_v51, %v7914_v5  ;;  %v8014_v31 = vadd.f32 %v8013_v19, %v8012_v39  ;;  %v8036_v36 = vadd.f32 %v8035_v27, %v8034_v7  ;;  %v18182_v5 = vld [vmem:[#allocation11_spill] sm:$0xff]  ;;  %v18183_v27 = vld [vmem:[#allocation37_spill] sm:$0xff] }
 0x60e   :  { %v8125_v38 = vadd.f32 %v8124_v18, %v8110_v40  ;;  %v8088_v17 = vadd.f32 %v16305_v59, %v8087_v16  ;;  %v8111_v45 = vmul.f32 %v16305_v59, %v16305_v59  ;;  %v8113_v40 = vmul.f32 %v16299_v60, %v16299_v60 }
 0x610   :  { %v8089_v41 = vadd.f32 %v16290_v12, %v8088_v17  ;;  %v8126_v15 = vadd.f32 %v8125_v38, %v8111_v45  ;;  %v10405_v46 = vpop.f32.mrb[60].mxu1  ;;  %v7954_v17 = vadd.f32 %v7953_v57, %v7952_v58  ;;  %v7977_v38 = vrot.slane %v7976_v50, 2 }
 0x611   :  { %v16314_v18 = vadd.f32 %v10405_v46, %v18180_v6  ;;  %v7819_v16 = vpop.f32.mrb[61].mxu1  ;;  %v8074_v45 = vadd.f32 %v8073_v61, %v8072_v1  ;;  %v8015_v46 = vrot.slane %v8014_v31, 2 }
 0x612   :  { %v8127_v8 = vadd.f32 %v8126_v15, %v8112_v37  ;;  %v16319_v10 = vadd.f32 %v7819_v16, %v18181_v55  ;;  %v8090_v42 = vadd.f32 %v16299_v60, %v8089_v41  ;;  %v10406_v53 = vpop.f32.mrb[62].mxu1  ;;  %v7917_v15 = vrot.slane %v7916_v3, 2 }
 0x613   :  { %v16323_v39 = vadd.f32 %v10406_v53, %v18182_v5  ;;  %v7822_v7 = vpop.f32.mrb[63].mxu1  ;;  %v8037_v41 = vrot.slane %v8036_v36, 2  ;;  %v7955_v1 = vrot.slane %v7954_v17, 2  ;;  %v7978_v57 = vadd.f32 %v7977_v38, %v7976_v50 }
 0x614   :  { %v8091_v6 = vadd.f32 %v16319_v10, %v8090_v42  ;;  %v8114_v51 = vmul.f32 %v16319_v10, %v16319_v10  ;;  %v8128_v19 = vadd.f32 %v8127_v8, %v8113_v40  ;;  %v16329_v37 = vadd.f32 %v7822_v7, %v18183_v27 }
 0x615   :  { %v8075_v61 = vrot.slane %v8074_v45, 2  ;;  %v8116_v42 = vmul.f32 %v16314_v18, %v16314_v18  ;;  %v7918_v55 = vadd.f32 %v7917_v15, %v7916_v3  ;;  %v8016_v5 = vadd.f32 %v8015_v46, %v8014_v31 }
 0x616   :  { %v8129_v16 = vadd.f32 %v8128_v19, %v8114_v51  ;;  %v8092_v58 = vadd.f32 %v16329_v37, %v8091_v6  ;;  %v8115_v53 = vmul.f32 %v16329_v37, %v16329_v37  ;;  %v8038_v7 = vadd.f32 %v8037_v41, %v8036_v36 }
 0x617   :  { %v8117_v51 = vmul.f32 %v16323_v39, %v16323_v39  ;;  %v7956_v27 = vadd.f32 %v7955_v1, %v7954_v17  ;;  %v7979_v33 = vrot.slane %v7978_v57, 1  ;;  %v8076_v11 = vadd.f32 %v8075_v61, %v8074_v45 }
 0x618   :  { %v8093_v8 = vadd.f32 %v16314_v18, %v8092_v58  ;;  %v8130_v40 = vadd.f32 %v8129_v16, %v8115_v53  ;;  %v7919_v23 = vrot.slane %v7918_v55, 1  ;;  %v8017_v9 = vrot.slane %v8016_v5, 1 }
 0x619   :  { %v8039_v0 = vrot.slane %v8038_v7, 1  ;;  %v7957_v16 = vrot.slane %v7956_v27, 1  ;;  %v7980_v3 = vadd.f32 %v7979_v33, %v7978_v57  ;;  %v8077_v31 = vrot.slane %v8076_v11, 1 }
 0x61a   :  { %v8094_v6 = vadd.f32 %v16323_v39, %v8093_v8  ;;  %v8131_v19 = vadd.f32 %v8130_v40, %v8116_v42  ;;  %v7920_v46 = vadd.f32 %v7919_v23, %v7918_v55  ;;  %v8018_v41 = vadd.f32 %v8017_v9, %v8016_v5 }
 0x61b   :  { %v8040_v53 = vadd.f32 %v8039_v0, %v8038_v7  ;;  %v7958_v17 = vadd.f32 %v7957_v16, %v7956_v27  ;;  %v8078_v45 = vadd.f32 %v8077_v31, %v8076_v11  ;;  %v7898_v11 = vld [vmem:[%s17070_s3 + $0x2] sm:$0x1]  ;;  %v7899_v7 = vld [vmem:[%s17070_s3 + $0x3] sm:$0x1]  ;;  %v18184_v27 = vld [vmem:[#allocation31_spill] sm:$0xff] }
 0x61c   :  { %v8095_v50 = vrot.slane %v8094_v6, 4  ;;  %v8132_v38 = vadd.f32 %v8131_v19, %v8117_v51  ;;  %v7981_v1 = vadd.f32 %v7980_v3, %v7920_v46 }
 0x61d   :  { %v8019_v51 = vadd.f32 %v8018_v41, %v7958_v17 }
 0x61e   :  { %v8096_v14 = vadd.f32 %v8095_v50, %v8094_v6  ;;  %v8133_v58 = vrot.slane %v8132_v38, 4  ;;  %v8041_v19 = vadd.f32 %v8040_v53, %v7981_v1 }
 0x61f   :  { %v8079_v50 = vadd.f32 %v8078_v45, %v8019_v51 }
 0x620   :  { %v8097_v36 = vrot.slane %v8096_v14, 2  ;;  %v8134_v15 = vadd.f32 %v8133_v58, %v8132_v38 }
 0x622   :  { %v8098_v8 = vadd.f32 %v8097_v36, %v8096_v14  ;;  %v8135_v42 = vrot.slane %v8134_v15, 2 }
 0x624   :  { %v8099_v61 = vrot.slane %v8098_v8, 1  ;;  %v8136_v40 = vadd.f32 %v8135_v42, %v8134_v15 }
 0x626   :  { %v8100_v44 = vadd.f32 %v8099_v61, %v8098_v8  ;;  %v8137_v6 = vrot.slane %v8136_v40, 1 }
 0x628   :  { %v8101_v35 = vadd.f32 %v8100_v44, %v8041_v19  ;;  %v8138_v33 = vadd.f32 %v8137_v6, %v8136_v40 }
 0x62a   :  { %v8139_v57 = vadd.f32 %v8138_v33, %v8079_v50  ;;  %v8140_v34 = vmul.f32 0.001953125, %v8101_v35 }
 0x62c   :  { %v8141_v38 = vmul.f32 0.001953125, %v8139_v57  ;;  %v8142_v23 = vmul.f32 %v8140_v34, %v8140_v34 }
 0x62e   :  { %v8143_v9 = vsub.f32 %v8141_v38, %v8142_v23 }
 0x630   :  { %v8144_v0 = vmax.f32 %v8143_v9, 0.0 }
 0x632   :  { %v8145_v14 = vadd.f32 1e-05, %v8144_v0 }
 0x634   :  { %11208 = vrsqrt.f32 %v8145_v14 }
 0x63e   :  { %v11209_v55 = vpop.eup %11208 }
 0x63f   :  { %v8147_v5 = vmul.f32 %v11209_v55, %v7898_v11 }
 0x641   :  { %v8148_v44 = vmul.f32 %v8147_v5, %v8140_v34  ;;  %v16347_v58 = vrot.slane %v8147_v5, %v18184_v27 }
 0x643   :  { %v8149_v35 = vsub.f32 %v7899_v7, %v8148_v44  ;;  %v8186_v16 = vmul.f32 %v16039_v43, %v16347_v58  ;;  %v8187_v3 = vmul.f32 %v16046_v24, %v16347_v58  ;;  %v8188_v31 = vmul.f32 %v16035_v26, %v16347_v58 }
 0x644   :  { %v8189_v36 = vmul.f32 %v16043_v4, %v16347_v58  ;;  %v8190_v15 = vmul.f32 %v16059_v22, %v16347_v58  ;;  %v8191_v34 = vmul.f32 %v16072_v56, %v16347_v58  ;;  %v8192_v46 = vmul.f32 %v16051_v52, %v16347_v58 }
 0x645   :  { %v8193_v43 = vmul.f32 %v16063_v29, %v16347_v58  ;;  %v8194_v24 = vmul.f32 %v16096_v32, %v16347_v58  ;;  %v8195_v26 = vmul.f32 %v16109_v21, %v16347_v58  ;;  %v8196_v4 = vmul.f32 %v16091_v20, %v16347_v58 }
 0x646   :  { %v8197_v22 = vmul.f32 %v16103_v13, %v16347_v58  ;;  %v8198_v56 = vmul.f32 %v16132_v62, %v16347_v58  ;;  %v8199_v52 = vmul.f32 %v16144_v48, %v16347_v58  ;;  %v8200_v29 = vmul.f32 %v16127_v25, %v16347_v58 }
 0x647   :  { %v8201_v32 = vmul.f32 %v16139_v30, %v16347_v58  ;;  %v8202_v21 = vmul.f32 %v16164_v47, %v16347_v58  ;;  %v8203_v20 = vmul.f32 %v16174_v2, %v16347_v58  ;;  %v8210_v13 = vmul.f32 %v16295_v63, %v16347_v58 }
 0x648   :  { %v8211_v62 = vmul.f32 %v16305_v59, %v16347_v58  ;;  %v8212_v48 = vmul.f32 %v16290_v12, %v16347_v58  ;;  %v8213_v25 = vmul.f32 %v16299_v60, %v16347_v58  ;;  %v8214_v30 = vmul.f32 %v16319_v10, %v16347_v58 }
 0x649   :  { %v8215_v47 = vmul.f32 %v16329_v37, %v16347_v58  ;;  %v8216_v2 = vmul.f32 %v16314_v18, %v16347_v58  ;;  %v8204_v63 = vmul.f32 %v16157_v49, %v16347_v58  ;;  %v8205_v59 = vmul.f32 %v16171_v28, %v16347_v58  ;;  %v18185_v37 = vld [vmem:[#allocation55_spill] sm:$0xff]  ;;  %v18186_v18 = vld [vmem:[#allocation20_spill] sm:$0xff] }
 0x64a   :  { %v8217_v12 = vmul.f32 %v16323_v39, %v16347_v58  ;;  %v16406_v60 = vrot.slane %v8149_v35, %v18184_v27  ;;  %v8206_v10 = vmul.f32 %v16254_v54, %v16347_v58  ;;  %v8207_v41 = vmul.f32 %v18185_v37, %v16347_v58  ;;  %v18187_v49 = vld [vmem:[#allocation51_spill] sm:$0xff] }
 0x64b   :  { %v8208_v53 = vmul.f32 %v18186_v18, %v16347_v58  ;;  %v8209_v8 = vmul.f32 %v18187_v49, %v16347_v58 }
 0x64c   :  { %v8254_v28 = vadd.f32 %v16406_v60, %v8186_v16  ;;  %v8255_v42 = vadd.f32 %v16406_v60, %v8187_v3  ;;  %v16419_v39 = vadd.f32 %v16406_v60, %v8188_v31  ;;  %v16422_v17 = vadd.f32 %v16406_v60, %v8189_v36 }
 0x64d   :  { %v16425_v54 = vadd.f32 %v16406_v60, %v8190_v15  ;;  %v16428_v1 = vadd.f32 %v16406_v60, %v8191_v34  ;;  %v16431_v45 = vadd.f32 %v16406_v60, %v8192_v46  ;;  %v16434_v61 = vadd.f32 %v16406_v60, %v8193_v43  ;;  %v18196_v46 = vld [vmem:[#allocation71_spill] sm:$0xff] }
 0x64e   :  { %v16437_v40 = vadd.f32 %v16406_v60, %v8194_v24  ;;  %v16440_v51 = vadd.f32 %v16406_v60, %v8195_v26  ;;  %v16443_v19 = vadd.f32 %v16406_v60, %v8196_v4  ;;  %v16446_v6 = vadd.f32 %v16406_v60, %v8197_v22  ;;  %v18197_v24 = vld [vmem:[#allocation73_spill] sm:$0xff]  ;;  %v18198_v4 = vld [vmem:[#allocation70_spill] sm:$0xff] }
 0x64f   :  { %v16449_v50 = vadd.f32 %v16406_v60, %v8198_v56  ;;  %v16452_v33 = vadd.f32 %v16406_v60, %v8199_v52  ;;  %v16455_v57 = vadd.f32 %v16406_v60, %v8200_v29  ;;  %v16458_v38 = vadd.f32 %v16406_v60, %v8201_v32  ;;  %v18199_v56 = vld [vmem:[#allocation72_spill] sm:$0xff] }
 0x650   :  { %v16461_v23 = vadd.f32 %v16406_v60, %v8202_v21  ;;  %v16464_v9 = vadd.f32 %v16406_v60, %v8203_v20  ;;  %v16467_v0 = vadd.f32 %v16406_v60, %v8204_v63  ;;  %v16470_v14 = vadd.f32 %v16406_v60, %v8205_v59 }
 0x651   :  { %v16473_v11 = vadd.f32 %v16406_v60, %v8206_v10  ;;  %v16476_v55 = vadd.f32 %v16406_v60, %v8207_v41  ;;  %v16479_v5 = vadd.f32 %v16406_v60, %v8208_v53  ;;  %v16482_v7 = vadd.f32 %v16406_v60, %v8209_v8  ;;  %v18202_v41 = vld [vmem:[#allocation74_spill] sm:$0xff]  ;;  %v18203_v53 = vld [vmem:[#allocation76_spill] sm:$0xff] }
 0x652   :  { %v16485_v44 = vadd.f32 %v16406_v60, %v8210_v13  ;;  %v16488_v35 = vadd.f32 %v16406_v60, %v8211_v62  ;;  %v16491_v16 = vadd.f32 %v16406_v60, %v8212_v48  ;;  %v16494_v3 = vadd.f32 %v16406_v60, %v8213_v25  ;;  %v18200_v62 = vld [vmem:[#allocation75_spill] sm:$0xff] }
 0x653   :  { %v16497_v31 = vadd.f32 %v16406_v60, %v8214_v30  ;;  %v16500_v36 = vadd.f32 %v16406_v60, %v8215_v47  ;;  %v16503_v15 = vadd.f32 %v16406_v60, %v8216_v2  ;;  %v16506_v34 = vadd.f32 %v16406_v60, %v8217_v12  ;;  %v18201_v2 = vld [vmem:[#allocation77_spill] sm:$0xff] }
 0x654   :  { %18188 = vst [vmem:[#allocation9_spill] sm:$0xff] %v16485_v44  ;;  %18189 = vst [vmem:[#allocation41_spill] sm:$0xff] %v16488_v35  ;;  %v16510_v43 = vmul.f32 %v18196_v46, %v16347_v58  ;;  %v16514_v26 = vmul.f32 %v18197_v24, %v16347_v58  ;;  %vm8318_vm2 = vcmp.ge.f32.partialorder %v8254_v28, 0.0  ;;  %vm8319_vm4 = vcmp.ge.f32.partialorder %v8255_v42, 0.0 }
 0x655   :  { %18190 = vst [vmem:[#allocation39_spill] sm:$0xff] %v16491_v16  ;;  %18191 = vst [vmem:[#allocation59_spill] sm:$0xff] %v16494_v3  ;;  %v16518_v22 = vmul.f32 %v18198_v4, %v16347_v58  ;;  %v16522_v52 = vmul.f32 %v18199_v56, %v16347_v58  ;;  %vm8320_vm15 = vcmp.ge.f32.partialorder %v16419_v39, 0.0  ;;  %vm8321_vm0 = vcmp.ge.f32.partialorder %v16422_v17, 0.0 }
 0x656   :  { %18192 = vst [vmem:[#allocation45_spill] sm:$0xff] %v16497_v31  ;;  %18193 = vst [vmem:[#allocation6_spill] sm:$0xff] %v16500_v36  ;;  %vm8322_vm13 = vcmp.ge.f32.partialorder %v16425_v54, 0.0  ;;  %vm8323_vm5 = vcmp.ge.f32.partialorder %v16428_v1, 0.0  ;;  %vm8324_vm11 = vcmp.ge.f32.partialorder %v16431_v45, 0.0  ;;  %vm8325_vm7 = vcmp.ge.f32.partialorder %v16434_v61, 0.0 }
 0x657   :  { %18194 = vst [vmem:[#allocation13_spill] sm:$0xff] %v16503_v15  ;;  %18195 = vst [vmem:[#allocation28_spill] sm:$0xff] %v16506_v34  ;;  %v8382_v29 = vmul.f32 0.1, %v8254_v28  ;;  %v8383_v32 = vmul.f32 0.1, %v8255_v42  ;;  %v8158_v48 = vmul.f32 %v18200_v62, %v16347_v58  ;;  %v8159_v63 = vmul.f32 %v18201_v2, %v16347_v58 }
 0x658   :  { %v8384_v21 = vmul.f32 0.1, %v16419_v39  ;;  %v8385_v20 = vmul.f32 0.1, %v16422_v17  ;;  %v8386_v13 = vmul.f32 0.1, %v16425_v54  ;;  %v8160_v18 = vmul.f32 %v18202_v41, %v16347_v58 }
 0x659   :  { %v8387_v25 = vmul.f32 0.1, %v16428_v1  ;;  %v8388_v30 = vmul.f32 0.1, %v16431_v45  ;;  %v8389_v47 = vmul.f32 0.1, %v16434_v61  ;;  %v8446_v10 = vsel %vm8318_vm2, %v8254_v28, %v8382_v29 }
 0x65a   :  { %vm8326_vm6 = vcmp.ge.f32.partialorder %v16437_v40, 0.0  ;;  %vm8327_vm12 = vcmp.ge.f32.partialorder %v16440_v51, 0.0  ;;  %v8390_v59 = vmul.f32 0.1, %v16437_v40  ;;  %v8391_v12 = vmul.f32 0.1, %v16440_v51 }
 0x65b   :  { %v8447_v37 = vsel %vm8319_vm4, %v8255_v42, %v8383_v32  ;;  %v8161_v49 = vmul.f32 %v18203_v53, %v16347_v58  ;;  %v16551_v8 = vmul.f32 0.1, %v16443_v19  ;;  %v16554_v46 = vmul.f32 0.1, %v16446_v6  ;;  %v18210_v2 = vld [vmem:[#allocation82_spill] sm:$0xff]  ;;  %v18213_v53 = vld [vmem:[#allocation89_spill] sm:$0xff] }
 0x65c   :  { %v8448_v24 = vsel %vm8320_vm15, %v16419_v39, %v8384_v21  ;;  %v8449_v28 = vsel %vm8321_vm0, %v16422_v17, %v8385_v20  ;;  %v8450_v42 = vsel %vm8322_vm13, %v16425_v54, %v8386_v13  ;;  %v8451_v4 = vsel %vm8323_vm5, %v16428_v1, %v8387_v25  ;;  %v18204_v1 = vld [vmem:[#allocation79_spill] sm:$0xff]  ;;  %v18205_v21 = vld [vmem:[#allocation81_spill] sm:$0xff]  ;;  %v18206_v20 = vld [vmem:[#allocation78_spill] sm:$0xff] }
 0x65d   :  { %v8452_v56 = vsel %vm8324_vm11, %v16431_v45, %v8388_v30  ;;  %v8453_v39 = vsel %vm8325_vm7, %v16434_v61, %v8389_v47  ;;  %v8454_v17 = vsel %vm8326_vm6, %v16437_v40, %v8390_v59  ;;  %v16580_v54 = vsel %vm8327_vm12, %v16440_v51, %v8391_v12  ;;  %v18207_v61 = vld [vmem:[#allocation80_spill] sm:$0xff]  ;;  %v18208_v40 = vld [vmem:[#allocation83_spill] sm:$0xff]  ;;  %v18209_v51 = vld [vmem:[#allocation85_spill] sm:$0xff] }
 0x65e   :  { %v8515_v29 = vadd.f32 %v8447_v37, %v8446_v10  ;;  %v8162_v32 = vmul.f32 %v18204_v1, %v16347_v58  ;;  %v8163_v45 = vmul.f32 %v18205_v21, %v16347_v58  ;;  %v8164_v13 = vmul.f32 %v18206_v20, %v16347_v58  ;;  %v18211_v12 = vld [vmem:[#allocation84_spill] sm:$0xff]  ;;  %v18212_v37 = vld [vmem:[#allocation87_spill] sm:$0xff]  ;;  %v18214_v21 = vld [vmem:[#allocation86_spill] sm:$0xff] }
 0x65f   :  { %v8165_v62 = vmul.f32 %v18207_v61, %v16347_v58  ;;  %v8166_v25 = vmul.f32 %v18208_v40, %v16347_v58  ;;  %v8167_v47 = vmul.f32 %v18209_v51, %v16347_v58  ;;  %v8168_v59 = vmul.f32 %v18210_v2, %v16347_v58  ;;  %v18216_v40 = vld [vmem:[#allocation91_spill] sm:$0xff]  ;;  %v18217_v2 = vld [vmem:[#allocation93_spill] sm:$0xff] }
 0x660   :  { %v8516_v30 = vadd.f32 %v8515_v29, %v8448_v24  ;;  %v8169_v10 = vmul.f32 %v18211_v12, %v16347_v58  ;;  %v8170_v41 = vmul.f32 %v18212_v37, %v16347_v58  ;;  %v8171_v1 = vmul.f32 %v18213_v53, %v16347_v58  ;;  %v18215_v24 = vld [vmem:[#allocation88_spill] sm:$0xff]  ;;  %v18218_v12 = vld [vmem:[#allocation90_spill] sm:$0xff]  ;;  %v18220_v53 = vld [vmem:[#allocation33_spill] sm:$0xff] }
 0x661   :  { %v8172_v20 = vmul.f32 %v18214_v21, %v16347_v58  ;;  %v8173_v29 = vmul.f32 %v18215_v24, %v16347_v58  ;;  %v8174_v51 = vmul.f32 %v18216_v40, %v16347_v58  ;;  %v8175_v27 = vmul.f32 %v18217_v2, %v16347_v58  ;;  %v18219_v37 = vld [vmem:[#allocation92_spill] sm:$0xff]  ;;  %v18223_v40 = vld [vmem:[#allocation29_spill] sm:$0xff] }
 0x662   :  { %v8517_v61 = vadd.f32 %v8516_v30, %v8449_v28  ;;  %v8176_v34 = vmul.f32 %v18218_v12, %v16347_v58  ;;  %v8177_v15 = vmul.f32 %v18219_v37, %v16347_v58  ;;  %v8178_v36 = vmul.f32 %v18220_v53, %v16347_v58  ;;  %v18221_v21 = vld [vmem:[#allocation60_spill] sm:$0xff]  ;;  %v18222_v28 = vld [vmem:[#allocation94_spill] sm:$0xff]  ;;  %v18225_v37 = vld [vmem:[#allocation49_spill] sm:$0xff] }
 0x663   :  { %v8179_v31 = vmul.f32 %v18221_v21, %v16347_v58  ;;  %v8180_v30 = vmul.f32 %v18222_v28, %v16347_v58  ;;  %vm8328_vm8 = vcmp.ge.f32.partialorder %v16443_v19, 0.0  ;;  %v8181_v2 = vmul.f32 %v18223_v40, %v16347_v58  ;;  %v18224_v12 = vld [vmem:[#allocation48_spill] sm:$0xff]  ;;  %v18226_v53 = vld [vmem:[#allocation50_spill] sm:$0xff] }
 0x664   :  { %v8518_v24 = vadd.f32 %v8517_v61, %v8450_v42  ;;  %v8182_v3 = vmul.f32 %v18224_v12, %v16347_v58  ;;  %v8183_v16 = vmul.f32 %v18225_v37, %v16347_v58  ;;  %v8184_v35 = vmul.f32 %v18226_v53, %v16347_v58  ;;  %v18227_v21 = vld [vmem:[#allocation46_spill] sm:$0xff] }
 0x665   :  { %v8185_v44 = vmul.f32 %v18227_v21, %v16347_v58  ;;  %v16633_v28 = vadd.f32 %v16406_v60, %v16510_v43  ;;  %v16637_v42 = vadd.f32 %v16406_v60, %v16514_v26  ;;  %v16641_v40 = vadd.f32 %v16406_v60, %v16518_v22 }
 0x666   :  { %v8519_v61 = vadd.f32 %v8518_v24, %v8451_v4  ;;  %v16645_v12 = vadd.f32 %v16406_v60, %v16522_v52  ;;  %v16648_v37 = vadd.f32 %v16406_v60, %v8158_v48  ;;  %v16651_v58 = vadd.f32 %v16406_v60, %v8159_v63 }
 0x667   :  { %v16654_v43 = vadd.f32 %v16406_v60, %v8160_v18  ;;  %v16657_v26 = vadd.f32 %v16406_v60, %v8161_v49  ;;  %v16660_v4 = vadd.f32 %v16406_v60, %v8162_v32  ;;  %v16663_v24 = vadd.f32 %v16406_v60, %v8163_v45 }
 0x668   :  { %v8520_v22 = vadd.f32 %v8519_v61, %v8452_v56  ;;  %v16666_v52 = vadd.f32 %v16406_v60, %v8164_v13  ;;  %v16669_v48 = vadd.f32 %v16406_v60, %v8165_v62  ;;  %v16672_v63 = vadd.f32 %v16406_v60, %v8166_v25 }
 0x669   :  { %v16675_v18 = vadd.f32 %v16406_v60, %v8167_v47  ;;  %v16678_v49 = vadd.f32 %v16406_v60, %v8168_v59  ;;  %v16681_v56 = vadd.f32 %v16406_v60, %v8169_v10  ;;  %v16684_v45 = vadd.f32 %v16406_v60, %v8170_v41 }
 0x66a   :  { %v8521_v32 = vadd.f32 %v8520_v22, %v8453_v39  ;;  %v16687_v13 = vadd.f32 %v16406_v60, %v8171_v1  ;;  %v16690_v62 = vadd.f32 %v16406_v60, %v8172_v20  ;;  %v16693_v25 = vadd.f32 %v16406_v60, %v8173_v29 }
 0x66b   :  { %v16696_v47 = vadd.f32 %v16406_v60, %v8174_v51  ;;  %v16699_v59 = vadd.f32 %v16406_v60, %v8175_v27  ;;  %v16702_v39 = vadd.f32 %v16406_v60, %v8176_v34  ;;  %v16705_v41 = vadd.f32 %v16406_v60, %v8177_v15 }
 0x66c   :  { %v8522_v10 = vadd.f32 %v8521_v32, %v8454_v17  ;;  %v16708_v1 = vadd.f32 %v16406_v60, %v8178_v36  ;;  %v16711_v20 = vadd.f32 %v16406_v60, %v8179_v31  ;;  %v16714_v29 = vadd.f32 %v16406_v60, %v8180_v30 }
 0x66d   :  { %v16717_v51 = vadd.f32 %v16406_v60, %v8181_v2  ;;  %v16720_v27 = vadd.f32 %v16406_v60, %v8182_v3  ;;  %v16723_v34 = vadd.f32 %v16406_v60, %v8183_v16  ;;  %vm8329_vm10 = vcmp.ge.f32.partialorder %v16446_v6, 0.0 }
 0x66e   :  { %v8523_v36 = vadd.f32 %v8522_v10, %v16580_v54  ;;  %v16728_v15 = vadd.f32 %v16406_v60, %v8184_v35  ;;  %v16731_v31 = vadd.f32 %v16406_v60, %v8185_v44  ;;  %v8394_v17 = vmul.f32 0.1, %v16449_v50 }
 0x66f   :  { %v8456_v3 = vsel %vm8328_vm8, %v16443_v19, %v16551_v8  ;;  %vm8330_vm14 = vcmp.ge.f32.partialorder %v16449_v50, 0.0  ;;  %v8395_v30 = vmul.f32 0.1, %v16452_v33  ;;  %v8457_v54 = vsel %vm8329_vm10, %v16446_v6, %v16554_v46 }
 0x670   :  { %v8524_v16 = vadd.f32 %v8523_v36, %v8456_v3  ;;  %vm8331_vm1 = vcmp.ge.f32.partialorder %v16452_v33, 0.0  ;;  %v8396_v60 = vmul.f32 0.1, %v16455_v57  ;;  %v8458_v44 = vsel %vm8330_vm14, %v16449_v50, %v8394_v17 }
 0x671   :  { %vm8332_vm9 = vcmp.ge.f32.partialorder %v16455_v57, 0.0  ;;  %v8397_v19 = vmul.f32 0.1, %v16458_v38  ;;  %v8459_v8 = vsel %vm8331_vm1, %v16452_v33, %v8395_v30  ;;  %vm8333_vm3 = vcmp.ge.f32.partialorder %v16458_v38, 0.0 }
 0x672   :  { %v8525_v35 = vadd.f32 %v8524_v16, %v8457_v54  ;;  %v8398_v21 = vmul.f32 0.1, %v16461_v23  ;;  %v8460_v6 = vsel %vm8332_vm9, %v16455_v57, %v8396_v60  ;;  %vm8334_vm2 = vcmp.ge.f32.partialorder %v16461_v23, 0.0 }
 0x673   :  { %v8399_v61 = vmul.f32 0.1, %v16464_v9  ;;  %v8461_v50 = vsel %vm8333_vm3, %v16458_v38, %v8397_v19  ;;  %vm8335_vm4 = vcmp.ge.f32.partialorder %v16464_v9, 0.0  ;;  %v8400_v32 = vmul.f32 0.1, %v16467_v0  ;;  %v18230_v19 = vld [vmem:[#allocation39_spill] sm:$0xff] }
 0x674   :  { %v8526_v2 = vadd.f32 %v8525_v35, %v8458_v44  ;;  %v8462_v33 = vsel %vm8334_vm2, %v16461_v23, %v8398_v21  ;;  %vm8336_vm15 = vcmp.ge.f32.partialorder %v16467_v0, 0.0  ;;  %v8401_v36 = vmul.f32 0.1, %v16470_v14  ;;  %v18228_v44 = vld [vmem:[#allocation9_spill] sm:$0xff] }
 0x675   :  { %v8463_v57 = vsel %vm8335_vm4, %v16464_v9, %v8399_v61  ;;  %vm8337_vm0 = vcmp.ge.f32.partialorder %v16470_v14, 0.0  ;;  %v8402_v3 = vmul.f32 0.1, %v16473_v11  ;;  %v8464_v38 = vsel %vm8336_vm15, %v16467_v0, %v8400_v32 }
 0x676   :  { %v8527_v53 = vadd.f32 %v8526_v2, %v8459_v8  ;;  %vm8338_vm13 = vcmp.ge.f32.partialorder %v16473_v11, 0.0  ;;  %v8403_v30 = vmul.f32 0.1, %v16476_v55  ;;  %v8465_v23 = vsel %vm8337_vm0, %v16470_v14, %v8401_v36  ;;  %v18229_v14 = vld [vmem:[#allocation41_spill] sm:$0xff] }
 0x677   :  { %vm8339_vm5 = vcmp.ge.f32.partialorder %v16476_v55, 0.0  ;;  %vm8340_vm11 = vcmp.ge.f32.partialorder %v16479_v5, 0.0  ;;  %vm8341_vm7 = vcmp.ge.f32.partialorder %v16482_v7, 0.0  ;;  %v8404_v54 = vmul.f32 0.1, %v16479_v5 }
 0x678   :  { %v8528_v46 = vadd.f32 %v8527_v53, %v8460_v6  ;;  %v8466_v35 = vsel %vm8338_vm13, %v16473_v11, %v8402_v3  ;;  %v8350_v0 = vmul.f32 0.1, %v16633_v28  ;;  %v8351_v60 = vmul.f32 0.1, %v16637_v42  ;;  %v18231_v11 = vld [vmem:[#allocation59_spill] sm:$0xff] }
 0x679   :  { %vm8342_vm6 = vcmp.ge.f32.partialorder %v18228_v44, 0.0  ;;  %vm8286_vm12 = vcmp.ge.f32.partialorder %v16633_v28, 0.0  ;;  %vm8287_vm8 = vcmp.ge.f32.partialorder %v16637_v42, 0.0  ;;  %vm8343_vm10 = vcmp.ge.f32.partialorder %v18229_v14, 0.0  ;;  %v8558_v3 = vld [vmem:[%s17069_s2 + $0x18] sm:$0xff] }
 0x67a   :  { %v8529_v22 = vadd.f32 %v8528_v46, %v8461_v50  ;;  %vm8344_vm14 = vcmp.ge.f32.partialorder %v18230_v19, 0.0  ;;  %v8405_v8 = vmul.f32 0.1, %v16482_v7  ;;  %v8467_v53 = vsel %vm8339_vm5, %v16476_v55, %v8403_v30  ;;  %v8555_v55 = vld [vmem:[%s17069_s2] sm:$0xff] }
 0x67b   :  { %vm8345_vm1 = vcmp.ge.f32.partialorder %v18231_v11, 0.0  ;;  %v8406_v21 = vmul.f32 0.1, %v18228_v44  ;;  %v8407_v6 = vmul.f32 0.1, %v18229_v14  ;;  %v8468_v61 = vsel %vm8340_vm11, %v16479_v5, %v8404_v54  ;;  %v8557_v5 = vld [vmem:[%s17069_s2 + $0x10] sm:$0xff] }
 0x67c   :  { %v8530_v10 = vadd.f32 %v8529_v22, %v8462_v33  ;;  %v8352_v50 = vmul.f32 0.1, %v16641_v40  ;;  %v8414_v22 = vsel %vm8286_vm12, %v16633_v28, %v8350_v0  ;;  %v8415_v32 = vsel %vm8287_vm8, %v16637_v42, %v8351_v60  ;;  %v8556_v33 = vld [vmem:[%s17069_s2 + $0x8] sm:$0xff] }
 0x67d   :  { %v8408_v36 = vmul.f32 0.1, %v18230_v19  ;;  %vm8288_vm3 = vcmp.ge.f32.partialorder %v16641_v40, 0.0  ;;  %v8409_v28 = vmul.f32 0.1, %v18231_v11  ;;  %v8469_v42 = vsel %vm8341_vm7, %v16482_v7, %v8405_v8 }
 0x67e   :  { %v8531_v17 = vadd.f32 %v8530_v10, %v8463_v57  ;;  %v18232_v10 = vld [vmem:[#allocation45_spill] sm:$0xff]  ;;  %vm8289_vm2 = vcmp.ge.f32.partialorder %v16645_v12, 0.0  ;;  %v10478_v30 = vpack.c.bf16 %v8556_v33, %v8555_v55  ;;  %v8354_v7 = vmul.f32 0.1, %v16648_v37 }
 0x67f   :  { %vm8346_vm9 = vcmp.ge.f32.partialorder %v18232_v10, 0.0  ;;  %v8416_v54 = vsel %vm8288_vm3, %v16641_v40, %v8352_v50  ;;  %vm8290_vm4 = vcmp.ge.f32.partialorder %v16648_v37, 0.0  ;;  %v8355_v8 = vmul.f32 0.1, %v16651_v58  ;;  %v8559_v40 = vld [vmem:[%s17069_s2 + $0x20] sm:$0xff] }
 0x680   :  { %v8532_v16 = vadd.f32 %v8531_v17, %v8464_v38  ;;  %v8353_v17 = vmul.f32 0.1, %v16645_v12  ;;  %vm8291_vm0 = vcmp.ge.f32.partialorder %v16651_v58, 0.0  ;;  %vm11340_vm13 = vmmov 0  }
 0x681   :  { %v8356_v50 = vmul.f32 0.1, %v16654_v43  ;;  %vm8292_vm5 = vcmp.ge.f32.partialorder %v16654_v43, 0.0  ;;  %vm8293_vm7 = vcmp.ge.f32.partialorder %v16657_v26, 0.0  ;;  %vm8295_vm8 = vcmp.ge.f32.partialorder %v16663_v24, 0.0 }
 0x682   :  { %v8533_v9 = vadd.f32 %v8532_v16, %v8465_v23  ;;  %v8478_v16 = vadd.f32 %v8415_v32, %v8414_v22  ;;  %v8470_v23 = vsel %vm8342_vm6, %v18228_v44, %v8406_v21  ;;  %v8417_v44 = vsel %vm8289_vm2, %v16645_v12, %v8353_v17  ;;  %v18234_v17 = vld [vmem:[#allocation13_spill] sm:$0xff] }
 0x683   :  { %v8410_v12 = vmul.f32 0.1, %v18232_v10  ;;  %v8418_v22 = vsel %vm8290_vm4, %v16648_v37, %v8354_v7  ;;  %v8561_v37 = vld [vmem:[%s17069_s2 + $0x30] sm:$0xff]  ;;  %vm8348_vm11 = vcmp.ge.f32.partialorder %v18234_v17, 0.0  ;;  %vm8294_vm6 = vcmp.ge.f32.partialorder %v16660_v4, 0.0  ;;  %v18235_v7 = vld [vmem:[#allocation28_spill] sm:$0xff] }
 0x684   :  { %v8534_v2 = vadd.f32 %v8533_v9, %v8466_v35  ;;  %v8471_v9 = vsel %vm8343_vm10, %v18229_v14, %v8407_v6  ;;  %v11339_v35 = vmov 0.0|0.0   ;;  %v8479_v60 = vadd.f32 %v8478_v16, %v8416_v54  ;;  %v8560_v14 = vld [vmem:[%s17069_s2 + $0x28] sm:$0xff] }
 0x685   :  { %10477 = vmatprep.subr.bf16.mxu0 %v11339_v35  ;;  %v10484_v33 = vpack.c.bf16 %v8560_v14, %v8559_v40  ;;  %v8420_v16 = vsel %vm8292_vm5, %v16654_v43, %v8356_v50  ;;  %v8413_v54 = vmul.f32 0.1, %v18235_v7  ;;  %v8563_v43 = vld [vmem:[%s17069_s2 + $0x40] sm:$0xff]  ;;  %vm8349_vm12 = vcmp.ge.f32.partialorder %v18235_v7, 0.0 }
 0x686   :  { %v8535_v46 = vadd.f32 %v8534_v2, %v8467_v53  ;;  %10479 = vmatpush3.bf16.msra.mxu0 %v10478_v30  ;;  %v10481_v2 = vpack.c.bf16 %v8558_v3, %v8557_v5  ;;  %v18233_v53 = vld [vmem:[#allocation6_spill] sm:$0xff]  ;;  %v8480_v6 = vadd.f32 %v8479_v60, %v8417_v44  ;;  %v8473_v5 = vsel %vm8345_vm1, %v18231_v11, %v8409_v28 }
 0x687   :  { %10480 = vmatprep.subr.bf16.mxu0 %v11339_v35  ;;  %vm8347_vm15 = vcmp.ge.f32.partialorder %v18233_v53, 0.0  ;;  %v8412_v28 = vmul.f32 0.1, %v18234_v17  ;;  %v8360_v40 = vmul.f32 0.1, %v16666_v52  ;;  %vm8296_vm10 = vcmp.ge.f32.partialorder %v16666_v52, 0.0 }
 0x688   :  { %v8536_v57 = vadd.f32 %v8535_v46, %v8468_v61  ;;  %v11341_v46 = vmov 0.0   ;;  %v8472_v61 = vsel %vm8344_vm14, %v18230_v19, %v8408_v36  ;;  %v8481_v55 = vadd.f32 %v8480_v6, %v8418_v22  ;;  %v8565_v22 = vld [vmem:[%s17069_s2 + $0x50] sm:$0xff] }
 0x689   :  { %10439 = vmatprep.mubr.msk.f32.mxu0 %vm11340_vm13, %v11341_v46  ;;  %v8357_v19 = vmul.f32 0.1, %v16657_v26  ;;  %v8419_v36 = vsel %vm8291_vm0, %v16651_v58, %v8355_v8  ;;  %v8474_v58 = vsel %vm8346_vm9, %v18232_v10, %v8410_v12  ;;  %v8359_v10 = vmul.f32 0.1, %v16663_v24 }
 0x68a   :  { %v8537_v38 = vadd.f32 %v8536_v57, %v8469_v42  ;;  %10482 = vmatpush3.bf16.msra.mxu0 %v10481_v2  ;;  %v8411_v57 = vmul.f32 0.1, %v18233_v53  ;;  %v8562_v42 = vld [vmem:[%s17069_s2 + $0x38] sm:$0xff]  ;;  %v8482_v11 = vadd.f32 %v8481_v55, %v8419_v36  ;;  %v8564_v2 = vld [vmem:[%s17069_s2 + $0x48] sm:$0xff]  ;;  %v8477_v12 = vsel %vm8349_vm12, %v18235_v7, %v8413_v54 }
 0x68b   :  { %10483 = vmatprep.subr.bf16.mxu0 %v11339_v35  ;;  %v8421_v60 = vsel %vm8293_vm7, %v16657_v26, %v8357_v19  ;;  %v8476_v26 = vsel %vm8348_vm11, %v18234_v17, %v8412_v28  ;;  %v10490_v6 = vpack.c.bf16 %v8564_v2, %v8563_v43  ;;  %v8423_v50 = vsel %vm8295_vm8, %v16663_v24, %v8359_v10 }
 0x68c   :  { %v8538_v0 = vadd.f32 %v8537_v38, %v8470_v23  ;;  %v8358_v38 = vmul.f32 0.1, %v16660_v4  ;;  %v8483_v23 = vadd.f32 %v8482_v11, %v8420_v16  ;;  %vm8297_vm14 = vcmp.ge.f32.partialorder %v16669_v48, 0.0  ;;  %v8570_v16 = vld [vmem:[%s17069_s2 + $0x78] sm:$0xff] }
 0x68d   :  { %vm8298_vm1 = vcmp.ge.f32.partialorder %v16672_v63, 0.0  ;;  %v8363_v19 = vmul.f32 0.1, %v16675_v18  ;;  %vm8299_vm9 = vcmp.ge.f32.partialorder %v16675_v18, 0.0  ;;  %v8364_v17 = vmul.f32 0.1, %v16678_v49 }
 0x68e   :  { %v8539_v21 = vadd.f32 %v8538_v0, %v8471_v9  ;;  %10485 = vmatpush3.bf16.msra.mxu0 %v10484_v33  ;;  %v10487_v9 = vpack.c.bf16 %v8562_v42, %v8561_v37  ;;  %v8475_v0 = vsel %vm8347_vm15, %v18233_v53, %v8411_v57  ;;  %v8484_v44 = vadd.f32 %v8483_v23, %v8421_v60  ;;  %v8567_v37 = vld [vmem:[%s17069_s2 + $0x60] sm:$0xff]  ;;  %v8568_v42 = vld [vmem:[%s17069_s2 + $0x68] sm:$0xff] }
 0x68f   :  { %10486 = vmatprep.subr.bf16.mxu0 %v11339_v35  ;;  %v8422_v14 = vsel %vm8294_vm6, %v16660_v4, %v8358_v38  ;;  %v8566_v4 = vld [vmem:[%s17069_s2 + $0x58] sm:$0xff]  ;;  %v8362_v33 = vmul.f32 0.1, %v16672_v63  ;;  %v8424_v57 = vsel %vm8296_vm10, %v16666_v52, %v8360_v40  ;;  %vm8300_vm3 = vcmp.ge.f32.partialorder %v16678_v49, 0.0  ;;  %v8569_v38 = vld [vmem:[%s17069_s2 + $0x70] sm:$0xff] }
 0x690   :  { %v8540_v32 = vadd.f32 %v8539_v21, %v8472_v61  ;;  %v8485_v21 = vadd.f32 %v8484_v44, %v8422_v14  ;;  %v8361_v61 = vmul.f32 0.1, %v16669_v48  ;;  %v10496_v11 = vpack.c.bf16 %v8568_v42, %v8567_v37 }
 0x691   :  { %v8365_v28 = vmul.f32 0.1, %v16681_v56  ;;  %vm8301_vm2 = vcmp.ge.f32.partialorder %v16681_v56, 0.0  ;;  %v8428_v23 = vsel %vm8300_vm3, %v16678_v49, %v8364_v17  ;;  %vm8302_vm4 = vcmp.ge.f32.partialorder %v16684_v45, 0.0 }
 0x692   :  { %v8541_v3 = vadd.f32 %v8540_v32, %v8473_v5  ;;  %10488 = vmatpush3.bf16.msra.mxu0 %v10487_v9  ;;  %v8486_v55 = vadd.f32 %v8485_v21, %v8423_v50  ;;  %v10493_v5 = vpack.c.bf16 %v8566_v4, %v8565_v22  ;;  %v8425_v36 = vsel %vm8297_vm14, %v16669_v48, %v8361_v61 }
 0x693   :  { %10489 = vmatprep.subr.bf16.mxu0 %v11339_v35  ;;  %v10499_v9 = vpack.c.bf16 %v8570_v16, %v8569_v38  ;;  %v8367_v7 = vmul.f32 0.1, %v16687_v13  ;;  %v8429_v54 = vsel %vm8301_vm2, %v16681_v56, %v8365_v28  ;;  %vm8303_vm15 = vcmp.ge.f32.partialorder %v16687_v13, 0.0 }
 0x694   :  { %v8542_v30 = vadd.f32 %v8541_v3, %v8474_v58  ;;  %v8487_v24 = vadd.f32 %v8486_v55, %v8424_v57  ;;  %v8426_v3 = vsel %vm8298_vm1, %v16672_v63, %v8362_v33  ;;  %v8427_v58 = vsel %vm8299_vm9, %v16675_v18, %v8363_v19 }
 0x695   :  { %v8368_v10 = vmul.f32 0.1, %v16690_v62  ;;  %vm8304_vm0 = vcmp.ge.f32.partialorder %v16690_v62, 0.0  ;;  %v8369_v43 = vmul.f32 0.1, %v16693_v25  ;;  %v8431_v2 = vsel %vm8303_vm15, %v16687_v13, %v8367_v7 }
 0x696   :  { %v8543_v8 = vadd.f32 %v8542_v30, %v8475_v0  ;;  %10491 = vmatpush3.bf16.msra.mxu0 %v10490_v6  ;;  %v8488_v52 = vadd.f32 %v8487_v24, %v8425_v36  ;;  %v8366_v30 = vmul.f32 0.1, %v16684_v45  ;;  %vm8305_vm5 = vcmp.ge.f32.partialorder %v16693_v25, 0.0 }
 0x697   :  { %10492 = vmatprep.subr.bf16.mxu0 %v11339_v35  ;;  %v8432_v44 = vsel %vm8304_vm0, %v16690_v62, %v8368_v10  ;;  %vm8306_vm11 = vcmp.ge.f32.partialorder %v16696_v47, 0.0  ;;  %v8433_v40 = vsel %vm8305_vm5, %v16693_v25, %v8369_v43  ;;  %vm8307_vm7 = vcmp.ge.f32.partialorder %v16699_v59, 0.0  ;;  %v8684_v10 = vld [vmem:[%s17069_s2 + $0x90] sm:$0xff] }
 0x698   :  { %v8544_v53 = vadd.f32 %v8543_v8, %v8476_v26  ;;  %v8489_v48 = vadd.f32 %v8488_v52, %v8426_v3  ;;  %v8430_v60 = vsel %vm8302_vm4, %v16684_v45, %v8366_v30  ;;  %v8370_v8 = vmul.f32 0.1, %v16696_v47 }
 0x699   :  { %v8371_v26 = vmul.f32 0.1, %v16699_v59  ;;  %v8372_v13 = vmul.f32 0.1, %v16702_v39  ;;  %vm8308_vm6 = vcmp.ge.f32.partialorder %v16702_v39, 0.0  ;;  %vm8309_vm12 = vcmp.ge.f32.partialorder %v16705_v41, 0.0 }
 0x69a   :  { %v16903_v32 = vadd.f32 %v8544_v53, %v8477_v12  ;;  %10494 = vmatpush3.bf16.msra.mxu0 %v10493_v5  ;;  %v8490_v63 = vadd.f32 %v8489_v48, %v8427_v58  ;;  %v8434_v53 = vsel %vm8306_vm11, %v16696_v47, %v8370_v8  ;;  %v8373_v6 = vmul.f32 0.1, %v16705_v41  ;;  %v8688_v8 = vld [vmem:[%s17069_s2 + $0xb0] sm:$0xff] }
 0x69b   :  { %10495 = vmatprep.subr.bf16.mxu0 %v11339_v35  ;;  %v8435_v62 = vsel %vm8307_vm7, %v16699_v59, %v8371_v26  ;;  %v8374_v61 = vmul.f32 0.1, %v16708_v1  ;;  %v8436_v25 = vsel %vm8308_vm6, %v16702_v39, %v8372_v13  ;;  %vm8310_vm8 = vcmp.ge.f32.partialorder %v16708_v1, 0.0  ;;  %v8690_v26 = vld [vmem:[%s17069_s2 + $0xc0] sm:$0xff]  ;;  %v8692_v13 = vld [vmem:[%s17069_s2 + $0xd0] sm:$0xff] }
 0x69c   :  { %v8491_v18 = vadd.f32 %v8490_v63, %v8428_v23  ;;  %v8375_v22 = vmul.f32 0.1, %v16711_v20  ;;  %v8437_v47 = vsel %vm8309_vm12, %v16705_v41, %v8373_v6  ;;  %vm8311_vm10 = vcmp.ge.f32.partialorder %v16711_v20, 0.0  ;;  %v8694_v6 = vld [vmem:[%s17069_s2 + $0xe0] sm:$0xff] }
 0x69d   :  { %v8376_v55 = vmul.f32 0.1, %v16714_v29  ;;  %v8438_v59 = vsel %vm8310_vm8, %v16708_v1, %v8374_v61  ;;  %vm8312_vm14 = vcmp.ge.f32.partialorder %v16714_v29, 0.0  ;;  %v8377_v57 = vmul.f32 0.1, %v16717_v51  ;;  %v8696_v61 = vld [vmem:[%s17069_s2 + $0xf0] sm:$0xff] }
 0x69e   :  { %10497 = vmatpush3.bf16.msra.mxu0 %v10496_v11  ;;  %v8492_v0 = vadd.f32 %v8491_v18, %v8429_v54  ;;  %v8439_v39 = vsel %vm8311_vm10, %v16711_v20, %v8375_v22  ;;  %vm8313_vm1 = vcmp.ge.f32.partialorder %v16717_v51, 0.0  ;;  %v8378_v5 = vmul.f32 0.1, %v16720_v27 }
 0x69f   :  { %10498 = vmatprep.subr.bf16.mxu0 %v11339_v35  ;;  %v8440_v41 = vsel %vm8312_vm14, %v16714_v29, %v8376_v55  ;;  %v8546_v19 = vrot.slane %v16903_v32, 4  ;;  %vm8314_vm9 = vcmp.ge.f32.partialorder %v16720_v27, 0.0  ;;  %v8379_v1 = vmul.f32 0.1, %v16723_v34 }
 0x6a0   :  { %v8493_v49 = vadd.f32 %v8492_v0, %v8430_v60  ;;  %v8441_v37 = vsel %vm8313_vm1, %v16717_v51, %v8377_v57  ;;  %vm8315_vm3 = vcmp.ge.f32.partialorder %v16723_v34, 0.0  ;;  %v8380_v20 = vmul.f32 0.1, %v16728_v15 }
 0x6a1   :  { %v8442_v52 = vsel %vm8314_vm9, %v16720_v27, %v8378_v5  ;;  %v8547_v17 = vadd.f32 %v8546_v19, %v16903_v32  ;;  %vm8316_vm2 = vcmp.ge.f32.partialorder %v16728_v15, 0.0  ;;  %v8381_v3 = vmul.f32 0.1, %v16731_v31 }
 0x6a2   :  { %10500 = vmatpush3.bf16.msra.mxu0 %v10499_v9  ;;  %v8494_v56 = vadd.f32 %v8493_v49, %v8431_v2  ;;  %v8443_v48 = vsel %vm8315_vm3, %v16723_v34, %v8379_v1  ;;  %vm8317_vm4 = vcmp.ge.f32.partialorder %v16731_v31, 0.0  ;;  %v8444_v51 = vsel %vm8316_vm2, %v16728_v15, %v8380_v20  ;;  %v8682_v15 = vld [vmem:[%s17069_s2 + $0x80] sm:$0xff]  ;;  %v8685_v49 = vld [vmem:[%s17069_s2 + $0x98] sm:$0xff]  ;;  %v8687_v2 = vld [vmem:[%s17069_s2 + $0xa8] sm:$0xff] }
 0x6a3   :  { %10501 = vmatprep.subr.bf16.mxu0 %v11339_v35  ;;  %v8548_v28 = vrot.slane %v8547_v17, 2  ;;  %v8445_v38 = vsel %vm8317_vm4, %v16731_v31, %v8381_v3  ;;  %vm18236_vm15 = vcmask 1040384   ;;  %v8683_v31 = vld [vmem:[%s17069_s2 + $0x88] sm:$0xff]  ;;  %v10505_v43 = vpack.c.bf16 %v8685_v49, %v8684_v10 }
 0x6a4   :  { %v8495_v45 = vadd.f32 %v8494_v56, %v8432_v44  ;;  %v10502_v60 = vpack.c.bf16 %v8683_v31, %v8682_v15  ;;  %v8689_v44 = vld [vmem:[%s17069_s2 + $0xb8] sm:$0xff] }
 0x6a5   :  { %v8549_v63 = vadd.f32 %v8548_v28, %v8547_v17 }
 0x6a6   :  { %v8496_v14 = vadd.f32 %v8495_v45, %v8433_v40  ;;  %v10511_v45 = vpack.c.bf16 %v8689_v44, %v8688_v8  ;;  %v8691_v40 = vld [vmem:[%s17069_s2 + $0xc8] sm:$0xff] }
 0x6a7   :  { %v8550_v23 = vrot.slane %v8549_v63, 1 }
 0x6a8   :  { %v8497_v21 = vadd.f32 %v8496_v14, %v8434_v53  ;;  %v10514_v14 = vpack.c.bf16 %v8691_v40, %v8690_v26  ;;  %v8693_v53 = vld [vmem:[%s17069_s2 + $0xd8] sm:$0xff] }
 0x6a9   :  { %v8551_v7 = vadd.f32 %v8550_v23, %v8549_v63 }
 0x6aa   :  { %v8498_v12 = vadd.f32 %v8497_v21, %v8435_v62  ;;  %v10517_v21 = vpack.c.bf16 %v8693_v53, %v8692_v13  ;;  %v8695_v62 = vld [vmem:[%s17069_s2 + $0xe8] sm:$0xff] }
 0x6ac   :  { %v8499_v50 = vadd.f32 %v8498_v12, %v8436_v25  ;;  %v10520_v12 = vpack.c.bf16 %v8695_v62, %v8694_v6  ;;  %v8697_v25 = vld [vmem:[%s17069_s2 + $0xf8] sm:$0xff] }
 0x6ae   :  { %v8500_v4 = vadd.f32 %v8499_v50, %v8437_v47  ;;  %v10523_v50 = vpack.c.bf16 %v8697_v25, %v8696_v61 }
 0x6b0   :  { %v8501_v33 = vadd.f32 %v8500_v4, %v8438_v59 }
 0x6b2   :  { %v8502_v24 = vadd.f32 %v8501_v33, %v8439_v39 }
 0x6b4   :  { %v8503_v36 = vadd.f32 %v8502_v24, %v8440_v41 }
 0x6b6   :  { %v8504_v42 = vadd.f32 %v8503_v36, %v8441_v37 }
 0x6b8   :  { %v8505_v29 = vadd.f32 %v8504_v42, %v8442_v52 }
 0x6ba   :  { %v8506_v11 = vadd.f32 %v8505_v29, %v8443_v48 }
 0x6bc   :  { %v8507_v58 = vadd.f32 %v8506_v11, %v8444_v51  ;;  %v8662_v11 = vld [vmem:[%s17070_s3 + $0x4] sm:$0x1] }
 0x6be   :  { %v8508_v16 = vadd.f32 %v8507_v58, %v8445_v38  ;;  %v8671_v58 = vld [vmem:[%s17070_s3 + $0x5] sm:$0x1]  ;;  %v18237_v38 = vld [vmem:[#allocation31_spill] sm:$0xff] }
 0x6c0   :  { %v8509_v27 = vrot.slane %v8508_v16, 4 }
 0x6c2   :  { %v8510_v32 = vadd.f32 %v8509_v27, %v8508_v16 }
 0x6c4   :  { %v8511_v30 = vrot.slane %v8510_v32, 2 }
 0x6c6   :  { %v8512_v18 = vadd.f32 %v8511_v30, %v8510_v32 }
 0x6c8   :  { %v8513_v9 = vrot.slane %v8512_v18, 1 }
 0x6ca   :  { %v8514_v54 = vadd.f32 %v8513_v9, %v8512_v18 }
 0x6cc   :  { %v8553_v34 = vsel %vm18236_vm15, %v8514_v54, %v8551_v7  ;;  %v9108_v7 = vld [vmem:[%s17070_s3 + $0x6] ss:$0 sm:$0xff] }
 0x6cd   :  { %v8554_v0 = vmul.f32 0.00390625, %v8553_v34 }
 0x6cf   :  { %10440 = vmatmul.mubr.f32.vlgmr.msra.gmra.mrb[180].mxu0 %v8554_v0 }
 0x6d0   :  { %10474 = vmatprep.mubr.msk.f32.mxu0 %vm11340_vm13, %v11341_v46  ;;  %10503 = vmatpush3.bf16.msra.mxu0 %v10502_v60  ;;  %v8686_v46 = vld [vmem:[%s17069_s2 + $0xa0] sm:$0xff]  ;;  %vm8641_vm13 = vcmask 1041408  }
 0x6d1   :  { %10504 = vmatprep.subr.bf16.mxu0 %v11339_v35  ;;  %v10508_v56 = vpack.c.bf16 %v8687_v2, %v8686_v46 }
 0x6d4   :  { %10506 = vmatpush3.bf16.msra.mxu0 %v10505_v43 }
 0x6d5   :  { %10507 = vmatprep.subr.bf16.mxu0 %v11339_v35 }
 0x6d8   :  { %10509 = vmatpush3.bf16.msra.mxu0 %v10508_v56 }
 0x6d9   :  { %10510 = vmatprep.subr.bf16.mxu0 %v11339_v35 }
 0x6dc   :  { %10512 = vmatpush3.bf16.msra.mxu0 %v10511_v45 }
 0x6dd   :  { %10513 = vmatprep.subr.bf16.mxu0 %v11339_v35 }
 0x6e0   :  { %10515 = vmatpush3.bf16.msra.mxu0 %v10514_v14 }
 0x6e1   :  { %10516 = vmatprep.subr.bf16.mxu0 %v11339_v35 }
 0x6e4   :  { %10518 = vmatpush3.bf16.msra.mxu0 %v10517_v21 }
 0x6e5   :  { %10519 = vmatprep.subr.bf16.mxu0 %v11339_v35 }
 0x6e8   :  { %10521 = vmatpush3.bf16.msra.mxu0 %v10520_v12 }
 0x6e9   :  { %10522 = vmatprep.subr.bf16.mxu0 %v11339_v35 }
 0x6ec   :  { %10524 = vmatpush3.bf16.msra.mxu0 %v10523_v50 }
 0x7a2   :  { %v8637_v22 = vpop.f32.mrb[180].mxu0 }
 0x7a3   :  { %v8642_v47 = vsel %vm8641_vm13, %v8637_v22, 0.0  ;;  %v8650_v4 = vmul.f32 %v8637_v22, %v8637_v22  ;;  %v10441_v55 = vpop.f32.mrb[181].mxu0 }
 0x7a4   :  { %v8643_v59 = vrot.slane %v8642_v47, 4 }
 0x7a5   :  { %v8651_v33 = vsel %vm8641_vm13, %v8650_v4, 0.0 }
 0x7a6   :  { %v8644_v57 = vadd.f32 %v8643_v59, %v8642_v47  ;;  %v8652_v39 = vrot.slane %v8651_v33, 4 }
 0x7a8   :  { %v8645_v24 = vrot.slane %v8644_v57, 2  ;;  %v8653_v5 = vadd.f32 %v8652_v39, %v8651_v33 }
 0x7aa   :  { %v8646_v41 = vadd.f32 %v8645_v24, %v8644_v57  ;;  %v8654_v19 = vrot.slane %v8653_v5, 2 }
 0x7ac   :  { %v8647_v36 = vrot.slane %v8646_v41, 1  ;;  %v8655_v1 = vadd.f32 %v8654_v19, %v8653_v5 }
 0x7ae   :  { %v8648_v37 = vadd.f32 %v8647_v36, %v8646_v41  ;;  %v8656_v42 = vrot.slane %v8655_v1, 1 }
 0x7b0   :  { %v8649_v20 = vmul.f32 0.5, %v8648_v37  ;;  %v8657_v35 = vadd.f32 %v8656_v42, %v8655_v1 }
 0x7b2   :  { %v8658_v52 = vmul.f32 0.5, %v8657_v35  ;;  %v8659_v17 = vmul.f32 %v8649_v20, %v8649_v20 }
 0x7b4   :  { %v8660_v29 = vsub.f32 %v8658_v52, %v8659_v17 }
 0x7b6   :  { %v8661_v3 = vmax.f32 %v8660_v29, 0.0 }
 0x7b8   :  { %v8663_v48 = vadd.f32 1e-05, %v8661_v3 }
 0x7ba   :  { %11210 = vrsqrt.f32 %v8663_v48 }
 0x7c4   :  { %v11211_v51 = vpop.eup %11210 }
 0x7c5   :  { %v8665_v28 = vmul.f32 %v11211_v51, %v8662_v11 }
 0x7c7   :  { %v8669_v16 = vrot.slane %v8665_v28, %v18237_v38  ;;  %v8672_v27 = vmul.f32 %v8665_v28, %v8649_v20 }
 0x7c9   :  { %v8673_v63 = vsub.f32 %v8671_v58, %v8672_v27  ;;  %v8670_v32 = vmul.f32 %v8669_v16, %v8637_v22 }
 0x7cb   :  { %v8677_v30 = vrot.slane %v8673_v63, %v18237_v38 }
 0x7cd   :  { %v8678_v23 = vadd.f32 %v8677_v30, %v8670_v32 }
 0x7cf   :  { %vm8679_vm0 = vcmp.ge.f32.partialorder %v8678_v23, 0.0  ;;  %v8680_v18 = vmul.f32 0.1, %v8678_v23 }
 0x7d1   :  { %v8681_v9 = vsel %vm8679_vm0, %v8678_v23, %v8680_v18 }
 0x7d2   :  { %10475 = vmatmul.mubr.f32.vlgmr.msra.gmra.mrb[182].mxu0 %v8681_v9 }
 0x8a5   :  { %v8769_v54 = vpop.f32.mrb[182].mxu0 }
 0x8a6   :  { %v8770_v34 = vadd.f32 %v9108_v7, %v8769_v54  ;;  %v10476_v0 = vpop.f32.mrb[183].mxu0 }
 0x8a8   :  { %8773 = vst [vmem:[#allocation3] sm:$0x3] %v8770_v34 }
 0x8a9   :  { %11325 = shalt.err (!%p11322_p4)
}
 0x8aa   :  { %s11326_s27 = scalar_lea.hbm %s17071_s4, 32 }
 0x8ab   :  { %p11327_p5 = scmp.ne.s32.totalorder %s17071_s4, %s11326_s27  ;;  %p11330_p6 = scmp.lt.u32.totalorder %s11326_s27, %s17071_s4 }
 0x8ad   :  { %p11332_p7 = pnand %p11330_p6, %p11327_p5 }
 0x8af   :  { %11335 = shalt.err (!%p11332_p7)
}
 0x8b0   :  { %8783 = dma.vmem_to_hbm [thread:$0]  %s8781_s23, 32, %s17071_s4, [#allocation4]  }
 0x8b1   :  { %11336 = dma.done.wait [#allocation4], 32  }
 0x8b2   :  { %11337 = vsyncadd [#allocation4], 4294967264 }
 0x8b3   :  { %8787 = vsyncpa [#allocation4], 1 }

</bundles_post_ra>
